<compile_context>
chip_gen: v5e
topology: v5e:2x2
jax: 0.10.0
libtpu: 0.0.40
codegen_flags: <defaults>
</compile_context>

<pallas_src>
import functools
import math

import jax
import jax.numpy as jnp
from jax.experimental import pallas as pl
from jax.experimental.pallas import tpu as pltpu

BN_EPS = 1e-5
EXPANSION = 1  # BasicBlock
LANE = 128
SUBLANE = 8


def _round_up(x, m):
    return (x + m - 1) // m * m


# -----------------------------------------------------------------------------
# Tiled fused matmul + BN affine (+ residual) (+ ReLU) kernels
# -----------------------------------------------------------------------------
def _mm_bn_kernel(x_ref, w_ref, s_ref, b_ref, o_ref, acc_ref, *, relu):
    @pl.when(pl.program_id(2) == 0)
    def _():
        acc_ref[...] = jnp.zeros_like(acc_ref)

    acc_ref[...] += jnp.dot(x_ref[...], w_ref[...],
                            preferred_element_type=jnp.float32)

    @pl.when(pl.program_id(2) == pl.num_programs(2) - 1)
    def _():
        out = acc_ref[...] * s_ref[...] + b_ref[...]
        if relu:
            out = jnp.maximum(out, 0.0)
        o_ref[...] = out.astype(o_ref.dtype)


def _mm_bn_res_kernel(x_ref, w_ref, s_ref, b_ref, r_ref, o_ref, acc_ref, *, relu):
    @pl.when(pl.program_id(2) == 0)
    def _():
        acc_ref[...] = jnp.zeros_like(acc_ref)

    acc_ref[...] += jnp.dot(x_ref[...], w_ref[...],
                            preferred_element_type=jnp.float32)

    @pl.when(pl.program_id(2) == pl.num_programs(2) - 1)
    def _():
        out = acc_ref[...] * s_ref[...] + b_ref[...]
        out = out + r_ref[...].astype(jnp.float32)
        if relu:
            out = jnp.maximum(out, 0.0)
        o_ref[...] = out.astype(o_ref.dtype)


def fused_matmul_bn(x2d, w2d, scale, bias, n_real, residual=None, relu=True):
    """[M,K] @ [Kp,Np] with fused per-channel affine (+residual) (+ReLU).

    w2d / scale / bias arrive pre-padded to (Kp, Np) / (1, Np), Kp, Np multiples
    of 128, bf16 weights.  x2d (bf16) is padded here; output sliced to
    (M, n_real) bf16.
    """
    M, K = x2d.shape
    Kp, Np = w2d.shape

    # Tile selection: lane-dense output tiles, K tiled for pipelining.
    tm = 256 if M >= 256 else _round_up(M, SUBLANE)
    Mp = _round_up(M, tm)
    tn = 256 if (Np % 256 == 0) else 128
    tk = next(t for t in (512, 384, 256, 128) if Kp % t == 0)

    xp = x2d
    if (Mp, Kp) != (M, K):
        xp = jnp.pad(x2d, ((0, Mp - M), (0, Kp - K)))

    grid = (Mp // tm, Np // tn, Kp // tk)

    in_specs = [
        pl.BlockSpec((tm, tk), lambda i, j, k: (i, k)),
        pl.BlockSpec((tk, tn), lambda i, j, k: (k, j)),
        pl.BlockSpec((1, tn), lambda i, j, k: (0, j)),
        pl.BlockSpec((1, tn), lambda i, j, k: (0, j)),
    ]
    args = [xp, w2d, scale, bias]

    if residual is None:
        kernel = functools.partial(_mm_bn_kernel, relu=relu)
    else:
        rp = residual
        if rp.shape != (Mp, Np):
            rp = jnp.pad(rp, ((0, Mp - rp.shape[0]), (0, Np - rp.shape[1])))
        in_specs.append(pl.BlockSpec((tm, tn), lambda i, j, k: (i, j)))
        args.append(rp)
        kernel = functools.partial(_mm_bn_res_kernel, relu=relu)

    flops = 2 * Mp * Np * Kp
    bytes_accessed = 2 * (Mp * Kp + Kp * Np
                          + Mp * Np * (2 if residual is not None else 1))

    out = pl.pallas_call(
        kernel,
        out_shape=jax.ShapeDtypeStruct((Mp, Np), jnp.bfloat16),
        grid_spec=pltpu.PrefetchScalarGridSpec(
            num_scalar_prefetch=0,
            grid=grid,
            in_specs=in_specs,
            out_specs=pl.BlockSpec((tm, tn), lambda i, j, k: (i, j)),
            scratch_shapes=[pltpu.VMEM((tm, tn), jnp.float32)],
        ),
        compiler_params=pltpu.CompilerParams(
            dimension_semantics=("parallel", "parallel", "arbitrary"),
            vmem_limit_bytes=32 * 1024 * 1024,
        ),
        cost_estimate=pl.CostEstimate(
            flops=flops, transcendentals=0, bytes_accessed=bytes_accessed
        ),
    )(*args)
    return out[:M, :n_real]


# -----------------------------------------------------------------------------
# Global average pool + Linear, fused (consumes NHWC directly)
# -----------------------------------------------------------------------------
def _pool_fc_kernel(x_ref, w_ref, b_ref, o_ref):
    pooled = jnp.mean(x_ref[...].astype(jnp.float32), axis=1)  # [bn, C]
    o_ref[...] = (
        jnp.dot(pooled, w_ref[...], preferred_element_type=jnp.float32)
        + b_ref[...]
    )


def pool_and_fc(x_nhwc, fc_w2d, fc_b2d):
    N, H, W, C = x_nhwc.shape
    x = x_nhwc.reshape(N, H * W, C)           # contiguous, no transpose
    ncls = fc_w2d.shape[1]
    bn = min(N, 8)
    return pl.pallas_call(
        _pool_fc_kernel,
        out_shape=jax.ShapeDtypeStruct((N, ncls), jnp.float32),
        grid=(pl.cdiv(N, bn),),
        in_specs=[
            pl.BlockSpec((bn, H * W, C), lambda i: (i, 0, 0)),
            pl.BlockSpec((C, ncls), lambda i: (0, 0)),
            pl.BlockSpec((1, ncls), lambda i: (0, 0)),
        ],
        out_specs=pl.BlockSpec((bn, ncls), lambda i: (i, 0)),
        compiler_params=pltpu.CompilerParams(
            dimension_semantics=("arbitrary",)
        ),
    )(x, fc_w2d, fc_b2d)


# -----------------------------------------------------------------------------
# Conv glue: NHWC patch extraction (plain JAX slicing, no transposes)
# -----------------------------------------------------------------------------
def _extract_patches_nhwc(x, ksize, stride, padding):
    """[N,H,W,C] -> ([N*Ho*Wo, k*k*C], Ho, Wo); K ordered (kh, kw, Cin)."""
    N, H, W, C = x.shape
    if padding:
        x = jnp.pad(x, ((0, 0), (padding, padding), (padding, padding), (0, 0)))
    Ho = (H + 2 * padding - ksize) // stride + 1
    Wo = (W + 2 * padding - ksize) // stride + 1
    if ksize == 1:
        col = x[:, 0:stride * Ho:stride, 0:stride * Wo:stride, :]
        return col.reshape(N * Ho * Wo, C), Ho, Wo
    taps = []
    for dh in range(ksize):
        for dw in range(ksize):
            taps.append(
                x[:, dh:dh + stride * Ho:stride, dw:dw + stride * Wo:stride, :]
            )
    col = jnp.stack(taps, axis=3)                      # [N, Ho, Wo, k*k, C]
    return col.reshape(N * Ho * Wo, ksize * ksize * C), Ho, Wo


def conv_bn(x_nhwc, arrs, meta, stride, relu, residual_nhwc=None):
    ksize, cout = meta["ksize"], meta["cout"]
    pad = (ksize - 1) // 2                    # 3x3 -> 1, 1x1 -> 0 (matches module)
    col, Ho, Wo = _extract_patches_nhwc(x_nhwc, ksize, stride, pad)
    res2d = None
    if residual_nhwc is not None:
        res2d = residual_nhwc.reshape(-1, cout)
    out2d = fused_matmul_bn(col, arrs["w2d"], arrs["scale"], arrs["bias"],
                            n_real=cout, residual=res2d, relu=relu)
    N = x_nhwc.shape[0]
    return out2d.reshape(N, Ho, Wo, cout)


def basic_block_forward(x, arrs, meta):
    stride = meta["stride"]
    h = conv_bn(x, arrs["conv1"], meta["conv1"], stride=stride, relu=True)
    if arrs["shortcut"] is not None:
        sc = conv_bn(x, arrs["shortcut"], meta["shortcut"], stride=stride,
                     relu=False)
    else:
        sc = x
    # conv2 + BN + residual add + ReLU fused in one Pallas kernel
    return conv_bn(h, arrs["conv2"], meta["conv2"], stride=1, relu=True,
                   residual_nhwc=sc)


# -----------------------------------------------------------------------------
# Parameter init + one-time prepacking (weights, folded BN, padding, bf16)
# -----------------------------------------------------------------------------
def _prepare_conv_bn(key, cin, cout, ksize):
    ks = jax.random.split(key, 5)
    fan_in = cin * ksize * ksize
    w = jax.random.normal(ks[0], (cout, cin, ksize, ksize), jnp.float32) * (
        1.0 / math.sqrt(fan_in))
    gamma = 1.0 + 0.1 * jax.random.normal(ks[1], (cout,), jnp.float32)
    beta = 0.1 * jax.random.normal(ks[2], (cout,), jnp.float32)
    mean = 0.1 * jax.random.normal(ks[3], (cout,), jnp.float32)
    var = 1.0 + 0.5 * jax.random.uniform(ks[4], (cout,), jnp.float32)

    # Eval-mode BN folded to scale/bias; weight prepacked [K, Cout], K ordered
    # (kh, kw, cin) to match NHWC patches; pad K & Cout to lane multiples.
    scale = gamma / jnp.sqrt(var + BN_EPS)
    bias = beta - mean * scale
    K = ksize * ksize * cin
    Kp, Np = _round_up(K, LANE), _round_up(cout, LANE)
    w2d = jnp.transpose(w, (2, 3, 1, 0)).reshape(K, cout)
    w2d = jnp.pad(w2d, ((0, Kp - K), (0, Np - cout))).astype(jnp.bfloat16)
    arrs = {
        "w2d": w2d,
        "scale": jnp.pad(scale, (0, Np - cout)).reshape(1, Np).astype(jnp.float32),
        "bias": jnp.pad(bias, (0, Np - cout)).reshape(1, Np).astype(jnp.float32),
    }
    meta = {"ksize": ksize, "cout": cout}
    return arrs, meta


def _init_basic_block(key, cin, cout, stride):
    k1, k2, k3 = jax.random.split(key, 3)
    a1, m1 = _prepare_conv_bn(k1, cin, cout, 3)
    a2, m2 = _prepare_conv_bn(k2, cout, cout * EXPANSION, 3)
    arrs = {"conv1": a1, "conv2": a2, "shortcut": None}
    meta = {"stride": stride, "conv1": m1, "conv2": m2, "shortcut": None}
    if stride != 1 or cin != cout * EXPANSION:
        a3, m3 = _prepare_conv_bn(k3, cin, cout * EXPANSION, 1)
        arrs["shortcut"] = a3
        meta["shortcut"] = m3
    return arrs, meta


def init_resnet(key, num_blocks, class_number=100):
    keys = jax.random.split(key, 6)
    stem_a, stem_m = _prepare_conv_bn(keys[0], 3, 64, 3)
    params = {"stem": stem_a}
    cfg = {"stem": stem_m}
    in_ch = 64
    layer_arrs, layer_meta = [], []
    for li, (nb, cout, stride) in enumerate(
            zip(num_blocks, [64, 128, 256, 512], [1, 2, 2, 2])):
        lkeys = jax.random.split(keys[1 + li], nb)
        strides = [stride] + [1] * (nb - 1)
        b_arrs, b_meta = [], []
        for s, bk in zip(strides, lkeys):
            a, m = _init_basic_block(bk, in_ch, cout, s)
            b_arrs.append(a)
            b_meta.append(m)
            in_ch = cout * EXPANSION
        layer_arrs.append(b_arrs)
        layer_meta.append(b_meta)
    params["layers"] = layer_arrs
    cfg["layers"] = layer_meta
    kfc1, kfc2 = jax.random.split(keys[5])
    fc_w = jax.random.normal(kfc1, (class_number, 512 * EXPANSION),
                             jnp.float32) * (1.0 / math.sqrt(512 * EXPANSION))
    fc_b = 0.1 * jax.random.normal(kfc2, (class_number,), jnp.float32)
    params["fc_w2d"] = fc_w.T                       # [C, num_classes]
    params["fc_b2d"] = fc_b.reshape(1, class_number)
    return params, cfg


def make_forward(cfg):
    """cfg is static (Python ints) and captured in the closure; params are arrays."""
    def forward(params, x_nchw):
        # One NCHW -> NHWC transpose at entry; bf16 activations from here on.
        x = jnp.transpose(x_nchw, (0, 2, 3, 1)).astype(jnp.bfloat16)
        out = conv_bn(x, params["stem"], cfg["stem"], stride=1, relu=True)
        for l_arrs, l_meta in zip(params["layers"], cfg["layers"]):
            for b_arrs, b_meta in zip(l_arrs, l_meta):
                out = basic_block_forward(out, b_arrs, b_meta)
        return pool_and_fc(out, params["fc_w2d"], params["fc_b2d"])
    return forward


if __name__ == "__main__":
    key = jax.random.PRNGKey(0)
    kp, kx = jax.random.split(key)
    num_blocks = [1, 1, 1, 1]  # small BasicBlock ResNet
    params, cfg = init_resnet(kp, num_blocks, class_number=100)
    x = jax.random.normal(kx, (2, 3, 16, 16), jnp.float32)  # NCHW, like PyTorch
    fwd = jax.jit(make_forward(cfg))
    out = jax.block_until_ready(fwd(params, x))
    assert out.shape == (2, 100) and out.dtype == jnp.float32
    print("KERNEL_OK")
</pallas_src>

<mosaic_0001>
module attributes {stable_mosaic.version = 11 : i64} {
  func.func @_mm_bn_kernel(%arg0: i32, %arg1: i32, %arg2: i32, %arg3: memref<256x128xbf16, #tpu.memory_space<vmem>>, %arg4: memref<128x128xbf16, #tpu.memory_space<vmem>>, %arg5: memref<1x128xf32, #tpu.memory_space<vmem>>, %arg6: memref<1x128xf32, #tpu.memory_space<vmem>>, %arg7: memref<256x128xbf16, #tpu.memory_space<vmem>>, %arg8: memref<256x128xf32, #tpu.memory_space<vmem>>) attributes {dimension_semantics = [#tpu.dimension_semantics<parallel>, #tpu.dimension_semantics<parallel>, #tpu.dimension_semantics<arbitrary>], iteration_bounds = array<i64: 2, 1, 1>, scalar_prefetch = 0 : i64, scratch_operands = 1 : i64, tpu.core_type = #tpu.core_type<tc>, window_params = [{transform_indices = @transform_0, window_bounds = array<i64: 256, 128>}, {transform_indices = @transform_1, window_bounds = array<i64: 128, 128>}, {transform_indices = @transform_2, window_bounds = array<i64: 1, 128>}, {transform_indices = @transform_3, window_bounds = array<i64: 1, 128>}, {transform_indices = @transform_4, window_bounds = array<i64: 256, 128>}]} {
    %c0_i32 = arith.constant 0 : i32
    %0 = arith.cmpi eq, %arg2, %c0_i32 : i32
    %1 = arith.extui %0 : i1 to i32
    %c0_i32_0 = arith.constant 0 : i32
    %2 = arith.cmpi ne, %1, %c0_i32_0 : i32
    scf.if %2 {
      %cst_10 = arith.constant 0.000000e+00 : f32
      %12 = vector.broadcast %cst_10 : f32 to vector<256x128xf32>
      %c0_11 = arith.constant 0 : index
      %c0_12 = arith.constant 0 : index
      %13 = vector.load %arg8[%c0_11, %c0_12] : memref<256x128xf32, #tpu.memory_space<vmem>>, vector<256x128xf32>
      tpu.vector_store %arg8[%c0_11, %c0_12], %12 {strides = array<i32>} : memref<256x128xf32, #tpu.memory_space<vmem>>, vector<256x128xf32>,
    } else {
    }
    %c0 = arith.constant 0 : index
    %c0_1 = arith.constant 0 : index
    %3 = vector.load %arg8[%c0, %c0_1] : memref<256x128xf32, #tpu.memory_space<vmem>>, vector<256x128xf32>
    %c0_2 = arith.constant 0 : index
    %c0_3 = arith.constant 0 : index
    %4 = vector.load %arg3[%c0_2, %c0_3] : memref<256x128xbf16, #tpu.memory_space<vmem>>, vector<256x128xbf16>
    %c0_4 = arith.constant 0 : index
    %c0_5 = arith.constant 0 : index
    %5 = vector.load %arg4[%c0_4, %c0_5] : memref<128x128xbf16, #tpu.memory_space<vmem>>, vector<128x128xbf16>
    %cst = arith.constant dense<0.000000e+00> : vector<256x128xf32>
    %6 = tpu.matmul %4, %5, %cst {dimension_numbers = #tpu.dot_dimension_numbers<[1], [0], [0], [1], [0, 0, 1, 1], [], []>} : vector<256x128xbf16>, vector<128x128xbf16>, vector<256x128xf32> -> vector<256x128xf32>
    %7 = arith.addf %3, %6 : vector<256x128xf32>
    %c0_6 = arith.constant 0 : index
    %c0_7 = arith.constant 0 : index
    %8 = vector.load %arg8[%c0_6, %c0_7] : memref<256x128xf32, #tpu.memory_space<vmem>>, vector<256x128xf32>
    tpu.vector_store %arg8[%c0_6, %c0_7], %7 {strides = array<i32>} : memref<256x128xf32, #tpu.memory_space<vmem>>, vector<256x128xf32>,
    %c0_i32_8 = arith.constant 0 : i32
    %9 = arith.cmpi eq, %arg2, %c0_i32_8 : i32
    %10 = arith.extui %9 : i1 to i32
    %c0_i32_9 = arith.constant 0 : i32
    %11 = arith.cmpi ne, %10, %c0_i32_9 : i32
    scf.if %11 {
      %c0_10 = arith.constant 0 : index
      %c0_11 = arith.constant 0 : index
      %12 = vector.load %arg8[%c0_10, %c0_11] : memref<256x128xf32, #tpu.memory_space<vmem>>, vector<256x128xf32>
      %c0_12 = arith.constant 0 : index
      %c0_13 = arith.constant 0 : index
      %13 = vector.load %arg5[%c0_12, %c0_13] : memref<1x128xf32, #tpu.memory_space<vmem>>, vector<1x128xf32>
      %14 = vector.broadcast %13 : vector<1x128xf32> to vector<256x128xf32>
      %15 = arith.mulf %12, %14 : vector<256x128xf32>
      %c0_14 = arith.constant 0 : index
      %c0_15 = arith.constant 0 : index
      %16 = vector.load %arg6[%c0_14, %c0_15] : memref<1x128xf32, #tpu.memory_space<vmem>>, vector<1x128xf32>
      %17 = vector.broadcast %16 : vector<1x128xf32> to vector<256x128xf32>
      %18 = arith.addf %15, %17 : vector<256x128xf32>
      %cst_16 = arith.constant 0.000000e+00 : f32
      %19 = vector.broadcast %cst_16 : f32 to vector<256x128xf32>
      %20 = arith.maximumf %18, %19 : vector<256x128xf32>
      %21 = arith.truncf %20 : vector<256x128xf32> to vector<256x128xbf16>
      %c0_17 = arith.constant 0 : index
      %c0_18 = arith.constant 0 : index
      %22 = vector.load %arg7[%c0_17, %c0_18] : memref<256x128xbf16, #tpu.memory_space<vmem>>, vector<256x128xbf16>
      tpu.vector_store %arg7[%c0_17, %c0_18], %21 {strides = array<i32>} : memref<256x128xbf16, #tpu.memory_space<vmem>>, vector<256x128xbf16>,
    } else {
    }
    return
  }
  func.func @transform_0(%arg0: i32, %arg1: i32, %arg2: i32) -> (i32, i32) {
    %c0_i32 = arith.constant 0 : i32
    return %arg0, %arg2 : i32, i32
  }
  func.func @transform_1(%arg0: i32, %arg1: i32, %arg2: i32) -> (i32, i32) {
    %c0_i32 = arith.constant 0 : i32
    return %arg2, %arg1 : i32, i32
  }
  func.func @transform_2(%arg0: i32, %arg1: i32, %arg2: i32) -> (i32, i32) {
    %c0_i32 = arith.constant 0 : i32
    %c0_i32_0 = arith.constant 0 : i32
    return %c0_i32, %arg1 : i32, i32
  }
  func.func @transform_3(%arg0: i32, %arg1: i32, %arg2: i32) -> (i32, i32) {
    %c0_i32 = arith.constant 0 : i32
    %c0_i32_0 = arith.constant 0 : i32
    return %c0_i32, %arg1 : i32, i32
  }
  func.func @transform_4(%arg0: i32, %arg1: i32, %arg2: i32) -> (i32, i32) {
    %c0_i32 = arith.constant 0 : i32
    return %arg0, %arg1 : i32, i32
  }
}

module attributes {stable_mosaic.version = 11 : i64} {
  func.func @_mm_bn_kernel(%arg0: i32, %arg1: i32, %arg2: i32, %arg3: memref<256x128xbf16, #tpu.memory_space<vmem>>, %arg4: memref<128x128xbf16, #tpu.memory_space<vmem>>, %arg5: memref<1x128xf32, #tpu.memory_space<vmem>>, %arg6: memref<1x128xf32, #tpu.memory_space<vmem>>, %arg7: memref<256x128xbf16, #tpu.memory_space<vmem>>, %arg8: memref<256x128xf32, #tpu.memory_space<vmem>>) attributes {dimension_semantics = [#tpu.dimension_semantics<parallel>, #tpu.dimension_semantics<parallel>, #tpu.dimension_semantics<arbitrary>], iteration_bounds = array<i64: 2, 1, 5>, scalar_prefetch = 0 : i64, scratch_operands = 1 : i64, tpu.core_type = #tpu.core_type<tc>, window_params = [{transform_indices = @transform_0, window_bounds = array<i64: 256, 128>}, {transform_indices = @transform_1, window_bounds = array<i64: 128, 128>}, {transform_indices = @transform_2, window_bounds = array<i64: 1, 128>}, {transform_indices = @transform_3, window_bounds = array<i64: 1, 128>}, {transform_indices = @transform_4, window_bounds = array<i64: 256, 128>}]} {
    %c0_i32 = arith.constant 0 : i32
    %0 = arith.cmpi eq, %arg2, %c0_i32 : i32
    %1 = arith.extui %0 : i1 to i32
    %c0_i32_0 = arith.constant 0 : i32
    %2 = arith.cmpi ne, %1, %c0_i32_0 : i32
    scf.if %2 {
      %cst_9 = arith.constant 0.000000e+00 : f32
      %12 = vector.broadcast %cst_9 : f32 to vector<256x128xf32>
      %c0_10 = arith.constant 0 : index
      %c0_11 = arith.constant 0 : index
      %13 = vector.load %arg8[%c0_10, %c0_11] : memref<256x128xf32, #tpu.memory_space<vmem>>, vector<256x128xf32>
      tpu.vector_store %arg8[%c0_10, %c0_11], %12 {strides = array<i32>} : memref<256x128xf32, #tpu.memory_space<vmem>>, vector<256x128xf32>,
    } else {
    }
    %c0 = arith.constant 0 : index
    %c0_1 = arith.constant 0 : index
    %3 = vector.load %arg8[%c0, %c0_1] : memref<256x128xf32, #tpu.memory_space<vmem>>, vector<256x128xf32>
    %c0_2 = arith.constant 0 : index
    %c0_3 = arith.constant 0 : index
    %4 = vector.load %arg3[%c0_2, %c0_3] : memref<256x128xbf16, #tpu.memory_space<vmem>>, vector<256x128xbf16>
    %c0_4 = arith.constant 0 : index
    %c0_5 = arith.constant 0 : index
    %5 = vector.load %arg4[%c0_4, %c0_5] : memref<128x128xbf16, #tpu.memory_space<vmem>>, vector<128x128xbf16>
    %cst = arith.constant dense<0.000000e+00> : vector<256x128xf32>
    %6 = tpu.matmul %4, %5, %cst {dimension_numbers = #tpu.dot_dimension_numbers<[1], [0], [0], [1], [0, 0, 1, 1], [], []>} : vector<256x128xbf16>, vector<128x128xbf16>, vector<256x128xf32> -> vector<256x128xf32>
    %7 = arith.addf %3, %6 : vector<256x128xf32>
    %c0_6 = arith.constant 0 : index
    %c0_7 = arith.constant 0 : index
    %8 = vector.load %arg8[%c0_6, %c0_7] : memref<256x128xf32, #tpu.memory_space<vmem>>, vector<256x128xf32>
    tpu.vector_store %arg8[%c0_6, %c0_7], %7 {strides = array<i32>} : memref<256x128xf32, #tpu.memory_space<vmem>>, vector<256x128xf32>,
    %c4_i32 = arith.constant 4 : i32
    %9 = arith.cmpi eq, %arg2, %c4_i32 : i32
    %10 = arith.extui %9 : i1 to i32
    %c0_i32_8 = arith.constant 0 : i32
    %11 = arith.cmpi ne, %10, %c0_i32_8 : i32
    scf.if %11 {
      %c0_9 = arith.constant 0 : index
      %c0_10 = arith.constant 0 : index
      %12 = vector.load %arg8[%c0_9, %c0_10] : memref<256x128xf32, #tpu.memory_space<vmem>>, vector<256x128xf32>
      %c0_11 = arith.constant 0 : index
      %c0_12 = arith.constant 0 : index
      %13 = vector.load %arg5[%c0_11, %c0_12] : memref<1x128xf32, #tpu.memory_space<vmem>>, vector<1x128xf32>
      %14 = vector.broadcast %13 : vector<1x128xf32> to vector<256x128xf32>
      %15 = arith.mulf %12, %14 : vector<256x128xf32>
      %c0_13 = arith.constant 0 : index
      %c0_14 = arith.constant 0 : index
      %16 = vector.load %arg6[%c0_13, %c0_14] : memref<1x128xf32, #tpu.memory_space<vmem>>, vector<1x128xf32>
      %17 = vector.broadcast %16 : vector<1x128xf32> to vector<256x128xf32>
      %18 = arith.addf %15, %17 : vector<256x128xf32>
      %cst_15 = arith.constant 0.000000e+00 : f32
      %19 = vector.broadcast %cst_15 : f32 to vector<256x128xf32>
      %20 = arith.maximumf %18, %19 : vector<256x128xf32>
      %21 = arith.truncf %20 : vector<256x128xf32> to vector<256x128xbf16>
      %c0_16 = arith.constant 0 : index
      %c0_17 = arith.constant 0 : index
      %22 = vector.load %arg7[%c0_16, %c0_17] : memref<256x128xbf16, #tpu.memory_space<vmem>>, vector<256x128xbf16>
      tpu.vector_store %arg7[%c0_16, %c0_17], %21 {strides = array<i32>} : memref<256x128xbf16, #tpu.memory_space<vmem>>, vector<256x128xbf16>,
    } else {
    }
    return
  }
  func.func @transform_0(%arg0: i32, %arg1: i32, %arg2: i32) -> (i32, i32) {
    %c0_i32 = arith.constant 0 : i32
    return %arg0, %arg2 : i32, i32
  }
  func.func @transform_1(%arg0: i32, %arg1: i32, %arg2: i32) -> (i32, i32) {
    %c0_i32 = arith.constant 0 : i32
    return %arg2, %arg1 : i32, i32
  }
  func.func @transform_2(%arg0: i32, %arg1: i32, %arg2: i32) -> (i32, i32) {
    %c0_i32 = arith.constant 0 : i32
    %c0_i32_0 = arith.constant 0 : i32
    return %c0_i32, %arg1 : i32, i32
  }
  func.func @transform_3(%arg0: i32, %arg1: i32, %arg2: i32) -> (i32, i32) {
    %c0_i32 = arith.constant 0 : i32
    %c0_i32_0 = arith.constant 0 : i32
    return %c0_i32, %arg1 : i32, i32
  }
  func.func @transform_4(%arg0: i32, %arg1: i32, %arg2: i32) -> (i32, i32) {
    %c0_i32 = arith.constant 0 : i32
    return %arg0, %arg1 : i32, i32
  }
}

module attributes {stable_mosaic.version = 11 : i64} {
  func.func @_mm_bn_res_kernel(%arg0: i32, %arg1: i32, %arg2: i32, %arg3: memref<256x128xbf16, #tpu.memory_space<vmem>>, %arg4: memref<128x128xbf16, #tpu.memory_space<vmem>>, %arg5: memref<1x128xf32, #tpu.memory_space<vmem>>, %arg6: memref<1x128xf32, #tpu.memory_space<vmem>>, %arg7: memref<256x128xbf16, #tpu.memory_space<vmem>>, %arg8: memref<256x128xbf16, #tpu.memory_space<vmem>>, %arg9: memref<256x128xf32, #tpu.memory_space<vmem>>) attributes {dimension_semantics = [#tpu.dimension_semantics<parallel>, #tpu.dimension_semantics<parallel>, #tpu.dimension_semantics<arbitrary>], iteration_bounds = array<i64: 2, 1, 5>, scalar_prefetch = 0 : i64, scratch_operands = 1 : i64, tpu.core_type = #tpu.core_type<tc>, window_params = [{transform_indices = @transform_0, window_bounds = array<i64: 256, 128>}, {transform_indices = @transform_1, window_bounds = array<i64: 128, 128>}, {transform_indices = @transform_2, window_bounds = array<i64: 1, 128>}, {transform_indices = @transform_3, window_bounds = array<i64: 1, 128>}, {transform_indices = @transform_4, window_bounds = array<i64: 256, 128>}, {transform_indices = @transform_5, window_bounds = array<i64: 256, 128>}]} {
    %c0_i32 = arith.constant 0 : i32
    %0 = arith.cmpi eq, %arg2, %c0_i32 : i32
    %1 = arith.extui %0 : i1 to i32
    %c0_i32_0 = arith.constant 0 : i32
    %2 = arith.cmpi ne, %1, %c0_i32_0 : i32
    scf.if %2 {
      %cst_9 = arith.constant 0.000000e+00 : f32
      %12 = vector.broadcast %cst_9 : f32 to vector<256x128xf32>
      %c0_10 = arith.constant 0 : index
      %c0_11 = arith.constant 0 : index
      %13 = vector.load %arg9[%c0_10, %c0_11] : memref<256x128xf32, #tpu.memory_space<vmem>>, vector<256x128xf32>
      tpu.vector_store %arg9[%c0_10, %c0_11], %12 {strides = array<i32>} : memref<256x128xf32, #tpu.memory_space<vmem>>, vector<256x128xf32>,
    } else {
    }
    %c0 = arith.constant 0 : index
    %c0_1 = arith.constant 0 : index
    %3 = vector.load %arg9[%c0, %c0_1] : memref<256x128xf32, #tpu.memory_space<vmem>>, vector<256x128xf32>
    %c0_2 = arith.constant 0 : index
    %c0_3 = arith.constant 0 : index
    %4 = vector.load %arg3[%c0_2, %c0_3] : memref<256x128xbf16, #tpu.memory_space<vmem>>, vector<256x128xbf16>
    %c0_4 = arith.constant 0 : index
    %c0_5 = arith.constant 0 : index
    %5 = vector.load %arg4[%c0_4, %c0_5] : memref<128x128xbf16, #tpu.memory_space<vmem>>, vector<128x128xbf16>
    %cst = arith.constant dense<0.000000e+00> : vector<256x128xf32>
    %6 = tpu.matmul %4, %5, %cst {dimension_numbers = #tpu.dot_dimension_numbers<[1], [0], [0], [1], [0, 0, 1, 1], [], []>} : vector<256x128xbf16>, vector<128x128xbf16>, vector<256x128xf32> -> vector<256x128xf32>
    %7 = arith.addf %3, %6 : vector<256x128xf32>
    %c0_6 = arith.constant 0 : index
    %c0_7 = arith.constant 0 : index
    %8 = vector.load %arg9[%c0_6, %c0_7] : memref<256x128xf32, #tpu.memory_space<vmem>>, vector<256x128xf32>
    tpu.vector_store %arg9[%c0_6, %c0_7], %7 {strides = array<i32>} : memref<256x128xf32, #tpu.memory_space<vmem>>, vector<256x128xf32>,
    %c4_i32 = arith.constant 4 : i32
    %9 = arith.cmpi eq, %arg2, %c4_i32 : i32
    %10 = arith.extui %9 : i1 to i32
    %c0_i32_8 = arith.constant 0 : i32
    %11 = arith.cmpi ne, %10, %c0_i32_8 : i32
    scf.if %11 {
      %c0_9 = arith.constant 0 : index
      %c0_10 = arith.constant 0 : index
      %12 = vector.load %arg9[%c0_9, %c0_10] : memref<256x128xf32, #tpu.memory_space<vmem>>, vector<256x128xf32>
      %c0_11 = arith.constant 0 : index
      %c0_12 = arith.constant 0 : index
      %13 = vector.load %arg5[%c0_11, %c0_12] : memref<1x128xf32, #tpu.memory_space<vmem>>, vector<1x128xf32>
      %14 = vector.broadcast %13 : vector<1x128xf32> to vector<256x128xf32>
      %15 = arith.mulf %12, %14 : vector<256x128xf32>
      %c0_13 = arith.constant 0 : index
      %c0_14 = arith.constant 0 : index
      %16 = vector.load %arg6[%c0_13, %c0_14] : memref<1x128xf32, #tpu.memory_space<vmem>>, vector<1x128xf32>
      %17 = vector.broadcast %16 : vector<1x128xf32> to vector<256x128xf32>
      %18 = arith.addf %15, %17 : vector<256x128xf32>
      %c0_15 = arith.constant 0 : index
      %c0_16 = arith.constant 0 : index
      %19 = vector.load %arg7[%c0_15, %c0_16] : memref<256x128xbf16, #tpu.memory_space<vmem>>, vector<256x128xbf16>
      %20 = arith.extf %19 : vector<256x128xbf16> to vector<256x128xf32>
      %21 = arith.addf %18, %20 : vector<256x128xf32>
      %cst_17 = arith.constant 0.000000e+00 : f32
      %22 = vector.broadcast %cst_17 : f32 to vector<256x128xf32>
      %23 = arith.maximumf %21, %22 : vector<256x128xf32>
      %24 = arith.truncf %23 : vector<256x128xf32> to vector<256x128xbf16>
      %c0_18 = arith.constant 0 : index
      %c0_19 = arith.constant 0 : index
      %25 = vector.load %arg8[%c0_18, %c0_19] : memref<256x128xbf16, #tpu.memory_space<vmem>>, vector<256x128xbf16>
      tpu.vector_store %arg8[%c0_18, %c0_19], %24 {strides = array<i32>} : memref<256x128xbf16, #tpu.memory_space<vmem>>, vector<256x128xbf16>,
    } else {
    }
    return
  }
  func.func @transform_0(%arg0: i32, %arg1: i32, %arg2: i32) -> (i32, i32) {
    %c0_i32 = arith.constant 0 : i32
    return %arg0, %arg2 : i32, i32
  }
  func.func @transform_1(%arg0: i32, %arg1: i32, %arg2: i32) -> (i32, i32) {
    %c0_i32 = arith.constant 0 : i32
    return %arg2, %arg1 : i32, i32
  }
  func.func @transform_2(%arg0: i32, %arg1: i32, %arg2: i32) -> (i32, i32) {
    %c0_i32 = arith.constant 0 : i32
    %c0_i32_0 = arith.constant 0 : i32
    return %c0_i32, %arg1 : i32, i32
  }
  func.func @transform_3(%arg0: i32, %arg1: i32, %arg2: i32) -> (i32, i32) {
    %c0_i32 = arith.constant 0 : i32
    %c0_i32_0 = arith.constant 0 : i32
    return %c0_i32, %arg1 : i32, i32
  }
  func.func @transform_4(%arg0: i32, %arg1: i32, %arg2: i32) -> (i32, i32) {
    %c0_i32 = arith.constant 0 : i32
    return %arg0, %arg1 : i32, i32
  }
  func.func @transform_5(%arg0: i32, %arg1: i32, %arg2: i32) -> (i32, i32) {
    %c0_i32 = arith.constant 0 : i32
    return %arg0, %arg1 : i32, i32
  }
}

module attributes {stable_mosaic.version = 11 : i64} {
  func.func @_mm_bn_kernel(%arg0: i32, %arg1: i32, %arg2: i32, %arg3: memref<128x128xbf16, #tpu.memory_space<vmem>>, %arg4: memref<128x128xbf16, #tpu.memory_space<vmem>>, %arg5: memref<1x128xf32, #tpu.memory_space<vmem>>, %arg6: memref<1x128xf32, #tpu.memory_space<vmem>>, %arg7: memref<128x128xbf16, #tpu.memory_space<vmem>>, %arg8: memref<128x128xf32, #tpu.memory_space<vmem>>) attributes {dimension_semantics = [#tpu.dimension_semantics<parallel>, #tpu.dimension_semantics<parallel>, #tpu.dimension_semantics<arbitrary>], iteration_bounds = array<i64: 1, 1, 5>, scalar_prefetch = 0 : i64, scratch_operands = 1 : i64, tpu.core_type = #tpu.core_type<tc>, window_params = [{transform_indices = @transform_0, window_bounds = array<i64: 128, 128>}, {transform_indices = @transform_1, window_bounds = array<i64: 128, 128>}, {transform_indices = @transform_2, window_bounds = array<i64: 1, 128>}, {transform_indices = @transform_3, window_bounds = array<i64: 1, 128>}, {transform_indices = @transform_4, window_bounds = array<i64: 128, 128>}]} {
    %c0_i32 = arith.constant 0 : i32
    %0 = arith.cmpi eq, %arg2, %c0_i32 : i32
    %1 = arith.extui %0 : i1 to i32
    %c0_i32_0 = arith.constant 0 : i32
    %2 = arith.cmpi ne, %1, %c0_i32_0 : i32
    scf.if %2 {
      %cst_9 = arith.constant 0.000000e+00 : f32
      %12 = vector.broadcast %cst_9 : f32 to vector<128x128xf32>
      %c0_10 = arith.constant 0 : index
      %c0_11 = arith.constant 0 : index
      %13 = vector.load %arg8[%c0_10, %c0_11] : memref<128x128xf32, #tpu.memory_space<vmem>>, vector<128x128xf32>
      tpu.vector_store %arg8[%c0_10, %c0_11], %12 {strides = array<i32>} : memref<128x128xf32, #tpu.memory_space<vmem>>, vector<128x128xf32>,
    } else {
    }
    %c0 = arith.constant 0 : index
    %c0_1 = arith.constant 0 : index
    %3 = vector.load %arg8[%c0, %c0_1] : memref<128x128xf32, #tpu.memory_space<vmem>>, vector<128x128xf32>
    %c0_2 = arith.constant 0 : index
    %c0_3 = arith.constant 0 : index
    %4 = vector.load %arg3[%c0_2, %c0_3] : memref<128x128xbf16, #tpu.memory_space<vmem>>, vector<128x128xbf16>
    %c0_4 = arith.constant 0 : index
    %c0_5 = arith.constant 0 : index
    %5 = vector.load %arg4[%c0_4, %c0_5] : memref<128x128xbf16, #tpu.memory_space<vmem>>, vector<128x128xbf16>
    %cst = arith.constant dense<0.000000e+00> : vector<128x128xf32>
    %6 = tpu.matmul %4, %5, %cst {dimension_numbers = #tpu.dot_dimension_numbers<[1], [0], [0], [1], [0, 0, 1, 1], [], []>} : vector<128x128xbf16>, vector<128x128xbf16>, vector<128x128xf32> -> vector<128x128xf32>
    %7 = arith.addf %3, %6 : vector<128x128xf32>
    %c0_6 = arith.constant 0 : index
    %c0_7 = arith.constant 0 : index
    %8 = vector.load %arg8[%c0_6, %c0_7] : memref<128x128xf32, #tpu.memory_space<vmem>>, vector<128x128xf32>
    tpu.vector_store %arg8[%c0_6, %c0_7], %7 {strides = array<i32>} : memref<128x128xf32, #tpu.memory_space<vmem>>, vector<128x128xf32>,
    %c4_i32 = arith.constant 4 : i32
    %9 = arith.cmpi eq, %arg2, %c4_i32 : i32
    %10 = arith.extui %9 : i1 to i32
    %c0_i32_8 = arith.constant 0 : i32
    %11 = arith.cmpi ne, %10, %c0_i32_8 : i32
    scf.if %11 {
      %c0_9 = arith.constant 0 : index
      %c0_10 = arith.constant 0 : index
      %12 = vector.load %arg8[%c0_9, %c0_10] : memref<128x128xf32, #tpu.memory_space<vmem>>, vector<128x128xf32>
      %c0_11 = arith.constant 0 : index
      %c0_12 = arith.constant 0 : index
      %13 = vector.load %arg5[%c0_11, %c0_12] : memref<1x128xf32, #tpu.memory_space<vmem>>, vector<1x128xf32>
      %14 = vector.broadcast %13 : vector<1x128xf32> to vector<128x128xf32>
      %15 = arith.mulf %12, %14 : vector<128x128xf32>
      %c0_13 = arith.constant 0 : index
      %c0_14 = arith.constant 0 : index
      %16 = vector.load %arg6[%c0_13, %c0_14] : memref<1x128xf32, #tpu.memory_space<vmem>>, vector<1x128xf32>
      %17 = vector.broadcast %16 : vector<1x128xf32> to vector<128x128xf32>
      %18 = arith.addf %15, %17 : vector<128x128xf32>
      %cst_15 = arith.constant 0.000000e+00 : f32
      %19 = vector.broadcast %cst_15 : f32 to vector<128x128xf32>
      %20 = arith.maximumf %18, %19 : vector<128x128xf32>
      %21 = arith.truncf %20 : vector<128x128xf32> to vector<128x128xbf16>
      %c0_16 = arith.constant 0 : index
      %c0_17 = arith.constant 0 : index
      %22 = vector.load %arg7[%c0_16, %c0_17] : memref<128x128xbf16, #tpu.memory_space<vmem>>, vector<128x128xbf16>
      tpu.vector_store %arg7[%c0_16, %c0_17], %21 {strides = array<i32>} : memref<128x128xbf16, #tpu.memory_space<vmem>>, vector<128x128xbf16>,
    } else {
    }
    return
  }
  func.func @transform_0(%arg0: i32, %arg1: i32, %arg2: i32) -> (i32, i32) {
    %c0_i32 = arith.constant 0 : i32
    return %arg0, %arg2 : i32, i32
  }
  func.func @transform_1(%arg0: i32, %arg1: i32, %arg2: i32) -> (i32, i32) {
    %c0_i32 = arith.constant 0 : i32
    return %arg2, %arg1 : i32, i32
  }
  func.func @transform_2(%arg0: i32, %arg1: i32, %arg2: i32) -> (i32, i32) {
    %c0_i32 = arith.constant 0 : i32
    %c0_i32_0 = arith.constant 0 : i32
    return %c0_i32, %arg1 : i32, i32
  }
  func.func @transform_3(%arg0: i32, %arg1: i32, %arg2: i32) -> (i32, i32) {
    %c0_i32 = arith.constant 0 : i32
    %c0_i32_0 = arith.constant 0 : i32
    return %c0_i32, %arg1 : i32, i32
  }
  func.func @transform_4(%arg0: i32, %arg1: i32, %arg2: i32) -> (i32, i32) {
    %c0_i32 = arith.constant 0 : i32
    return %arg0, %arg1 : i32, i32
  }
}

module attributes {stable_mosaic.version = 11 : i64} {
  func.func @_mm_bn_kernel(%arg0: i32, %arg1: i32, %arg2: i32, %arg3: memref<128x128xbf16, #tpu.memory_space<vmem>>, %arg4: memref<128x128xbf16, #tpu.memory_space<vmem>>, %arg5: memref<1x128xf32, #tpu.memory_space<vmem>>, %arg6: memref<1x128xf32, #tpu.memory_space<vmem>>, %arg7: memref<128x128xbf16, #tpu.memory_space<vmem>>, %arg8: memref<128x128xf32, #tpu.memory_space<vmem>>) attributes {dimension_semantics = [#tpu.dimension_semantics<parallel>, #tpu.dimension_semantics<parallel>, #tpu.dimension_semantics<arbitrary>], iteration_bounds = array<i64: 1, 1, 1>, scalar_prefetch = 0 : i64, scratch_operands = 1 : i64, tpu.core_type = #tpu.core_type<tc>, window_params = [{transform_indices = @transform_0, window_bounds = array<i64: 128, 128>}, {transform_indices = @transform_1, window_bounds = array<i64: 128, 128>}, {transform_indices = @transform_2, window_bounds = array<i64: 1, 128>}, {transform_indices = @transform_3, window_bounds = array<i64: 1, 128>}, {transform_indices = @transform_4, window_bounds = array<i64: 128, 128>}]} {
    %c0_i32 = arith.constant 0 : i32
    %0 = arith.cmpi eq, %arg2, %c0_i32 : i32
    %1 = arith.extui %0 : i1 to i32
    %c0_i32_0 = arith.constant 0 : i32
    %2 = arith.cmpi ne, %1, %c0_i32_0 : i32
    scf.if %2 {
      %cst_10 = arith.constant 0.000000e+00 : f32
      %12 = vector.broadcast %cst_10 : f32 to vector<128x128xf32>
      %c0_11 = arith.constant 0 : index
      %c0_12 = arith.constant 0 : index
      %13 = vector.load %arg8[%c0_11, %c0_12] : memref<128x128xf32, #tpu.memory_space<vmem>>, vector<128x128xf32>
      tpu.vector_store %arg8[%c0_11, %c0_12], %12 {strides = array<i32>} : memref<128x128xf32, #tpu.memory_space<vmem>>, vector<128x128xf32>,
    } else {
    }
    %c0 = arith.constant 0 : index
    %c0_1 = arith.constant 0 : index
    %3 = vector.load %arg8[%c0, %c0_1] : memref<128x128xf32, #tpu.memory_space<vmem>>, vector<128x128xf32>
    %c0_2 = arith.constant 0 : index
    %c0_3 = arith.constant 0 : index
    %4 = vector.load %arg3[%c0_2, %c0_3] : memref<128x128xbf16, #tpu.memory_space<vmem>>, vector<128x128xbf16>
    %c0_4 = arith.constant 0 : index
    %c0_5 = arith.constant 0 : index
    %5 = vector.load %arg4[%c0_4, %c0_5] : memref<128x128xbf16, #tpu.memory_space<vmem>>, vector<128x128xbf16>
    %cst = arith.constant dense<0.000000e+00> : vector<128x128xf32>
    %6 = tpu.matmul %4, %5, %cst {dimension_numbers = #tpu.dot_dimension_numbers<[1], [0], [0], [1], [0, 0, 1, 1], [], []>} : vector<128x128xbf16>, vector<128x128xbf16>, vector<128x128xf32> -> vector<128x128xf32>
    %7 = arith.addf %3, %6 : vector<128x128xf32>
    %c0_6 = arith.constant 0 : index
    %c0_7 = arith.constant 0 : index
    %8 = vector.load %arg8[%c0_6, %c0_7] : memref<128x128xf32, #tpu.memory_space<vmem>>, vector<128x128xf32>
    tpu.vector_store %arg8[%c0_6, %c0_7], %7 {strides = array<i32>} : memref<128x128xf32, #tpu.memory_space<vmem>>, vector<128x128xf32>,
    %c0_i32_8 = arith.constant 0 : i32
    %9 = arith.cmpi eq, %arg2, %c0_i32_8 : i32
    %10 = arith.extui %9 : i1 to i32
    %c0_i32_9 = arith.constant 0 : i32
    %11 = arith.cmpi ne, %10, %c0_i32_9 : i32
    scf.if %11 {
      %c0_10 = arith.constant 0 : index
      %c0_11 = arith.constant 0 : index
      %12 = vector.load %arg8[%c0_10, %c0_11] : memref<128x128xf32, #tpu.memory_space<vmem>>, vector<128x128xf32>
      %c0_12 = arith.constant 0 : index
      %c0_13 = arith.constant 0 : index
      %13 = vector.load %arg5[%c0_12, %c0_13] : memref<1x128xf32, #tpu.memory_space<vmem>>, vector<1x128xf32>
      %14 = vector.broadcast %13 : vector<1x128xf32> to vector<128x128xf32>
      %15 = arith.mulf %12, %14 : vector<128x128xf32>
      %c0_14 = arith.constant 0 : index
      %c0_15 = arith.constant 0 : index
      %16 = vector.load %arg6[%c0_14, %c0_15] : memref<1x128xf32, #tpu.memory_space<vmem>>, vector<1x128xf32>
      %17 = vector.broadcast %16 : vector<1x128xf32> to vector<128x128xf32>
      %18 = arith.addf %15, %17 : vector<128x128xf32>
      %19 = arith.truncf %18 : vector<128x128xf32> to vector<128x128xbf16>
      %c0_16 = arith.constant 0 : index
      %c0_17 = arith.constant 0 : index
      %20 = vector.load %arg7[%c0_16, %c0_17] : memref<128x128xbf16, #tpu.memory_space<vmem>>, vector<128x128xbf16>
      tpu.vector_store %arg7[%c0_16, %c0_17], %19 {strides = array<i32>} : memref<128x128xbf16, #tpu.memory_space<vmem>>, vector<128x128xbf16>,
    } else {
    }
    return
  }
  func.func @transform_0(%arg0: i32, %arg1: i32, %arg2: i32) -> (i32, i32) {
    %c0_i32 = arith.constant 0 : i32
    return %arg0, %arg2 : i32, i32
  }
  func.func @transform_1(%arg0: i32, %arg1: i32, %arg2: i32) -> (i32, i32) {
    %c0_i32 = arith.constant 0 : i32
    return %arg2, %arg1 : i32, i32
  }
  func.func @transform_2(%arg0: i32, %arg1: i32, %arg2: i32) -> (i32, i32) {
    %c0_i32 = arith.constant 0 : i32
    %c0_i32_0 = arith.constant 0 : i32
    return %c0_i32, %arg1 : i32, i32
  }
  func.func @transform_3(%arg0: i32, %arg1: i32, %arg2: i32) -> (i32, i32) {
    %c0_i32 = arith.constant 0 : i32
    %c0_i32_0 = arith.constant 0 : i32
    return %c0_i32, %arg1 : i32, i32
  }
  func.func @transform_4(%arg0: i32, %arg1: i32, %arg2: i32) -> (i32, i32) {
    %c0_i32 = arith.constant 0 : i32
    return %arg0, %arg1 : i32, i32
  }
}

module attributes {stable_mosaic.version = 11 : i64} {
  func.func @_mm_bn_res_kernel(%arg0: i32, %arg1: i32, %arg2: i32, %arg3: memref<128x384xbf16, #tpu.memory_space<vmem>>, %arg4: memref<384x128xbf16, #tpu.memory_space<vmem>>, %arg5: memref<1x128xf32, #tpu.memory_space<vmem>>, %arg6: memref<1x128xf32, #tpu.memory_space<vmem>>, %arg7: memref<128x128xbf16, #tpu.memory_space<vmem>>, %arg8: memref<128x128xbf16, #tpu.memory_space<vmem>>, %arg9: memref<128x128xf32, #tpu.memory_space<vmem>>) attributes {dimension_semantics = [#tpu.dimension_semantics<parallel>, #tpu.dimension_semantics<parallel>, #tpu.dimension_semantics<arbitrary>], iteration_bounds = array<i64: 1, 1, 3>, scalar_prefetch = 0 : i64, scratch_operands = 1 : i64, tpu.core_type = #tpu.core_type<tc>, window_params = [{transform_indices = @transform_0, window_bounds = array<i64: 128, 384>}, {transform_indices = @transform_1, window_bounds = array<i64: 384, 128>}, {transform_indices = @transform_2, window_bounds = array<i64: 1, 128>}, {transform_indices = @transform_3, window_bounds = array<i64: 1, 128>}, {transform_indices = @transform_4, window_bounds = array<i64: 128, 128>}, {transform_indices = @transform_5, window_bounds = array<i64: 128, 128>}]} {
    %c0_i32 = arith.constant 0 : i32
    %0 = arith.cmpi eq, %arg2, %c0_i32 : i32
    %1 = arith.extui %0 : i1 to i32
    %c0_i32_0 = arith.constant 0 : i32
    %2 = arith.cmpi ne, %1, %c0_i32_0 : i32
    scf.if %2 {
      %cst_9 = arith.constant 0.000000e+00 : f32
      %12 = vector.broadcast %cst_9 : f32 to vector<128x128xf32>
      %c0_10 = arith.constant 0 : index
      %c0_11 = arith.constant 0 : index
      %13 = vector.load %arg9[%c0_10, %c0_11] : memref<128x128xf32, #tpu.memory_space<vmem>>, vector<128x128xf32>
      tpu.vector_store %arg9[%c0_10, %c0_11], %12 {strides = array<i32>} : memref<128x128xf32, #tpu.memory_space<vmem>>, vector<128x128xf32>,
    } else {
    }
    %c0 = arith.constant 0 : index
    %c0_1 = arith.constant 0 : index
    %3 = vector.load %arg9[%c0, %c0_1] : memref<128x128xf32, #tpu.memory_space<vmem>>, vector<128x128xf32>
    %c0_2 = arith.constant 0 : index
    %c0_3 = arith.constant 0 : index
    %4 = vector.load %arg3[%c0_2, %c0_3] : memref<128x384xbf16, #tpu.memory_space<vmem>>, vector<128x384xbf16>
    %c0_4 = arith.constant 0 : index
    %c0_5 = arith.constant 0 : index
    %5 = vector.load %arg4[%c0_4, %c0_5] : memref<384x128xbf16, #tpu.memory_space<vmem>>, vector<384x128xbf16>
    %cst = arith.constant dense<0.000000e+00> : vector<128x128xf32>
    %6 = tpu.matmul %4, %5, %cst {dimension_numbers = #tpu.dot_dimension_numbers<[1], [0], [0], [1], [0, 0, 1, 1], [], []>} : vector<128x384xbf16>, vector<384x128xbf16>, vector<128x128xf32> -> vector<128x128xf32>
    %7 = arith.addf %3, %6 : vector<128x128xf32>
    %c0_6 = arith.constant 0 : index
    %c0_7 = arith.constant 0 : index
    %8 = vector.load %arg9[%c0_6, %c0_7] : memref<128x128xf32, #tpu.memory_space<vmem>>, vector<128x128xf32>
    tpu.vector_store %arg9[%c0_6, %c0_7], %7 {strides = array<i32>} : memref<128x128xf32, #tpu.memory_space<vmem>>, vector<128x128xf32>,
    %c2_i32 = arith.constant 2 : i32
    %9 = arith.cmpi eq, %arg2, %c2_i32 : i32
    %10 = arith.extui %9 : i1 to i32
    %c0_i32_8 = arith.constant 0 : i32
    %11 = arith.cmpi ne, %10, %c0_i32_8 : i32
    scf.if %11 {
      %c0_9 = arith.constant 0 : index
      %c0_10 = arith.constant 0 : index
      %12 = vector.load %arg9[%c0_9, %c0_10] : memref<128x128xf32, #tpu.memory_space<vmem>>, vector<128x128xf32>
      %c0_11 = arith.constant 0 : index
      %c0_12 = arith.constant 0 : index
      %13 = vector.load %arg5[%c0_11, %c0_12] : memref<1x128xf32, #tpu.memory_space<vmem>>, vector<1x128xf32>
      %14 = vector.broadcast %13 : vector<1x128xf32> to vector<128x128xf32>
      %15 = arith.mulf %12, %14 : vector<128x128xf32>
      %c0_13 = arith.constant 0 : index
      %c0_14 = arith.constant 0 : index
      %16 = vector.load %arg6[%c0_13, %c0_14] : memref<1x128xf32, #tpu.memory_space<vmem>>, vector<1x128xf32>
      %17 = vector.broadcast %16 : vector<1x128xf32> to vector<128x128xf32>
      %18 = arith.addf %15, %17 : vector<128x128xf32>
      %c0_15 = arith.constant 0 : index
      %c0_16 = arith.constant 0 : index
      %19 = vector.load %arg7[%c0_15, %c0_16] : memref<128x128xbf16, #tpu.memory_space<vmem>>, vector<128x128xbf16>
      %20 = arith.extf %19 : vector<128x128xbf16> to vector<128x128xf32>
      %21 = arith.addf %18, %20 : vector<128x128xf32>
      %cst_17 = arith.constant 0.000000e+00 : f32
      %22 = vector.broadcast %cst_17 : f32 to vector<128x128xf32>
      %23 = arith.maximumf %21, %22 : vector<128x128xf32>
      %24 = arith.truncf %23 : vector<128x128xf32> to vector<128x128xbf16>
      %c0_18 = arith.constant 0 : index
      %c0_19 = arith.constant 0 : index
      %25 = vector.load %arg8[%c0_18, %c0_19] : memref<128x128xbf16, #tpu.memory_space<vmem>>, vector<128x128xbf16>
      tpu.vector_store %arg8[%c0_18, %c0_19], %24 {strides = array<i32>} : memref<128x128xbf16, #tpu.memory_space<vmem>>, vector<128x128xbf16>,
    } else {
    }
    return
  }
  func.func @transform_0(%arg0: i32, %arg1: i32, %arg2: i32) -> (i32, i32) {
    %c0_i32 = arith.constant 0 : i32
    return %arg0, %arg2 : i32, i32
  }
  func.func @transform_1(%arg0: i32, %arg1: i32, %arg2: i32) -> (i32, i32) {
    %c0_i32 = arith.constant 0 : i32
    return %arg2, %arg1 : i32, i32
  }
  func.func @transform_2(%arg0: i32, %arg1: i32, %arg2: i32) -> (i32, i32) {
    %c0_i32 = arith.constant 0 : i32
    %c0_i32_0 = arith.constant 0 : i32
    return %c0_i32, %arg1 : i32, i32
  }
  func.func @transform_3(%arg0: i32, %arg1: i32, %arg2: i32) -> (i32, i32) {
    %c0_i32 = arith.constant 0 : i32
    %c0_i32_0 = arith.constant 0 : i32
    return %c0_i32, %arg1 : i32, i32
  }
  func.func @transform_4(%arg0: i32, %arg1: i32, %arg2: i32) -> (i32, i32) {
    %c0_i32 = arith.constant 0 : i32
    return %arg0, %arg1 : i32, i32
  }
  func.func @transform_5(%arg0: i32, %arg1: i32, %arg2: i32) -> (i32, i32) {
    %c0_i32 = arith.constant 0 : i32
    return %arg0, %arg1 : i32, i32
  }
}

module attributes {stable_mosaic.version = 11 : i64} {
  func.func @_mm_bn_kernel(%arg0: i32, %arg1: i32, %arg2: i32, %arg3: memref<32x384xbf16, #tpu.memory_space<vmem>>, %arg4: memref<384x256xbf16, #tpu.memory_space<vmem>>, %arg5: memref<1x256xf32, #tpu.memory_space<vmem>>, %arg6: memref<1x256xf32, #tpu.memory_space<vmem>>, %arg7: memref<32x256xbf16, #tpu.memory_space<vmem>>, %arg8: memref<32x256xf32, #tpu.memory_space<vmem>>) attributes {dimension_semantics = [#tpu.dimension_semantics<parallel>, #tpu.dimension_semantics<parallel>, #tpu.dimension_semantics<arbitrary>], iteration_bounds = array<i64: 1, 1, 3>, scalar_prefetch = 0 : i64, scratch_operands = 1 : i64, tpu.core_type = #tpu.core_type<tc>, window_params = [{transform_indices = @transform_0, window_bounds = array<i64: 32, 384>}, {transform_indices = @transform_1, window_bounds = array<i64: 384, 256>}, {transform_indices = @transform_2, window_bounds = array<i64: 1, 256>}, {transform_indices = @transform_3, window_bounds = array<i64: 1, 256>}, {transform_indices = @transform_4, window_bounds = array<i64: 32, 256>}]} {
    %c0_i32 = arith.constant 0 : i32
    %0 = arith.cmpi eq, %arg2, %c0_i32 : i32
    %1 = arith.extui %0 : i1 to i32
    %c0_i32_0 = arith.constant 0 : i32
    %2 = arith.cmpi ne, %1, %c0_i32_0 : i32
    scf.if %2 {
      %cst_9 = arith.constant 0.000000e+00 : f32
      %12 = vector.broadcast %cst_9 : f32 to vector<32x256xf32>
      %c0_10 = arith.constant 0 : index
      %c0_11 = arith.constant 0 : index
      %13 = vector.load %arg8[%c0_10, %c0_11] : memref<32x256xf32, #tpu.memory_space<vmem>>, vector<32x256xf32>
      tpu.vector_store %arg8[%c0_10, %c0_11], %12 {strides = array<i32>} : memref<32x256xf32, #tpu.memory_space<vmem>>, vector<32x256xf32>,
    } else {
    }
    %c0 = arith.constant 0 : index
    %c0_1 = arith.constant 0 : index
    %3 = vector.load %arg8[%c0, %c0_1] : memref<32x256xf32, #tpu.memory_space<vmem>>, vector<32x256xf32>
    %c0_2 = arith.constant 0 : index
    %c0_3 = arith.constant 0 : index
    %4 = vector.load %arg3[%c0_2, %c0_3] : memref<32x384xbf16, #tpu.memory_space<vmem>>, vector<32x384xbf16>
    %c0_4 = arith.constant 0 : index
    %c0_5 = arith.constant 0 : index
    %5 = vector.load %arg4[%c0_4, %c0_5] : memref<384x256xbf16, #tpu.memory_space<vmem>>, vector<384x256xbf16>
    %cst = arith.constant dense<0.000000e+00> : vector<32x256xf32>
    %6 = tpu.matmul %4, %5, %cst {dimension_numbers = #tpu.dot_dimension_numbers<[1], [0], [0], [1], [0, 0, 1, 1], [], []>} : vector<32x384xbf16>, vector<384x256xbf16>, vector<32x256xf32> -> vector<32x256xf32>
    %7 = arith.addf %3, %6 : vector<32x256xf32>
    %c0_6 = arith.constant 0 : index
    %c0_7 = arith.constant 0 : index
    %8 = vector.load %arg8[%c0_6, %c0_7] : memref<32x256xf32, #tpu.memory_space<vmem>>, vector<32x256xf32>
    tpu.vector_store %arg8[%c0_6, %c0_7], %7 {strides = array<i32>} : memref<32x256xf32, #tpu.memory_space<vmem>>, vector<32x256xf32>,
    %c2_i32 = arith.constant 2 : i32
    %9 = arith.cmpi eq, %arg2, %c2_i32 : i32
    %10 = arith.extui %9 : i1 to i32
    %c0_i32_8 = arith.constant 0 : i32
    %11 = arith.cmpi ne, %10, %c0_i32_8 : i32
    scf.if %11 {
      %c0_9 = arith.constant 0 : index
      %c0_10 = arith.constant 0 : index
      %12 = vector.load %arg8[%c0_9, %c0_10] : memref<32x256xf32, #tpu.memory_space<vmem>>, vector<32x256xf32>
      %c0_11 = arith.constant 0 : index
      %c0_12 = arith.constant 0 : index
      %13 = vector.load %arg5[%c0_11, %c0_12] : memref<1x256xf32, #tpu.memory_space<vmem>>, vector<1x256xf32>
      %14 = vector.broadcast %13 : vector<1x256xf32> to vector<32x256xf32>
      %15 = arith.mulf %12, %14 : vector<32x256xf32>
      %c0_13 = arith.constant 0 : index
      %c0_14 = arith.constant 0 : index
      %16 = vector.load %arg6[%c0_13, %c0_14] : memref<1x256xf32, #tpu.memory_space<vmem>>, vector<1x256xf32>
      %17 = vector.broadcast %16 : vector<1x256xf32> to vector<32x256xf32>
      %18 = arith.addf %15, %17 : vector<32x256xf32>
      %cst_15 = arith.constant 0.000000e+00 : f32
      %19 = vector.broadcast %cst_15 : f32 to vector<32x256xf32>
      %20 = arith.maximumf %18, %19 : vector<32x256xf32>
      %21 = arith.truncf %20 : vector<32x256xf32> to vector<32x256xbf16>
      %c0_16 = arith.constant 0 : index
      %c0_17 = arith.constant 0 : index
      %22 = vector.load %arg7[%c0_16, %c0_17] : memref<32x256xbf16, #tpu.memory_space<vmem>>, vector<32x256xbf16>
      tpu.vector_store %arg7[%c0_16, %c0_17], %21 {strides = array<i32>} : memref<32x256xbf16, #tpu.memory_space<vmem>>, vector<32x256xbf16>,
    } else {
    }
    return
  }
  func.func @transform_0(%arg0: i32, %arg1: i32, %arg2: i32) -> (i32, i32) {
    %c0_i32 = arith.constant 0 : i32
    return %arg0, %arg2 : i32, i32
  }
  func.func @transform_1(%arg0: i32, %arg1: i32, %arg2: i32) -> (i32, i32) {
    %c0_i32 = arith.constant 0 : i32
    return %arg2, %arg1 : i32, i32
  }
  func.func @transform_2(%arg0: i32, %arg1: i32, %arg2: i32) -> (i32, i32) {
    %c0_i32 = arith.constant 0 : i32
    %c0_i32_0 = arith.constant 0 : i32
    return %c0_i32, %arg1 : i32, i32
  }
  func.func @transform_3(%arg0: i32, %arg1: i32, %arg2: i32) -> (i32, i32) {
    %c0_i32 = arith.constant 0 : i32
    %c0_i32_0 = arith.constant 0 : i32
    return %c0_i32, %arg1 : i32, i32
  }
  func.func @transform_4(%arg0: i32, %arg1: i32, %arg2: i32) -> (i32, i32) {
    %c0_i32 = arith.constant 0 : i32
    return %arg0, %arg1 : i32, i32
  }
}

module attributes {stable_mosaic.version = 11 : i64} {
  func.func @_mm_bn_kernel(%arg0: i32, %arg1: i32, %arg2: i32, %arg3: memref<32x128xbf16, #tpu.memory_space<vmem>>, %arg4: memref<128x256xbf16, #tpu.memory_space<vmem>>, %arg5: memref<1x256xf32, #tpu.memory_space<vmem>>, %arg6: memref<1x256xf32, #tpu.memory_space<vmem>>, %arg7: memref<32x256xbf16, #tpu.memory_space<vmem>>, %arg8: memref<32x256xf32, #tpu.memory_space<vmem>>) attributes {dimension_semantics = [#tpu.dimension_semantics<parallel>, #tpu.dimension_semantics<parallel>, #tpu.dimension_semantics<arbitrary>], iteration_bounds = array<i64: 1, 1, 1>, scalar_prefetch = 0 : i64, scratch_operands = 1 : i64, tpu.core_type = #tpu.core_type<tc>, window_params = [{transform_indices = @transform_0, window_bounds = array<i64: 32, 128>}, {transform_indices = @transform_1, window_bounds = array<i64: 128, 256>}, {transform_indices = @transform_2, window_bounds = array<i64: 1, 256>}, {transform_indices = @transform_3, window_bounds = array<i64: 1, 256>}, {transform_indices = @transform_4, window_bounds = array<i64: 32, 256>}]} {
    %c0_i32 = arith.constant 0 : i32
    %0 = arith.cmpi eq, %arg2, %c0_i32 : i32
    %1 = arith.extui %0 : i1 to i32
    %c0_i32_0 = arith.constant 0 : i32
    %2 = arith.cmpi ne, %1, %c0_i32_0 : i32
    scf.if %2 {
      %cst_10 = arith.constant 0.000000e+00 : f32
      %12 = vector.broadcast %cst_10 : f32 to vector<32x256xf32>
      %c0_11 = arith.constant 0 : index
      %c0_12 = arith.constant 0 : index
      %13 = vector.load %arg8[%c0_11, %c0_12] : memref<32x256xf32, #tpu.memory_space<vmem>>, vector<32x256xf32>
      tpu.vector_store %arg8[%c0_11, %c0_12], %12 {strides = array<i32>} : memref<32x256xf32, #tpu.memory_space<vmem>>, vector<32x256xf32>,
    } else {
    }
    %c0 = arith.constant 0 : index
    %c0_1 = arith.constant 0 : index
    %3 = vector.load %arg8[%c0, %c0_1] : memref<32x256xf32, #tpu.memory_space<vmem>>, vector<32x256xf32>
    %c0_2 = arith.constant 0 : index
    %c0_3 = arith.constant 0 : index
    %4 = vector.load %arg3[%c0_2, %c0_3] : memref<32x128xbf16, #tpu.memory_space<vmem>>, vector<32x128xbf16>
    %c0_4 = arith.constant 0 : index
    %c0_5 = arith.constant 0 : index
    %5 = vector.load %arg4[%c0_4, %c0_5] : memref<128x256xbf16, #tpu.memory_space<vmem>>, vector<128x256xbf16>
    %cst = arith.constant dense<0.000000e+00> : vector<32x256xf32>
    %6 = tpu.matmul %4, %5, %cst {dimension_numbers = #tpu.dot_dimension_numbers<[1], [0], [0], [1], [0, 0, 1, 1], [], []>} : vector<32x128xbf16>, vector<128x256xbf16>, vector<32x256xf32> -> vector<32x256xf32>
    %7 = arith.addf %3, %6 : vector<32x256xf32>
    %c0_6 = arith.constant 0 : index
    %c0_7 = arith.constant 0 : index
    %8 = vector.load %arg8[%c0_6, %c0_7] : memref<32x256xf32, #tpu.memory_space<vmem>>, vector<32x256xf32>
    tpu.vector_store %arg8[%c0_6, %c0_7], %7 {strides = array<i32>} : memref<32x256xf32, #tpu.memory_space<vmem>>, vector<32x256xf32>,
    %c0_i32_8 = arith.constant 0 : i32
    %9 = arith.cmpi eq, %arg2, %c0_i32_8 : i32
    %10 = arith.extui %9 : i1 to i32
    %c0_i32_9 = arith.constant 0 : i32
    %11 = arith.cmpi ne, %10, %c0_i32_9 : i32
    scf.if %11 {
      %c0_10 = arith.constant 0 : index
      %c0_11 = arith.constant 0 : index
      %12 = vector.load %arg8[%c0_10, %c0_11] : memref<32x256xf32, #tpu.memory_space<vmem>>, vector<32x256xf32>
      %c0_12 = arith.constant 0 : index
      %c0_13 = arith.constant 0 : index
      %13 = vector.load %arg5[%c0_12, %c0_13] : memref<1x256xf32, #tpu.memory_space<vmem>>, vector<1x256xf32>
      %14 = vector.broadcast %13 : vector<1x256xf32> to vector<32x256xf32>
      %15 = arith.mulf %12, %14 : vector<32x256xf32>
      %c0_14 = arith.constant 0 : index
      %c0_15 = arith.constant 0 : index
      %16 = vector.load %arg6[%c0_14, %c0_15] : memref<1x256xf32, #tpu.memory_space<vmem>>, vector<1x256xf32>
      %17 = vector.broadcast %16 : vector<1x256xf32> to vector<32x256xf32>
      %18 = arith.addf %15, %17 : vector<32x256xf32>
      %19 = arith.truncf %18 : vector<32x256xf32> to vector<32x256xbf16>
      %c0_16 = arith.constant 0 : index
      %c0_17 = arith.constant 0 : index
      %20 = vector.load %arg7[%c0_16, %c0_17] : memref<32x256xbf16, #tpu.memory_space<vmem>>, vector<32x256xbf16>
      tpu.vector_store %arg7[%c0_16, %c0_17], %19 {strides = array<i32>} : memref<32x256xbf16, #tpu.memory_space<vmem>>, vector<32x256xbf16>,
    } else {
    }
    return
  }
  func.func @transform_0(%arg0: i32, %arg1: i32, %arg2: i32) -> (i32, i32) {
    %c0_i32 = arith.constant 0 : i32
    return %arg0, %arg2 : i32, i32
  }
  func.func @transform_1(%arg0: i32, %arg1: i32, %arg2: i32) -> (i32, i32) {
    %c0_i32 = arith.constant 0 : i32
    return %arg2, %arg1 : i32, i32
  }
  func.func @transform_2(%arg0: i32, %arg1: i32, %arg2: i32) -> (i32, i32) {
    %c0_i32 = arith.constant 0 : i32
    %c0_i32_0 = arith.constant 0 : i32
    return %c0_i32, %arg1 : i32, i32
  }
  func.func @transform_3(%arg0: i32, %arg1: i32, %arg2: i32) -> (i32, i32) {
    %c0_i32 = arith.constant 0 : i32
    %c0_i32_0 = arith.constant 0 : i32
    return %c0_i32, %arg1 : i32, i32
  }
  func.func @transform_4(%arg0: i32, %arg1: i32, %arg2: i32) -> (i32, i32) {
    %c0_i32 = arith.constant 0 : i32
    return %arg0, %arg1 : i32, i32
  }
}

module attributes {stable_mosaic.version = 11 : i64} {
  func.func @_mm_bn_res_kernel(%arg0: i32, %arg1: i32, %arg2: i32, %arg3: memref<32x384xbf16, #tpu.memory_space<vmem>>, %arg4: memref<384x256xbf16, #tpu.memory_space<vmem>>, %arg5: memref<1x256xf32, #tpu.memory_space<vmem>>, %arg6: memref<1x256xf32, #tpu.memory_space<vmem>>, %arg7: memref<32x256xbf16, #tpu.memory_space<vmem>>, %arg8: memref<32x256xbf16, #tpu.memory_space<vmem>>, %arg9: memref<32x256xf32, #tpu.memory_space<vmem>>) attributes {dimension_semantics = [#tpu.dimension_semantics<parallel>, #tpu.dimension_semantics<parallel>, #tpu.dimension_semantics<arbitrary>], iteration_bounds = array<i64: 1, 1, 6>, scalar_prefetch = 0 : i64, scratch_operands = 1 : i64, tpu.core_type = #tpu.core_type<tc>, window_params = [{transform_indices = @transform_0, window_bounds = array<i64: 32, 384>}, {transform_indices = @transform_1, window_bounds = array<i64: 384, 256>}, {transform_indices = @transform_2, window_bounds = array<i64: 1, 256>}, {transform_indices = @transform_3, window_bounds = array<i64: 1, 256>}, {transform_indices = @transform_4, window_bounds = array<i64: 32, 256>}, {transform_indices = @transform_5, window_bounds = array<i64: 32, 256>}]} {
    %c0_i32 = arith.constant 0 : i32
    %0 = arith.cmpi eq, %arg2, %c0_i32 : i32
    %1 = arith.extui %0 : i1 to i32
    %c0_i32_0 = arith.constant 0 : i32
    %2 = arith.cmpi ne, %1, %c0_i32_0 : i32
    scf.if %2 {
      %cst_9 = arith.constant 0.000000e+00 : f32
      %12 = vector.broadcast %cst_9 : f32 to vector<32x256xf32>
      %c0_10 = arith.constant 0 : index
      %c0_11 = arith.constant 0 : index
      %13 = vector.load %arg9[%c0_10, %c0_11] : memref<32x256xf32, #tpu.memory_space<vmem>>, vector<32x256xf32>
      tpu.vector_store %arg9[%c0_10, %c0_11], %12 {strides = array<i32>} : memref<32x256xf32, #tpu.memory_space<vmem>>, vector<32x256xf32>,
    } else {
    }
    %c0 = arith.constant 0 : index
    %c0_1 = arith.constant 0 : index
    %3 = vector.load %arg9[%c0, %c0_1] : memref<32x256xf32, #tpu.memory_space<vmem>>, vector<32x256xf32>
    %c0_2 = arith.constant 0 : index
    %c0_3 = arith.constant 0 : index
    %4 = vector.load %arg3[%c0_2, %c0_3] : memref<32x384xbf16, #tpu.memory_space<vmem>>, vector<32x384xbf16>
    %c0_4 = arith.constant 0 : index
    %c0_5 = arith.constant 0 : index
    %5 = vector.load %arg4[%c0_4, %c0_5] : memref<384x256xbf16, #tpu.memory_space<vmem>>, vector<384x256xbf16>
    %cst = arith.constant dense<0.000000e+00> : vector<32x256xf32>
    %6 = tpu.matmul %4, %5, %cst {dimension_numbers = #tpu.dot_dimension_numbers<[1], [0], [0], [1], [0, 0, 1, 1], [], []>} : vector<32x384xbf16>, vector<384x256xbf16>, vector<32x256xf32> -> vector<32x256xf32>
    %7 = arith.addf %3, %6 : vector<32x256xf32>
    %c0_6 = arith.constant 0 : index
    %c0_7 = arith.constant 0 : index
    %8 = vector.load %arg9[%c0_6, %c0_7] : memref<32x256xf32, #tpu.memory_space<vmem>>, vector<32x256xf32>
    tpu.vector_store %arg9[%c0_6, %c0_7], %7 {strides = array<i32>} : memref<32x256xf32, #tpu.memory_space<vmem>>, vector<32x256xf32>,
    %c5_i32 = arith.constant 5 : i32
    %9 = arith.cmpi eq, %arg2, %c5_i32 : i32
    %10 = arith.extui %9 : i1 to i32
    %c0_i32_8 = arith.constant 0 : i32
    %11 = arith.cmpi ne, %10, %c0_i32_8 : i32
    scf.if %11 {
      %c0_9 = arith.constant 0 : index
      %c0_10 = arith.constant 0 : index
      %12 = vector.load %arg9[%c0_9, %c0_10] : memref<32x256xf32, #tpu.memory_space<vmem>>, vector<32x256xf32>
      %c0_11 = arith.constant 0 : index
      %c0_12 = arith.constant 0 : index
      %13 = vector.load %arg5[%c0_11, %c0_12] : memref<1x256xf32, #tpu.memory_space<vmem>>, vector<1x256xf32>
      %14 = vector.broadcast %13 : vector<1x256xf32> to vector<32x256xf32>
      %15 = arith.mulf %12, %14 : vector<32x256xf32>
      %c0_13 = arith.constant 0 : index
      %c0_14 = arith.constant 0 : index
      %16 = vector.load %arg6[%c0_13, %c0_14] : memref<1x256xf32, #tpu.memory_space<vmem>>, vector<1x256xf32>
      %17 = vector.broadcast %16 : vector<1x256xf32> to vector<32x256xf32>
      %18 = arith.addf %15, %17 : vector<32x256xf32>
      %c0_15 = arith.constant 0 : index
      %c0_16 = arith.constant 0 : index
      %19 = vector.load %arg7[%c0_15, %c0_16] : memref<32x256xbf16, #tpu.memory_space<vmem>>, vector<32x256xbf16>
      %20 = arith.extf %19 : vector<32x256xbf16> to vector<32x256xf32>
      %21 = arith.addf %18, %20 : vector<32x256xf32>
      %cst_17 = arith.constant 0.000000e+00 : f32
      %22 = vector.broadcast %cst_17 : f32 to vector<32x256xf32>
      %23 = arith.maximumf %21, %22 : vector<32x256xf32>
      %24 = arith.truncf %23 : vector<32x256xf32> to vector<32x256xbf16>
      %c0_18 = arith.constant 0 : index
      %c0_19 = arith.constant 0 : index
      %25 = vector.load %arg8[%c0_18, %c0_19] : memref<32x256xbf16, #tpu.memory_space<vmem>>, vector<32x256xbf16>
      tpu.vector_store %arg8[%c0_18, %c0_19], %24 {strides = array<i32>} : memref<32x256xbf16, #tpu.memory_space<vmem>>, vector<32x256xbf16>,
    } else {
    }
    return
  }
  func.func @transform_0(%arg0: i32, %arg1: i32, %arg2: i32) -> (i32, i32) {
    %c0_i32 = arith.constant 0 : i32
    return %arg0, %arg2 : i32, i32
  }
  func.func @transform_1(%arg0: i32, %arg1: i32, %arg2: i32) -> (i32, i32) {
    %c0_i32 = arith.constant 0 : i32
    return %arg2, %arg1 : i32, i32
  }
  func.func @transform_2(%arg0: i32, %arg1: i32, %arg2: i32) -> (i32, i32) {
    %c0_i32 = arith.constant 0 : i32
    %c0_i32_0 = arith.constant 0 : i32
    return %c0_i32, %arg1 : i32, i32
  }
  func.func @transform_3(%arg0: i32, %arg1: i32, %arg2: i32) -> (i32, i32) {
    %c0_i32 = arith.constant 0 : i32
    %c0_i32_0 = arith.constant 0 : i32
    return %c0_i32, %arg1 : i32, i32
  }
  func.func @transform_4(%arg0: i32, %arg1: i32, %arg2: i32) -> (i32, i32) {
    %c0_i32 = arith.constant 0 : i32
    return %arg0, %arg1 : i32, i32
  }
  func.func @transform_5(%arg0: i32, %arg1: i32, %arg2: i32) -> (i32, i32) {
    %c0_i32 = arith.constant 0 : i32
    return %arg0, %arg1 : i32, i32
  }
}

module attributes {stable_mosaic.version = 11 : i64} {
  func.func @_mm_bn_kernel(%arg0: i32, %arg1: i32, %arg2: i32, %arg3: memref<8x384xbf16, #tpu.memory_space<vmem>>, %arg4: memref<384x256xbf16, #tpu.memory_space<vmem>>, %arg5: memref<1x256xf32, #tpu.memory_space<vmem>>, %arg6: memref<1x256xf32, #tpu.memory_space<vmem>>, %arg7: memref<8x256xbf16, #tpu.memory_space<vmem>>, %arg8: memref<8x256xf32, #tpu.memory_space<vmem>>) attributes {dimension_semantics = [#tpu.dimension_semantics<parallel>, #tpu.dimension_semantics<parallel>, #tpu.dimension_semantics<arbitrary>], iteration_bounds = array<i64: 1, 2, 6>, scalar_prefetch = 0 : i64, scratch_operands = 1 : i64, tpu.core_type = #tpu.core_type<tc>, window_params = [{transform_indices = @transform_0, window_bounds = array<i64: 8, 384>}, {transform_indices = @transform_1, window_bounds = array<i64: 384, 256>}, {transform_indices = @transform_2, window_bounds = array<i64: 1, 256>}, {transform_indices = @transform_3, window_bounds = array<i64: 1, 256>}, {transform_indices = @transform_4, window_bounds = array<i64: 8, 256>}]} {
    %c0_i32 = arith.constant 0 : i32
    %0 = arith.cmpi eq, %arg2, %c0_i32 : i32
    %1 = arith.extui %0 : i1 to i32
    %c0_i32_0 = arith.constant 0 : i32
    %2 = arith.cmpi ne, %1, %c0_i32_0 : i32
    scf.if %2 {
      %cst_9 = arith.constant 0.000000e+00 : f32
      %12 = vector.broadcast %cst_9 : f32 to vector<8x256xf32>
      %c0_10 = arith.constant 0 : index
      %c0_11 = arith.constant 0 : index
      %13 = vector.load %arg8[%c0_10, %c0_11] : memref<8x256xf32, #tpu.memory_space<vmem>>, vector<8x256xf32>
      tpu.vector_store %arg8[%c0_10, %c0_11], %12 {strides = array<i32>} : memref<8x256xf32, #tpu.memory_space<vmem>>, vector<8x256xf32>,
    } else {
    }
    %c0 = arith.constant 0 : index
    %c0_1 = arith.constant 0 : index
    %3 = vector.load %arg8[%c0, %c0_1] : memref<8x256xf32, #tpu.memory_space<vmem>>, vector<8x256xf32>
    %c0_2 = arith.constant 0 : index
    %c0_3 = arith.constant 0 : index
    %4 = vector.load %arg3[%c0_2, %c0_3] : memref<8x384xbf16, #tpu.memory_space<vmem>>, vector<8x384xbf16>
    %c0_4 = arith.constant 0 : index
    %c0_5 = arith.constant 0 : index
    %5 = vector.load %arg4[%c0_4, %c0_5] : memref<384x256xbf16, #tpu.memory_space<vmem>>, vector<384x256xbf16>
    %cst = arith.constant dense<0.000000e+00> : vector<8x256xf32>
    %6 = tpu.matmul %4, %5, %cst {dimension_numbers = #tpu.dot_dimension_numbers<[1], [0], [0], [1], [0, 0, 1, 1], [], []>} : vector<8x384xbf16>, vector<384x256xbf16>, vector<8x256xf32> -> vector<8x256xf32>
    %7 = arith.addf %3, %6 : vector<8x256xf32>
    %c0_6 = arith.constant 0 : index
    %c0_7 = arith.constant 0 : index
    %8 = vector.load %arg8[%c0_6, %c0_7] : memref<8x256xf32, #tpu.memory_space<vmem>>, vector<8x256xf32>
    tpu.vector_store %arg8[%c0_6, %c0_7], %7 {strides = array<i32>} : memref<8x256xf32, #tpu.memory_space<vmem>>, vector<8x256xf32>,
    %c5_i32 = arith.constant 5 : i32
    %9 = arith.cmpi eq, %arg2, %c5_i32 : i32
    %10 = arith.extui %9 : i1 to i32
    %c0_i32_8 = arith.constant 0 : i32
    %11 = arith.cmpi ne, %10, %c0_i32_8 : i32
    scf.if %11 {
      %c0_9 = arith.constant 0 : index
      %c0_10 = arith.constant 0 : index
      %12 = vector.load %arg8[%c0_9, %c0_10] : memref<8x256xf32, #tpu.memory_space<vmem>>, vector<8x256xf32>
      %c0_11 = arith.constant 0 : index
      %c0_12 = arith.constant 0 : index
      %13 = vector.load %arg5[%c0_11, %c0_12] : memref<1x256xf32, #tpu.memory_space<vmem>>, vector<1x256xf32>
      %14 = vector.broadcast %13 : vector<1x256xf32> to vector<8x256xf32>
      %15 = arith.mulf %12, %14 : vector<8x256xf32>
      %c0_13 = arith.constant 0 : index
      %c0_14 = arith.constant 0 : index
      %16 = vector.load %arg6[%c0_13, %c0_14] : memref<1x256xf32, #tpu.memory_space<vmem>>, vector<1x256xf32>
      %17 = vector.broadcast %16 : vector<1x256xf32> to vector<8x256xf32>
      %18 = arith.addf %15, %17 : vector<8x256xf32>
      %cst_15 = arith.constant 0.000000e+00 : f32
      %19 = vector.broadcast %cst_15 : f32 to vector<8x256xf32>
      %20 = arith.maximumf %18, %19 : vector<8x256xf32>
      %21 = arith.truncf %20 : vector<8x256xf32> to vector<8x256xbf16>
      %c0_16 = arith.constant 0 : index
      %c0_17 = arith.constant 0 : index
      %22 = vector.load %arg7[%c0_16, %c0_17] : memref<8x256xbf16, #tpu.memory_space<vmem>>, vector<8x256xbf16>
      tpu.vector_store %arg7[%c0_16, %c0_17], %21 {strides = array<i32>} : memref<8x256xbf16, #tpu.memory_space<vmem>>, vector<8x256xbf16>,
    } else {
    }
    return
  }
  func.func @transform_0(%arg0: i32, %arg1: i32, %arg2: i32) -> (i32, i32) {
    %c0_i32 = arith.constant 0 : i32
    return %arg0, %arg2 : i32, i32
  }
  func.func @transform_1(%arg0: i32, %arg1: i32, %arg2: i32) -> (i32, i32) {
    %c0_i32 = arith.constant 0 : i32
    return %arg2, %arg1 : i32, i32
  }
  func.func @transform_2(%arg0: i32, %arg1: i32, %arg2: i32) -> (i32, i32) {
    %c0_i32 = arith.constant 0 : i32
    %c0_i32_0 = arith.constant 0 : i32
    return %c0_i32, %arg1 : i32, i32
  }
  func.func @transform_3(%arg0: i32, %arg1: i32, %arg2: i32) -> (i32, i32) {
    %c0_i32 = arith.constant 0 : i32
    %c0_i32_0 = arith.constant 0 : i32
    return %c0_i32, %arg1 : i32, i32
  }
  func.func @transform_4(%arg0: i32, %arg1: i32, %arg2: i32) -> (i32, i32) {
    %c0_i32 = arith.constant 0 : i32
    return %arg0, %arg1 : i32, i32
  }
}

module attributes {stable_mosaic.version = 11 : i64} {
  func.func @_mm_bn_res_kernel(%arg0: i32, %arg1: i32, %arg2: i32, %arg3: memref<8x512xbf16, #tpu.memory_space<vmem>>, %arg4: memref<512x256xbf16, #tpu.memory_space<vmem>>, %arg5: memref<1x256xf32, #tpu.memory_space<vmem>>, %arg6: memref<1x256xf32, #tpu.memory_space<vmem>>, %arg7: memref<8x256xbf16, #tpu.memory_space<vmem>>, %arg8: memref<8x256xbf16, #tpu.memory_space<vmem>>, %arg9: memref<8x256xf32, #tpu.memory_space<vmem>>) attributes {dimension_semantics = [#tpu.dimension_semantics<parallel>, #tpu.dimension_semantics<parallel>, #tpu.dimension_semantics<arbitrary>], iteration_bounds = array<i64: 1, 2, 9>, scalar_prefetch = 0 : i64, scratch_operands = 1 : i64, tpu.core_type = #tpu.core_type<tc>, window_params = [{transform_indices = @transform_0, window_bounds = array<i64: 8, 512>}, {transform_indices = @transform_1, window_bounds = array<i64: 512, 256>}, {transform_indices = @transform_2, window_bounds = array<i64: 1, 256>}, {transform_indices = @transform_3, window_bounds = array<i64: 1, 256>}, {transform_indices = @transform_4, window_bounds = array<i64: 8, 256>}, {transform_indices = @transform_5, window_bounds = array<i64: 8, 256>}]} {
    %c0_i32 = arith.constant 0 : i32
    %0 = arith.cmpi eq, %arg2, %c0_i32 : i32
    %1 = arith.extui %0 : i1 to i32
    %c0_i32_0 = arith.constant 0 : i32
    %2 = arith.cmpi ne, %1, %c0_i32_0 : i32
    scf.if %2 {
      %cst_9 = arith.constant 0.000000e+00 : f32
      %12 = vector.broadcast %cst_9 : f32 to vector<8x256xf32>
      %c0_10 = arith.constant 0 : index
      %c0_11 = arith.constant 0 : index
      %13 = vector.load %arg9[%c0_10, %c0_11] : memref<8x256xf32, #tpu.memory_space<vmem>>, vector<8x256xf32>
      tpu.vector_store %arg9[%c0_10, %c0_11], %12 {strides = array<i32>} : memref<8x256xf32, #tpu.memory_space<vmem>>, vector<8x256xf32>,
    } else {
    }
    %c0 = arith.constant 0 : index
    %c0_1 = arith.constant 0 : index
    %3 = vector.load %arg9[%c0, %c0_1] : memref<8x256xf32, #tpu.memory_space<vmem>>, vector<8x256xf32>
    %c0_2 = arith.constant 0 : index
    %c0_3 = arith.constant 0 : index
    %4 = vector.load %arg3[%c0_2, %c0_3] : memref<8x512xbf16, #tpu.memory_space<vmem>>, vector<8x512xbf16>
    %c0_4 = arith.constant 0 : index
    %c0_5 = arith.constant 0 : index
    %5 = vector.load %arg4[%c0_4, %c0_5] : memref<512x256xbf16, #tpu.memory_space<vmem>>, vector<512x256xbf16>
    %cst = arith.constant dense<0.000000e+00> : vector<8x256xf32>
    %6 = tpu.matmul %4, %5, %cst {dimension_numbers = #tpu.dot_dimension_numbers<[1], [0], [0], [1], [0, 0, 1, 1], [], []>} : vector<8x512xbf16>, vector<512x256xbf16>, vector<8x256xf32> -> vector<8x256xf32>
    %7 = arith.addf %3, %6 : vector<8x256xf32>
    %c0_6 = arith.constant 0 : index
    %c0_7 = arith.constant 0 : index
    %8 = vector.load %arg9[%c0_6, %c0_7] : memref<8x256xf32, #tpu.memory_space<vmem>>, vector<8x256xf32>
    tpu.vector_store %arg9[%c0_6, %c0_7], %7 {strides = array<i32>} : memref<8x256xf32, #tpu.memory_space<vmem>>, vector<8x256xf32>,
    %c8_i32 = arith.constant 8 : i32
    %9 = arith.cmpi eq, %arg2, %c8_i32 : i32
    %10 = arith.extui %9 : i1 to i32
    %c0_i32_8 = arith.constant 0 : i32
    %11 = arith.cmpi ne, %10, %c0_i32_8 : i32
    scf.if %11 {
      %c0_9 = arith.constant 0 : index
      %c0_10 = arith.constant 0 : index
      %12 = vector.load %arg9[%c0_9, %c0_10] : memref<8x256xf32, #tpu.memory_space<vmem>>, vector<8x256xf32>
      %c0_11 = arith.constant 0 : index
      %c0_12 = arith.constant 0 : index
      %13 = vector.load %arg5[%c0_11, %c0_12] : memref<1x256xf32, #tpu.memory_space<vmem>>, vector<1x256xf32>
      %14 = vector.broadcast %13 : vector<1x256xf32> to vector<8x256xf32>
      %15 = arith.mulf %12, %14 : vector<8x256xf32>
      %c0_13 = arith.constant 0 : index
      %c0_14 = arith.constant 0 : index
      %16 = vector.load %arg6[%c0_13, %c0_14] : memref<1x256xf32, #tpu.memory_space<vmem>>, vector<1x256xf32>
      %17 = vector.broadcast %16 : vector<1x256xf32> to vector<8x256xf32>
      %18 = arith.addf %15, %17 : vector<8x256xf32>
      %c0_15 = arith.constant 0 : index
      %c0_16 = arith.constant 0 : index
      %19 = vector.load %arg7[%c0_15, %c0_16] : memref<8x256xbf16, #tpu.memory_space<vmem>>, vector<8x256xbf16>
      %20 = arith.extf %19 : vector<8x256xbf16> to vector<8x256xf32>
      %21 = arith.addf %18, %20 : vector<8x256xf32>
      %cst_17 = arith.constant 0.000000e+00 : f32
      %22 = vector.broadcast %cst_17 : f32 to vector<8x256xf32>
      %23 = arith.maximumf %21, %22 : vector<8x256xf32>
      %24 = arith.truncf %23 : vector<8x256xf32> to vector<8x256xbf16>
      %c0_18 = arith.constant 0 : index
      %c0_19 = arith.constant 0 : index
      %25 = vector.load %arg8[%c0_18, %c0_19] : memref<8x256xbf16, #tpu.memory_space<vmem>>, vector<8x256xbf16>
      tpu.vector_store %arg8[%c0_18, %c0_19], %24 {strides = array<i32>} : memref<8x256xbf16, #tpu.memory_space<vmem>>, vector<8x256xbf16>,
    } else {
    }
    return
  }
  func.func @transform_0(%arg0: i32, %arg1: i32, %arg2: i32) -> (i32, i32) {
    %c0_i32 = arith.constant 0 : i32
    return %arg0, %arg2 : i32, i32
  }
  func.func @transform_1(%arg0: i32, %arg1: i32, %arg2: i32) -> (i32, i32) {
    %c0_i32 = arith.constant 0 : i32
    return %arg2, %arg1 : i32, i32
  }
  func.func @transform_2(%arg0: i32, %arg1: i32, %arg2: i32) -> (i32, i32) {
    %c0_i32 = arith.constant 0 : i32
    %c0_i32_0 = arith.constant 0 : i32
    return %c0_i32, %arg1 : i32, i32
  }
  func.func @transform_3(%arg0: i32, %arg1: i32, %arg2: i32) -> (i32, i32) {
    %c0_i32 = arith.constant 0 : i32
    %c0_i32_0 = arith.constant 0 : i32
    return %c0_i32, %arg1 : i32, i32
  }
  func.func @transform_4(%arg0: i32, %arg1: i32, %arg2: i32) -> (i32, i32) {
    %c0_i32 = arith.constant 0 : i32
    return %arg0, %arg1 : i32, i32
  }
  func.func @transform_5(%arg0: i32, %arg1: i32, %arg2: i32) -> (i32, i32) {
    %c0_i32 = arith.constant 0 : i32
    return %arg0, %arg1 : i32, i32
  }
}

module attributes {stable_mosaic.version = 11 : i64} {
  func.func @_mm_bn_kernel(%arg0: i32, %arg1: i32, %arg2: i32, %arg3: memref<8x256xbf16, #tpu.memory_space<vmem>>, %arg4: memref<256x256xbf16, #tpu.memory_space<vmem>>, %arg5: memref<1x256xf32, #tpu.memory_space<vmem>>, %arg6: memref<1x256xf32, #tpu.memory_space<vmem>>, %arg7: memref<8x256xbf16, #tpu.memory_space<vmem>>, %arg8: memref<8x256xf32, #tpu.memory_space<vmem>>) attributes {dimension_semantics = [#tpu.dimension_semantics<parallel>, #tpu.dimension_semantics<parallel>, #tpu.dimension_semantics<arbitrary>], iteration_bounds = array<i64: 1, 2, 1>, scalar_prefetch = 0 : i64, scratch_operands = 1 : i64, tpu.core_type = #tpu.core_type<tc>, window_params = [{transform_indices = @transform_0, window_bounds = array<i64: 8, 256>}, {transform_indices = @transform_1, window_bounds = array<i64: 256, 256>}, {transform_indices = @transform_2, window_bounds = array<i64: 1, 256>}, {transform_indices = @transform_3, window_bounds = array<i64: 1, 256>}, {transform_indices = @transform_4, window_bounds = array<i64: 8, 256>}]} {
    %c0_i32 = arith.constant 0 : i32
    %0 = arith.cmpi eq, %arg2, %c0_i32 : i32
    %1 = arith.extui %0 : i1 to i32
    %c0_i32_0 = arith.constant 0 : i32
    %2 = arith.cmpi ne, %1, %c0_i32_0 : i32
    scf.if %2 {
      %cst_10 = arith.constant 0.000000e+00 : f32
      %12 = vector.broadcast %cst_10 : f32 to vector<8x256xf32>
      %c0_11 = arith.constant 0 : index
      %c0_12 = arith.constant 0 : index
      %13 = vector.load %arg8[%c0_11, %c0_12] : memref<8x256xf32, #tpu.memory_space<vmem>>, vector<8x256xf32>
      tpu.vector_store %arg8[%c0_11, %c0_12], %12 {strides = array<i32>} : memref<8x256xf32, #tpu.memory_space<vmem>>, vector<8x256xf32>,
    } else {
    }
    %c0 = arith.constant 0 : index
    %c0_1 = arith.constant 0 : index
    %3 = vector.load %arg8[%c0, %c0_1] : memref<8x256xf32, #tpu.memory_space<vmem>>, vector<8x256xf32>
    %c0_2 = arith.constant 0 : index
    %c0_3 = arith.constant 0 : index
    %4 = vector.load %arg3[%c0_2, %c0_3] : memref<8x256xbf16, #tpu.memory_space<vmem>>, vector<8x256xbf16>
    %c0_4 = arith.constant 0 : index
    %c0_5 = arith.constant 0 : index
    %5 = vector.load %arg4[%c0_4, %c0_5] : memref<256x256xbf16, #tpu.memory_space<vmem>>, vector<256x256xbf16>
    %cst = arith.constant dense<0.000000e+00> : vector<8x256xf32>
    %6 = tpu.matmul %4, %5, %cst {dimension_numbers = #tpu.dot_dimension_numbers<[1], [0], [0], [1], [0, 0, 1, 1], [], []>} : vector<8x256xbf16>, vector<256x256xbf16>, vector<8x256xf32> -> vector<8x256xf32>
    %7 = arith.addf %3, %6 : vector<8x256xf32>
    %c0_6 = arith.constant 0 : index
    %c0_7 = arith.constant 0 : index
    %8 = vector.load %arg8[%c0_6, %c0_7] : memref<8x256xf32, #tpu.memory_space<vmem>>, vector<8x256xf32>
    tpu.vector_store %arg8[%c0_6, %c0_7], %7 {strides = array<i32>} : memref<8x256xf32, #tpu.memory_space<vmem>>, vector<8x256xf32>,
    %c0_i32_8 = arith.constant 0 : i32
    %9 = arith.cmpi eq, %arg2, %c0_i32_8 : i32
    %10 = arith.extui %9 : i1 to i32
    %c0_i32_9 = arith.constant 0 : i32
    %11 = arith.cmpi ne, %10, %c0_i32_9 : i32
    scf.if %11 {
      %c0_10 = arith.constant 0 : index
      %c0_11 = arith.constant 0 : index
      %12 = vector.load %arg8[%c0_10, %c0_11] : memref<8x256xf32, #tpu.memory_space<vmem>>, vector<8x256xf32>
      %c0_12 = arith.constant 0 : index
      %c0_13 = arith.constant 0 : index
      %13 = vector.load %arg5[%c0_12, %c0_13] : memref<1x256xf32, #tpu.memory_space<vmem>>, vector<1x256xf32>
      %14 = vector.broadcast %13 : vector<1x256xf32> to vector<8x256xf32>
      %15 = arith.mulf %12, %14 : vector<8x256xf32>
      %c0_14 = arith.constant 0 : index
      %c0_15 = arith.constant 0 : index
      %16 = vector.load %arg6[%c0_14, %c0_15] : memref<1x256xf32, #tpu.memory_space<vmem>>, vector<1x256xf32>
      %17 = vector.broadcast %16 : vector<1x256xf32> to vector<8x256xf32>
      %18 = arith.addf %15, %17 : vector<8x256xf32>
      %19 = arith.truncf %18 : vector<8x256xf32> to vector<8x256xbf16>
      %c0_16 = arith.constant 0 : index
      %c0_17 = arith.constant 0 : index
      %20 = vector.load %arg7[%c0_16, %c0_17] : memref<8x256xbf16, #tpu.memory_space<vmem>>, vector<8x256xbf16>
      tpu.vector_store %arg7[%c0_16, %c0_17], %19 {strides = array<i32>} : memref<8x256xbf16, #tpu.memory_space<vmem>>, vector<8x256xbf16>,
    } else {
    }
    return
  }
  func.func @transform_0(%arg0: i32, %arg1: i32, %arg2: i32) -> (i32, i32) {
    %c0_i32 = arith.constant 0 : i32
    return %arg0, %arg2 : i32, i32
  }
  func.func @transform_1(%arg0: i32, %arg1: i32, %arg2: i32) -> (i32, i32) {
    %c0_i32 = arith.constant 0 : i32
    return %arg2, %arg1 : i32, i32
  }
  func.func @transform_2(%arg0: i32, %arg1: i32, %arg2: i32) -> (i32, i32) {
    %c0_i32 = arith.constant 0 : i32
    %c0_i32_0 = arith.constant 0 : i32
    return %c0_i32, %arg1 : i32, i32
  }
  func.func @transform_3(%arg0: i32, %arg1: i32, %arg2: i32) -> (i32, i32) {
    %c0_i32 = arith.constant 0 : i32
    %c0_i32_0 = arith.constant 0 : i32
    return %c0_i32, %arg1 : i32, i32
  }
  func.func @transform_4(%arg0: i32, %arg1: i32, %arg2: i32) -> (i32, i32) {
    %c0_i32 = arith.constant 0 : i32
    return %arg0, %arg1 : i32, i32
  }
}

module attributes {stable_mosaic.version = 11 : i64} {
  func.func @_pool_fc_kernel(%arg0: i32, %arg1: memref<2x4x512xbf16, #tpu.memory_space<vmem>>, %arg2: memref<512x100xf32, #tpu.memory_space<vmem>>, %arg3: memref<1x100xf32, #tpu.memory_space<vmem>>, %arg4: memref<2x100xf32, #tpu.memory_space<vmem>>) attributes {dimension_semantics = [#tpu.dimension_semantics<arbitrary>], iteration_bounds = array<i64: 1>, scalar_prefetch = 0 : i64, scratch_operands = 0 : i64, tpu.core_type = #tpu.core_type<tc>, window_params = [{transform_indices = @transform_0, window_bounds = array<i64: 2, 4, 512>}, {pipeline_mode = #tpu.pipeline_mode<synchronous>, transform_indices = @transform_1, window_bounds = array<i64: 512, 100>}, {pipeline_mode = #tpu.pipeline_mode<synchronous>, transform_indices = @transform_2, window_bounds = array<i64: 1, 100>}, {transform_indices = @transform_3, window_bounds = array<i64: 2, 100>}]} {
    %c0 = arith.constant 0 : index
    %c0_0 = arith.constant 0 : index
    %c0_1 = arith.constant 0 : index
    %0 = vector.load %arg1[%c0, %c0_0, %c0_1] : memref<2x4x512xbf16, #tpu.memory_space<vmem>>, vector<2x4x512xbf16>
    %1 = arith.extf %0 : vector<2x4x512xbf16> to vector<2x4x512xf32>
    %cst = arith.constant dense<0.000000e+00> : vector<2x512xf32>
    %2 = vector.multi_reduction <add>, %1, %cst [1] : vector<2x4x512xf32> to vector<2x512xf32>
    %cst_2 = arith.constant 4.000000e+00 : f32
    %3 = vector.broadcast %cst_2 : f32 to vector<2x512xf32>
    %4 = arith.divf %2, %3 : vector<2x512xf32>
    %c0_3 = arith.constant 0 : index
    %c0_4 = arith.constant 0 : index
    %5 = vector.load %arg2[%c0_3, %c0_4] : memref<512x100xf32, #tpu.memory_space<vmem>>, vector<512x100xf32>
    %cst_5 = arith.constant dense<0.000000e+00> : vector<2x100xf32>
    %6 = tpu.matmul %4, %5, %cst_5 {dimension_numbers = #tpu.dot_dimension_numbers<[1], [0], [0], [1], [0, 0, 1, 1], [], []>} : vector<2x512xf32>, vector<512x100xf32>, vector<2x100xf32> -> vector<2x100xf32>
    %c0_6 = arith.constant 0 : index
    %c0_7 = arith.constant 0 : index
    %7 = vector.load %arg3[%c0_6, %c0_7] : memref<1x100xf32, #tpu.memory_space<vmem>>, vector<1x100xf32>
    %8 = vector.broadcast %7 : vector<1x100xf32> to vector<2x100xf32>
    %9 = arith.addf %6, %8 : vector<2x100xf32>
    %c0_8 = arith.constant 0 : index
    %c0_9 = arith.constant 0 : index
    %10 = vector.load %arg4[%c0_8, %c0_9] : memref<2x100xf32, #tpu.memory_space<vmem>>, vector<2x100xf32>
    tpu.vector_store %arg4[%c0_8, %c0_9], %9 {strides = array<i32>} : memref<2x100xf32, #tpu.memory_space<vmem>>, vector<2x100xf32>,
    return
  }
  func.func @transform_0(%arg0: i32) -> (i32, i32, i32) {
    %c0_i32 = arith.constant 0 : i32
    %c0_i32_0 = arith.constant 0 : i32
    %c0_i32_1 = arith.constant 0 : i32
    return %arg0, %c0_i32, %c0_i32_0 : i32, i32, i32
  }
  func.func @transform_1(%arg0: i32) -> (i32, i32) {
    %c0_i32 = arith.constant 0 : i32
    %c0_i32_0 = arith.constant 0 : i32
    %c0_i32_1 = arith.constant 0 : i32
    return %c0_i32, %c0_i32_0 : i32, i32
  }
  func.func @transform_2(%arg0: i32) -> (i32, i32) {
    %c0_i32 = arith.constant 0 : i32
    %c0_i32_0 = arith.constant 0 : i32
    %c0_i32_1 = arith.constant 0 : i32
    return %c0_i32, %c0_i32_0 : i32, i32
  }
  func.func @transform_3(%arg0: i32) -> (i32, i32) {
    %c0_i32 = arith.constant 0 : i32
    %c0_i32_0 = arith.constant 0 : i32
    return %arg0, %c0_i32 : i32, i32
  }
}

</mosaic_0001>

<bundles_post_ra>
// kernel: forward.13
= control target key start
LH: loop header
LB: loop body
LE: loop exit
PB: predicated region body
PF: predicated region fallthrough
CT: control target
= control target key end

     0   :  { %s1367_s15 = smov 0   ;;  %s1369_s16 = smov 0   ;;  %s1544_s0 = inlined_call_operand.vmem [shape: bf16[512,128], index: 0, kind: input, shape index: {}]   ;;  %s1545_s1 = inlined_call_operand.vmem [shape: bf16[128,128], index: 1, kind: input, shape index: {}]   ;;  %s1546_s2 = inlined_call_operand.vmem [shape: f32[1,128], index: 2, kind: input, shape index: {}]   ;;  %s1547_s3 = inlined_call_operand.vmem [shape: f32[1,128], index: 3, kind: input, shape index: {}]   ;;  %s1548_s4 = inlined_call_operand.vmem [shape: bf16[512,128], index: 4, kind: output, shape index: {}]  }
   0x1   :  { %s1371_s17 = smov 0  }
   0x2 LB: > { %s33_s18 = sadd.s32 1, %s1336_s16  ;;  %p1046_p0 = scmp.ge.s32.totalorder %s1340_s17, 1  ;;  %s1340_s17 = sphi %s1371_s17, %s14_s17   ;;  %s1336_s16 = sphi %s1369_s16, %s1550_s16   ;;  %s1332_s15 = sphi %s1367_s15, %s1549_s15  }
   0x3   : > { %p35_p1 = scmp.ge.s32.totalorder %s33_s18, 2  ;;  %p221_p2 = scmp.lt.s32.totalorder %s1340_s17, 3 }
   0x5   : > { %s1552_s18 = smov (%p35_p1, %s33_s18), 0  ;;  %p222_p3 = pnand %p1046_p0, %p221_p2 }
   0x6   : > { %s1047_s27 = sshll.u32 (!%p222_p3), %s1332_s15, 5 }
   0x7   : > { %225 = sbr.rel (%p222_p3) target bundleno = 243 (0xf3), region = 36  ;;  %p268_p4 = scmp.lt.s32.totalorder (!%p222_p3), %s1047_s27, 63 }
   0xc   : > { %v1172_v0 = vld [vmem:[%s1545_s1 + $0x38] sm:$0xff]  ;;  %v1171_v1 = vld [vmem:[%s1545_s1 + $0x30] sm:$0xff]  ;;  %v1170_v2 = vld [vmem:[%s1545_s1 + $0x28] sm:$0xff]  ;;  %s1554_s27 = smov (!%p268_p4, %s1047_s27), 63 }
   0xd   : > { %560 = vmatpush.bf16.msra.mxu0 %v1172_v0  ;;  %1268 = vmatpush.bf16.msra.mxu1 %v1172_v0  ;;  %v1169_v3 = vld [vmem:[%s1545_s1 + $0x20] sm:$0xff]  ;;  %v1168_v4 = vld [vmem:[%s1545_s1 + $0x18] sm:$0xff]  ;;  %v1167_v5 = vld [vmem:[%s1545_s1 + $0x10] sm:$0xff]  ;;  %s1048_s8 = sshll.u32 %s1554_s27, 2 }
   0xe   : > { %1269 = vmatpush.bf16.msra.mxu2 %v1172_v0  ;;  %1270 = vmatpush.bf16.msra.mxu3 %v1172_v0  ;;  %v1166_v6 = vld [vmem:[%s1545_s1 + $0x8] sm:$0xff]  ;;  %v1165_v7 = vld [vmem:[%s1545_s1] sm:$0xff]  ;;  %s1420_s13 = scalar_lea.vmem %s1544_s0, %s1048_s8  ;;  %s1463_s23 = scalar_lea.vmem %s1548_s4, %s1048_s8 }
   0xf   : > { %v1149_v8 = vld [vmem:[%s1420_s13] sm:$0xff]  ;;  %v1150_v12 = vld [vmem:[%s1420_s13 + $0x8] sm:$0xff]  ;;  %v1151_v16 = vld [vmem:[%s1420_s13 + $0x10] sm:$0xff] }
  0x10   : > { %v1153_v9 = vld [vmem:[%s1420_s13 + $0x20] sm:$0xff]  ;;  %v1154_v13 = vld [vmem:[%s1420_s13 + $0x28] sm:$0xff]  ;;  %v1155_v17 = vld [vmem:[%s1420_s13 + $0x30] sm:$0xff] }
  0x11   : > { %561 = vmatpush.bf16.msra.mxu0 %v1171_v1  ;;  %1271 = vmatpush.bf16.msra.mxu1 %v1171_v1  ;;  %v1157_v10 = vld [vmem:[%s1420_s13 + $0x40] sm:$0xff]  ;;  %v1158_v14 = vld [vmem:[%s1420_s13 + $0x48] sm:$0xff]  ;;  %v1159_v18 = vld [vmem:[%s1420_s13 + $0x50] sm:$0xff] }
  0x12   : > { %1272 = vmatpush.bf16.msra.mxu2 %v1171_v1  ;;  %1273 = vmatpush.bf16.msra.mxu3 %v1171_v1  ;;  %v1161_v11 = vld [vmem:[%s1420_s13 + $0x60] sm:$0xff]  ;;  %v1162_v15 = vld [vmem:[%s1420_s13 + $0x68] sm:$0xff]  ;;  %v1163_v19 = vld [vmem:[%s1420_s13 + $0x70] sm:$0xff] }
  0x13   : > { %v1152_v20 = vld [vmem:[%s1420_s13 + $0x18] sm:$0xff]  ;;  %v1441_v26 = vld [vmem:[%s1546_s2] ss:$0 sm:$0xff] }
  0x14   : > { %v1156_v21 = vld [vmem:[%s1420_s13 + $0x38] sm:$0xff]  ;;  %v1447_v28 = vld [vmem:[%s1547_s3] ss:$0 sm:$0xff] }
  0x15   : > { %562 = vmatpush.bf16.msra.mxu0 %v1170_v2  ;;  %1274 = vmatpush.bf16.msra.mxu1 %v1170_v2  ;;  %v1160_v22 = vld [vmem:[%s1420_s13 + $0x58] sm:$0xff] }
  0x16   : > { %1275 = vmatpush.bf16.msra.mxu2 %v1170_v2  ;;  %1276 = vmatpush.bf16.msra.mxu3 %v1170_v2  ;;  %v1164_v23 = vld [vmem:[%s1420_s13 + $0x78] sm:$0xff] }
  0x19   : > { %563 = vmatpush.bf16.msra.mxu0 %v1169_v3  ;;  %1277 = vmatpush.bf16.msra.mxu1 %v1169_v3 }
  0x1a   : > { %1278 = vmatpush.bf16.msra.mxu2 %v1169_v3  ;;  %1279 = vmatpush.bf16.msra.mxu3 %v1169_v3 }
  0x1d   : > { %564 = vmatpush.bf16.msra.mxu0 %v1168_v4  ;;  %1280 = vmatpush.bf16.msra.mxu1 %v1168_v4 }
  0x1e   : > { %1281 = vmatpush.bf16.msra.mxu2 %v1168_v4  ;;  %1282 = vmatpush.bf16.msra.mxu3 %v1168_v4 }
  0x21   : > { %565 = vmatpush.bf16.msra.mxu0 %v1167_v5  ;;  %1283 = vmatpush.bf16.msra.mxu1 %v1167_v5 }
  0x22   : > { %1284 = vmatpush.bf16.msra.mxu2 %v1167_v5  ;;  %1285 = vmatpush.bf16.msra.mxu3 %v1167_v5 }
  0x25   : > { %566 = vmatpush.bf16.msra.mxu0 %v1166_v6  ;;  %1286 = vmatpush.bf16.msra.mxu1 %v1166_v6 }
  0x26   : > { %1287 = vmatpush.bf16.msra.mxu2 %v1166_v6  ;;  %1288 = vmatpush.bf16.msra.mxu3 %v1166_v6 }
  0x29   : > { %567 = vmatpush.bf16.msra.mxu0 %v1165_v7  ;;  %1289 = vmatpush.bf16.msra.mxu1 %v1165_v7 }
  0x2a   : > { %1290 = vmatpush.bf16.msra.mxu2 %v1165_v7  ;;  %1291 = vmatpush.bf16.msra.mxu3 %v1165_v7 }
  0x2c   : > { %568 = vmatmul.bf16.vlgmr.msra.gmra.mxu0 %v1149_v8  ;;  %588 = vmatmul.bf16.vlgmr.msra.gmra.mxu1 %v1153_v9 }
  0x2d   : > { %608 = vmatmul.bf16.vlgmr.msra.gmra.mxu2 %v1157_v10  ;;  %628 = vmatmul.bf16.vlgmr.msra.gmra.mxu3 %v1161_v11 }
  0x3c   : > { %573 = vmatmul.bf16.gmra.mxu0 %v1150_v12  ;;  %593 = vmatmul.bf16.gmra.mxu1 %v1154_v13 }
  0x3d   : > { %613 = vmatmul.bf16.gmra.mxu2 %v1158_v14  ;;  %633 = vmatmul.bf16.gmra.mxu3 %v1162_v15 }
  0x4c   : > { %578 = vmatmul.bf16.gmra.mxu0 %v1151_v16  ;;  %598 = vmatmul.bf16.gmra.mxu1 %v1155_v17 }
  0x4d   : > { %618 = vmatmul.bf16.gmra.mxu2 %v1159_v18  ;;  %638 = vmatmul.bf16.gmra.mxu3 %v1163_v19 }
  0x5c   : > { %583 = vmatmul.bf16.gmra.mxu0 %v1152_v20  ;;  %603 = vmatmul.bf16.gmra.mxu1 %v1156_v21 }
  0x5d   : > { %623 = vmatmul.bf16.gmra.mxu2 %v1160_v22  ;;  %643 = vmatmul.bf16.gmra.mxu3 %v1164_v23 }
  0xa9   : > { %v569_v24 = vpop.f32.mrf.mxu0  ;;  %v589_v25 = vpop.f32.mrf.mxu1 }
  0xaa   : > { %v752_v27 = vmul.f32 %v1441_v26, %v569_v24  ;;  %v760_v29 = vmul.f32 %v1441_v26, %v589_v25 }
  0xac   : > { %v788_v34 = vadd.f32 %v1447_v28, %v752_v27  ;;  %v796_v35 = vadd.f32 %v1447_v28, %v760_v29 }
  0xae   : > { %v820_v42 = vmax.f32 %v788_v34, 0.0  ;;  %v828_v43 = vmax.f32 %v796_v35, 0.0 }
  0xb0   : > { %v609_v30 = vpop.f32.mrf.mxu2  ;;  %v629_v31 = vpop.f32.mrf.mxu3 }
  0xb1   : > { %v571_v32 = vpop.f32.mrf.mxu0  ;;  %v591_v33 = vpop.f32.mrf.mxu1  ;;  %v768_v40 = vmul.f32 %v1441_v26, %v609_v30  ;;  %v776_v41 = vmul.f32 %v1441_v26, %v629_v31 }
  0xb2   : > { %v753_v36 = vmul.f32 %v1441_v26, %v571_v32  ;;  %v761_v37 = vmul.f32 %v1441_v26, %v591_v33 }
  0xb3   : > { %v804_v50 = vadd.f32 %v1447_v28, %v768_v40  ;;  %v812_v51 = vadd.f32 %v1447_v28, %v776_v41 }
  0xb4   : > { %v789_v38 = vadd.f32 %v1447_v28, %v753_v36  ;;  %v797_v39 = vadd.f32 %v1447_v28, %v761_v37 }
  0xb5   : > { %v836_v58 = vmax.f32 %v804_v50, 0.0  ;;  %v844_v59 = vmax.f32 %v812_v51, 0.0 }
  0xb6   : > { %v821_v44 = vmax.f32 %v789_v38, 0.0  ;;  %v829_v45 = vmax.f32 %v797_v39, 0.0 }
  0xb8   : > { %v1176_v46 = vpack.c.bf16 %v821_v44, %v820_v42  ;;  %v1196_v47 = vpack.c.bf16 %v829_v45, %v828_v43  ;;  %v611_v48 = vpop.f32.mrf.mxu2  ;;  %v631_v49 = vpop.f32.mrf.mxu3 }
  0xb9   : > { %v769_v52 = vmul.f32 %v1441_v26, %v611_v48  ;;  %v777_v53 = vmul.f32 %v1441_v26, %v631_v49  ;;  %v574_v54 = vpop.f32.mrf.mxu0  ;;  %v594_v55 = vpop.f32.mrf.mxu1 }
  0xba   : > { %1177 = vst [vmem:[%s1463_s23] sm:$0xff] %v1176_v46   ;;  %v754_v62 = vmul.f32 %v1441_v26, %v574_v54  ;;  %v762_v63 = vmul.f32 %v1441_v26, %v594_v55 }
  0xbb   : > { %1256 = vst [vmem:[%s1463_s23 + $0x20] sm:$0xff] %v1196_v47   ;;  %v805_v56 = vadd.f32 %v1447_v28, %v769_v52  ;;  %v813_v57 = vadd.f32 %v1447_v28, %v777_v53 }
  0xbc   : > { %v790_v6 = vadd.f32 %v1447_v28, %v754_v62  ;;  %v798_v7 = vadd.f32 %v1447_v28, %v762_v63 }
  0xbd   : > { %v837_v60 = vmax.f32 %v805_v56, 0.0  ;;  %v845_v61 = vmax.f32 %v813_v57, 0.0 }
  0xbe   : > { %v822_v14 = vmax.f32 %v790_v6, 0.0  ;;  %v830_v15 = vmax.f32 %v798_v7, 0.0 }
  0xbf   : > { %v1216_v0 = vpack.c.bf16 %v837_v60, %v836_v58  ;;  %v1236_v1 = vpack.c.bf16 %v845_v61, %v844_v59 }
  0xc0   : > { %v614_v2 = vpop.f32.mrf.mxu2  ;;  %v634_v3 = vpop.f32.mrf.mxu3 }
  0xc1   : > { %1260 = vst [vmem:[%s1463_s23 + $0x40] sm:$0xff] %v1216_v0   ;;  %v576_v4 = vpop.f32.mrf.mxu0  ;;  %v596_v5 = vpop.f32.mrf.mxu1  ;;  %v770_v12 = vmul.f32 %v1441_v26, %v614_v2  ;;  %v778_v13 = vmul.f32 %v1441_v26, %v634_v3 }
  0xc2   : > { %1264 = vst [vmem:[%s1463_s23 + $0x60] sm:$0xff] %v1236_v1   ;;  %v755_v8 = vmul.f32 %v1441_v26, %v576_v4  ;;  %v763_v9 = vmul.f32 %v1441_v26, %v596_v5 }
  0xc3   : > { %v806_v22 = vadd.f32 %v1447_v28, %v770_v12  ;;  %v814_v23 = vadd.f32 %v1447_v28, %v778_v13 }
  0xc4   : > { %v791_v10 = vadd.f32 %v1447_v28, %v755_v8  ;;  %v799_v11 = vadd.f32 %v1447_v28, %v763_v9 }
  0xc5   : > { %v838_v32 = vmax.f32 %v806_v22, 0.0  ;;  %v846_v33 = vmax.f32 %v814_v23, 0.0 }
  0xc6   : > { %v823_v16 = vmax.f32 %v791_v10, 0.0  ;;  %v831_v17 = vmax.f32 %v799_v11, 0.0 }
  0xc8   : > { %v1181_v18 = vpack.c.bf16 %v823_v16, %v822_v14  ;;  %v1201_v19 = vpack.c.bf16 %v831_v17, %v830_v15  ;;  %v616_v20 = vpop.f32.mrf.mxu2  ;;  %v636_v21 = vpop.f32.mrf.mxu3 }
  0xc9   : > { %v771_v24 = vmul.f32 %v1441_v26, %v616_v20  ;;  %v779_v25 = vmul.f32 %v1441_v26, %v636_v21  ;;  %v579_v27 = vpop.f32.mrf.mxu0  ;;  %v599_v29 = vpop.f32.mrf.mxu1 }
  0xca   : > { %1253 = vst [vmem:[%s1463_s23 + $0x8] sm:$0xff] %v1181_v18   ;;  %v756_v36 = vmul.f32 %v1441_v26, %v579_v27  ;;  %v764_v37 = vmul.f32 %v1441_v26, %v599_v29 }
  0xcb   : > { %1257 = vst [vmem:[%s1463_s23 + $0x28] sm:$0xff] %v1201_v19   ;;  %v807_v30 = vadd.f32 %v1447_v28, %v771_v24  ;;  %v815_v31 = vadd.f32 %v1447_v28, %v779_v25 }
  0xcc   : > { %v792_v44 = vadd.f32 %v1447_v28, %v756_v36  ;;  %v800_v45 = vadd.f32 %v1447_v28, %v764_v37 }
  0xcd   : > { %v839_v34 = vmax.f32 %v807_v30, 0.0  ;;  %v847_v35 = vmax.f32 %v815_v31, 0.0 }
  0xce   : > { %v824_v52 = vmax.f32 %v792_v44, 0.0  ;;  %v832_v53 = vmax.f32 %v800_v45, 0.0 }
  0xcf   : > { %v1221_v38 = vpack.c.bf16 %v839_v34, %v838_v32  ;;  %v1241_v39 = vpack.c.bf16 %v847_v35, %v846_v33 }
  0xd0   : > { %v619_v40 = vpop.f32.mrf.mxu2  ;;  %v639_v41 = vpop.f32.mrf.mxu3 }
  0xd1   : > { %1261 = vst [vmem:[%s1463_s23 + $0x48] sm:$0xff] %v1221_v38   ;;  %v581_v42 = vpop.f32.mrf.mxu0  ;;  %v601_v43 = vpop.f32.mrf.mxu1  ;;  %v772_v50 = vmul.f32 %v1441_v26, %v619_v40  ;;  %v780_v51 = vmul.f32 %v1441_v26, %v639_v41 }
  0xd2   : > { %1265 = vst [vmem:[%s1463_s23 + $0x68] sm:$0xff] %v1241_v39   ;;  %v757_v46 = vmul.f32 %v1441_v26, %v581_v42  ;;  %v765_v47 = vmul.f32 %v1441_v26, %v601_v43 }
  0xd3   : > { %v808_v60 = vadd.f32 %v1447_v28, %v772_v50  ;;  %v816_v61 = vadd.f32 %v1447_v28, %v780_v51 }
  0xd4   : > { %v793_v48 = vadd.f32 %v1447_v28, %v757_v46  ;;  %v801_v49 = vadd.f32 %v1447_v28, %v765_v47 }
  0xd5   : > { %v840_v4 = vmax.f32 %v808_v60, 0.0  ;;  %v848_v5 = vmax.f32 %v816_v61, 0.0 }
  0xd6   : > { %v825_v54 = vmax.f32 %v793_v48, 0.0  ;;  %v833_v55 = vmax.f32 %v801_v49, 0.0 }
  0xd8   : > { %v1186_v56 = vpack.c.bf16 %v825_v54, %v824_v52  ;;  %v1206_v57 = vpack.c.bf16 %v833_v55, %v832_v53  ;;  %v621_v58 = vpop.f32.mrf.mxu2  ;;  %v641_v59 = vpop.f32.mrf.mxu3 }
  0xd9   : > { %v773_v62 = vmul.f32 %v1441_v26, %v621_v58  ;;  %v781_v63 = vmul.f32 %v1441_v26, %v641_v59  ;;  %v584_v0 = vpop.f32.mrf.mxu0  ;;  %v604_v1 = vpop.f32.mrf.mxu1 }
  0xda   : > { %1254 = vst [vmem:[%s1463_s23 + $0x10] sm:$0xff] %v1186_v56   ;;  %v758_v8 = vmul.f32 %v1441_v26, %v584_v0  ;;  %v766_v9 = vmul.f32 %v1441_v26, %v604_v1 }
  0xdb   : > { %1258 = vst [vmem:[%s1463_s23 + $0x30] sm:$0xff] %v1206_v57   ;;  %v809_v2 = vadd.f32 %v1447_v28, %v773_v62  ;;  %v817_v3 = vadd.f32 %v1447_v28, %v781_v63 }
  0xdc   : > { %v794_v16 = vadd.f32 %v1447_v28, %v758_v8  ;;  %v802_v17 = vadd.f32 %v1447_v28, %v766_v9 }
  0xdd   : > { %v841_v6 = vmax.f32 %v809_v2, 0.0  ;;  %v849_v7 = vmax.f32 %v817_v3, 0.0 }
  0xde   : > { %v826_v24 = vmax.f32 %v794_v16, 0.0  ;;  %v834_v25 = vmax.f32 %v802_v17, 0.0 }
  0xdf   : > { %v1226_v10 = vpack.c.bf16 %v841_v6, %v840_v4  ;;  %v1246_v11 = vpack.c.bf16 %v849_v7, %v848_v5 }
  0xe0   : > { %v624_v12 = vpop.f32.mrf.mxu2  ;;  %v644_v13 = vpop.f32.mrf.mxu3 }
  0xe1   : > { %1262 = vst [vmem:[%s1463_s23 + $0x50] sm:$0xff] %v1226_v10   ;;  %v586_v14 = vpop.f32.mrf.mxu0  ;;  %v606_v15 = vpop.f32.mrf.mxu1  ;;  %v774_v22 = vmul.f32 %v1441_v26, %v624_v12  ;;  %v782_v23 = vmul.f32 %v1441_v26, %v644_v13 }
  0xe2   : > { %1266 = vst [vmem:[%s1463_s23 + $0x70] sm:$0xff] %v1246_v11   ;;  %v759_v18 = vmul.f32 %v1441_v26, %v586_v14  ;;  %v767_v19 = vmul.f32 %v1441_v26, %v606_v15 }
  0xe3   : > { %v810_v34 = vadd.f32 %v1447_v28, %v774_v22  ;;  %v818_v35 = vadd.f32 %v1447_v28, %v782_v23 }
  0xe4   : > { %v795_v20 = vadd.f32 %v1447_v28, %v759_v18  ;;  %v803_v21 = vadd.f32 %v1447_v28, %v767_v19 }
  0xe5   : > { %v842_v40 = vmax.f32 %v810_v34, 0.0  ;;  %v850_v41 = vmax.f32 %v818_v35, 0.0 }
  0xe6   : > { %v827_v27 = vmax.f32 %v795_v20, 0.0  ;;  %v835_v29 = vmax.f32 %v803_v21, 0.0 }
  0xe8   : > { %v1191_v30 = vpack.c.bf16 %v827_v27, %v826_v24  ;;  %v1211_v31 = vpack.c.bf16 %v835_v29, %v834_v25  ;;  %v626_v32 = vpop.f32.mrf.mxu2  ;;  %v646_v33 = vpop.f32.mrf.mxu3 }
  0xe9   : > { %v775_v36 = vmul.f32 %v1441_v26, %v626_v32  ;;  %v783_v37 = vmul.f32 %v1441_v26, %v646_v33 }
  0xea   : > { %1255 = vst [vmem:[%s1463_s23 + $0x18] sm:$0xff] %v1191_v30  }
  0xeb   : > { %1259 = vst [vmem:[%s1463_s23 + $0x38] sm:$0xff] %v1211_v31   ;;  %v811_v38 = vadd.f32 %v1447_v28, %v775_v36  ;;  %v819_v39 = vadd.f32 %v1447_v28, %v783_v37 }
  0xed   : > { %v843_v42 = vmax.f32 %v811_v38, 0.0  ;;  %v851_v43 = vmax.f32 %v819_v39, 0.0 }
  0xef   : > { %v1231_v44 = vpack.c.bf16 %v843_v42, %v842_v40  ;;  %v1251_v45 = vpack.c.bf16 %v851_v43, %v850_v41 }
  0xf1   : > { %1263 = vst [vmem:[%s1463_s23 + $0x58] sm:$0xff] %v1231_v44  }
  0xf2   : > { %1267 = vst [vmem:[%s1463_s23 + $0x78] sm:$0xff] %v1251_v45  }
  0xf3 PF: > { %s14_s17 = sadd.s32 1, %s1340_s17   ;;  %s1549_s15 = smov %s1336_s16 }
  0xf4   : > { %p11_p5 = scmp.ge.s32.totalorder %s14_s17, 4   ;;  %s1550_s16 = smov %s1552_s18 }
  0xf6   :  { %13 = sbr.rel (!%p11_p5) target bundleno = 2 (0x2), region = 83 }

// kernel: forward.14
= control target key start
LH: loop header
LB: loop body
LE: loop exit
PB: predicated region body
PF: predicated region fallthrough
CT: control target
= control target key end

     0   :  { %s1606_s15 = smov 0   ;;  %s1608_s16 = smov 0   ;;  %s1888_s0 = inlined_call_operand.vmem [shape: bf16[512,640], index: 0, kind: input, shape index: {}]   ;;  %s1889_s1 = inlined_call_operand.vmem [shape: bf16[640,128], index: 1, kind: input, shape index: {}]   ;;  %s1890_s2 = inlined_call_operand.vmem [shape: f32[1,128], index: 2, kind: input, shape index: {}]   ;;  %s1891_s3 = inlined_call_operand.vmem [shape: f32[1,128], index: 3, kind: input, shape index: {}]   ;;  %s1892_s4 = inlined_call_operand.vmem [shape: bf16[512,128], index: 4, kind: output, shape index: {}]  }
   0x1   :  { %s1610_s17 = smov 0   ;;  %s1612_s18 = smov 0  }
   0x2   :  { %s1614_s19 = smov 0   ;;  %s1616_s20 = smov 0  }
   0x3   :  { %s1618_s21 = smov 0  }
   0x4 LB: > { %s26_s22 = sadd.s32 1, %s1570_s19  ;;  %s33_s23 = sadd.s32 1, %s1574_s20  ;;  %s1578_s21 = sphi %s1618_s21, %s14_s21   ;;  %s1574_s20 = sphi %s1616_s20, %s1898_s20   ;;  %s1570_s19 = sphi %s1614_s19, %s1897_s19   ;;  %s1566_s18 = sphi %s1612_s18, %s1896_s18   ;;  %s1562_s17 = sphi %s1610_s17, %s1895_s17   ;;  %s1558_s16 = sphi %s1608_s16, %s1894_s16   ;;  %s1554_s15 = sphi %s1606_s15, %s1893_s15  }
   0x5   : > { %p27_p0 = scmp.ge.s32.totalorder %s26_s22, 5  ;;  %p49_p1 = scmp.ne.s32.totalorder %s1558_s16, %s1554_s15 }
   0x6   : > { %p50_p2 = scmp.eq.s32.totalorder %s1578_s21, 0  ;;  %s42_s27 = sadd.s32 1, %s1558_s16 }
   0x7   : > { %s1900_s22 = smov (%p27_p0, %s26_s22), 0  ;;  %s1902_s23 = smov (!%p27_p0, %s33_s23), %s1574_s20 }
   0x8   : > { %p51_p3 = por %p50_p2, %p49_p1  ;;  %p35_p4 = scmp.ge.s32.totalorder %s1902_s23, 2 }
   0x9   : > { %s38_s24 = ssub.s32 %s1570_s19, %s1900_s22  ;;  %p1210_p6 = scmp.ge.s32.totalorder %s1578_s21, 10 }
   0xa   : > { %s1904_s23 = smov (%p35_p4, %s1902_s23), 0 }
   0xb   : > { %s37_s25 = ssub.s32 %s1574_s20, %s1904_s23  ;;  %195 = sbr.rel (%p1210_p6) target bundleno = 55 (0x37), region = 24 }
   0xc   : > { %s39_s26 = sor.u32 %s38_s24, %s37_s25 }
   0xd   : > { %p40_p5 = scmp.eq.s32.totalorder %s39_s26, 0 }
   0xf   : > { %s1657_s28 = scalar_select %p40_p5, %s1558_s16, %s42_s27  }
  0x10   : > { %198 = sbr.rel (!%p51_p3) target bundleno = 55 (0x37), region = 28  ;;  %s200_s29 = sand.u32 (%p51_p3), 1, %s1558_s16  }
  0x11   : > { %s1464_s30 = smul.u32 (%p51_p3), 160, %s1574_s20  ;;  %s1211_s5 = sshll.u32 (%p51_p3), %s200_s29, 7 }
  0x12   : > { %s1671_s11 = scalar_lea.vmem (%p51_p3), [#allocation3], %s1211_s5 }
  0x13   : > { %s205_s6 = sadd.s32 (%p51_p3), %s1570_s19, %s1464_s30 }
  0x14   : > { %s1214_s7 = sshll.u32 (%p51_p3), %s205_s6, 2 }
  0x15   : > { %s1666_s10 = scalar_lea.vmem %s1888_s0, %s1214_s7 }
  0x16   : > { %v224_v0 = vld [vmem:[%s1666_s10] sm:$0xf]  ;;  %v226_v1 = vld [vmem:[%s1666_s10 + $0x14] sm:$0xf]  ;;  %v228_v2 = vld [vmem:[%s1666_s10 + $0x28] sm:$0xf] }
  0x17   : > { %225 = vst [vmem:[%s1671_s11] sm:$0xf] %v224_v0  ;;  %v230_v3 = vld [vmem:[%s1666_s10 + $0x3c] sm:$0xf]  ;;  %v232_v4 = vld [vmem:[%s1666_s10 + $0x50] sm:$0xf] }
  0x18   : > { %227 = vst [vmem:[%s1671_s11 + $0x4] sm:$0xf] %v226_v1  ;;  %v234_v5 = vld [vmem:[%s1666_s10 + $0x64] sm:$0xf]  ;;  %v236_v6 = vld [vmem:[%s1666_s10 + $0x78] sm:$0xf] }
  0x19   : > { %229 = vst [vmem:[%s1671_s11 + $0x8] sm:$0xf] %v228_v2  ;;  %v238_v7 = vld [vmem:[%s1666_s10 + $0x8c] sm:$0xf]  ;;  %v240_v8 = vld [vmem:[%s1666_s10 + $0xa0] sm:$0xf] }
  0x1a   : > { %231 = vst [vmem:[%s1671_s11 + $0xc] sm:$0xf] %v230_v3  ;;  %v242_v9 = vld [vmem:[%s1666_s10 + $0xb4] sm:$0xf]  ;;  %v244_v10 = vld [vmem:[%s1666_s10 + $0xc8] sm:$0xf] }
  0x1b   : > { %233 = vst [vmem:[%s1671_s11 + $0x10] sm:$0xf] %v232_v4  ;;  %v246_v11 = vld [vmem:[%s1666_s10 + $0xdc] sm:$0xf]  ;;  %v248_v12 = vld [vmem:[%s1666_s10 + $0xf0] sm:$0xf] }
  0x1c   : > { %235 = vst [vmem:[%s1671_s11 + $0x14] sm:$0xf] %v234_v5  ;;  %v250_v13 = vld [vmem:[%s1666_s10 + $0x104] sm:$0xf]  ;;  %v252_v14 = vld [vmem:[%s1666_s10 + $0x118] sm:$0xf] }
  0x1d   : > { %237 = vst [vmem:[%s1671_s11 + $0x18] sm:$0xf] %v236_v6  ;;  %v254_v15 = vld [vmem:[%s1666_s10 + $0x12c] sm:$0xf]  ;;  %v256_v16 = vld [vmem:[%s1666_s10 + $0x140] sm:$0xf] }
  0x1e   : > { %239 = vst [vmem:[%s1671_s11 + $0x1c] sm:$0xf] %v238_v7  ;;  %v258_v17 = vld [vmem:[%s1666_s10 + $0x154] sm:$0xf]  ;;  %v260_v18 = vld [vmem:[%s1666_s10 + $0x168] sm:$0xf] }
  0x1f   : > { %241 = vst [vmem:[%s1671_s11 + $0x20] sm:$0xf] %v240_v8  ;;  %v262_v19 = vld [vmem:[%s1666_s10 + $0x17c] sm:$0xf]  ;;  %v264_v20 = vld [vmem:[%s1666_s10 + $0x190] sm:$0xf] }
  0x20   : > { %243 = vst [vmem:[%s1671_s11 + $0x24] sm:$0xf] %v242_v9  ;;  %v266_v21 = vld [vmem:[%s1666_s10 + $0x1a4] sm:$0xf]  ;;  %v268_v22 = vld [vmem:[%s1666_s10 + $0x1b8] sm:$0xf] }
  0x21   : > { %245 = vst [vmem:[%s1671_s11 + $0x28] sm:$0xf] %v244_v10  ;;  %v270_v23 = vld [vmem:[%s1666_s10 + $0x1cc] sm:$0xf]  ;;  %v272_v24 = vld [vmem:[%s1666_s10 + $0x1e0] sm:$0xf] }
  0x22   : > { %247 = vst [vmem:[%s1671_s11 + $0x2c] sm:$0xf] %v246_v11  ;;  %v274_v25 = vld [vmem:[%s1666_s10 + $0x1f4] sm:$0xf]  ;;  %v276_v26 = vld [vmem:[%s1666_s10 + $0x208] sm:$0xf] }
  0x23   : > { %249 = vst [vmem:[%s1671_s11 + $0x30] sm:$0xf] %v248_v12  ;;  %v278_v27 = vld [vmem:[%s1666_s10 + $0x21c] sm:$0xf]  ;;  %v280_v28 = vld [vmem:[%s1666_s10 + $0x230] sm:$0xf] }
  0x24   : > { %251 = vst [vmem:[%s1671_s11 + $0x34] sm:$0xf] %v250_v13  ;;  %v282_v29 = vld [vmem:[%s1666_s10 + $0x244] sm:$0xf]  ;;  %v284_v30 = vld [vmem:[%s1666_s10 + $0x258] sm:$0xf] }
  0x25   : > { %253 = vst [vmem:[%s1671_s11 + $0x38] sm:$0xf] %v252_v14  ;;  %v286_v31 = vld [vmem:[%s1666_s10 + $0x26c] sm:$0xf] }
  0x26   : > { %255 = vst [vmem:[%s1671_s11 + $0x3c] sm:$0xf] %v254_v15 }
  0x27   : > { %257 = vst [vmem:[%s1671_s11 + $0x40] sm:$0xf] %v256_v16 }
  0x28   : > { %259 = vst [vmem:[%s1671_s11 + $0x44] sm:$0xf] %v258_v17 }
  0x29   : > { %261 = vst [vmem:[%s1671_s11 + $0x48] sm:$0xf] %v260_v18 }
  0x2a   : > { %263 = vst [vmem:[%s1671_s11 + $0x4c] sm:$0xf] %v262_v19 }
  0x2b   : > { %265 = vst [vmem:[%s1671_s11 + $0x50] sm:$0xf] %v264_v20 }
  0x2c   : > { %267 = vst [vmem:[%s1671_s11 + $0x54] sm:$0xf] %v266_v21 }
  0x2d   : > { %269 = vst [vmem:[%s1671_s11 + $0x58] sm:$0xf] %v268_v22 }
  0x2e   : > { %271 = vst [vmem:[%s1671_s11 + $0x5c] sm:$0xf] %v270_v23 }
  0x2f   : > { %273 = vst [vmem:[%s1671_s11 + $0x60] sm:$0xf] %v272_v24 }
  0x30   : > { %275 = vst [vmem:[%s1671_s11 + $0x64] sm:$0xf] %v274_v25 }
  0x31   : > { %277 = vst [vmem:[%s1671_s11 + $0x68] sm:$0xf] %v276_v26 }
  0x32   : > { %279 = vst [vmem:[%s1671_s11 + $0x6c] sm:$0xf] %v278_v27 }
  0x33   : > { %281 = vst [vmem:[%s1671_s11 + $0x70] sm:$0xf] %v280_v28 }
  0x34   : > { %283 = vst [vmem:[%s1671_s11 + $0x74] sm:$0xf] %v282_v29 }
  0x35   : > { %285 = vst [vmem:[%s1671_s11 + $0x78] sm:$0xf] %v284_v30 }
  0x36   : > { %287 = vst [vmem:[%s1671_s11 + $0x7c] sm:$0xf] %v286_v31 }
  0x37 PF: > { %p1215_p7 = scmp.ge.s32.totalorder %s1578_s21, 1  ;;  %p386_p8 = scmp.lt.s32.totalorder %s1578_s21, 11 }
  0x39   : > { %p387_p9 = pnand %p1215_p7, %p386_p8 }
  0x3a   : > { %s393_s12 = sand.u32 (!%p387_p9), 1, %s1554_s15   ;;  %s1217_s13 = sshll.u32 (!%p387_p9), %s1562_s17, 4 }
  0x3b   : > { %390 = sbr.rel (%p387_p9) target bundleno = 365 (0x16d), region = 73  ;;  %s1216_s14 = sshll.u32 (!%p387_p9), %s393_s12, 7 }
  0x3c   : > { %p437_p10 = scmp.lt.s32.totalorder (!%p387_p9), %s1217_s13, 79  ;;  %s1219_s24 = sshll.u32 (!%p387_p9), %s1566_s18, 5 }
  0x3d   : > { %p452_p11 = scmp.lt.s32.totalorder (!%p387_p9), %s1219_s24, 63  ;;  %s1749_s15 = scalar_lea.vmem (!%p387_p9), [#allocation3], %s1216_s14 }
  0x3e   : > { %p1221_p12 = scmp.ne.s32.totalorder (!%p387_p9), %s1562_s17, 0 }
  0x40   : > { %s1906_s13 = smov (!%p437_p10, %s1217_s13), 79  ;;  %s1908_s24 = smov (!%p452_p11, %s1219_s24), 63 }
  0x41   : > { %s1218_s25 = sshll.u32 %s1906_s13, 2  ;;  %s1220_s30 = sshll.u32 %s1908_s24, 2 }
  0x42   : > { %s1742_s29 = scalar_lea.vmem %s1889_s1, %s1218_s25  ;;  %s1747_s7 = scalar_lea.vmem %s1892_s4, %s1220_s30 }
  0x43   : > { %463 = sbr.rel (%p1221_p12) target bundleno = 105 (0x69), region = 81 }
  0x48   : > { %v1580_v32 = vmov 0.0  }
  0x49   : > { %464 = vst [vmem:[#allocation2 + $0xb0] sm:$0xff] %v1580_v32 }
  0x4a   : > { %465 = vst [vmem:[#allocation2] sm:$0xff] %v1580_v32 }
  0x4b   : > { %466 = vst [vmem:[#allocation2 + $0xd8] sm:$0xff] %v1580_v32 }
  0x4c   : > { %467 = vst [vmem:[#allocation2 + $0x18] sm:$0xff] %v1580_v32 }
  0x4d   : > { %468 = vst [vmem:[#allocation2 + $0x50] sm:$0xff] %v1580_v32 }
  0x4e   : > { %469 = vst [vmem:[#allocation2 + $0x68] sm:$0xff] %v1580_v32 }
  0x4f   : > { %470 = vst [vmem:[#allocation2 + $0x30] sm:$0xff] %v1580_v32 }
  0x50   : > { %471 = vst [vmem:[#allocation2 + $0x48] sm:$0xff] %v1580_v32 }
  0x51   : > { %472 = vst [vmem:[#allocation2 + $0x80] sm:$0xff] %v1580_v32 }
  0x52   : > { %473 = vst [vmem:[#allocation2 + $0x88] sm:$0xff] %v1580_v32 }
  0x53   : > { %474 = vst [vmem:[#allocation2 + $0xe8] sm:$0xff] %v1580_v32 }
  0x54   : > { %475 = vst [vmem:[#allocation2 + $0xb8] sm:$0xff] %v1580_v32 }
  0x55   : > { %476 = vst [vmem:[#allocation2 + $0x60] sm:$0xff] %v1580_v32 }
  0x56   : > { %477 = vst [vmem:[#allocation2 + $0xf0] sm:$0xff] %v1580_v32 }
  0x57   : > { %478 = vst [vmem:[#allocation2 + $0x8] sm:$0xff] %v1580_v32 }
  0x58   : > { %479 = vst [vmem:[#allocation2 + $0x78] sm:$0xff] %v1580_v32 }
  0x59   : > { %480 = vst [vmem:[#allocation2 + $0x38] sm:$0xff] %v1580_v32 }
  0x5a   : > { %481 = vst [vmem:[#allocation2 + $0x58] sm:$0xff] %v1580_v32 }
  0x5b   : > { %482 = vst [vmem:[#allocation2 + $0x40] sm:$0xff] %v1580_v32 }
  0x5c   : > { %483 = vst [vmem:[#allocation2 + $0xc8] sm:$0xff] %v1580_v32 }
  0x5d   : > { %484 = vst [vmem:[#allocation2 + $0xe0] sm:$0xff] %v1580_v32 }
  0x5e   : > { %485 = vst [vmem:[#allocation2 + $0x90] sm:$0xff] %v1580_v32 }
  0x5f   : > { %486 = vst [vmem:[#allocation2 + $0x70] sm:$0xff] %v1580_v32 }
  0x60   : > { %487 = vst [vmem:[#allocation2 + $0xc0] sm:$0xff] %v1580_v32 }
  0x61   : > { %488 = vst [vmem:[#allocation2 + $0xa8] sm:$0xff] %v1580_v32 }
  0x62   : > { %489 = vst [vmem:[#allocation2 + $0xd0] sm:$0xff] %v1580_v32 }
  0x63   : > { %490 = vst [vmem:[#allocation2 + $0x10] sm:$0xff] %v1580_v32 }
  0x64   : > { %491 = vst [vmem:[#allocation2 + $0x28] sm:$0xff] %v1580_v32 }
  0x65   : > { %492 = vst [vmem:[#allocation2 + $0xa0] sm:$0xff] %v1580_v32 }
  0x66   : > { %493 = vst [vmem:[#allocation2 + $0xf8] sm:$0xff] %v1580_v32 }
  0x67   : > { %494 = vst [vmem:[#allocation2 + $0x20] sm:$0xff] %v1580_v32 }
  0x68   : > { %495 = vst [vmem:[#allocation2 + $0x98] sm:$0xff] %v1580_v32 }
  0x69 PF: > { %v1344_v33 = vld [vmem:[%s1742_s29 + $0x38] sm:$0xff]  ;;  %v1343_v34 = vld [vmem:[%s1742_s29 + $0x30] sm:$0xff]  ;;  %v1342_v35 = vld [vmem:[%s1742_s29 + $0x28] sm:$0xff]  ;;  %p1318_p13 = scmp.ne.s32.totalorder %s1562_s17, 4 }
  0x6a   : > { %720 = vmatpush.bf16.msra.mxu0 %v1344_v33  ;;  %1440 = vmatpush.bf16.msra.mxu1 %v1344_v33  ;;  %v1341_v36 = vld [vmem:[%s1742_s29 + $0x20] sm:$0xff]  ;;  %v1340_v37 = vld [vmem:[%s1742_s29 + $0x18] sm:$0xff]  ;;  %v1339_v38 = vld [vmem:[%s1742_s29 + $0x10] sm:$0xff] }
  0x6b   : > { %1441 = vmatpush.bf16.msra.mxu2 %v1344_v33  ;;  %1442 = vmatpush.bf16.msra.mxu3 %v1344_v33  ;;  %v1338_v39 = vld [vmem:[%s1742_s29 + $0x8] sm:$0xff]  ;;  %v1337_v40 = vld [vmem:[%s1742_s29] sm:$0xff]  ;;  %v1323_v49 = vld [vmem:[%s1749_s15 + $0x10] sm:$0xff] }
  0x6c   : > { %v1321_v41 = vld [vmem:[%s1749_s15] sm:$0xff]  ;;  %v1322_v45 = vld [vmem:[%s1749_s15 + $0x8] sm:$0xff]  ;;  %v1327_v50 = vld [vmem:[%s1749_s15 + $0x30] sm:$0xff] }
  0x6d   : > { %v1325_v42 = vld [vmem:[%s1749_s15 + $0x20] sm:$0xff]  ;;  %v1326_v46 = vld [vmem:[%s1749_s15 + $0x28] sm:$0xff]  ;;  %v1331_v51 = vld [vmem:[%s1749_s15 + $0x50] sm:$0xff] }
  0x6e   : > { %721 = vmatpush.bf16.msra.mxu0 %v1343_v34  ;;  %1443 = vmatpush.bf16.msra.mxu1 %v1343_v34  ;;  %v1329_v43 = vld [vmem:[%s1749_s15 + $0x40] sm:$0xff]  ;;  %v1330_v47 = vld [vmem:[%s1749_s15 + $0x48] sm:$0xff]  ;;  %v1335_v52 = vld [vmem:[%s1749_s15 + $0x70] sm:$0xff] }
  0x6f   : > { %1444 = vmatpush.bf16.msra.mxu2 %v1343_v34  ;;  %1445 = vmatpush.bf16.msra.mxu3 %v1343_v34  ;;  %v1333_v44 = vld [vmem:[%s1749_s15 + $0x60] sm:$0xff]  ;;  %v1334_v48 = vld [vmem:[%s1749_s15 + $0x68] sm:$0xff]  ;;  %v1324_v53 = vld [vmem:[%s1749_s15 + $0x18] sm:$0xff] }
  0x70   : > { %v1328_v54 = vld [vmem:[%s1749_s15 + $0x38] sm:$0xff]  ;;  %v496_v57 = vld [vmem:[#allocation2 + $0xb0] sm:$0xff]  ;;  %v504_v58 = vld [vmem:[#allocation2 + $0x80] sm:$0xff] }
  0x71   : > { %v1332_v55 = vld [vmem:[%s1749_s15 + $0x58] sm:$0xff]  ;;  %v520_v0 = vld [vmem:[#allocation2 + $0xa8] sm:$0xff]  ;;  %v497_v1 = vld [vmem:[#allocation2] sm:$0xff] }
  0x72   : > { %722 = vmatpush.bf16.msra.mxu0 %v1342_v35  ;;  %1446 = vmatpush.bf16.msra.mxu1 %v1342_v35  ;;  %v1336_v56 = vld [vmem:[%s1749_s15 + $0x78] sm:$0xff]  ;;  %v505_v2 = vld [vmem:[#allocation2 + $0x88] sm:$0xff]  ;;  %v521_v12 = vld [vmem:[#allocation2 + $0xd0] sm:$0xff] }
  0x73   : > { %1447 = vmatpush.bf16.msra.mxu2 %v1342_v35  ;;  %1448 = vmatpush.bf16.msra.mxu3 %v1342_v35  ;;  %v512_v63 = vld [vmem:[#allocation2 + $0x38] sm:$0xff]  ;;  %v506_v14 = vld [vmem:[#allocation2 + $0xe8] sm:$0xff]  ;;  %v514_v23 = vld [vmem:[#allocation2 + $0x40] sm:$0xff] }
  0x74   : > { %v513_v11 = vld [vmem:[#allocation2 + $0x58] sm:$0xff]  ;;  %v522_v24 = vld [vmem:[#allocation2 + $0x10] sm:$0xff]  ;;  %v515_v35 = vld [vmem:[#allocation2 + $0xc8] sm:$0xff] }
  0x75   : > { %v498_v13 = vld [vmem:[#allocation2 + $0xd8] sm:$0xff] }
  0x76   : > { %723 = vmatpush.bf16.msra.mxu0 %v1341_v36  ;;  %1449 = vmatpush.bf16.msra.mxu1 %v1341_v36  ;;  %v499_v25 = vld [vmem:[#allocation2 + $0x18] sm:$0xff] }
  0x77   : > { %1450 = vmatpush.bf16.msra.mxu2 %v1341_v36  ;;  %1451 = vmatpush.bf16.msra.mxu3 %v1341_v36  ;;  %v507_v26 = vld [vmem:[#allocation2 + $0xb8] sm:$0xff]  ;;  %v523_v36 = vld [vmem:[#allocation2 + $0x28] sm:$0xff] }
  0x7a   : > { %724 = vmatpush.bf16.msra.mxu0 %v1340_v37  ;;  %1452 = vmatpush.bf16.msra.mxu1 %v1340_v37 }
  0x7b   : > { %1453 = vmatpush.bf16.msra.mxu2 %v1340_v37  ;;  %1454 = vmatpush.bf16.msra.mxu3 %v1340_v37  ;;  %v500_v37 = vld [vmem:[#allocation2 + $0x50] sm:$0xff] }
  0x7e   : > { %725 = vmatpush.bf16.msra.mxu0 %v1339_v38  ;;  %1455 = vmatpush.bf16.msra.mxu1 %v1339_v38 }
  0x7f   : > { %1456 = vmatpush.bf16.msra.mxu2 %v1339_v38  ;;  %1457 = vmatpush.bf16.msra.mxu3 %v1339_v38  ;;  %v508_v38 = vld [vmem:[#allocation2 + $0x60] sm:$0xff] }
  0x82   : > { %726 = vmatpush.bf16.msra.mxu0 %v1338_v39  ;;  %1458 = vmatpush.bf16.msra.mxu1 %v1338_v39 }
  0x83   : > { %1459 = vmatpush.bf16.msra.mxu2 %v1338_v39  ;;  %1460 = vmatpush.bf16.msra.mxu3 %v1338_v39 }
  0x86   : > { %727 = vmatpush.bf16.msra.mxu0 %v1337_v40  ;;  %1461 = vmatpush.bf16.msra.mxu1 %v1337_v40 }
  0x87   : > { %1462 = vmatpush.bf16.msra.mxu2 %v1337_v40  ;;  %1463 = vmatpush.bf16.msra.mxu3 %v1337_v40 }
  0x89   : > { %728 = vmatmul.bf16.vlgmr.msra.gmra.mxu0 %v1321_v41  ;;  %748 = vmatmul.bf16.vlgmr.msra.gmra.mxu1 %v1325_v42 }
  0x8a   : > { %768 = vmatmul.bf16.vlgmr.msra.gmra.mxu2 %v1329_v43  ;;  %788 = vmatmul.bf16.vlgmr.msra.gmra.mxu3 %v1333_v44 }
  0x99   : > { %733 = vmatmul.bf16.gmra.mxu0 %v1322_v45  ;;  %753 = vmatmul.bf16.gmra.mxu1 %v1326_v46 }
  0x9a   : > { %773 = vmatmul.bf16.gmra.mxu2 %v1330_v47  ;;  %793 = vmatmul.bf16.gmra.mxu3 %v1334_v48  ;;  %v516_v47 = vld [vmem:[#allocation2 + $0xe0] sm:$0xff] }
  0x9b   : > { %v524_v48 = vld [vmem:[#allocation2 + $0xa0] sm:$0xff] }
  0xa9   : > { %738 = vmatmul.bf16.gmra.mxu0 %v1323_v49  ;;  %758 = vmatmul.bf16.gmra.mxu1 %v1327_v50  ;;  %v501_v49 = vld [vmem:[#allocation2 + $0x68] sm:$0xff]  ;;  %v509_v50 = vld [vmem:[#allocation2 + $0xf0] sm:$0xff] }
  0xaa   : > { %778 = vmatmul.bf16.gmra.mxu2 %v1331_v51  ;;  %798 = vmatmul.bf16.gmra.mxu3 %v1335_v52 }
  0xb9   : > { %743 = vmatmul.bf16.gmra.mxu0 %v1324_v53  ;;  %763 = vmatmul.bf16.gmra.mxu1 %v1328_v54 }
  0xba   : > { %783 = vmatmul.bf16.gmra.mxu2 %v1332_v55  ;;  %803 = vmatmul.bf16.gmra.mxu3 %v1336_v56 }
 0x106   : > { %v729_v59 = vpop.f32.mrf.mxu0  ;;  %v749_v60 = vpop.f32.mrf.mxu1 }
 0x107   : > { %v809_v61 = vadd.f32 %v729_v59, %v496_v57  ;;  %v817_v62 = vadd.f32 %v749_v60, %v504_v58  ;;  %v517_v59 = vld [vmem:[#allocation2 + $0x90] sm:$0xff]  ;;  %v525_v60 = vld [vmem:[#allocation2 + $0xf8] sm:$0xff] }
 0x109   : > { %841 = vst [vmem:[#allocation2 + $0xb0] sm:$0xff] %v809_v61  ;;  %v502_v61 = vld [vmem:[#allocation2 + $0x30] sm:$0xff] }
 0x10a   : > { %849 = vst [vmem:[#allocation2 + $0x80] sm:$0xff] %v817_v62  ;;  %v510_v62 = vld [vmem:[#allocation2 + $0x8] sm:$0xff] }
 0x10d   : > { %v769_v3 = vpop.f32.mrf.mxu2  ;;  %v789_v4 = vpop.f32.mrf.mxu3 }
 0x10e   : > { %v825_v5 = vadd.f32 %v769_v3, %v512_v63  ;;  %v833_v6 = vadd.f32 %v789_v4, %v520_v0  ;;  %v731_v7 = vpop.f32.mrf.mxu0  ;;  %v751_v8 = vpop.f32.mrf.mxu1 }
 0x10f   : > { %v810_v9 = vadd.f32 %v731_v7, %v497_v1  ;;  %v818_v10 = vadd.f32 %v751_v8, %v505_v2  ;;  %v518_v7 = vld [vmem:[#allocation2 + $0x70] sm:$0xff]  ;;  %v526_v8 = vld [vmem:[#allocation2 + $0x20] sm:$0xff] }
 0x110   : > { %857 = vst [vmem:[#allocation2 + $0x38] sm:$0xff] %v825_v5 }
 0x111   : > { %865 = vst [vmem:[#allocation2 + $0xa8] sm:$0xff] %v833_v6 }
 0x112   : > { %842 = vst [vmem:[#allocation2] sm:$0xff] %v810_v9  ;;  %v503_v9 = vld [vmem:[#allocation2 + $0x48] sm:$0xff] }
 0x113   : > { %850 = vst [vmem:[#allocation2 + $0x88] sm:$0xff] %v818_v10  ;;  %v511_v10 = vld [vmem:[#allocation2 + $0x78] sm:$0xff] }
 0x115   : > { %v771_v15 = vpop.f32.mrf.mxu2  ;;  %v791_v16 = vpop.f32.mrf.mxu3 }
 0x116   : > { %v826_v17 = vadd.f32 %v771_v15, %v513_v11  ;;  %v834_v18 = vadd.f32 %v791_v16, %v521_v12  ;;  %v734_v19 = vpop.f32.mrf.mxu0  ;;  %v754_v20 = vpop.f32.mrf.mxu1 }
 0x117   : > { %v811_v21 = vadd.f32 %v734_v19, %v498_v13  ;;  %v819_v22 = vadd.f32 %v754_v20, %v506_v14  ;;  %v519_v19 = vld [vmem:[#allocation2 + $0xc0] sm:$0xff]  ;;  %v527_v20 = vld [vmem:[#allocation2 + $0x98] sm:$0xff] }
 0x118   : > { %858 = vst [vmem:[#allocation2 + $0x58] sm:$0xff] %v826_v17 }
 0x119   : > { %866 = vst [vmem:[#allocation2 + $0xd0] sm:$0xff] %v834_v18 }
 0x11a   : > { %843 = vst [vmem:[#allocation2 + $0xd8] sm:$0xff] %v811_v21 }
 0x11b   : > { %851 = vst [vmem:[#allocation2 + $0xe8] sm:$0xff] %v819_v22 }
 0x11d   : > { %v774_v27 = vpop.f32.mrf.mxu2  ;;  %v794_v28 = vpop.f32.mrf.mxu3 }
 0x11e   : > { %v827_v29 = vadd.f32 %v774_v27, %v514_v23  ;;  %v835_v30 = vadd.f32 %v794_v28, %v522_v24  ;;  %v736_v31 = vpop.f32.mrf.mxu0  ;;  %v756_v32 = vpop.f32.mrf.mxu1 }
 0x11f   : > { %v812_v33 = vadd.f32 %v736_v31, %v499_v25  ;;  %v820_v34 = vadd.f32 %v756_v32, %v507_v26 }
 0x120   : > { %859 = vst [vmem:[#allocation2 + $0x40] sm:$0xff] %v827_v29 }
 0x121   : > { %867 = vst [vmem:[#allocation2 + $0x10] sm:$0xff] %v835_v30 }
 0x122   : > { %844 = vst [vmem:[#allocation2 + $0x18] sm:$0xff] %v812_v33 }
 0x123   : > { %852 = vst [vmem:[#allocation2 + $0xb8] sm:$0xff] %v820_v34 }
 0x125   : > { %v776_v39 = vpop.f32.mrf.mxu2  ;;  %v796_v40 = vpop.f32.mrf.mxu3 }
 0x126   : > { %v828_v41 = vadd.f32 %v776_v39, %v515_v35  ;;  %v836_v42 = vadd.f32 %v796_v40, %v523_v36  ;;  %v739_v43 = vpop.f32.mrf.mxu0  ;;  %v759_v44 = vpop.f32.mrf.mxu1 }
 0x127   : > { %v813_v45 = vadd.f32 %v739_v43, %v500_v37  ;;  %v821_v46 = vadd.f32 %v759_v44, %v508_v38 }
 0x128   : > { %860 = vst [vmem:[#allocation2 + $0xc8] sm:$0xff] %v828_v41 }
 0x129   : > { %868 = vst [vmem:[#allocation2 + $0x28] sm:$0xff] %v836_v42 }
 0x12a   : > { %845 = vst [vmem:[#allocation2 + $0x50] sm:$0xff] %v813_v45 }
 0x12b   : > { %853 = vst [vmem:[#allocation2 + $0x60] sm:$0xff] %v821_v46 }
 0x12d   : > { %v779_v51 = vpop.f32.mrf.mxu2  ;;  %v799_v52 = vpop.f32.mrf.mxu3 }
 0x12e   : > { %v829_v53 = vadd.f32 %v779_v51, %v516_v47  ;;  %v837_v54 = vadd.f32 %v799_v52, %v524_v48  ;;  %v741_v55 = vpop.f32.mrf.mxu0  ;;  %v761_v56 = vpop.f32.mrf.mxu1 }
 0x12f   : > { %v814_v57 = vadd.f32 %v741_v55, %v501_v49  ;;  %v822_v58 = vadd.f32 %v761_v56, %v509_v50 }
 0x130   : > { %861 = vst [vmem:[#allocation2 + $0xe0] sm:$0xff] %v829_v53 }
 0x131   : > { %869 = vst [vmem:[#allocation2 + $0xa0] sm:$0xff] %v837_v54 }
 0x132   : > { %846 = vst [vmem:[#allocation2 + $0x68] sm:$0xff] %v814_v57 }
 0x133   : > { %854 = vst [vmem:[#allocation2 + $0xf0] sm:$0xff] %v822_v58 }
 0x135   : > { %v781_v63 = vpop.f32.mrf.mxu2  ;;  %v801_v0 = vpop.f32.mrf.mxu3 }
 0x136   : > { %v830_v1 = vadd.f32 %v781_v63, %v517_v59  ;;  %v838_v2 = vadd.f32 %v801_v0, %v525_v60  ;;  %v744_v3 = vpop.f32.mrf.mxu0  ;;  %v764_v4 = vpop.f32.mrf.mxu1 }
 0x137   : > { %v815_v5 = vadd.f32 %v744_v3, %v502_v61  ;;  %v823_v6 = vadd.f32 %v764_v4, %v510_v62 }
 0x138   : > { %862 = vst [vmem:[#allocation2 + $0x90] sm:$0xff] %v830_v1 }
 0x139   : > { %870 = vst [vmem:[#allocation2 + $0xf8] sm:$0xff] %v838_v2 }
 0x13a   : > { %847 = vst [vmem:[#allocation2 + $0x30] sm:$0xff] %v815_v5 }
 0x13b   : > { %855 = vst [vmem:[#allocation2 + $0x8] sm:$0xff] %v823_v6 }
 0x13d   : > { %v784_v11 = vpop.f32.mrf.mxu2  ;;  %v804_v12 = vpop.f32.mrf.mxu3 }
 0x13e   : > { %v831_v13 = vadd.f32 %v784_v11, %v518_v7  ;;  %v839_v14 = vadd.f32 %v804_v12, %v526_v8  ;;  %v746_v15 = vpop.f32.mrf.mxu0  ;;  %v766_v16 = vpop.f32.mrf.mxu1 }
 0x13f   : > { %v816_v17 = vadd.f32 %v746_v15, %v503_v9  ;;  %v824_v18 = vadd.f32 %v766_v16, %v511_v10 }
 0x140   : > { %863 = vst [vmem:[#allocation2 + $0x70] sm:$0xff] %v831_v13 }
 0x141   : > { %871 = vst [vmem:[#allocation2 + $0x20] sm:$0xff] %v839_v14 }
 0x142   : > { %848 = vst [vmem:[#allocation2 + $0x48] sm:$0xff] %v816_v17 }
 0x143   : > { %856 = vst [vmem:[#allocation2 + $0x78] sm:$0xff] %v824_v18 }
 0x145   : > { %v786_v21 = vpop.f32.mrf.mxu2  ;;  %v806_v22 = vpop.f32.mrf.mxu3  ;;  %876 = sbr.rel (%p1318_p13) target bundleno = 365 (0x16d), region = 85 }
 0x146   : > { %v832_v23 = vadd.f32 %v786_v21, %v519_v19  ;;  %v840_v24 = vadd.f32 %v806_v22, %v527_v20 }
 0x148   : > { %864 = vst [vmem:[#allocation2 + $0xc0] sm:$0xff] %v832_v23 }
 0x149   : > { %872 = vst [vmem:[#allocation2 + $0x98] sm:$0xff] %v840_v24 }
 0x14a   : > { %v877_v25 = vld [vmem:[#allocation2 + $0xb0] sm:$0xff]  ;;  %v878_v26 = vld [vmem:[#allocation2] sm:$0xff]  ;;  %v879_v29 = vld [vmem:[#allocation2 + $0xd8] sm:$0xff] }
 0x14b   : > { %v1780_v27 = vld [vmem:[%s1890_s2] ss:$0 sm:$0xff]  ;;  %v880_v30 = vld [vmem:[#allocation2 + $0x18] sm:$0xff]  ;;  %v881_v31 = vld [vmem:[#allocation2 + $0x50] sm:$0xff] }
 0x14c   : > { %v1785_v28 = vld [vmem:[%s1891_s3] ss:$0 sm:$0xff]  ;;  %v913_v32 = vmul.f32 %v1780_v27, %v877_v25  ;;  %v914_v33 = vmul.f32 %v1780_v27, %v878_v26  ;;  %v915_v34 = vmul.f32 %v1780_v27, %v879_v29  ;;  %v916_v35 = vmul.f32 %v1780_v27, %v880_v30  ;;  %v882_v36 = vld [vmem:[#allocation2 + $0x68] sm:$0xff]  ;;  %v883_v37 = vld [vmem:[#allocation2 + $0x30] sm:$0xff] }
 0x14d   : > { %v884_v38 = vld [vmem:[#allocation2 + $0x48] sm:$0xff]  ;;  %v917_v39 = vmul.f32 %v1780_v27, %v881_v31  ;;  %v918_v40 = vmul.f32 %v1780_v27, %v882_v36  ;;  %v919_v41 = vmul.f32 %v1780_v27, %v883_v37  ;;  %v885_v51 = vld [vmem:[#allocation2 + $0x80] sm:$0xff]  ;;  %v888_v58 = vld [vmem:[#allocation2 + $0xb8] sm:$0xff] }
 0x14e   : > { %v920_v42 = vmul.f32 %v1780_v27, %v884_v38  ;;  %v949_v43 = vadd.f32 %v1785_v28, %v913_v32  ;;  %v950_v44 = vadd.f32 %v1785_v28, %v914_v33  ;;  %v951_v45 = vadd.f32 %v1785_v28, %v915_v34  ;;  %v886_v52 = vld [vmem:[#allocation2 + $0x88] sm:$0xff]  ;;  %v889_v63 = vld [vmem:[#allocation2 + $0x60] sm:$0xff]  ;;  %v890_v0 = vld [vmem:[#allocation2 + $0xf0] sm:$0xff] }
 0x14f   : > { %v952_v46 = vadd.f32 %v1785_v28, %v916_v35  ;;  %v953_v47 = vadd.f32 %v1785_v28, %v917_v39  ;;  %v954_v48 = vadd.f32 %v1785_v28, %v918_v40  ;;  %v955_v49 = vadd.f32 %v1785_v28, %v919_v41  ;;  %v887_v57 = vld [vmem:[#allocation2 + $0xe8] sm:$0xff]  ;;  %v892_v6 = vld [vmem:[#allocation2 + $0x78] sm:$0xff]  ;;  %v895_v31 = vld [vmem:[#allocation2 + $0x40] sm:$0xff] }
 0x150   : > { %v956_v50 = vadd.f32 %v1785_v28, %v920_v42  ;;  %v981_v53 = vmax.f32 %v949_v43, 0.0  ;;  %v982_v54 = vmax.f32 %v950_v44, 0.0  ;;  %v983_v55 = vmax.f32 %v951_v45, 0.0  ;;  %v891_v5 = vld [vmem:[#allocation2 + $0x8] sm:$0xff]  ;;  %v893_v19 = vld [vmem:[#allocation2 + $0x38] sm:$0xff]  ;;  %v897_v37 = vld [vmem:[#allocation2 + $0xe0] sm:$0xff] }
 0x151   : > { %v984_v56 = vmax.f32 %v952_v46, 0.0  ;;  %v985_v59 = vmax.f32 %v953_v47, 0.0  ;;  %v986_v60 = vmax.f32 %v954_v48, 0.0  ;;  %v987_v61 = vmax.f32 %v955_v49, 0.0  ;;  %v894_v24 = vld [vmem:[#allocation2 + $0x58] sm:$0xff]  ;;  %v896_v32 = vld [vmem:[#allocation2 + $0xc8] sm:$0xff] }
 0x152   : > { %v988_v62 = vmax.f32 %v956_v50, 0.0  ;;  %v1348_v1 = vpack.c.bf16 %v982_v54, %v981_v53  ;;  %v921_v3 = vmul.f32 %v1780_v27, %v885_v51  ;;  %v922_v4 = vmul.f32 %v1780_v27, %v886_v52  ;;  %v898_v38 = vld [vmem:[#allocation2 + $0x90] sm:$0xff]  ;;  %v900_v48 = vld [vmem:[#allocation2 + $0xc0] sm:$0xff]  ;;  %v901_v53 = vld [vmem:[#allocation2 + $0xa8] sm:$0xff] }
 0x153   : > { %v1353_v2 = vpack.c.bf16 %v984_v56, %v983_v55  ;;  %v1358_v7 = vpack.c.bf16 %v986_v60, %v985_v59  ;;  %v923_v9 = vmul.f32 %v1780_v27, %v887_v57  ;;  %v924_v10 = vmul.f32 %v1780_v27, %v888_v58  ;;  %v899_v43 = vld [vmem:[#allocation2 + $0x70] sm:$0xff] }
 0x154   : > { %v1363_v8 = vpack.c.bf16 %v988_v62, %v987_v61  ;;  %1349 = vst [vmem:[%s1747_s7] sm:$0xff] %v1348_v1   ;;  %v957_v11 = vadd.f32 %v1785_v28, %v921_v3  ;;  %v958_v12 = vadd.f32 %v1785_v28, %v922_v4  ;;  %v925_v13 = vmul.f32 %v1780_v27, %v889_v63  ;;  %v902_v62 = vld [vmem:[#allocation2 + $0xd0] sm:$0xff]  ;;  %v904_v4 = vld [vmem:[#allocation2 + $0x28] sm:$0xff] }
 0x155   : > { %v926_v14 = vmul.f32 %v1780_v27, %v890_v0  ;;  %1425 = vst [vmem:[%s1747_s7 + $0x8] sm:$0xff] %v1353_v2   ;;  %v959_v15 = vadd.f32 %v1785_v28, %v923_v9  ;;  %v960_v16 = vadd.f32 %v1785_v28, %v924_v10  ;;  %v927_v17 = vmul.f32 %v1780_v27, %v891_v5  ;;  %v903_v3 = vld [vmem:[#allocation2 + $0x10] sm:$0xff]  ;;  %v905_v9 = vld [vmem:[#allocation2 + $0xa0] sm:$0xff]  ;;  %v906_v10 = vld [vmem:[#allocation2 + $0xf8] sm:$0xff] }
 0x156   : > { %v928_v18 = vmul.f32 %v1780_v27, %v892_v6  ;;  %1426 = vst [vmem:[%s1747_s7 + $0x10] sm:$0xff] %v1358_v7   ;;  %v989_v20 = vmax.f32 %v957_v11, 0.0  ;;  %v990_v21 = vmax.f32 %v958_v12, 0.0  ;;  %v961_v22 = vadd.f32 %v1785_v28, %v925_v13 }
 0x157   : > { %v962_v23 = vadd.f32 %v1785_v28, %v926_v14  ;;  %1427 = vst [vmem:[%s1747_s7 + $0x18] sm:$0xff] %v1363_v8   ;;  %v991_v25 = vmax.f32 %v959_v15, 0.0  ;;  %v992_v26 = vmax.f32 %v960_v16, 0.0  ;;  %v963_v29 = vadd.f32 %v1785_v28, %v927_v17  ;;  %v907_v15 = vld [vmem:[#allocation2 + $0x20] sm:$0xff] }
 0x158   : > { %v964_v30 = vadd.f32 %v1785_v28, %v928_v18  ;;  %v1368_v33 = vpack.c.bf16 %v990_v21, %v989_v20  ;;  %v993_v34 = vmax.f32 %v961_v22, 0.0  ;;  %v929_v36 = vmul.f32 %v1780_v27, %v893_v19  ;;  %v908_v20 = vld [vmem:[#allocation2 + $0x98] sm:$0xff] }
 0x159   : > { %v994_v35 = vmax.f32 %v962_v23, 0.0  ;;  %v1373_v39 = vpack.c.bf16 %v992_v26, %v991_v25  ;;  %v995_v40 = vmax.f32 %v963_v29, 0.0  ;;  %v930_v42 = vmul.f32 %v1780_v27, %v894_v24 }
 0x15a   : > { %v996_v41 = vmax.f32 %v964_v30, 0.0  ;;  %1428 = vst [vmem:[%s1747_s7 + $0x20] sm:$0xff] %v1368_v33   ;;  %v965_v45 = vadd.f32 %v1785_v28, %v929_v36  ;;  %v931_v46 = vmul.f32 %v1780_v27, %v895_v31  ;;  %v932_v47 = vmul.f32 %v1780_v27, %v896_v32 }
 0x15b   : > { %v1378_v44 = vpack.c.bf16 %v994_v35, %v993_v34  ;;  %1429 = vst [vmem:[%s1747_s7 + $0x28] sm:$0xff] %v1373_v39   ;;  %v966_v50 = vadd.f32 %v1785_v28, %v930_v42  ;;  %v933_v51 = vmul.f32 %v1780_v27, %v897_v37  ;;  %v934_v52 = vmul.f32 %v1780_v27, %v898_v38 }
 0x15c   : > { %v1383_v49 = vpack.c.bf16 %v996_v41, %v995_v40  ;;  %v997_v54 = vmax.f32 %v965_v45, 0.0  ;;  %v967_v55 = vadd.f32 %v1785_v28, %v931_v46  ;;  %v968_v56 = vadd.f32 %v1785_v28, %v932_v47 }
 0x15d   : > { %1430 = vst [vmem:[%s1747_s7 + $0x30] sm:$0xff] %v1378_v44   ;;  %v935_v57 = vmul.f32 %v1780_v27, %v899_v43  ;;  %v998_v58 = vmax.f32 %v966_v50, 0.0  ;;  %v969_v59 = vadd.f32 %v1785_v28, %v933_v51  ;;  %v970_v60 = vadd.f32 %v1785_v28, %v934_v52 }
 0x15e   : > { %1431 = vst [vmem:[%s1747_s7 + $0x38] sm:$0xff] %v1383_v49   ;;  %v936_v61 = vmul.f32 %v1780_v27, %v900_v48  ;;  %v999_v63 = vmax.f32 %v967_v55, 0.0  ;;  %v1000_v0 = vmax.f32 %v968_v56, 0.0  ;;  %v937_v2 = vmul.f32 %v1780_v27, %v901_v53 }
 0x15f   : > { %v971_v1 = vadd.f32 %v1785_v28, %v935_v57  ;;  %v1388_v5 = vpack.c.bf16 %v998_v58, %v997_v54  ;;  %v1001_v6 = vmax.f32 %v969_v59, 0.0  ;;  %v1002_v7 = vmax.f32 %v970_v60, 0.0 }
 0x160   : > { %v972_v8 = vadd.f32 %v1785_v28, %v936_v61  ;;  %v1393_v11 = vpack.c.bf16 %v1000_v0, %v999_v63  ;;  %v938_v13 = vmul.f32 %v1780_v27, %v902_v62  ;;  %v973_v14 = vadd.f32 %v1785_v28, %v937_v2 }
 0x161   : > { %v1003_v12 = vmax.f32 %v971_v1, 0.0  ;;  %1432 = vst [vmem:[%s1747_s7 + $0x40] sm:$0xff] %v1388_v5   ;;  %v1398_v16 = vpack.c.bf16 %v1002_v7, %v1001_v6  ;;  %v939_v18 = vmul.f32 %v1780_v27, %v903_v3  ;;  %v940_v19 = vmul.f32 %v1780_v27, %v904_v4 }
 0x162   : > { %v1004_v17 = vmax.f32 %v972_v8, 0.0  ;;  %1433 = vst [vmem:[%s1747_s7 + $0x48] sm:$0xff] %v1393_v11   ;;  %v974_v21 = vadd.f32 %v1785_v28, %v938_v13  ;;  %v1005_v22 = vmax.f32 %v973_v14, 0.0  ;;  %v941_v23 = vmul.f32 %v1780_v27, %v905_v9 }
 0x163   : > { %v942_v24 = vmul.f32 %v1780_v27, %v906_v10  ;;  %1434 = vst [vmem:[%s1747_s7 + $0x50] sm:$0xff] %v1398_v16   ;;  %v975_v26 = vadd.f32 %v1785_v28, %v939_v18  ;;  %v976_v29 = vadd.f32 %v1785_v28, %v940_v19  ;;  %v943_v30 = vmul.f32 %v1780_v27, %v907_v15 }
 0x164   : > { %v1403_v25 = vpack.c.bf16 %v1004_v17, %v1003_v12  ;;  %v1006_v31 = vmax.f32 %v974_v21, 0.0  ;;  %v977_v32 = vadd.f32 %v1785_v28, %v941_v23  ;;  %v944_v34 = vmul.f32 %v1780_v27, %v908_v20 }
 0x165   : > { %v978_v33 = vadd.f32 %v1785_v28, %v942_v24  ;;  %v1007_v35 = vmax.f32 %v975_v26, 0.0  ;;  %v1008_v36 = vmax.f32 %v976_v29, 0.0  ;;  %v979_v37 = vadd.f32 %v1785_v28, %v943_v30 }
 0x166   : > { %1435 = vst [vmem:[%s1747_s7 + $0x58] sm:$0xff] %v1403_v25   ;;  %v1408_v38 = vpack.c.bf16 %v1006_v31, %v1005_v22  ;;  %v1009_v39 = vmax.f32 %v977_v32, 0.0  ;;  %v980_v41 = vadd.f32 %v1785_v28, %v944_v34 }
 0x167   : > { %v1010_v40 = vmax.f32 %v978_v33, 0.0  ;;  %v1413_v42 = vpack.c.bf16 %v1008_v36, %v1007_v35  ;;  %v1011_v43 = vmax.f32 %v979_v37, 0.0 }
 0x168   : > { %1436 = vst [vmem:[%s1747_s7 + $0x60] sm:$0xff] %v1408_v38   ;;  %v1012_v45 = vmax.f32 %v980_v41, 0.0 }
 0x169   : > { %v1418_v44 = vpack.c.bf16 %v1010_v40, %v1009_v39  ;;  %1437 = vst [vmem:[%s1747_s7 + $0x68] sm:$0xff] %v1413_v42  }
 0x16a   : > { %v1423_v46 = vpack.c.bf16 %v1012_v45, %v1011_v43 }
 0x16b   : > { %1438 = vst [vmem:[%s1747_s7 + $0x70] sm:$0xff] %v1418_v44  }
 0x16c   : > { %1439 = vst [vmem:[%s1747_s7 + $0x78] sm:$0xff] %v1423_v46  }
 0x16d PF: > { %s14_s21 = sadd.s32 1, %s1578_s21   ;;  %s1893_s15 = smov %s1558_s16 }
 0x16e   : > { %p11_p0 = scmp.ge.s32.totalorder %s14_s21, 12   ;;  %s1894_s16 = smov %s1657_s28 }
 0x16f   : > { %s1895_s17 = smov %s1570_s19  ;;  %s1896_s18 = smov %s1574_s20 }
 0x170   : > { %s1897_s19 = smov %s1900_s22  ;;  %s1898_s20 = smov %s1904_s23 }
 0x171   :  { %13 = sbr.rel (!%p11_p0) target bundleno = 4 (0x4), region = 129 }

// kernel: forward.15
= control target key start
LH: loop header
LB: loop body
LE: loop exit
PB: predicated region body
PF: predicated region fallthrough
CT: control target
= control target key end

     0   :  { %s1863_s18 = smov 0   ;;  %s1865_s19 = smov 0   ;;  %s2166_s0 = inlined_call_operand.vmem [shape: bf16[512,640], index: 0, kind: input, shape index: {}]   ;;  %s2167_s1 = inlined_call_operand.vmem [shape: bf16[640,128], index: 1, kind: input, shape index: {}]   ;;  %s2168_s2 = inlined_call_operand.vmem [shape: f32[1,128], index: 2, kind: input, shape index: {}]   ;;  %s2169_s3 = inlined_call_operand.vmem [shape: f32[1,128], index: 3, kind: input, shape index: {}]   ;;  %s2170_s4 = inlined_call_operand.vmem [shape: bf16[512,128], index: 4, kind: input, shape index: {}]   ;;  %s2171_s5 = inlined_call_operand.vmem [shape: bf16[512,128], index: 5, kind: output, shape index: {}]  }
   0x1   :  { %s1867_s20 = smov 0   ;;  %s1869_s21 = smov 0  }
   0x2   :  { %s1871_s22 = smov 0   ;;  %s1873_s23 = smov 0  }
   0x3   :  { %s1875_s24 = smov 0  }
   0x4 LB: > { %s27_s25 = sadd.s32 1, %s1822_s22  ;;  %s34_s26 = sadd.s32 1, %s1826_s23  ;;  %s1830_s24 = sphi %s1875_s24, %s15_s24   ;;  %s1826_s23 = sphi %s1873_s23, %s2177_s23   ;;  %s1822_s22 = sphi %s1871_s22, %s2176_s22   ;;  %s1818_s21 = sphi %s1869_s21, %s2175_s21   ;;  %s1814_s20 = sphi %s1867_s20, %s2174_s20   ;;  %s1810_s19 = sphi %s1865_s19, %s2173_s19   ;;  %s1806_s18 = sphi %s1863_s18, %s2172_s18  }
   0x5   : > { %p28_p0 = scmp.ge.s32.totalorder %s27_s25, 5  ;;  %p50_p1 = scmp.ne.s32.totalorder %s1810_s19, %s1806_s18 }
   0x6   : > { %p51_p2 = scmp.eq.s32.totalorder %s1830_s24, 0  ;;  %s43_s30 = sadd.s32 1, %s1810_s19 }
   0x7   : > { %s2179_s25 = smov (%p28_p0, %s27_s25), 0  ;;  %s2181_s26 = smov (!%p28_p0, %s34_s26), %s1826_s23 }
   0x8   : > { %p52_p3 = por %p51_p2, %p50_p1  ;;  %p36_p4 = scmp.ge.s32.totalorder %s2181_s26, 2 }
   0x9   : > { %s39_s27 = ssub.s32 %s1822_s22, %s2179_s25  ;;  %p1381_p6 = scmp.ge.s32.totalorder %s1830_s24, 10 }
   0xa   : > { %s2183_s26 = smov (%p36_p4, %s2181_s26), 0 }
   0xb   : > { %s38_s28 = ssub.s32 %s1826_s23, %s2183_s26  ;;  %224 = sbr.rel (%p1381_p6) target bundleno = 55 (0x37), region = 24 }
   0xc   : > { %s40_s29 = sor.u32 %s39_s27, %s38_s28 }
   0xd   : > { %p41_p5 = scmp.eq.s32.totalorder %s40_s29, 0 }
   0xf   : > { %s1914_s6 = scalar_select %p41_p5, %s1810_s19, %s43_s30  }
  0x10   : > { %227 = sbr.rel (!%p52_p3) target bundleno = 55 (0x37), region = 28  ;;  %s229_s7 = sand.u32 (%p52_p3), 1, %s1810_s19  }
  0x11   : > { %s1716_s8 = smul.u32 (%p52_p3), 160, %s1826_s23  ;;  %s1382_s9 = sshll.u32 (%p52_p3), %s229_s7, 7 }
  0x12   : > { %s1928_s15 = scalar_lea.vmem (%p52_p3), [#allocation3], %s1382_s9 }
  0x13   : > { %s234_s10 = sadd.s32 (%p52_p3), %s1822_s22, %s1716_s8 }
  0x14   : > { %s1385_s11 = sshll.u32 (%p52_p3), %s234_s10, 2 }
  0x15   : > { %s1923_s14 = scalar_lea.vmem %s2166_s0, %s1385_s11 }
  0x16   : > { %v253_v0 = vld [vmem:[%s1923_s14] sm:$0xf]  ;;  %v255_v1 = vld [vmem:[%s1923_s14 + $0x14] sm:$0xf]  ;;  %v257_v2 = vld [vmem:[%s1923_s14 + $0x28] sm:$0xf] }
  0x17   : > { %254 = vst [vmem:[%s1928_s15] sm:$0xf] %v253_v0  ;;  %v259_v3 = vld [vmem:[%s1923_s14 + $0x3c] sm:$0xf]  ;;  %v261_v4 = vld [vmem:[%s1923_s14 + $0x50] sm:$0xf] }
  0x18   : > { %256 = vst [vmem:[%s1928_s15 + $0x4] sm:$0xf] %v255_v1  ;;  %v263_v5 = vld [vmem:[%s1923_s14 + $0x64] sm:$0xf]  ;;  %v265_v6 = vld [vmem:[%s1923_s14 + $0x78] sm:$0xf] }
  0x19   : > { %258 = vst [vmem:[%s1928_s15 + $0x8] sm:$0xf] %v257_v2  ;;  %v267_v7 = vld [vmem:[%s1923_s14 + $0x8c] sm:$0xf]  ;;  %v269_v8 = vld [vmem:[%s1923_s14 + $0xa0] sm:$0xf] }
  0x1a   : > { %260 = vst [vmem:[%s1928_s15 + $0xc] sm:$0xf] %v259_v3  ;;  %v271_v9 = vld [vmem:[%s1923_s14 + $0xb4] sm:$0xf]  ;;  %v273_v10 = vld [vmem:[%s1923_s14 + $0xc8] sm:$0xf] }
  0x1b   : > { %262 = vst [vmem:[%s1928_s15 + $0x10] sm:$0xf] %v261_v4  ;;  %v275_v11 = vld [vmem:[%s1923_s14 + $0xdc] sm:$0xf]  ;;  %v277_v12 = vld [vmem:[%s1923_s14 + $0xf0] sm:$0xf] }
  0x1c   : > { %264 = vst [vmem:[%s1928_s15 + $0x14] sm:$0xf] %v263_v5  ;;  %v279_v13 = vld [vmem:[%s1923_s14 + $0x104] sm:$0xf]  ;;  %v281_v14 = vld [vmem:[%s1923_s14 + $0x118] sm:$0xf] }
  0x1d   : > { %266 = vst [vmem:[%s1928_s15 + $0x18] sm:$0xf] %v265_v6  ;;  %v283_v15 = vld [vmem:[%s1923_s14 + $0x12c] sm:$0xf]  ;;  %v285_v16 = vld [vmem:[%s1923_s14 + $0x140] sm:$0xf] }
  0x1e   : > { %268 = vst [vmem:[%s1928_s15 + $0x1c] sm:$0xf] %v267_v7  ;;  %v287_v17 = vld [vmem:[%s1923_s14 + $0x154] sm:$0xf]  ;;  %v289_v18 = vld [vmem:[%s1923_s14 + $0x168] sm:$0xf] }
  0x1f   : > { %270 = vst [vmem:[%s1928_s15 + $0x20] sm:$0xf] %v269_v8  ;;  %v291_v19 = vld [vmem:[%s1923_s14 + $0x17c] sm:$0xf]  ;;  %v293_v20 = vld [vmem:[%s1923_s14 + $0x190] sm:$0xf] }
  0x20   : > { %272 = vst [vmem:[%s1928_s15 + $0x24] sm:$0xf] %v271_v9  ;;  %v295_v21 = vld [vmem:[%s1923_s14 + $0x1a4] sm:$0xf]  ;;  %v297_v22 = vld [vmem:[%s1923_s14 + $0x1b8] sm:$0xf] }
  0x21   : > { %274 = vst [vmem:[%s1928_s15 + $0x28] sm:$0xf] %v273_v10  ;;  %v299_v23 = vld [vmem:[%s1923_s14 + $0x1cc] sm:$0xf]  ;;  %v301_v24 = vld [vmem:[%s1923_s14 + $0x1e0] sm:$0xf] }
  0x22   : > { %276 = vst [vmem:[%s1928_s15 + $0x2c] sm:$0xf] %v275_v11  ;;  %v303_v25 = vld [vmem:[%s1923_s14 + $0x1f4] sm:$0xf]  ;;  %v305_v26 = vld [vmem:[%s1923_s14 + $0x208] sm:$0xf] }
  0x23   : > { %278 = vst [vmem:[%s1928_s15 + $0x30] sm:$0xf] %v277_v12  ;;  %v307_v27 = vld [vmem:[%s1923_s14 + $0x21c] sm:$0xf]  ;;  %v309_v28 = vld [vmem:[%s1923_s14 + $0x230] sm:$0xf] }
  0x24   : > { %280 = vst [vmem:[%s1928_s15 + $0x34] sm:$0xf] %v279_v13  ;;  %v311_v29 = vld [vmem:[%s1923_s14 + $0x244] sm:$0xf]  ;;  %v313_v30 = vld [vmem:[%s1923_s14 + $0x258] sm:$0xf] }
  0x25   : > { %282 = vst [vmem:[%s1928_s15 + $0x38] sm:$0xf] %v281_v14  ;;  %v315_v31 = vld [vmem:[%s1923_s14 + $0x26c] sm:$0xf] }
  0x26   : > { %284 = vst [vmem:[%s1928_s15 + $0x3c] sm:$0xf] %v283_v15 }
  0x27   : > { %286 = vst [vmem:[%s1928_s15 + $0x40] sm:$0xf] %v285_v16 }
  0x28   : > { %288 = vst [vmem:[%s1928_s15 + $0x44] sm:$0xf] %v287_v17 }
  0x29   : > { %290 = vst [vmem:[%s1928_s15 + $0x48] sm:$0xf] %v289_v18 }
  0x2a   : > { %292 = vst [vmem:[%s1928_s15 + $0x4c] sm:$0xf] %v291_v19 }
  0x2b   : > { %294 = vst [vmem:[%s1928_s15 + $0x50] sm:$0xf] %v293_v20 }
  0x2c   : > { %296 = vst [vmem:[%s1928_s15 + $0x54] sm:$0xf] %v295_v21 }
  0x2d   : > { %298 = vst [vmem:[%s1928_s15 + $0x58] sm:$0xf] %v297_v22 }
  0x2e   : > { %300 = vst [vmem:[%s1928_s15 + $0x5c] sm:$0xf] %v299_v23 }
  0x2f   : > { %302 = vst [vmem:[%s1928_s15 + $0x60] sm:$0xf] %v301_v24 }
  0x30   : > { %304 = vst [vmem:[%s1928_s15 + $0x64] sm:$0xf] %v303_v25 }
  0x31   : > { %306 = vst [vmem:[%s1928_s15 + $0x68] sm:$0xf] %v305_v26 }
  0x32   : > { %308 = vst [vmem:[%s1928_s15 + $0x6c] sm:$0xf] %v307_v27 }
  0x33   : > { %310 = vst [vmem:[%s1928_s15 + $0x70] sm:$0xf] %v309_v28 }
  0x34   : > { %312 = vst [vmem:[%s1928_s15 + $0x74] sm:$0xf] %v311_v29 }
  0x35   : > { %314 = vst [vmem:[%s1928_s15 + $0x78] sm:$0xf] %v313_v30 }
  0x36   : > { %316 = vst [vmem:[%s1928_s15 + $0x7c] sm:$0xf] %v315_v31 }
  0x37 PF: > { %p1386_p7 = scmp.ge.s32.totalorder %s1830_s24, 1  ;;  %p427_p8 = scmp.lt.s32.totalorder %s1830_s24, 11 }
  0x39   : > { %p428_p9 = pnand %p1386_p7, %p427_p8 }
  0x3a   : > { %s434_s16 = sand.u32 (!%p428_p9), 1, %s1806_s18   ;;  %s1388_s17 = sshll.u32 (!%p428_p9), %s1814_s20, 4 }
  0x3b   : > { %431 = sbr.rel (%p428_p9) target bundleno = 382 (0x17e), region = 77  ;;  %s1387_s27 = sshll.u32 (!%p428_p9), %s434_s16, 7 }
  0x3c   : > { %p488_p10 = scmp.lt.s32.totalorder (!%p428_p9), %s1388_s17, 79  ;;  %s1390_s28 = sshll.u32 (!%p428_p9), %s1818_s21, 5 }
  0x3d   : > { %p503_p11 = scmp.lt.s32.totalorder (!%p428_p9), %s1390_s28, 63  ;;  %s2011_s21 = scalar_lea.vmem (!%p428_p9), [#allocation3], %s1387_s27 }
  0x3e   : > { %p1394_p12 = scmp.ne.s32.totalorder (!%p428_p9), %s1814_s20, 0 }
  0x40   : > { %s2185_s17 = smov (!%p488_p10, %s1388_s17), 79  ;;  %s2187_s28 = smov (!%p503_p11, %s1390_s28), 63 }
  0x41   : > { %s1389_s29 = sshll.u32 %s2185_s17, 2  ;;  %s1391_s9 = sshll.u32 %s2187_s28, 2 }
  0x42   : > { %s1999_s8 = scalar_lea.vmem %s2167_s1, %s1389_s29  ;;  %s2004_s12 = scalar_lea.vmem %s2170_s4, %s1391_s9 }
  0x43   : > { %s2009_s14 = scalar_lea.vmem %s2171_s5, %s1391_s9  ;;  %523 = sbr.rel (%p1394_p12) target bundleno = 105 (0x69), region = 85 }
  0x48   : > { %v1832_v32 = vmov 0.0  }
  0x49   : > { %524 = vst [vmem:[#allocation2 + $0xb0] sm:$0xff] %v1832_v32 }
  0x4a   : > { %525 = vst [vmem:[#allocation2] sm:$0xff] %v1832_v32 }
  0x4b   : > { %526 = vst [vmem:[#allocation2 + $0xd8] sm:$0xff] %v1832_v32 }
  0x4c   : > { %527 = vst [vmem:[#allocation2 + $0x18] sm:$0xff] %v1832_v32 }
  0x4d   : > { %528 = vst [vmem:[#allocation2 + $0x50] sm:$0xff] %v1832_v32 }
  0x4e   : > { %529 = vst [vmem:[#allocation2 + $0x68] sm:$0xff] %v1832_v32 }
  0x4f   : > { %530 = vst [vmem:[#allocation2 + $0x30] sm:$0xff] %v1832_v32 }
  0x50   : > { %531 = vst [vmem:[#allocation2 + $0x48] sm:$0xff] %v1832_v32 }
  0x51   : > { %532 = vst [vmem:[#allocation2 + $0x80] sm:$0xff] %v1832_v32 }
  0x52   : > { %533 = vst [vmem:[#allocation2 + $0x88] sm:$0xff] %v1832_v32 }
  0x53   : > { %534 = vst [vmem:[#allocation2 + $0xe8] sm:$0xff] %v1832_v32 }
  0x54   : > { %535 = vst [vmem:[#allocation2 + $0xb8] sm:$0xff] %v1832_v32 }
  0x55   : > { %536 = vst [vmem:[#allocation2 + $0x60] sm:$0xff] %v1832_v32 }
  0x56   : > { %537 = vst [vmem:[#allocation2 + $0xf0] sm:$0xff] %v1832_v32 }
  0x57   : > { %538 = vst [vmem:[#allocation2 + $0x8] sm:$0xff] %v1832_v32 }
  0x58   : > { %539 = vst [vmem:[#allocation2 + $0x78] sm:$0xff] %v1832_v32 }
  0x59   : > { %540 = vst [vmem:[#allocation2 + $0x38] sm:$0xff] %v1832_v32 }
  0x5a   : > { %541 = vst [vmem:[#allocation2 + $0x58] sm:$0xff] %v1832_v32 }
  0x5b   : > { %542 = vst [vmem:[#allocation2 + $0x40] sm:$0xff] %v1832_v32 }
  0x5c   : > { %543 = vst [vmem:[#allocation2 + $0xc8] sm:$0xff] %v1832_v32 }
  0x5d   : > { %544 = vst [vmem:[#allocation2 + $0xe0] sm:$0xff] %v1832_v32 }
  0x5e   : > { %545 = vst [vmem:[#allocation2 + $0x90] sm:$0xff] %v1832_v32 }
  0x5f   : > { %546 = vst [vmem:[#allocation2 + $0x70] sm:$0xff] %v1832_v32 }
  0x60   : > { %547 = vst [vmem:[#allocation2 + $0xc0] sm:$0xff] %v1832_v32 }
  0x61   : > { %548 = vst [vmem:[#allocation2 + $0xa8] sm:$0xff] %v1832_v32 }
  0x62   : > { %549 = vst [vmem:[#allocation2 + $0xd0] sm:$0xff] %v1832_v32 }
  0x63   : > { %550 = vst [vmem:[#allocation2 + $0x10] sm:$0xff] %v1832_v32 }
  0x64   : > { %551 = vst [vmem:[#allocation2 + $0x28] sm:$0xff] %v1832_v32 }
  0x65   : > { %552 = vst [vmem:[#allocation2 + $0xa0] sm:$0xff] %v1832_v32 }
  0x66   : > { %553 = vst [vmem:[#allocation2 + $0xf8] sm:$0xff] %v1832_v32 }
  0x67   : > { %554 = vst [vmem:[#allocation2 + $0x20] sm:$0xff] %v1832_v32 }
  0x68   : > { %555 = vst [vmem:[#allocation2 + $0x98] sm:$0xff] %v1832_v32 }
  0x69 PF: > { %v1517_v33 = vld [vmem:[%s1999_s8 + $0x38] sm:$0xff]  ;;  %v1516_v34 = vld [vmem:[%s1999_s8 + $0x30] sm:$0xff]  ;;  %v1515_v35 = vld [vmem:[%s1999_s8 + $0x28] sm:$0xff]  ;;  %p1491_p13 = scmp.ne.s32.totalorder %s1814_s20, 4 }
  0x6a   : > { %780 = vmatpush.bf16.msra.mxu0 %v1517_v33  ;;  %1692 = vmatpush.bf16.msra.mxu1 %v1517_v33  ;;  %v1514_v36 = vld [vmem:[%s1999_s8 + $0x20] sm:$0xff]  ;;  %v1513_v37 = vld [vmem:[%s1999_s8 + $0x18] sm:$0xff]  ;;  %v1512_v38 = vld [vmem:[%s1999_s8 + $0x10] sm:$0xff] }
  0x6b   : > { %1693 = vmatpush.bf16.msra.mxu2 %v1517_v33  ;;  %1694 = vmatpush.bf16.msra.mxu3 %v1517_v33  ;;  %v1511_v39 = vld [vmem:[%s1999_s8 + $0x8] sm:$0xff]  ;;  %v1510_v40 = vld [vmem:[%s1999_s8] sm:$0xff]  ;;  %v1496_v49 = vld [vmem:[%s2011_s21 + $0x10] sm:$0xff] }
  0x6c   : > { %v1494_v41 = vld [vmem:[%s2011_s21] sm:$0xff]  ;;  %v1495_v45 = vld [vmem:[%s2011_s21 + $0x8] sm:$0xff]  ;;  %v1500_v50 = vld [vmem:[%s2011_s21 + $0x30] sm:$0xff] }
  0x6d   : > { %v1498_v42 = vld [vmem:[%s2011_s21 + $0x20] sm:$0xff]  ;;  %v1499_v46 = vld [vmem:[%s2011_s21 + $0x28] sm:$0xff]  ;;  %v1504_v51 = vld [vmem:[%s2011_s21 + $0x50] sm:$0xff] }
  0x6e   : > { %781 = vmatpush.bf16.msra.mxu0 %v1516_v34  ;;  %1695 = vmatpush.bf16.msra.mxu1 %v1516_v34  ;;  %v1502_v43 = vld [vmem:[%s2011_s21 + $0x40] sm:$0xff]  ;;  %v1503_v47 = vld [vmem:[%s2011_s21 + $0x48] sm:$0xff]  ;;  %v1508_v52 = vld [vmem:[%s2011_s21 + $0x70] sm:$0xff] }
  0x6f   : > { %1696 = vmatpush.bf16.msra.mxu2 %v1516_v34  ;;  %1697 = vmatpush.bf16.msra.mxu3 %v1516_v34  ;;  %v1506_v44 = vld [vmem:[%s2011_s21 + $0x60] sm:$0xff]  ;;  %v1507_v48 = vld [vmem:[%s2011_s21 + $0x68] sm:$0xff]  ;;  %v1497_v53 = vld [vmem:[%s2011_s21 + $0x18] sm:$0xff] }
  0x70   : > { %v1501_v54 = vld [vmem:[%s2011_s21 + $0x38] sm:$0xff]  ;;  %v556_v57 = vld [vmem:[#allocation2 + $0xb0] sm:$0xff]  ;;  %v564_v58 = vld [vmem:[#allocation2 + $0x80] sm:$0xff] }
  0x71   : > { %v1505_v55 = vld [vmem:[%s2011_s21 + $0x58] sm:$0xff]  ;;  %v580_v0 = vld [vmem:[#allocation2 + $0xa8] sm:$0xff]  ;;  %v557_v1 = vld [vmem:[#allocation2] sm:$0xff] }
  0x72   : > { %782 = vmatpush.bf16.msra.mxu0 %v1515_v35  ;;  %1698 = vmatpush.bf16.msra.mxu1 %v1515_v35  ;;  %v1509_v56 = vld [vmem:[%s2011_s21 + $0x78] sm:$0xff]  ;;  %v565_v2 = vld [vmem:[#allocation2 + $0x88] sm:$0xff]  ;;  %v581_v12 = vld [vmem:[#allocation2 + $0xd0] sm:$0xff] }
  0x73   : > { %1699 = vmatpush.bf16.msra.mxu2 %v1515_v35  ;;  %1700 = vmatpush.bf16.msra.mxu3 %v1515_v35  ;;  %v572_v63 = vld [vmem:[#allocation2 + $0x38] sm:$0xff]  ;;  %v566_v14 = vld [vmem:[#allocation2 + $0xe8] sm:$0xff]  ;;  %v574_v23 = vld [vmem:[#allocation2 + $0x40] sm:$0xff] }
  0x74   : > { %v573_v11 = vld [vmem:[#allocation2 + $0x58] sm:$0xff]  ;;  %v582_v24 = vld [vmem:[#allocation2 + $0x10] sm:$0xff]  ;;  %v575_v35 = vld [vmem:[#allocation2 + $0xc8] sm:$0xff] }
  0x75   : > { %v558_v13 = vld [vmem:[#allocation2 + $0xd8] sm:$0xff] }
  0x76   : > { %783 = vmatpush.bf16.msra.mxu0 %v1514_v36  ;;  %1701 = vmatpush.bf16.msra.mxu1 %v1514_v36  ;;  %v559_v25 = vld [vmem:[#allocation2 + $0x18] sm:$0xff] }
  0x77   : > { %1702 = vmatpush.bf16.msra.mxu2 %v1514_v36  ;;  %1703 = vmatpush.bf16.msra.mxu3 %v1514_v36  ;;  %v567_v26 = vld [vmem:[#allocation2 + $0xb8] sm:$0xff]  ;;  %v583_v36 = vld [vmem:[#allocation2 + $0x28] sm:$0xff] }
  0x7a   : > { %784 = vmatpush.bf16.msra.mxu0 %v1513_v37  ;;  %1704 = vmatpush.bf16.msra.mxu1 %v1513_v37 }
  0x7b   : > { %1705 = vmatpush.bf16.msra.mxu2 %v1513_v37  ;;  %1706 = vmatpush.bf16.msra.mxu3 %v1513_v37  ;;  %v560_v37 = vld [vmem:[#allocation2 + $0x50] sm:$0xff] }
  0x7e   : > { %785 = vmatpush.bf16.msra.mxu0 %v1512_v38  ;;  %1707 = vmatpush.bf16.msra.mxu1 %v1512_v38 }
  0x7f   : > { %1708 = vmatpush.bf16.msra.mxu2 %v1512_v38  ;;  %1709 = vmatpush.bf16.msra.mxu3 %v1512_v38  ;;  %v568_v38 = vld [vmem:[#allocation2 + $0x60] sm:$0xff] }
  0x82   : > { %786 = vmatpush.bf16.msra.mxu0 %v1511_v39  ;;  %1710 = vmatpush.bf16.msra.mxu1 %v1511_v39 }
  0x83   : > { %1711 = vmatpush.bf16.msra.mxu2 %v1511_v39  ;;  %1712 = vmatpush.bf16.msra.mxu3 %v1511_v39 }
  0x86   : > { %787 = vmatpush.bf16.msra.mxu0 %v1510_v40  ;;  %1713 = vmatpush.bf16.msra.mxu1 %v1510_v40 }
  0x87   : > { %1714 = vmatpush.bf16.msra.mxu2 %v1510_v40  ;;  %1715 = vmatpush.bf16.msra.mxu3 %v1510_v40 }
  0x89   : > { %788 = vmatmul.bf16.vlgmr.msra.gmra.mxu0 %v1494_v41  ;;  %808 = vmatmul.bf16.vlgmr.msra.gmra.mxu1 %v1498_v42 }
  0x8a   : > { %828 = vmatmul.bf16.vlgmr.msra.gmra.mxu2 %v1502_v43  ;;  %848 = vmatmul.bf16.vlgmr.msra.gmra.mxu3 %v1506_v44 }
  0x99   : > { %793 = vmatmul.bf16.gmra.mxu0 %v1495_v45  ;;  %813 = vmatmul.bf16.gmra.mxu1 %v1499_v46 }
  0x9a   : > { %833 = vmatmul.bf16.gmra.mxu2 %v1503_v47  ;;  %853 = vmatmul.bf16.gmra.mxu3 %v1507_v48  ;;  %v576_v47 = vld [vmem:[#allocation2 + $0xe0] sm:$0xff] }
  0x9b   : > { %v584_v48 = vld [vmem:[#allocation2 + $0xa0] sm:$0xff] }
  0xa9   : > { %798 = vmatmul.bf16.gmra.mxu0 %v1496_v49  ;;  %818 = vmatmul.bf16.gmra.mxu1 %v1500_v50  ;;  %v561_v49 = vld [vmem:[#allocation2 + $0x68] sm:$0xff]  ;;  %v569_v50 = vld [vmem:[#allocation2 + $0xf0] sm:$0xff] }
  0xaa   : > { %838 = vmatmul.bf16.gmra.mxu2 %v1504_v51  ;;  %858 = vmatmul.bf16.gmra.mxu3 %v1508_v52 }
  0xb9   : > { %803 = vmatmul.bf16.gmra.mxu0 %v1497_v53  ;;  %823 = vmatmul.bf16.gmra.mxu1 %v1501_v54 }
  0xba   : > { %843 = vmatmul.bf16.gmra.mxu2 %v1505_v55  ;;  %863 = vmatmul.bf16.gmra.mxu3 %v1509_v56 }
 0x106   : > { %v789_v59 = vpop.f32.mrf.mxu0  ;;  %v809_v60 = vpop.f32.mrf.mxu1 }
 0x107   : > { %v869_v61 = vadd.f32 %v789_v59, %v556_v57  ;;  %v877_v62 = vadd.f32 %v809_v60, %v564_v58  ;;  %v577_v59 = vld [vmem:[#allocation2 + $0x90] sm:$0xff]  ;;  %v585_v60 = vld [vmem:[#allocation2 + $0xf8] sm:$0xff] }
 0x109   : > { %901 = vst [vmem:[#allocation2 + $0xb0] sm:$0xff] %v869_v61  ;;  %v562_v61 = vld [vmem:[#allocation2 + $0x30] sm:$0xff] }
 0x10a   : > { %909 = vst [vmem:[#allocation2 + $0x80] sm:$0xff] %v877_v62  ;;  %v570_v62 = vld [vmem:[#allocation2 + $0x8] sm:$0xff] }
 0x10d   : > { %v829_v3 = vpop.f32.mrf.mxu2  ;;  %v849_v4 = vpop.f32.mrf.mxu3 }
 0x10e   : > { %v885_v5 = vadd.f32 %v829_v3, %v572_v63  ;;  %v893_v6 = vadd.f32 %v849_v4, %v580_v0  ;;  %v791_v7 = vpop.f32.mrf.mxu0  ;;  %v811_v8 = vpop.f32.mrf.mxu1 }
 0x10f   : > { %v870_v9 = vadd.f32 %v791_v7, %v557_v1  ;;  %v878_v10 = vadd.f32 %v811_v8, %v565_v2  ;;  %v578_v7 = vld [vmem:[#allocation2 + $0x70] sm:$0xff]  ;;  %v586_v8 = vld [vmem:[#allocation2 + $0x20] sm:$0xff] }
 0x110   : > { %917 = vst [vmem:[#allocation2 + $0x38] sm:$0xff] %v885_v5 }
 0x111   : > { %925 = vst [vmem:[#allocation2 + $0xa8] sm:$0xff] %v893_v6 }
 0x112   : > { %902 = vst [vmem:[#allocation2] sm:$0xff] %v870_v9  ;;  %v563_v9 = vld [vmem:[#allocation2 + $0x48] sm:$0xff] }
 0x113   : > { %910 = vst [vmem:[#allocation2 + $0x88] sm:$0xff] %v878_v10  ;;  %v571_v10 = vld [vmem:[#allocation2 + $0x78] sm:$0xff] }
 0x115   : > { %v831_v15 = vpop.f32.mrf.mxu2  ;;  %v851_v16 = vpop.f32.mrf.mxu3 }
 0x116   : > { %v886_v17 = vadd.f32 %v831_v15, %v573_v11  ;;  %v894_v18 = vadd.f32 %v851_v16, %v581_v12  ;;  %v794_v19 = vpop.f32.mrf.mxu0  ;;  %v814_v20 = vpop.f32.mrf.mxu1 }
 0x117   : > { %v871_v21 = vadd.f32 %v794_v19, %v558_v13  ;;  %v879_v22 = vadd.f32 %v814_v20, %v566_v14  ;;  %v579_v19 = vld [vmem:[#allocation2 + $0xc0] sm:$0xff]  ;;  %v587_v20 = vld [vmem:[#allocation2 + $0x98] sm:$0xff] }
 0x118   : > { %918 = vst [vmem:[#allocation2 + $0x58] sm:$0xff] %v886_v17 }
 0x119   : > { %926 = vst [vmem:[#allocation2 + $0xd0] sm:$0xff] %v894_v18 }
 0x11a   : > { %903 = vst [vmem:[#allocation2 + $0xd8] sm:$0xff] %v871_v21 }
 0x11b   : > { %911 = vst [vmem:[#allocation2 + $0xe8] sm:$0xff] %v879_v22 }
 0x11d   : > { %v834_v27 = vpop.f32.mrf.mxu2  ;;  %v854_v28 = vpop.f32.mrf.mxu3 }
 0x11e   : > { %v887_v29 = vadd.f32 %v834_v27, %v574_v23  ;;  %v895_v30 = vadd.f32 %v854_v28, %v582_v24  ;;  %v796_v31 = vpop.f32.mrf.mxu0  ;;  %v816_v32 = vpop.f32.mrf.mxu1 }
 0x11f   : > { %v872_v33 = vadd.f32 %v796_v31, %v559_v25  ;;  %v880_v34 = vadd.f32 %v816_v32, %v567_v26 }
 0x120   : > { %919 = vst [vmem:[#allocation2 + $0x40] sm:$0xff] %v887_v29 }
 0x121   : > { %927 = vst [vmem:[#allocation2 + $0x10] sm:$0xff] %v895_v30 }
 0x122   : > { %904 = vst [vmem:[#allocation2 + $0x18] sm:$0xff] %v872_v33 }
 0x123   : > { %912 = vst [vmem:[#allocation2 + $0xb8] sm:$0xff] %v880_v34 }
 0x125   : > { %v836_v39 = vpop.f32.mrf.mxu2  ;;  %v856_v40 = vpop.f32.mrf.mxu3 }
 0x126   : > { %v888_v41 = vadd.f32 %v836_v39, %v575_v35  ;;  %v896_v42 = vadd.f32 %v856_v40, %v583_v36  ;;  %v799_v43 = vpop.f32.mrf.mxu0  ;;  %v819_v44 = vpop.f32.mrf.mxu1 }
 0x127   : > { %v873_v45 = vadd.f32 %v799_v43, %v560_v37  ;;  %v881_v46 = vadd.f32 %v819_v44, %v568_v38 }
 0x128   : > { %920 = vst [vmem:[#allocation2 + $0xc8] sm:$0xff] %v888_v41 }
 0x129   : > { %928 = vst [vmem:[#allocation2 + $0x28] sm:$0xff] %v896_v42 }
 0x12a   : > { %905 = vst [vmem:[#allocation2 + $0x50] sm:$0xff] %v873_v45 }
 0x12b   : > { %913 = vst [vmem:[#allocation2 + $0x60] sm:$0xff] %v881_v46 }
 0x12d   : > { %v839_v51 = vpop.f32.mrf.mxu2  ;;  %v859_v52 = vpop.f32.mrf.mxu3 }
 0x12e   : > { %v889_v53 = vadd.f32 %v839_v51, %v576_v47  ;;  %v897_v54 = vadd.f32 %v859_v52, %v584_v48  ;;  %v801_v55 = vpop.f32.mrf.mxu0  ;;  %v821_v56 = vpop.f32.mrf.mxu1 }
 0x12f   : > { %v874_v57 = vadd.f32 %v801_v55, %v561_v49  ;;  %v882_v58 = vadd.f32 %v821_v56, %v569_v50 }
 0x130   : > { %921 = vst [vmem:[#allocation2 + $0xe0] sm:$0xff] %v889_v53 }
 0x131   : > { %929 = vst [vmem:[#allocation2 + $0xa0] sm:$0xff] %v897_v54 }
 0x132   : > { %906 = vst [vmem:[#allocation2 + $0x68] sm:$0xff] %v874_v57 }
 0x133   : > { %914 = vst [vmem:[#allocation2 + $0xf0] sm:$0xff] %v882_v58 }
 0x135   : > { %v841_v63 = vpop.f32.mrf.mxu2  ;;  %v861_v0 = vpop.f32.mrf.mxu3 }
 0x136   : > { %v890_v1 = vadd.f32 %v841_v63, %v577_v59  ;;  %v898_v2 = vadd.f32 %v861_v0, %v585_v60  ;;  %v804_v3 = vpop.f32.mrf.mxu0  ;;  %v824_v4 = vpop.f32.mrf.mxu1 }
 0x137   : > { %v875_v5 = vadd.f32 %v804_v3, %v562_v61  ;;  %v883_v6 = vadd.f32 %v824_v4, %v570_v62 }
 0x138   : > { %922 = vst [vmem:[#allocation2 + $0x90] sm:$0xff] %v890_v1 }
 0x139   : > { %930 = vst [vmem:[#allocation2 + $0xf8] sm:$0xff] %v898_v2 }
 0x13a   : > { %907 = vst [vmem:[#allocation2 + $0x30] sm:$0xff] %v875_v5 }
 0x13b   : > { %915 = vst [vmem:[#allocation2 + $0x8] sm:$0xff] %v883_v6 }
 0x13d   : > { %v844_v11 = vpop.f32.mrf.mxu2  ;;  %v864_v12 = vpop.f32.mrf.mxu3 }
 0x13e   : > { %v891_v13 = vadd.f32 %v844_v11, %v578_v7  ;;  %v899_v14 = vadd.f32 %v864_v12, %v586_v8  ;;  %v806_v15 = vpop.f32.mrf.mxu0  ;;  %v826_v16 = vpop.f32.mrf.mxu1 }
 0x13f   : > { %v876_v17 = vadd.f32 %v806_v15, %v563_v9  ;;  %v884_v18 = vadd.f32 %v826_v16, %v571_v10 }
 0x140   : > { %923 = vst [vmem:[#allocation2 + $0x70] sm:$0xff] %v891_v13 }
 0x141   : > { %931 = vst [vmem:[#allocation2 + $0x20] sm:$0xff] %v899_v14 }
 0x142   : > { %908 = vst [vmem:[#allocation2 + $0x48] sm:$0xff] %v876_v17 }
 0x143   : > { %916 = vst [vmem:[#allocation2 + $0x78] sm:$0xff] %v884_v18 }
 0x145   : > { %v846_v21 = vpop.f32.mrf.mxu2  ;;  %v866_v22 = vpop.f32.mrf.mxu3  ;;  %936 = sbr.rel (%p1491_p13) target bundleno = 382 (0x17e), region = 89 }
 0x146   : > { %v892_v23 = vadd.f32 %v846_v21, %v579_v19  ;;  %v900_v24 = vadd.f32 %v866_v22, %v587_v20 }
 0x148   : > { %924 = vst [vmem:[#allocation2 + $0xc0] sm:$0xff] %v892_v23 }
 0x149   : > { %932 = vst [vmem:[#allocation2 + $0x98] sm:$0xff] %v900_v24 }
 0x14a   : > { %v937_v25 = vld [vmem:[#allocation2 + $0xb0] sm:$0xff]  ;;  %v938_v26 = vld [vmem:[#allocation2] sm:$0xff]  ;;  %v939_v30 = vld [vmem:[#allocation2 + $0xd8] sm:$0xff] }
 0x14b   : > { %v2042_v27 = vld [vmem:[%s2168_s2] ss:$0 sm:$0xff]  ;;  %v940_v31 = vld [vmem:[#allocation2 + $0x18] sm:$0xff]  ;;  %v1662_v36 = vld [vmem:[%s2004_s12 + $0x8] sm:$0xff]  }
 0x14c   : > { %v2047_v28 = vld [vmem:[%s2169_s3] ss:$0 sm:$0xff]  ;;  %v973_v32 = vmul.f32 %v2042_v27, %v937_v25  ;;  %v974_v33 = vmul.f32 %v2042_v27, %v938_v26  ;;  %v941_v37 = vld [vmem:[#allocation2 + $0x50] sm:$0xff]  ;;  %v942_v38 = vld [vmem:[#allocation2 + $0x68] sm:$0xff]  ;;  %v975_v39 = vmul.f32 %v2042_v27, %v939_v30  ;;  %v976_v40 = vmul.f32 %v2042_v27, %v940_v31 }
 0x14d   : > { %v1519_v29 = vld [vmem:[%s2004_s12] sm:$0xff]   ;;  %v1524_v41 = vunpack.c.l.bf16 %v1662_v36  ;;  %v1525_v42 = vunpack.c.h.bf16 %v1662_v36  ;;  %v1663_v43 = vld [vmem:[%s2004_s12 + $0x10] sm:$0xff]   ;;  %v977_v46 = vmul.f32 %v2042_v27, %v941_v37  ;;  %v978_v47 = vmul.f32 %v2042_v27, %v942_v38  ;;  %v944_v49 = vld [vmem:[#allocation2 + $0x48] sm:$0xff] }
 0x14e   : > { %v1520_v34 = vunpack.c.l.bf16 %v1519_v29  ;;  %v1521_v35 = vunpack.c.h.bf16 %v1519_v29  ;;  %v1009_v44 = vadd.f32 %v2047_v28, %v973_v32  ;;  %v1010_v45 = vadd.f32 %v2047_v28, %v974_v33  ;;  %v943_v48 = vld [vmem:[#allocation2 + $0x30] sm:$0xff]  ;;  %v1664_v62 = vld [vmem:[%s2004_s12 + $0x18] sm:$0xff]   ;;  %v945_v3 = vld [vmem:[#allocation2 + $0x80] sm:$0xff] }
 0x14f   : > { %v1011_v50 = vadd.f32 %v2047_v28, %v975_v39  ;;  %v1012_v51 = vadd.f32 %v2047_v28, %v976_v40  ;;  %v1528_v52 = vunpack.c.l.bf16 %v1663_v43  ;;  %v1529_v53 = vunpack.c.h.bf16 %v1663_v43  ;;  %v946_v4 = vld [vmem:[#allocation2 + $0x88] sm:$0xff]  ;;  %v1665_v9 = vld [vmem:[%s2004_s12 + $0x20] sm:$0xff]   ;;  %v948_v19 = vld [vmem:[#allocation2 + $0xb8] sm:$0xff] }
 0x150   : > { %v1105_v54 = vadd.f32 %v1520_v34, %v1009_v44  ;;  %v1106_v55 = vadd.f32 %v1521_v35, %v1010_v45  ;;  %v1013_v56 = vadd.f32 %v2047_v28, %v977_v46  ;;  %v1014_v57 = vadd.f32 %v2047_v28, %v978_v47  ;;  %v947_v14 = vld [vmem:[#allocation2 + $0xe8] sm:$0xff]  ;;  %v949_v31 = vld [vmem:[#allocation2 + $0x60] sm:$0xff]  ;;  %v950_v32 = vld [vmem:[#allocation2 + $0xf0] sm:$0xff] }
 0x151   : > { %v1107_v58 = vadd.f32 %v1524_v41, %v1011_v50  ;;  %v1108_v59 = vadd.f32 %v1525_v42, %v1012_v51  ;;  %v979_v60 = vmul.f32 %v2042_v27, %v943_v48  ;;  %v980_v61 = vmul.f32 %v2042_v27, %v944_v49  ;;  %v1666_v20 = vld [vmem:[%s2004_s12 + $0x28] sm:$0xff]   ;;  %v1667_v33 = vld [vmem:[%s2004_s12 + $0x30] sm:$0xff]   ;;  %v952_v47 = vld [vmem:[#allocation2 + $0x78] sm:$0xff] }
 0x152   : > { %v1137_v63 = vmax.f32 %v1105_v54, 0.0  ;;  %v1138_v0 = vmax.f32 %v1106_v55, 0.0  ;;  %v1109_v1 = vadd.f32 %v1528_v52, %v1013_v56  ;;  %v1110_v2 = vadd.f32 %v1529_v53, %v1014_v57  ;;  %v951_v46 = vld [vmem:[#allocation2 + $0x8] sm:$0xff]  ;;  %v1668_v52 = vld [vmem:[%s2004_s12 + $0x38] sm:$0xff]  }
 0x153   : > { %v1139_v5 = vmax.f32 %v1107_v58, 0.0  ;;  %v1140_v6 = vmax.f32 %v1108_v59, 0.0  ;;  %v1015_v7 = vadd.f32 %v2047_v28, %v979_v60  ;;  %v1016_v8 = vadd.f32 %v2047_v28, %v980_v61  ;;  %v953_v57 = vld [vmem:[#allocation2 + $0x38] sm:$0xff] }
 0x154   : > { %v1585_v10 = vpack.c.bf16 %v1138_v0, %v1137_v63  ;;  %v1141_v11 = vmax.f32 %v1109_v1, 0.0  ;;  %v1142_v12 = vmax.f32 %v1110_v2, 0.0  ;;  %v1532_v13 = vunpack.c.l.bf16 %v1664_v62 }
 0x155   : > { %v1590_v15 = vpack.c.bf16 %v1140_v6, %v1139_v5  ;;  %v1533_v16 = vunpack.c.h.bf16 %v1664_v62  ;;  %v981_v17 = vmul.f32 %v2042_v27, %v945_v3  ;;  %v982_v18 = vmul.f32 %v2042_v27, %v946_v4  ;;  %v954_v62 = vld [vmem:[#allocation2 + $0x58] sm:$0xff]  ;;  %v1669_v3 = vld [vmem:[%s2004_s12 + $0x40] sm:$0xff]  }
 0x156   : > { %1586 = vst [vmem:[%s2009_s14] sm:$0xff] %v1585_v10   ;;  %v1595_v21 = vpack.c.bf16 %v1142_v12, %v1141_v11  ;;  %v1111_v22 = vadd.f32 %v1532_v13, %v1015_v7  ;;  %v1536_v23 = vunpack.c.l.bf16 %v1665_v9  ;;  %v1537_v24 = vunpack.c.h.bf16 %v1665_v9  ;;  %v956_v13 = vld [vmem:[#allocation2 + $0xc8] sm:$0xff] }
 0x157   : > { %1677 = vst [vmem:[%s2009_s14 + $0x8] sm:$0xff] %v1590_v15   ;;  %v1112_v25 = vadd.f32 %v1533_v16, %v1016_v8  ;;  %v1017_v26 = vadd.f32 %v2047_v28, %v981_v17  ;;  %v1018_v29 = vadd.f32 %v2047_v28, %v982_v18  ;;  %v983_v30 = vmul.f32 %v2042_v27, %v947_v14  ;;  %v955_v8 = vld [vmem:[#allocation2 + $0x40] sm:$0xff]  ;;  %v1670_v18 = vld [vmem:[%s2004_s12 + $0x48] sm:$0xff]  }
 0x158   : > { %1678 = vst [vmem:[%s2009_s14 + $0x10] sm:$0xff] %v1595_v21   ;;  %v1143_v34 = vmax.f32 %v1111_v22, 0.0  ;;  %v984_v35 = vmul.f32 %v2042_v27, %v948_v19  ;;  %v1540_v36 = vunpack.c.l.bf16 %v1666_v20  ;;  %v1541_v37 = vunpack.c.h.bf16 %v1666_v20 }
 0x159   : > { %v1144_v38 = vmax.f32 %v1112_v25, 0.0  ;;  %v1113_v39 = vadd.f32 %v1536_v23, %v1017_v26  ;;  %v1114_v40 = vadd.f32 %v1537_v24, %v1018_v29  ;;  %v1019_v41 = vadd.f32 %v2047_v28, %v983_v30  ;;  %v957_v23 = vld [vmem:[#allocation2 + $0xe0] sm:$0xff]  ;;  %v958_v30 = vld [vmem:[#allocation2 + $0x90] sm:$0xff] }
 0x15a   : > { %v1020_v42 = vadd.f32 %v2047_v28, %v984_v35  ;;  %v985_v43 = vmul.f32 %v2042_v27, %v949_v31  ;;  %v986_v44 = vmul.f32 %v2042_v27, %v950_v32  ;;  %v1544_v45 = vunpack.c.l.bf16 %v1667_v33  ;;  %v1671_v31 = vld [vmem:[%s2004_s12 + $0x50] sm:$0xff]  }
 0x15b   : > { %v1600_v48 = vpack.c.bf16 %v1144_v38, %v1143_v34  ;;  %v1145_v49 = vmax.f32 %v1113_v39, 0.0  ;;  %v1146_v50 = vmax.f32 %v1114_v40, 0.0  ;;  %v1115_v51 = vadd.f32 %v1540_v36, %v1019_v41  ;;  %v959_v36 = vld [vmem:[#allocation2 + $0x70] sm:$0xff]  ;;  %v960_v41 = vld [vmem:[#allocation2 + $0xc0] sm:$0xff] }
 0x15c   : > { %v1116_v53 = vadd.f32 %v1541_v37, %v1020_v42  ;;  %v1021_v54 = vadd.f32 %v2047_v28, %v985_v43  ;;  %v1022_v55 = vadd.f32 %v2047_v28, %v986_v44  ;;  %v1545_v56 = vunpack.c.h.bf16 %v1667_v33 }
 0x15d   : > { %1679 = vst [vmem:[%s2009_s14 + $0x18] sm:$0xff] %v1600_v48   ;;  %v1605_v58 = vpack.c.bf16 %v1146_v50, %v1145_v49  ;;  %v1147_v59 = vmax.f32 %v1115_v51, 0.0  ;;  %v987_v60 = vmul.f32 %v2042_v27, %v951_v46  ;;  %v988_v61 = vmul.f32 %v2042_v27, %v952_v47  ;;  %v1672_v46 = vld [vmem:[%s2004_s12 + $0x58] sm:$0xff]   ;;  %v961_v51 = vld [vmem:[#allocation2 + $0xa8] sm:$0xff] }
 0x15e   : > { %v1148_v63 = vmax.f32 %v1116_v53, 0.0  ;;  %v1117_v0 = vadd.f32 %v1544_v45, %v1021_v54  ;;  %v1118_v1 = vadd.f32 %v1545_v56, %v1022_v55  ;;  %v1548_v2 = vunpack.c.l.bf16 %v1668_v52  ;;  %v962_v56 = vld [vmem:[#allocation2 + $0xd0] sm:$0xff] }
 0x15f   : > { %1680 = vst [vmem:[%s2009_s14 + $0x20] sm:$0xff] %v1605_v58   ;;  %v1023_v4 = vadd.f32 %v2047_v28, %v987_v60  ;;  %v1024_v5 = vadd.f32 %v2047_v28, %v988_v61  ;;  %v1549_v6 = vunpack.c.h.bf16 %v1668_v52  ;;  %v989_v7 = vmul.f32 %v2042_v27, %v953_v57  ;;  %v1673_v61 = vld [vmem:[%s2004_s12 + $0x60] sm:$0xff]  }
 0x160   : > { %v1610_v9 = vpack.c.bf16 %v1148_v63, %v1147_v59  ;;  %v1149_v10 = vmax.f32 %v1117_v0, 0.0  ;;  %v1150_v11 = vmax.f32 %v1118_v1, 0.0  ;;  %v990_v12 = vmul.f32 %v2042_v27, %v954_v62 }
 0x161   : > { %v1119_v14 = vadd.f32 %v1548_v2, %v1023_v4  ;;  %v1120_v15 = vadd.f32 %v1549_v6, %v1024_v5  ;;  %v1025_v16 = vadd.f32 %v2047_v28, %v989_v7  ;;  %v1552_v17 = vunpack.c.l.bf16 %v1669_v3  ;;  %v963_v2 = vld [vmem:[#allocation2 + $0x10] sm:$0xff]  ;;  %v964_v7 = vld [vmem:[#allocation2 + $0x28] sm:$0xff] }
 0x162   : > { %1681 = vst [vmem:[%s2009_s14 + $0x28] sm:$0xff] %v1610_v9   ;;  %v1615_v19 = vpack.c.bf16 %v1150_v11, %v1149_v10  ;;  %v1026_v20 = vadd.f32 %v2047_v28, %v990_v12  ;;  %v1553_v21 = vunpack.c.h.bf16 %v1669_v3  ;;  %v991_v22 = vmul.f32 %v2042_v27, %v955_v8  ;;  %v1674_v12 = vld [vmem:[%s2004_s12 + $0x68] sm:$0xff]  }
 0x163   : > { %v1151_v24 = vmax.f32 %v1119_v14, 0.0  ;;  %v1152_v25 = vmax.f32 %v1120_v15, 0.0  ;;  %v1121_v26 = vadd.f32 %v1552_v17, %v1025_v16  ;;  %v992_v29 = vmul.f32 %v2042_v27, %v956_v13  ;;  %v965_v17 = vld [vmem:[#allocation2 + $0xa0] sm:$0xff] }
 0x164   : > { %1682 = vst [vmem:[%s2009_s14 + $0x30] sm:$0xff] %v1615_v19   ;;  %v1122_v32 = vadd.f32 %v1553_v21, %v1026_v20  ;;  %v1027_v33 = vadd.f32 %v2047_v28, %v991_v22  ;;  %v1556_v34 = vunpack.c.l.bf16 %v1670_v18  ;;  %v1557_v35 = vunpack.c.h.bf16 %v1670_v18  ;;  %v966_v22 = vld [vmem:[#allocation2 + $0xf8] sm:$0xff] }
 0x165   : > { %v1620_v37 = vpack.c.bf16 %v1152_v25, %v1151_v24  ;;  %v1153_v38 = vmax.f32 %v1121_v26, 0.0  ;;  %v1028_v39 = vadd.f32 %v2047_v28, %v992_v29  ;;  %v993_v40 = vmul.f32 %v2042_v27, %v957_v23  ;;  %v1675_v23 = vld [vmem:[%s2004_s12 + $0x70] sm:$0xff]  }
 0x166   : > { %v1154_v42 = vmax.f32 %v1122_v32, 0.0  ;;  %v1123_v43 = vadd.f32 %v1556_v34, %v1027_v33  ;;  %v994_v44 = vmul.f32 %v2042_v27, %v958_v30  ;;  %v1560_v45 = vunpack.c.l.bf16 %v1671_v31  ;;  %v967_v30 = vld [vmem:[#allocation2 + $0x20] sm:$0xff] }
 0x167   : > { %1683 = vst [vmem:[%s2009_s14 + $0x38] sm:$0xff] %v1620_v37   ;;  %v1124_v47 = vadd.f32 %v1557_v35, %v1028_v39  ;;  %v1029_v48 = vadd.f32 %v2047_v28, %v993_v40  ;;  %v1561_v49 = vunpack.c.h.bf16 %v1671_v31  ;;  %v995_v50 = vmul.f32 %v2042_v27, %v959_v36  ;;  %v968_v35 = vld [vmem:[#allocation2 + $0x98] sm:$0xff] }
 0x168   : > { %v1625_v52 = vpack.c.bf16 %v1154_v42, %v1153_v38  ;;  %v1155_v53 = vmax.f32 %v1123_v43, 0.0  ;;  %v1030_v54 = vadd.f32 %v2047_v28, %v994_v44  ;;  %v996_v55 = vmul.f32 %v2042_v27, %v960_v41  ;;  %v1676_v40 = vld [vmem:[%s2004_s12 + $0x78] sm:$0xff]  }
 0x169   : > { %v1156_v57 = vmax.f32 %v1124_v47, 0.0  ;;  %v1125_v58 = vadd.f32 %v1560_v45, %v1029_v48  ;;  %v1031_v59 = vadd.f32 %v2047_v28, %v995_v50  ;;  %v1564_v60 = vunpack.c.l.bf16 %v1672_v46 }
 0x16a   : > { %1684 = vst [vmem:[%s2009_s14 + $0x40] sm:$0xff] %v1625_v52   ;;  %v1126_v62 = vadd.f32 %v1561_v49, %v1030_v54  ;;  %v1032_v63 = vadd.f32 %v2047_v28, %v996_v55  ;;  %v1565_v0 = vunpack.c.h.bf16 %v1672_v46  ;;  %v997_v1 = vmul.f32 %v2042_v27, %v961_v51 }
 0x16b   : > { %v1630_v3 = vpack.c.bf16 %v1156_v57, %v1155_v53  ;;  %v1157_v4 = vmax.f32 %v1125_v58, 0.0  ;;  %v1127_v5 = vadd.f32 %v1564_v60, %v1031_v59  ;;  %v998_v6 = vmul.f32 %v2042_v27, %v962_v56 }
 0x16c   : > { %v1158_v8 = vmax.f32 %v1126_v62, 0.0  ;;  %v1128_v9 = vadd.f32 %v1565_v0, %v1032_v63  ;;  %v1033_v10 = vadd.f32 %v2047_v28, %v997_v1  ;;  %v1568_v11 = vunpack.c.l.bf16 %v1673_v61 }
 0x16d   : > { %1685 = vst [vmem:[%s2009_s14 + $0x48] sm:$0xff] %v1630_v3   ;;  %v1159_v13 = vmax.f32 %v1127_v5, 0.0  ;;  %v1034_v14 = vadd.f32 %v2047_v28, %v998_v6  ;;  %v1569_v15 = vunpack.c.h.bf16 %v1673_v61  ;;  %v999_v16 = vmul.f32 %v2042_v27, %v963_v2 }
 0x16e   : > { %v1635_v18 = vpack.c.bf16 %v1158_v8, %v1157_v4  ;;  %v1160_v19 = vmax.f32 %v1128_v9, 0.0  ;;  %v1129_v20 = vadd.f32 %v1568_v11, %v1033_v10  ;;  %v1000_v21 = vmul.f32 %v2042_v27, %v964_v7 }
 0x16f   : > { %v1130_v24 = vadd.f32 %v1569_v15, %v1034_v14  ;;  %v1035_v25 = vadd.f32 %v2047_v28, %v999_v16  ;;  %v1572_v26 = vunpack.c.l.bf16 %v1674_v12  ;;  %v1573_v29 = vunpack.c.h.bf16 %v1674_v12 }
 0x170   : > { %1686 = vst [vmem:[%s2009_s14 + $0x50] sm:$0xff] %v1635_v18   ;;  %v1640_v31 = vpack.c.bf16 %v1160_v19, %v1159_v13  ;;  %v1161_v32 = vmax.f32 %v1129_v20, 0.0  ;;  %v1036_v33 = vadd.f32 %v2047_v28, %v1000_v21  ;;  %v1001_v34 = vmul.f32 %v2042_v27, %v965_v17 }
 0x171   : > { %v1162_v36 = vmax.f32 %v1130_v24, 0.0  ;;  %v1131_v37 = vadd.f32 %v1572_v26, %v1035_v25  ;;  %v1002_v38 = vmul.f32 %v2042_v27, %v966_v22  ;;  %v1576_v39 = vunpack.c.l.bf16 %v1675_v23 }
 0x172   : > { %1687 = vst [vmem:[%s2009_s14 + $0x58] sm:$0xff] %v1640_v31   ;;  %v1132_v41 = vadd.f32 %v1573_v29, %v1036_v33  ;;  %v1037_v42 = vadd.f32 %v2047_v28, %v1001_v34  ;;  %v1577_v43 = vunpack.c.h.bf16 %v1675_v23  ;;  %v1003_v44 = vmul.f32 %v2042_v27, %v967_v30 }
 0x173   : > { %v1645_v45 = vpack.c.bf16 %v1162_v36, %v1161_v32  ;;  %v1163_v46 = vmax.f32 %v1131_v37, 0.0  ;;  %v1038_v47 = vadd.f32 %v2047_v28, %v1002_v38  ;;  %v1004_v48 = vmul.f32 %v2042_v27, %v968_v35 }
 0x174   : > { %v1164_v49 = vmax.f32 %v1132_v41, 0.0  ;;  %v1133_v50 = vadd.f32 %v1576_v39, %v1037_v42  ;;  %v1039_v51 = vadd.f32 %v2047_v28, %v1003_v44  ;;  %v1580_v52 = vunpack.c.l.bf16 %v1676_v40 }
 0x175   : > { %1688 = vst [vmem:[%s2009_s14 + $0x60] sm:$0xff] %v1645_v45   ;;  %v1134_v53 = vadd.f32 %v1577_v43, %v1038_v47  ;;  %v1040_v54 = vadd.f32 %v2047_v28, %v1004_v48  ;;  %v1581_v55 = vunpack.c.h.bf16 %v1676_v40 }
 0x176   : > { %v1650_v56 = vpack.c.bf16 %v1164_v49, %v1163_v46  ;;  %v1165_v57 = vmax.f32 %v1133_v50, 0.0  ;;  %v1135_v58 = vadd.f32 %v1580_v52, %v1039_v51 }
 0x177   : > { %v1166_v59 = vmax.f32 %v1134_v53, 0.0  ;;  %v1136_v60 = vadd.f32 %v1581_v55, %v1040_v54 }
 0x178   : > { %1689 = vst [vmem:[%s2009_s14 + $0x68] sm:$0xff] %v1650_v56   ;;  %v1167_v61 = vmax.f32 %v1135_v58, 0.0 }
 0x179   : > { %v1655_v27 = vpack.c.bf16 %v1166_v59, %v1165_v57  ;;  %v1168_v62 = vmax.f32 %v1136_v60, 0.0 }
 0x17b   : > { %1690 = vst [vmem:[%s2009_s14 + $0x70] sm:$0xff] %v1655_v27   ;;  %v1660_v63 = vpack.c.bf16 %v1168_v62, %v1167_v61 }
 0x17d   : > { %1691 = vst [vmem:[%s2009_s14 + $0x78] sm:$0xff] %v1660_v63  }
 0x17e PF: > { %s15_s24 = sadd.s32 1, %s1830_s24   ;;  %s2172_s18 = smov %s1810_s19 }
 0x17f   : > { %p12_p0 = scmp.ge.s32.totalorder %s15_s24, 12   ;;  %s2173_s19 = smov %s1914_s6 }
 0x180   : > { %s2174_s20 = smov %s1822_s22  ;;  %s2175_s21 = smov %s1826_s23 }
 0x181   : > { %s2176_s22 = smov %s2179_s25  ;;  %s2177_s23 = smov %s2183_s26 }
 0x182   :  { %14 = sbr.rel (!%p12_p0) target bundleno = 4 (0x4), region = 136 }

// kernel: forward.16
= control target key start
LH: loop header
LB: loop body
LE: loop exit
PB: predicated region body
PF: predicated region fallthrough
CT: control target
= control target key end

     0   :  { %s1148_s15 = smov 0   ;;  %s1150_s16 = smov 0   ;;  %s1301_s0 = inlined_call_operand.vmem [shape: bf16[128,640], index: 0, kind: input, shape index: {}]   ;;  %s1302_s1 = inlined_call_operand.vmem [shape: bf16[640,128], index: 1, kind: input, shape index: {}]   ;;  %s1303_s2 = inlined_call_operand.vmem [shape: f32[1,128], index: 2, kind: input, shape index: {}]   ;;  %s1304_s3 = inlined_call_operand.vmem [shape: f32[1,128], index: 3, kind: input, shape index: {}]   ;;  %s1305_s4 = inlined_call_operand.vmem [shape: bf16[128,128], index: 4, kind: output, shape index: {}]  }
   0x1   :  { %s1152_s17 = smov 0   ;;  %s1154_s18 = smov 0  }
   0x2   :  { %s1156_s19 = smov 0  }
   0x3 LB: > { %s26_s20 = sadd.s32 1, %s1116_s18  ;;  %p49_p1 = scmp.ne.s32.totalorder %s1108_s16, %s1104_s15  ;;  %s1120_s19 = sphi %s1156_s19, %s14_s19   ;;  %s1116_s18 = sphi %s1154_s18, %s1309_s18   ;;  %s1112_s17 = sphi %s1152_s17, %s1308_s17   ;;  %s1108_s16 = sphi %s1150_s16, %s1307_s16   ;;  %s1104_s15 = sphi %s1148_s15, %s1306_s15  }
   0x4   : > { %p27_p0 = scmp.ge.s32.totalorder %s26_s20, 5  ;;  %p50_p2 = scmp.eq.s32.totalorder %s1120_s19, 0 }
   0x5   : > { %s42_s22 = sadd.s32 1, %s1108_s16  ;;  %p875_p5 = scmp.ge.s32.totalorder %s1120_s19, 5 }
   0x6   : > { %s1311_s20 = smov (%p27_p0, %s26_s20), 0  ;;  %p51_p3 = por %p50_p2, %p49_p1 }
   0x7   : > { %s38_s21 = ssub.s32 %s1116_s18, %s1311_s20  ;;  %195 = sbr.rel (%p875_p5) target bundleno = 32 (0x20), region = 24 }
   0x8   : > { %p40_p4 = scmp.eq.s32.totalorder %s38_s21, 0 }
   0xa   : > { %s1183_s23 = scalar_select %p40_p4, %s1108_s16, %s42_s22  }
   0xc   : > { %198 = sbr.rel (!%p51_p3) target bundleno = 32 (0x20), region = 28  ;;  %s200_s24 = sand.u32 (%p51_p3), 1, %s1108_s16  }
   0xd   : > { %s877_s25 = sshll.u32 (%p51_p3), %s1116_s18, 2  ;;  %s876_s26 = sshll.u32 (%p51_p3), %s200_s24, 6 }
   0xe   : > { %s1191_s29 = scalar_lea.vmem (%p51_p3), %s1301_s0, %s877_s25  ;;  %s202_s30 = scalar_lea.vmem (%p51_p3), [#allocation3], %s876_s26 }
   0xf   : > { %v224_v0 = vld [vmem:[%s1191_s29] sm:$0xf] (%p51_p3)  ;;  %v226_v1 = vld [vmem:[%s1191_s29 + $0x14] sm:$0xf] (%p51_p3)  ;;  %v228_v2 = vld [vmem:[%s1191_s29 + $0x28] sm:$0xf] (%p51_p3) }
  0x10   : > { %225 = vst [vmem:[%s202_s30] sm:$0xf] (%p51_p3), %v224_v0  ;;  %v230_v3 = vld [vmem:[%s1191_s29 + $0x3c] sm:$0xf] (%p51_p3)  ;;  %v232_v4 = vld [vmem:[%s1191_s29 + $0x50] sm:$0xf] (%p51_p3) }
  0x11   : > { %227 = vst [vmem:[%s202_s30 + $0x4] sm:$0xf] %v226_v1  ;;  %v234_v5 = vld [vmem:[%s1191_s29 + $0x64] sm:$0xf]  ;;  %v236_v6 = vld [vmem:[%s1191_s29 + $0x78] sm:$0xf] }
  0x12   : > { %229 = vst [vmem:[%s202_s30 + $0x8] sm:$0xf] %v228_v2  ;;  %v238_v7 = vld [vmem:[%s1191_s29 + $0x8c] sm:$0xf]  ;;  %v240_v8 = vld [vmem:[%s1191_s29 + $0xa0] sm:$0xf] }
  0x13   : > { %231 = vst [vmem:[%s202_s30 + $0xc] sm:$0xf] %v230_v3  ;;  %v242_v9 = vld [vmem:[%s1191_s29 + $0xb4] sm:$0xf]  ;;  %v244_v10 = vld [vmem:[%s1191_s29 + $0xc8] sm:$0xf] }
  0x14   : > { %233 = vst [vmem:[%s202_s30 + $0x10] sm:$0xf] %v232_v4  ;;  %v246_v11 = vld [vmem:[%s1191_s29 + $0xdc] sm:$0xf]  ;;  %v248_v12 = vld [vmem:[%s1191_s29 + $0xf0] sm:$0xf] }
  0x15   : > { %235 = vst [vmem:[%s202_s30 + $0x14] sm:$0xf] %v234_v5  ;;  %v250_v13 = vld [vmem:[%s1191_s29 + $0x104] sm:$0xf]  ;;  %v252_v14 = vld [vmem:[%s1191_s29 + $0x118] sm:$0xf] }
  0x16   : > { %237 = vst [vmem:[%s202_s30 + $0x18] sm:$0xf] %v236_v6  ;;  %v254_v15 = vld [vmem:[%s1191_s29 + $0x12c] sm:$0xf] }
  0x17   : > { %239 = vst [vmem:[%s202_s30 + $0x1c] sm:$0xf] %v238_v7 }
  0x18   : > { %241 = vst [vmem:[%s202_s30 + $0x20] sm:$0xf] %v240_v8 }
  0x19   : > { %243 = vst [vmem:[%s202_s30 + $0x24] sm:$0xf] %v242_v9 }
  0x1a   : > { %245 = vst [vmem:[%s202_s30 + $0x28] sm:$0xf] %v244_v10 }
  0x1b   : > { %247 = vst [vmem:[%s202_s30 + $0x2c] sm:$0xf] %v246_v11 }
  0x1c   : > { %249 = vst [vmem:[%s202_s30 + $0x30] sm:$0xf] %v248_v12 }
  0x1d   : > { %251 = vst [vmem:[%s202_s30 + $0x34] sm:$0xf] %v250_v13 }
  0x1e   : > { %253 = vst [vmem:[%s202_s30 + $0x38] sm:$0xf] %v252_v14 }
  0x1f   : > { %255 = vst [vmem:[%s202_s30 + $0x3c] sm:$0xf] %v254_v15 }
  0x20 PF: > { %p878_p6 = scmp.ge.s32.totalorder %s1120_s19, 1  ;;  %p322_p7 = scmp.lt.s32.totalorder %s1120_s19, 6 }
  0x22   : > { %p323_p8 = pnand %p878_p6, %p322_p7 }
  0x23   : > { %s329_s5 = sand.u32 (!%p323_p8), 1, %s1104_s15   ;;  %s880_s6 = sshll.u32 (!%p323_p8), %s1112_s17, 4 }
  0x24   : > { %326 = sbr.rel (%p323_p8) target bundleno = 277 (0x115), region = 73  ;;  %s879_s7 = sshll.u32 (!%p323_p8), %s329_s5, 6 }
  0x25   : > { %p373_p9 = scmp.lt.s32.totalorder (!%p323_p8), %s880_s6, 79  ;;  %s1218_s12 = scalar_lea.vmem (!%p323_p8), [#allocation3], %s879_s7 }
  0x26   : > { %p882_p10 = scmp.ne.s32.totalorder (!%p323_p8), %s1112_s17, 0 }
  0x29   : > { %s1313_s6 = smov (!%p373_p9, %s880_s6), 79  ;;  %399 = sbr.rel (%p882_p10) target bundleno = 63 (0x3f), region = 81 }
  0x2a   : > { %s881_s8 = sshll.u32 %s1313_s6, 2 }
  0x2b   : > { %s1216_s11 = scalar_lea.vmem %s1302_s1, %s881_s8 }
  0x2e   : > { %v1122_v16 = vmov 0.0  }
  0x2f   : > { %400 = vst [vmem:[#allocation2 + $0x30] sm:$0xff] %v1122_v16 }
  0x30   : > { %401 = vst [vmem:[#allocation2] sm:$0xff] %v1122_v16 }
  0x31   : > { %402 = vst [vmem:[#allocation2 + $0x58] sm:$0xff] %v1122_v16 }
  0x32   : > { %403 = vst [vmem:[#allocation2 + $0x18] sm:$0xff] %v1122_v16 }
  0x33   : > { %404 = vst [vmem:[#allocation2 + $0x50] sm:$0xff] %v1122_v16 }
  0x34   : > { %405 = vst [vmem:[#allocation2 + $0x68] sm:$0xff] %v1122_v16 }
  0x35   : > { %406 = vst [vmem:[#allocation2 + $0x8] sm:$0xff] %v1122_v16 }
  0x36   : > { %407 = vst [vmem:[#allocation2 + $0x48] sm:$0xff] %v1122_v16 }
  0x37   : > { %408 = vst [vmem:[#allocation2 + $0x40] sm:$0xff] %v1122_v16 }
  0x38   : > { %409 = vst [vmem:[#allocation2 + $0x20] sm:$0xff] %v1122_v16 }
  0x39   : > { %410 = vst [vmem:[#allocation2 + $0x10] sm:$0xff] %v1122_v16 }
  0x3a   : > { %411 = vst [vmem:[#allocation2 + $0x38] sm:$0xff] %v1122_v16 }
  0x3b   : > { %412 = vst [vmem:[#allocation2 + $0x60] sm:$0xff] %v1122_v16 }
  0x3c   : > { %413 = vst [vmem:[#allocation2 + $0x70] sm:$0xff] %v1122_v16 }
  0x3d   : > { %414 = vst [vmem:[#allocation2 + $0x78] sm:$0xff] %v1122_v16 }
  0x3e   : > { %415 = vst [vmem:[#allocation2 + $0x28] sm:$0xff] %v1122_v16 }
  0x3f PF: > { %v967_v17 = vld [vmem:[%s1216_s11 + $0x38] sm:$0xff]  ;;  %v966_v18 = vld [vmem:[%s1216_s11 + $0x30] sm:$0xff]  ;;  %v965_v19 = vld [vmem:[%s1216_s11 + $0x28] sm:$0xff]  ;;  %p947_p11 = scmp.ne.s32.totalorder %s1112_s17, 4 }
  0x40   : > { %560 = vmatpush.bf16.msra.mxu0 %v967_v17  ;;  %1015 = vmatpush.bf16.msra.mxu1 %v967_v17  ;;  %v964_v20 = vld [vmem:[%s1216_s11 + $0x20] sm:$0xff]  ;;  %v963_v21 = vld [vmem:[%s1216_s11 + $0x18] sm:$0xff]  ;;  %v962_v22 = vld [vmem:[%s1216_s11 + $0x10] sm:$0xff] }
  0x41   : > { %1016 = vmatpush.bf16.msra.mxu2 %v967_v17  ;;  %1017 = vmatpush.bf16.msra.mxu3 %v967_v17  ;;  %v961_v23 = vld [vmem:[%s1216_s11 + $0x8] sm:$0xff]  ;;  %v960_v24 = vld [vmem:[%s1216_s11] sm:$0xff]  ;;  %v954_v26 = vld [vmem:[%s1218_s12 + $0x10] sm:$0xff] }
  0x42   : > { %v952_v25 = vld [vmem:[%s1218_s12] sm:$0xff]  ;;  %v958_v28 = vld [vmem:[%s1218_s12 + $0x30] sm:$0xff]  ;;  %v953_v29 = vld [vmem:[%s1218_s12 + $0x8] sm:$0xff] }
  0x43   : > { %v956_v27 = vld [vmem:[%s1218_s12 + $0x20] sm:$0xff]  ;;  %v955_v30 = vld [vmem:[%s1218_s12 + $0x18] sm:$0xff]  ;;  %v957_v31 = vld [vmem:[%s1218_s12 + $0x28] sm:$0xff] }
  0x44   : > { %561 = vmatpush.bf16.msra.mxu0 %v966_v18  ;;  %1018 = vmatpush.bf16.msra.mxu1 %v966_v18  ;;  %v959_v32 = vld [vmem:[%s1218_s12 + $0x38] sm:$0xff]  ;;  %v416_v33 = vld [vmem:[#allocation2 + $0x30] sm:$0xff]  ;;  %v424_v39 = vld [vmem:[#allocation2 + $0x40] sm:$0xff] }
  0x45   : > { %1019 = vmatpush.bf16.msra.mxu2 %v966_v18  ;;  %1020 = vmatpush.bf16.msra.mxu3 %v966_v18  ;;  %v420_v34 = vld [vmem:[#allocation2 + $0x50] sm:$0xff]  ;;  %v428_v40 = vld [vmem:[#allocation2 + $0x60] sm:$0xff]  ;;  %v421_v42 = vld [vmem:[#allocation2 + $0x68] sm:$0xff] }
  0x46   : > { %v417_v41 = vld [vmem:[#allocation2] sm:$0xff]  ;;  %v429_v52 = vld [vmem:[#allocation2 + $0x70] sm:$0xff]  ;;  %v418_v53 = vld [vmem:[#allocation2 + $0x58] sm:$0xff] }
  0x47   : > { %v425_v51 = vld [vmem:[#allocation2 + $0x20] sm:$0xff]  ;;  %v422_v54 = vld [vmem:[#allocation2 + $0x8] sm:$0xff]  ;;  %v426_v63 = vld [vmem:[#allocation2 + $0x10] sm:$0xff] }
  0x48   : > { %562 = vmatpush.bf16.msra.mxu0 %v965_v19  ;;  %1021 = vmatpush.bf16.msra.mxu1 %v965_v19  ;;  %v430_v0 = vld [vmem:[#allocation2 + $0x78] sm:$0xff]  ;;  %v423_v2 = vld [vmem:[#allocation2 + $0x48] sm:$0xff] }
  0x49   : > { %1022 = vmatpush.bf16.msra.mxu2 %v965_v19  ;;  %1023 = vmatpush.bf16.msra.mxu3 %v965_v19  ;;  %v419_v1 = vld [vmem:[#allocation2 + $0x18] sm:$0xff]  ;;  %v431_v12 = vld [vmem:[#allocation2 + $0x28] sm:$0xff] }
  0x4a   : > { %v427_v11 = vld [vmem:[#allocation2 + $0x38] sm:$0xff] }
  0x4c   : > { %563 = vmatpush.bf16.msra.mxu0 %v964_v20  ;;  %1024 = vmatpush.bf16.msra.mxu1 %v964_v20 }
  0x4d   : > { %1025 = vmatpush.bf16.msra.mxu2 %v964_v20  ;;  %1026 = vmatpush.bf16.msra.mxu3 %v964_v20 }
  0x50   : > { %564 = vmatpush.bf16.msra.mxu0 %v963_v21  ;;  %1027 = vmatpush.bf16.msra.mxu1 %v963_v21 }
  0x51   : > { %1028 = vmatpush.bf16.msra.mxu2 %v963_v21  ;;  %1029 = vmatpush.bf16.msra.mxu3 %v963_v21 }
  0x54   : > { %565 = vmatpush.bf16.msra.mxu0 %v962_v22  ;;  %1030 = vmatpush.bf16.msra.mxu1 %v962_v22 }
  0x55   : > { %1031 = vmatpush.bf16.msra.mxu2 %v962_v22  ;;  %1032 = vmatpush.bf16.msra.mxu3 %v962_v22 }
  0x58   : > { %566 = vmatpush.bf16.msra.mxu0 %v961_v23  ;;  %1033 = vmatpush.bf16.msra.mxu1 %v961_v23 }
  0x59   : > { %1034 = vmatpush.bf16.msra.mxu2 %v961_v23  ;;  %1035 = vmatpush.bf16.msra.mxu3 %v961_v23 }
  0x5c   : > { %567 = vmatpush.bf16.msra.mxu0 %v960_v24  ;;  %1036 = vmatpush.bf16.msra.mxu1 %v960_v24 }
  0x5d   : > { %1037 = vmatpush.bf16.msra.mxu2 %v960_v24  ;;  %1038 = vmatpush.bf16.msra.mxu3 %v960_v24 }
  0x5f   : > { %568 = vmatmul.bf16.vlgmr.msra.gmra.mxu0 %v952_v25  ;;  %578 = vmatmul.bf16.vlgmr.msra.gmra.mxu1 %v954_v26 }
  0x60   : > { %588 = vmatmul.bf16.vlgmr.msra.gmra.mxu2 %v956_v27  ;;  %598 = vmatmul.bf16.vlgmr.msra.gmra.mxu3 %v958_v28 }
  0x6f   : > { %573 = vmatmul.bf16.gmra.mxu0 %v953_v29  ;;  %583 = vmatmul.bf16.gmra.mxu1 %v955_v30 }
  0x70   : > { %593 = vmatmul.bf16.gmra.mxu2 %v957_v31  ;;  %603 = vmatmul.bf16.gmra.mxu3 %v959_v32 }
  0xdc   : > { %v569_v35 = vpop.f32.mrf.mxu0  ;;  %v579_v36 = vpop.f32.mrf.mxu1 }
  0xdd   : > { %v609_v37 = vadd.f32 %v569_v35, %v416_v33  ;;  %v613_v38 = vadd.f32 %v579_v36, %v420_v34 }
  0xdf   : > { %625 = vst [vmem:[#allocation2 + $0x30] sm:$0xff] %v609_v37 }
  0xe0   : > { %629 = vst [vmem:[#allocation2 + $0x50] sm:$0xff] %v613_v38 }
  0xe3   : > { %v589_v43 = vpop.f32.mrf.mxu2  ;;  %v599_v44 = vpop.f32.mrf.mxu3 }
  0xe4   : > { %v617_v45 = vadd.f32 %v589_v43, %v424_v39  ;;  %v621_v46 = vadd.f32 %v599_v44, %v428_v40  ;;  %v571_v47 = vpop.f32.mrf.mxu0  ;;  %v581_v48 = vpop.f32.mrf.mxu1 }
  0xe5   : > { %v610_v49 = vadd.f32 %v571_v47, %v417_v41  ;;  %v614_v50 = vadd.f32 %v581_v48, %v421_v42 }
  0xe6   : > { %633 = vst [vmem:[#allocation2 + $0x40] sm:$0xff] %v617_v45 }
  0xe7   : > { %637 = vst [vmem:[#allocation2 + $0x60] sm:$0xff] %v621_v46 }
  0xe8   : > { %626 = vst [vmem:[#allocation2] sm:$0xff] %v610_v49 }
  0xe9   : > { %630 = vst [vmem:[#allocation2 + $0x68] sm:$0xff] %v614_v50 }
  0xeb   : > { %v591_v55 = vpop.f32.mrf.mxu2  ;;  %v601_v56 = vpop.f32.mrf.mxu3 }
  0xec   : > { %v618_v57 = vadd.f32 %v591_v55, %v425_v51  ;;  %v622_v58 = vadd.f32 %v601_v56, %v429_v52  ;;  %v574_v59 = vpop.f32.mrf.mxu0  ;;  %v584_v60 = vpop.f32.mrf.mxu1 }
  0xed   : > { %v611_v61 = vadd.f32 %v574_v59, %v418_v53  ;;  %v615_v62 = vadd.f32 %v584_v60, %v422_v54 }
  0xee   : > { %634 = vst [vmem:[#allocation2 + $0x20] sm:$0xff] %v618_v57 }
  0xef   : > { %638 = vst [vmem:[#allocation2 + $0x70] sm:$0xff] %v622_v58 }
  0xf0   : > { %627 = vst [vmem:[#allocation2 + $0x58] sm:$0xff] %v611_v61 }
  0xf1   : > { %631 = vst [vmem:[#allocation2 + $0x8] sm:$0xff] %v615_v62 }
  0xf3   : > { %v594_v3 = vpop.f32.mrf.mxu2  ;;  %v604_v4 = vpop.f32.mrf.mxu3 }
  0xf4   : > { %v619_v5 = vadd.f32 %v594_v3, %v426_v63  ;;  %v623_v6 = vadd.f32 %v604_v4, %v430_v0  ;;  %v576_v7 = vpop.f32.mrf.mxu0  ;;  %v586_v8 = vpop.f32.mrf.mxu1 }
  0xf5   : > { %v612_v9 = vadd.f32 %v576_v7, %v419_v1  ;;  %v616_v10 = vadd.f32 %v586_v8, %v423_v2 }
  0xf6   : > { %635 = vst [vmem:[#allocation2 + $0x10] sm:$0xff] %v619_v5 }
  0xf7   : > { %639 = vst [vmem:[#allocation2 + $0x78] sm:$0xff] %v623_v6 }
  0xf8   : > { %628 = vst [vmem:[#allocation2 + $0x18] sm:$0xff] %v612_v9 }
  0xf9   : > { %632 = vst [vmem:[#allocation2 + $0x48] sm:$0xff] %v616_v10 }
  0xfb   : > { %v596_v13 = vpop.f32.mrf.mxu2  ;;  %v606_v14 = vpop.f32.mrf.mxu3  ;;  %644 = sbr.rel (%p947_p11) target bundleno = 277 (0x115), region = 85 }
  0xfc   : > { %v620_v15 = vadd.f32 %v596_v13, %v427_v11  ;;  %v624_v16 = vadd.f32 %v606_v14, %v431_v12 }
  0xfe   : > { %636 = vst [vmem:[#allocation2 + $0x38] sm:$0xff] %v620_v15 }
  0xff   : > { %640 = vst [vmem:[#allocation2 + $0x28] sm:$0xff] %v624_v16 }
 0x100   : > { %v645_v17 = vld [vmem:[#allocation2 + $0x30] sm:$0xff]  ;;  %v646_v18 = vld [vmem:[#allocation2] sm:$0xff]  ;;  %v647_v21 = vld [vmem:[#allocation2 + $0x58] sm:$0xff] }
 0x101   : > { %v1080_v19 = vld [vmem:[%s1303_s2] ss:$0 sm:$0xff]  ;;  %v648_v22 = vld [vmem:[#allocation2 + $0x18] sm:$0xff]  ;;  %v649_v23 = vld [vmem:[#allocation2 + $0x50] sm:$0xff] }
 0x102   : > { %v1244_v20 = vld [vmem:[%s1304_s3] ss:$0 sm:$0xff]  ;;  %v665_v24 = vmul.f32 %v1080_v19, %v645_v17  ;;  %v666_v25 = vmul.f32 %v1080_v19, %v646_v18  ;;  %v667_v26 = vmul.f32 %v1080_v19, %v647_v21  ;;  %v668_v27 = vmul.f32 %v1080_v19, %v648_v22  ;;  %v650_v28 = vld [vmem:[#allocation2 + $0x68] sm:$0xff]  ;;  %v655_v49 = vld [vmem:[#allocation2 + $0x10] sm:$0xff] }
 0x103   : > { %v651_v29 = vld [vmem:[#allocation2 + $0x8] sm:$0xff]  ;;  %v669_v31 = vmul.f32 %v1080_v19, %v649_v23  ;;  %v670_v32 = vmul.f32 %v1080_v19, %v650_v28  ;;  %v653_v43 = vld [vmem:[#allocation2 + $0x40] sm:$0xff]  ;;  %v658_v56 = vld [vmem:[#allocation2 + $0x70] sm:$0xff]  ;;  %v675_v1 = vmul.f32 %v1080_v19, %v655_v49 }
 0x104   : > { %v652_v30 = vld [vmem:[#allocation2 + $0x48] sm:$0xff]  ;;  %v671_v33 = vmul.f32 %v1080_v19, %v651_v29  ;;  %v685_v35 = vadd.f32 %v1244_v20, %v665_v24  ;;  %v686_v36 = vadd.f32 %v1244_v20, %v666_v25  ;;  %v687_v37 = vadd.f32 %v1244_v20, %v667_v26  ;;  %v654_v44 = vld [vmem:[#allocation2 + $0x20] sm:$0xff]  ;;  %v659_v61 = vld [vmem:[#allocation2 + $0x78] sm:$0xff] }
 0x105   : > { %v672_v34 = vmul.f32 %v1080_v19, %v652_v30  ;;  %v688_v38 = vadd.f32 %v1244_v20, %v668_v27  ;;  %v689_v39 = vadd.f32 %v1244_v20, %v669_v31  ;;  %v690_v40 = vadd.f32 %v1244_v20, %v670_v32  ;;  %v656_v50 = vld [vmem:[#allocation2 + $0x38] sm:$0xff]  ;;  %v657_v55 = vld [vmem:[#allocation2 + $0x60] sm:$0xff] }
 0x106   : > { %v691_v41 = vadd.f32 %v1244_v20, %v671_v33  ;;  %v701_v45 = vmax.f32 %v685_v35, 0.0  ;;  %v702_v46 = vmax.f32 %v686_v36, 0.0  ;;  %v703_v47 = vmax.f32 %v687_v37, 0.0  ;;  %v660_v62 = vld [vmem:[#allocation2 + $0x28] sm:$0xff] }
 0x107   : > { %v692_v42 = vadd.f32 %v1244_v20, %v672_v34  ;;  %v704_v48 = vmax.f32 %v688_v38, 0.0  ;;  %v705_v51 = vmax.f32 %v689_v39, 0.0  ;;  %v706_v52 = vmax.f32 %v690_v40, 0.0 }
 0x108   : > { %v707_v53 = vmax.f32 %v691_v41, 0.0  ;;  %v971_v57 = vpack.c.bf16 %v702_v46, %v701_v45  ;;  %v673_v59 = vmul.f32 %v1080_v19, %v653_v43  ;;  %v674_v60 = vmul.f32 %v1080_v19, %v654_v44 }
 0x109   : > { %v708_v54 = vmax.f32 %v692_v42, 0.0  ;;  %v976_v58 = vpack.c.bf16 %v704_v48, %v703_v47  ;;  %v981_v63 = vpack.c.bf16 %v706_v52, %v705_v51  ;;  %v676_v2 = vmul.f32 %v1080_v19, %v656_v50 }
 0x10a   : > { %972 = vst [vmem:[%s1305_s4] sm:$0xff] %v971_v57   ;;  %v693_v3 = vadd.f32 %v1244_v20, %v673_v59  ;;  %v694_v4 = vadd.f32 %v1244_v20, %v674_v60  ;;  %v677_v5 = vmul.f32 %v1080_v19, %v657_v55  ;;  %v678_v6 = vmul.f32 %v1080_v19, %v658_v56 }
 0x10b   : > { %v986_v0 = vpack.c.bf16 %v708_v54, %v707_v53  ;;  %1008 = vst [vmem:[%s1305_s4 + $0x8] sm:$0xff] %v976_v58   ;;  %v695_v7 = vadd.f32 %v1244_v20, %v675_v1  ;;  %v696_v8 = vadd.f32 %v1244_v20, %v676_v2  ;;  %v679_v9 = vmul.f32 %v1080_v19, %v659_v61 }
 0x10c   : > { %v680_v10 = vmul.f32 %v1080_v19, %v660_v62  ;;  %1009 = vst [vmem:[%s1305_s4 + $0x10] sm:$0xff] %v981_v63   ;;  %v709_v11 = vmax.f32 %v693_v3, 0.0  ;;  %v710_v12 = vmax.f32 %v694_v4, 0.0  ;;  %v697_v13 = vadd.f32 %v1244_v20, %v677_v5 }
 0x10d   : > { %v698_v14 = vadd.f32 %v1244_v20, %v678_v6  ;;  %1010 = vst [vmem:[%s1305_s4 + $0x18] sm:$0xff] %v986_v0   ;;  %v711_v15 = vmax.f32 %v695_v7, 0.0  ;;  %v712_v16 = vmax.f32 %v696_v8, 0.0  ;;  %v699_v17 = vadd.f32 %v1244_v20, %v679_v9 }
 0x10e   : > { %v700_v18 = vadd.f32 %v1244_v20, %v680_v10  ;;  %v991_v19 = vpack.c.bf16 %v710_v12, %v709_v11  ;;  %v713_v21 = vmax.f32 %v697_v13, 0.0 }
 0x10f   : > { %v714_v22 = vmax.f32 %v698_v14, 0.0  ;;  %v996_v23 = vpack.c.bf16 %v712_v16, %v711_v15  ;;  %v715_v24 = vmax.f32 %v699_v17, 0.0 }
 0x110   : > { %v716_v25 = vmax.f32 %v700_v18, 0.0  ;;  %1011 = vst [vmem:[%s1305_s4 + $0x20] sm:$0xff] %v991_v19  }
 0x111   : > { %v1001_v26 = vpack.c.bf16 %v714_v22, %v713_v21  ;;  %1012 = vst [vmem:[%s1305_s4 + $0x28] sm:$0xff] %v996_v23  }
 0x112   : > { %v1006_v27 = vpack.c.bf16 %v716_v25, %v715_v24 }
 0x113   : > { %1013 = vst [vmem:[%s1305_s4 + $0x30] sm:$0xff] %v1001_v26  }
 0x114   : > { %1014 = vst [vmem:[%s1305_s4 + $0x38] sm:$0xff] %v1006_v27  }
 0x115 PF: > { %s14_s19 = sadd.s32 1, %s1120_s19   ;;  %s1306_s15 = smov %s1108_s16 }
 0x116   : > { %p11_p12 = scmp.ge.s32.totalorder %s14_s19, 7   ;;  %s1307_s16 = smov %s1183_s23 }
 0x117   : > { %s1308_s17 = smov %s1116_s18  ;;  %s1309_s18 = smov %s1311_s20 }
 0x118   :  { %13 = sbr.rel (!%p11_p12) target bundleno = 3 (0x3), region = 129 }

// kernel: forward.17
= control target key start
LH: loop header
LB: loop body
LE: loop exit
PB: predicated region body
PF: predicated region fallthrough
CT: control target
= control target key end

     0   :  { %s613_s1 = inlined_call_operand.vmem [shape: bf16[128,128], index: 1, kind: input, shape index: {}]   ;;  %s614_s2 = inlined_call_operand.vmem [shape: f32[1,128], index: 2, kind: input, shape index: {}]   ;;  %s615_s3 = inlined_call_operand.vmem [shape: f32[1,128], index: 3, kind: input, shape index: {}]   ;;  %s616_s0 = inlined_call_operand.vmem [shape: bf16[128,128], index: 0, kind: input, shape index: {}]   ;;  %s617_s4 = inlined_call_operand.vmem [shape: bf16[128,128], index: 4, kind: output, shape index: {}]  }
   0x1   :  { %v436_v0 = vld [vmem:[%s613_s1 + $0x38] sm:$0xff]  ;;  %v435_v1 = vld [vmem:[%s613_s1 + $0x30] sm:$0xff]  ;;  %v434_v2 = vld [vmem:[%s613_s1 + $0x28] sm:$0xff] }
   0x2   :  { %181 = vmatpush.bf16.msra.mxu0 %v436_v0  ;;  %484 = vmatpush.bf16.msra.mxu1 %v436_v0  ;;  %v433_v3 = vld [vmem:[%s613_s1 + $0x20] sm:$0xff]  ;;  %v432_v4 = vld [vmem:[%s613_s1 + $0x18] sm:$0xff]  ;;  %v431_v5 = vld [vmem:[%s613_s1 + $0x10] sm:$0xff] }
   0x3   :  { %485 = vmatpush.bf16.msra.mxu2 %v436_v0  ;;  %486 = vmatpush.bf16.msra.mxu3 %v436_v0  ;;  %v430_v6 = vld [vmem:[%s613_s1 + $0x8] sm:$0xff]  ;;  %v429_v7 = vld [vmem:[%s613_s1] sm:$0xff]  ;;  %v423_v9 = vld [vmem:[%s616_s0 + $0x10] sm:$0xff] }
   0x4   :  { %v421_v8 = vld [vmem:[%s616_s0] sm:$0xff]  ;;  %v427_v11 = vld [vmem:[%s616_s0 + $0x30] sm:$0xff]  ;;  %v422_v12 = vld [vmem:[%s616_s0 + $0x8] sm:$0xff] }
   0x5   :  { %v425_v10 = vld [vmem:[%s616_s0 + $0x20] sm:$0xff]  ;;  %v424_v13 = vld [vmem:[%s616_s0 + $0x18] sm:$0xff]  ;;  %v426_v14 = vld [vmem:[%s616_s0 + $0x28] sm:$0xff] }
   0x6   :  { %182 = vmatpush.bf16.msra.mxu0 %v435_v1  ;;  %487 = vmatpush.bf16.msra.mxu1 %v435_v1  ;;  %v428_v15 = vld [vmem:[%s616_s0 + $0x38] sm:$0xff]  ;;  %v508_v18 = vld [vmem:[%s614_s2] ss:$0 sm:$0xff] }
   0x7   :  { %488 = vmatpush.bf16.msra.mxu2 %v435_v1  ;;  %489 = vmatpush.bf16.msra.mxu3 %v435_v1  ;;  %v509_v20 = vld [vmem:[%s615_s3] ss:$0 sm:$0xff] }
   0xa   :  { %183 = vmatpush.bf16.msra.mxu0 %v434_v2  ;;  %490 = vmatpush.bf16.msra.mxu1 %v434_v2 }
   0xb   :  { %491 = vmatpush.bf16.msra.mxu2 %v434_v2  ;;  %492 = vmatpush.bf16.msra.mxu3 %v434_v2 }
   0xe   :  { %184 = vmatpush.bf16.msra.mxu0 %v433_v3  ;;  %493 = vmatpush.bf16.msra.mxu1 %v433_v3 }
   0xf   :  { %494 = vmatpush.bf16.msra.mxu2 %v433_v3  ;;  %495 = vmatpush.bf16.msra.mxu3 %v433_v3 }
  0x12   :  { %185 = vmatpush.bf16.msra.mxu0 %v432_v4  ;;  %496 = vmatpush.bf16.msra.mxu1 %v432_v4 }
  0x13   :  { %497 = vmatpush.bf16.msra.mxu2 %v432_v4  ;;  %498 = vmatpush.bf16.msra.mxu3 %v432_v4 }
  0x16   :  { %186 = vmatpush.bf16.msra.mxu0 %v431_v5  ;;  %499 = vmatpush.bf16.msra.mxu1 %v431_v5 }
  0x17   :  { %500 = vmatpush.bf16.msra.mxu2 %v431_v5  ;;  %501 = vmatpush.bf16.msra.mxu3 %v431_v5 }
  0x1a   :  { %187 = vmatpush.bf16.msra.mxu0 %v430_v6  ;;  %502 = vmatpush.bf16.msra.mxu1 %v430_v6 }
  0x1b   :  { %503 = vmatpush.bf16.msra.mxu2 %v430_v6  ;;  %504 = vmatpush.bf16.msra.mxu3 %v430_v6 }
  0x1e   :  { %188 = vmatpush.bf16.msra.mxu0 %v429_v7  ;;  %505 = vmatpush.bf16.msra.mxu1 %v429_v7 }
  0x1f   :  { %506 = vmatpush.bf16.msra.mxu2 %v429_v7  ;;  %507 = vmatpush.bf16.msra.mxu3 %v429_v7 }
  0x21   :  { %189 = vmatmul.bf16.vlgmr.msra.gmra.mxu0 %v421_v8  ;;  %199 = vmatmul.bf16.vlgmr.msra.gmra.mxu1 %v423_v9 }
  0x22   :  { %209 = vmatmul.bf16.vlgmr.msra.gmra.mxu2 %v425_v10  ;;  %219 = vmatmul.bf16.vlgmr.msra.gmra.mxu3 %v427_v11 }
  0x31   :  { %194 = vmatmul.bf16.gmra.mxu0 %v422_v12  ;;  %204 = vmatmul.bf16.gmra.mxu1 %v424_v13 }
  0x32   :  { %214 = vmatmul.bf16.gmra.mxu2 %v426_v14  ;;  %224 = vmatmul.bf16.gmra.mxu3 %v428_v15 }
  0x9e   :  { %v190_v16 = vpop.f32.mrf.mxu0  ;;  %v200_v17 = vpop.f32.mrf.mxu1 }
  0x9f   :  { %v285_v19 = vmul.f32 %v508_v18, %v190_v16  ;;  %v289_v21 = vmul.f32 %v508_v18, %v200_v17 }
  0xa1   :  { %v305_v28 = vadd.f32 %v509_v20, %v285_v19  ;;  %v309_v29 = vadd.f32 %v509_v20, %v289_v21 }
  0xa5   :  { %v210_v22 = vpop.f32.mrf.mxu2  ;;  %v220_v23 = vpop.f32.mrf.mxu3 }
  0xa6   :  { %v192_v24 = vpop.f32.mrf.mxu0  ;;  %v202_v25 = vpop.f32.mrf.mxu1  ;;  %v293_v34 = vmul.f32 %v508_v18, %v210_v22  ;;  %v297_v35 = vmul.f32 %v508_v18, %v220_v23 }
  0xa7   :  { %v286_v26 = vmul.f32 %v508_v18, %v192_v24  ;;  %v290_v27 = vmul.f32 %v508_v18, %v202_v25 }
  0xa8   :  { %v313_v42 = vadd.f32 %v509_v20, %v293_v34  ;;  %v317_v43 = vadd.f32 %v509_v20, %v297_v35 }
  0xa9   :  { %v306_v30 = vadd.f32 %v509_v20, %v286_v26  ;;  %v310_v31 = vadd.f32 %v509_v20, %v290_v27 }
  0xab   :  { %v440_v32 = vpack.c.bf16 %v306_v30, %v305_v28  ;;  %v450_v33 = vpack.c.bf16 %v310_v31, %v309_v29 }
  0xad   :  { %441 = vst [vmem:[%s617_s4] sm:$0xff] %v440_v32   ;;  %v212_v36 = vpop.f32.mrf.mxu2  ;;  %v222_v37 = vpop.f32.mrf.mxu3 }
  0xae   :  { %478 = vst [vmem:[%s617_s4 + $0x10] sm:$0xff] %v450_v33   ;;  %v294_v38 = vmul.f32 %v508_v18, %v212_v36  ;;  %v298_v39 = vmul.f32 %v508_v18, %v222_v37  ;;  %v195_v40 = vpop.f32.mrf.mxu0  ;;  %v205_v41 = vpop.f32.mrf.mxu1 }
  0xaf   :  { %v287_v48 = vmul.f32 %v508_v18, %v195_v40  ;;  %v291_v49 = vmul.f32 %v508_v18, %v205_v41 }
  0xb0   :  { %v314_v44 = vadd.f32 %v509_v20, %v294_v38  ;;  %v318_v45 = vadd.f32 %v509_v20, %v298_v39 }
  0xb1   :  { %v307_v56 = vadd.f32 %v509_v20, %v287_v48  ;;  %v311_v57 = vadd.f32 %v509_v20, %v291_v49 }
  0xb2   :  { %v460_v46 = vpack.c.bf16 %v314_v44, %v313_v42  ;;  %v470_v47 = vpack.c.bf16 %v318_v45, %v317_v43 }
  0xb4   :  { %480 = vst [vmem:[%s617_s4 + $0x20] sm:$0xff] %v460_v46  }
  0xb5   :  { %482 = vst [vmem:[%s617_s4 + $0x30] sm:$0xff] %v470_v47   ;;  %v215_v50 = vpop.f32.mrf.mxu2  ;;  %v225_v51 = vpop.f32.mrf.mxu3 }
  0xb6   :  { %v197_v52 = vpop.f32.mrf.mxu0  ;;  %v207_v53 = vpop.f32.mrf.mxu1  ;;  %v295_v62 = vmul.f32 %v508_v18, %v215_v50  ;;  %v299_v63 = vmul.f32 %v508_v18, %v225_v51 }
  0xb7   :  { %v288_v54 = vmul.f32 %v508_v18, %v197_v52  ;;  %v292_v55 = vmul.f32 %v508_v18, %v207_v53 }
  0xb8   :  { %v315_v4 = vadd.f32 %v509_v20, %v295_v62  ;;  %v319_v5 = vadd.f32 %v509_v20, %v299_v63 }
  0xb9   :  { %v308_v58 = vadd.f32 %v509_v20, %v288_v54  ;;  %v312_v59 = vadd.f32 %v509_v20, %v292_v55 }
  0xbb   :  { %v445_v60 = vpack.c.bf16 %v308_v58, %v307_v56  ;;  %v455_v61 = vpack.c.bf16 %v312_v59, %v311_v57 }
  0xbd   :  { %477 = vst [vmem:[%s617_s4 + $0x8] sm:$0xff] %v445_v60   ;;  %v217_v0 = vpop.f32.mrf.mxu2  ;;  %v227_v1 = vpop.f32.mrf.mxu3 }
  0xbe   :  { %479 = vst [vmem:[%s617_s4 + $0x18] sm:$0xff] %v455_v61   ;;  %v296_v2 = vmul.f32 %v508_v18, %v217_v0  ;;  %v300_v3 = vmul.f32 %v508_v18, %v227_v1 }
  0xc0   :  { %v316_v6 = vadd.f32 %v509_v20, %v296_v2  ;;  %v320_v7 = vadd.f32 %v509_v20, %v300_v3 }
  0xc2   :  { %v465_v8 = vpack.c.bf16 %v316_v6, %v315_v4  ;;  %v475_v9 = vpack.c.bf16 %v320_v7, %v319_v5 }
  0xc4   :  { %481 = vst [vmem:[%s617_s4 + $0x28] sm:$0xff] %v465_v8  }
  0xc5   :  { %483 = vst [vmem:[%s617_s4 + $0x38] sm:$0xff] %v475_v9  }

// kernel: forward.18
= control target key start
LH: loop header
LB: loop body
LE: loop exit
PB: predicated region body
PF: predicated region fallthrough
CT: control target
= control target key end

     0   :  { %s1828_s18 = smov 0   ;;  %s1830_s19 = smov 0   ;;  %s2181_s0 = inlined_call_operand.vmem [shape: bf16[128,1152], index: 0, kind: input, shape index: {}]   ;;  %s2182_s1 = inlined_call_operand.vmem [shape: bf16[1152,128], index: 1, kind: input, shape index: {}]   ;;  %s2183_s2 = inlined_call_operand.vmem [shape: f32[1,128], index: 2, kind: input, shape index: {}]   ;;  %s2184_s3 = inlined_call_operand.vmem [shape: f32[1,128], index: 3, kind: input, shape index: {}]   ;;  %s2185_s4 = inlined_call_operand.vmem [shape: bf16[128,128], index: 4, kind: input, shape index: {}]   ;;  %s2186_s5 = inlined_call_operand.vmem [shape: bf16[128,128], index: 5, kind: output, shape index: {}]  }
   0x1   :  { %s1832_s20 = smov 0   ;;  %s1834_s21 = smov 0  }
   0x2   :  { %s1836_s22 = smov 0  }
   0x3 LB: > { %s27_s23 = sadd.s32 1, %s1791_s21  ;;  %p50_p1 = scmp.ne.s32.totalorder %s1783_s19, %s1779_s18  ;;  %s1795_s22 = sphi %s1836_s22, %s15_s22   ;;  %s1791_s21 = sphi %s1834_s21, %s2190_s21   ;;  %s1787_s20 = sphi %s1832_s20, %s2189_s20   ;;  %s1783_s19 = sphi %s1830_s19, %s2188_s19   ;;  %s1779_s18 = sphi %s1828_s18, %s2187_s18  }
   0x4   : > { %p28_p0 = scmp.ge.s32.totalorder %s27_s23, 3  ;;  %p51_p2 = scmp.eq.s32.totalorder %s1795_s22, 0 }
   0x5   : > { %s43_s25 = sadd.s32 1, %s1783_s19  ;;  %p1319_p5 = scmp.ge.s32.totalorder %s1795_s22, 3 }
   0x6   : > { %s2192_s23 = smov (%p28_p0, %s27_s23), 0  ;;  %p52_p3 = por %p51_p2, %p50_p1 }
   0x7   : > { %s39_s24 = ssub.s32 %s1791_s21, %s2192_s23  ;;  %236 = sbr.rel (%p1319_p5) target bundleno = 49 (0x31), region = 28 }
   0x8   : > { %p41_p4 = scmp.eq.s32.totalorder %s39_s24, 0 }
   0xa   : > { %s1863_s26 = scalar_select %p41_p4, %s1783_s19, %s43_s25  }
   0xc   : > { %239 = sbr.rel (!%p52_p3) target bundleno = 49 (0x31), region = 32  ;;  %s241_s27 = sand.u32 (%p52_p3), 1, %s1783_s19  }
   0xd   : > { %s1553_s28 = smul.u32 (%p52_p3), 12, %s1791_s21 }
   0xe   : > { %s1712_s29 = smul.u32 (%p52_p3), 192, %s241_s27 }
   0xf   : > { %s1871_s7 = scalar_lea.vmem (%p52_p3), %s2181_s0, %s1553_s28 }
  0x10   : > { %v264_v0 = vld [vmem:[%s1871_s7] sm:$0xff] (%p52_p3)  ;;  %v268_v2 = vld [vmem:[%s1871_s7 + $0x48] sm:$0xff] (%p52_p3)  ;;  %s1876_s8 = scalar_lea.vmem (%p52_p3), [#allocation3], %s1712_s29  ;;  %v272_v4 = vld [vmem:[%s1871_s7 + $0x90] sm:$0xff] (%p52_p3) }
  0x11   : > { %v266_v1 = vld [vmem:[%s1871_s7 + $0x24] sm:$0xff]  ;;  %265 = vst [vmem:[%s1876_s8] sm:$0xff] %v264_v0  ;;  %v270_v3 = vld [vmem:[%s1871_s7 + $0x6c] sm:$0xff]  ;;  %v274_v5 = vld [vmem:[%s1871_s7 + $0xb4] sm:$0xff] }
  0x12   : > { %267 = vst [vmem:[%s1876_s8 + $0xc] sm:$0xff] %v266_v1  ;;  %v276_v6 = vld [vmem:[%s1871_s7 + $0xd8] sm:$0xff]  ;;  %v280_v8 = vld [vmem:[%s1871_s7 + $0x120] sm:$0xff]  ;;  %v284_v10 = vld [vmem:[%s1871_s7 + $0x168] sm:$0xff] }
  0x13   : > { %269 = vst [vmem:[%s1876_s8 + $0x18] sm:$0xff] %v268_v2  ;;  %v278_v7 = vld [vmem:[%s1871_s7 + $0xfc] sm:$0xff]  ;;  %v282_v9 = vld [vmem:[%s1871_s7 + $0x144] sm:$0xff]  ;;  %v286_v11 = vld [vmem:[%s1871_s7 + $0x18c] sm:$0xff] }
  0x14   : > { %271 = vst [vmem:[%s1876_s8 + $0x24] sm:$0xff] %v270_v3  ;;  %v288_v12 = vld [vmem:[%s1871_s7 + $0x1b0] sm:$0xff]  ;;  %v292_v14 = vld [vmem:[%s1871_s7 + $0x1f8] sm:$0xff]  ;;  %v1321_v16 = vld [vmem:[%s1871_s7 + $0x8] sm:$0xf] }
  0x15   : > { %273 = vst [vmem:[%s1876_s8 + $0x30] sm:$0xff] %v272_v4  ;;  %v290_v13 = vld [vmem:[%s1871_s7 + $0x1d4] sm:$0xff]  ;;  %v294_v15 = vld [vmem:[%s1871_s7 + $0x21c] sm:$0xff]  ;;  %v1323_v17 = vld [vmem:[%s1871_s7 + $0x2c] sm:$0xf] }
  0x16   : > { %275 = vst [vmem:[%s1876_s8 + $0x3c] sm:$0xff] %v274_v5  ;;  %v1325_v18 = vld [vmem:[%s1871_s7 + $0x50] sm:$0xf]  ;;  %v1327_v19 = vld [vmem:[%s1871_s7 + $0x74] sm:$0xf] }
  0x17   : > { %277 = vst [vmem:[%s1876_s8 + $0x48] sm:$0xff] %v276_v6  ;;  %v1329_v20 = vld [vmem:[%s1871_s7 + $0x98] sm:$0xf]  ;;  %v1331_v21 = vld [vmem:[%s1871_s7 + $0xbc] sm:$0xf] }
  0x18   : > { %279 = vst [vmem:[%s1876_s8 + $0x54] sm:$0xff] %v278_v7  ;;  %v1333_v22 = vld [vmem:[%s1871_s7 + $0xe0] sm:$0xf]  ;;  %v1335_v23 = vld [vmem:[%s1871_s7 + $0x104] sm:$0xf] }
  0x19   : > { %281 = vst [vmem:[%s1876_s8 + $0x60] sm:$0xff] %v280_v8  ;;  %v1337_v24 = vld [vmem:[%s1871_s7 + $0x128] sm:$0xf]  ;;  %v1339_v25 = vld [vmem:[%s1871_s7 + $0x14c] sm:$0xf] }
  0x1a   : > { %283 = vst [vmem:[%s1876_s8 + $0x6c] sm:$0xff] %v282_v9  ;;  %v1341_v26 = vld [vmem:[%s1871_s7 + $0x170] sm:$0xf]  ;;  %v1343_v27 = vld [vmem:[%s1871_s7 + $0x194] sm:$0xf] }
  0x1b   : > { %285 = vst [vmem:[%s1876_s8 + $0x78] sm:$0xff] %v284_v10  ;;  %v1345_v28 = vld [vmem:[%s1871_s7 + $0x1b8] sm:$0xf]  ;;  %v1347_v29 = vld [vmem:[%s1871_s7 + $0x1dc] sm:$0xf] }
  0x1c   : > { %287 = vst [vmem:[%s1876_s8 + $0x84] sm:$0xff] %v286_v11  ;;  %v1349_v30 = vld [vmem:[%s1871_s7 + $0x200] sm:$0xf]  ;;  %v1351_v31 = vld [vmem:[%s1871_s7 + $0x224] sm:$0xf] }
  0x1d   : > { %289 = vst [vmem:[%s1876_s8 + $0x90] sm:$0xff] %v288_v12 }
  0x1e   : > { %291 = vst [vmem:[%s1876_s8 + $0x9c] sm:$0xff] %v290_v13 }
  0x1f   : > { %293 = vst [vmem:[%s1876_s8 + $0xa8] sm:$0xff] %v292_v14 }
  0x20   : > { %295 = vst [vmem:[%s1876_s8 + $0xb4] sm:$0xff] %v294_v15 }
  0x21   : > { %1322 = vst [vmem:[%s1876_s8 + $0x8] sm:$0xf] %v1321_v16 }
  0x22   : > { %1324 = vst [vmem:[%s1876_s8 + $0x14] sm:$0xf] %v1323_v17 }
  0x23   : > { %1326 = vst [vmem:[%s1876_s8 + $0x20] sm:$0xf] %v1325_v18 }
  0x24   : > { %1328 = vst [vmem:[%s1876_s8 + $0x2c] sm:$0xf] %v1327_v19 }
  0x25   : > { %1330 = vst [vmem:[%s1876_s8 + $0x38] sm:$0xf] %v1329_v20 }
  0x26   : > { %1332 = vst [vmem:[%s1876_s8 + $0x44] sm:$0xf] %v1331_v21 }
  0x27   : > { %1334 = vst [vmem:[%s1876_s8 + $0x50] sm:$0xf] %v1333_v22 }
  0x28   : > { %1336 = vst [vmem:[%s1876_s8 + $0x5c] sm:$0xf] %v1335_v23 }
  0x29   : > { %1338 = vst [vmem:[%s1876_s8 + $0x68] sm:$0xf] %v1337_v24 }
  0x2a   : > { %1340 = vst [vmem:[%s1876_s8 + $0x74] sm:$0xf] %v1339_v25 }
  0x2b   : > { %1342 = vst [vmem:[%s1876_s8 + $0x80] sm:$0xf] %v1341_v26 }
  0x2c   : > { %1344 = vst [vmem:[%s1876_s8 + $0x8c] sm:$0xf] %v1343_v27 }
  0x2d   : > { %1346 = vst [vmem:[%s1876_s8 + $0x98] sm:$0xf] %v1345_v28 }
  0x2e   : > { %1348 = vst [vmem:[%s1876_s8 + $0xa4] sm:$0xf] %v1347_v29 }
  0x2f   : > { %1350 = vst [vmem:[%s1876_s8 + $0xb0] sm:$0xf] %v1349_v30 }
  0x30   : > { %1352 = vst [vmem:[%s1876_s8 + $0xbc] sm:$0xf] %v1351_v31 }
  0x31 PF: > { %p1353_p6 = scmp.ge.s32.totalorder %s1795_s22, 1  ;;  %p352_p7 = scmp.lt.s32.totalorder %s1795_s22, 4 }
  0x33   : > { %p353_p8 = pnand %p1353_p6, %p352_p7 }
  0x34   : > { %s359_s9 = sand.u32 (!%p353_p8), 1, %s1779_s18   ;;  %s413_s10 = smul.u32 (!%p353_p8), 48, %s1787_s20 }
  0x35   : > { %356 = sbr.rel (%p353_p8) target bundleno = 369 (0x171), region = 62  ;;  %p1355_p10 = scmp.ne.s32.totalorder (!%p353_p8), %s1787_s20, 0 }
  0x36   : > { %s1713_s11 = smul.u32 (!%p353_p8), 192, %s359_s9  ;;  %p414_p9 = scmp.lt.s32.totalorder (!%p353_p8), %s413_s10, 143 }
  0x38   : > { %s1948_s16 = scalar_lea.vmem (!%p353_p8), [#allocation3], %s1713_s11 }
  0x3a   : > { %s2194_s10 = smov (!%p414_p9, %s413_s10), 143  ;;  %449 = sbr.rel (%p1355_p10) target bundleno = 80 (0x50), region = 70 }
  0x3b   : > { %s1354_s12 = sshll.u32 %s2194_s10, 2 }
  0x3c   : > { %s1946_s15 = scalar_lea.vmem %s2182_s1, %s1354_s12 }
  0x3f   : > { %v1797_v32 = vmov 0.0  }
  0x40   : > { %450 = vst [vmem:[#allocation2 + $0x30] sm:$0xff] %v1797_v32 }
  0x41   : > { %451 = vst [vmem:[#allocation2] sm:$0xff] %v1797_v32 }
  0x42   : > { %452 = vst [vmem:[#allocation2 + $0x58] sm:$0xff] %v1797_v32 }
  0x43   : > { %453 = vst [vmem:[#allocation2 + $0x18] sm:$0xff] %v1797_v32 }
  0x44   : > { %454 = vst [vmem:[#allocation2 + $0x50] sm:$0xff] %v1797_v32 }
  0x45   : > { %455 = vst [vmem:[#allocation2 + $0x68] sm:$0xff] %v1797_v32 }
  0x46   : > { %456 = vst [vmem:[#allocation2 + $0x8] sm:$0xff] %v1797_v32 }
  0x47   : > { %457 = vst [vmem:[#allocation2 + $0x48] sm:$0xff] %v1797_v32 }
  0x48   : > { %458 = vst [vmem:[#allocation2 + $0x40] sm:$0xff] %v1797_v32 }
  0x49   : > { %459 = vst [vmem:[#allocation2 + $0x20] sm:$0xff] %v1797_v32 }
  0x4a   : > { %460 = vst [vmem:[#allocation2 + $0x10] sm:$0xff] %v1797_v32 }
  0x4b   : > { %461 = vst [vmem:[#allocation2 + $0x38] sm:$0xff] %v1797_v32 }
  0x4c   : > { %462 = vst [vmem:[#allocation2 + $0x60] sm:$0xff] %v1797_v32 }
  0x4d   : > { %463 = vst [vmem:[#allocation2 + $0x70] sm:$0xff] %v1797_v32 }
  0x4e   : > { %464 = vst [vmem:[#allocation2 + $0x78] sm:$0xff] %v1797_v32 }
  0x4f   : > { %465 = vst [vmem:[#allocation2 + $0x28] sm:$0xff] %v1797_v32 }
  0x50 PF: > { %v1585_v33 = vld [vmem:[%s1946_s15 + $0x38] sm:$0xff]  ;;  %v1584_v36 = vld [vmem:[%s1946_s15 + $0x30] sm:$0xff]  ;;  %v1583_v39 = vld [vmem:[%s1946_s15 + $0x28] sm:$0xff]  ;;  %p1548_p11 = scmp.ne.s32.totalorder %s1787_s20, 2 }
  0x51   : > { %v1953_v34 = vld [vmem:[%s1946_s15 + $0x78] sm:$0xff]  ;;  %834 = vmatpush.bf16.msra.mxu0 %v1585_v33  ;;  %1688 = vmatpush.bf16.msra.mxu3 %v1585_v33  ;;  %v1962_v37 = vld [vmem:[%s1946_s15 + $0x70] sm:$0xff]  ;;  %v1591_v40 = vld [vmem:[%s1946_s15 + $0x68] sm:$0xff] }
  0x52   : > { %v1956_v35 = vld [vmem:[%s1946_s15 + $0xb8] sm:$0xff]  ;;  %883 = vmatpush.bf16.msra.mxu1 %v1953_v34  ;;  %v1965_v38 = vld [vmem:[%s1946_s15 + $0xb0] sm:$0xff]  ;;  %v1972_v41 = vld [vmem:[%s1946_s15 + $0xa8] sm:$0xff] }
  0x53   : > { %932 = vmatpush.bf16.msra.mxu2 %v1956_v35  ;;  %v1582_v42 = vld [vmem:[%s1946_s15 + $0x20] sm:$0xff]  ;;  %v1581_v45 = vld [vmem:[%s1946_s15 + $0x18] sm:$0xff]  ;;  %v1580_v48 = vld [vmem:[%s1946_s15 + $0x10] sm:$0xff] }
  0x54   : > { %v1590_v43 = vld [vmem:[%s1946_s15 + $0x60] sm:$0xff]  ;;  %v1589_v46 = vld [vmem:[%s1946_s15 + $0x58] sm:$0xff]  ;;  %v1588_v49 = vld [vmem:[%s1946_s15 + $0x50] sm:$0xff] }
  0x55   : > { %835 = vmatpush.bf16.msra.mxu0 %v1584_v36  ;;  %1689 = vmatpush.bf16.msra.mxu3 %v1584_v36  ;;  %v1978_v44 = vld [vmem:[%s1946_s15 + $0xa0] sm:$0xff]  ;;  %v1984_v47 = vld [vmem:[%s1946_s15 + $0x98] sm:$0xff]  ;;  %v1990_v50 = vld [vmem:[%s1946_s15 + $0x90] sm:$0xff] }
  0x56   : > { %884 = vmatpush.bf16.msra.mxu1 %v1962_v37  ;;  %v1579_v51 = vld [vmem:[%s1946_s15 + $0x8] sm:$0xff]  ;;  %v1578_v54 = vld [vmem:[%s1946_s15] sm:$0xff]  ;;  %v1430_v59 = vld [vmem:[%s1948_s16 + $0x90] sm:$0xf] }
  0x57   : > { %933 = vmatpush.bf16.msra.mxu2 %v1965_v38  ;;  %v1587_v52 = vld [vmem:[%s1946_s15 + $0x48] sm:$0xff]  ;;  %v1586_v55 = vld [vmem:[%s1946_s15 + $0x40] sm:$0xff]  ;;  %v1573_v60 = vld [vmem:[%s1948_s16 + $0x98] sm:$0xf0] }
  0x58   : > { %v1996_v53 = vld [vmem:[%s1946_s15 + $0x88] sm:$0xff]  ;;  %v2001_v56 = vld [vmem:[%s1946_s15 + $0x80] sm:$0xff]  ;;  %v1360_v62 = vld [vmem:[%s1948_s16 + $0xc] sm:$0xf0]  ;;  %v1431_v2 = vor.u32 %v1573_v60, %v1430_v59 }
  0x59   : > { %836 = vmatpush.bf16.msra.mxu0 %v1583_v39  ;;  %1690 = vmatpush.bf16.msra.mxu3 %v1583_v39  ;;  %v1358_v57 = vld [vmem:[%s1948_s16] sm:$0xf]  ;;  %v1555_v58 = vld [vmem:[%s1948_s16 + $0x8] sm:$0xf0]  ;;  %v1554_v61 = vld [vmem:[%s1948_s16 + $0x4] sm:$0xf] }
  0x5a   : > { %885 = vmatpush.bf16.msra.mxu1 %v1591_v40  ;;  %v1366_v63 = vld [vmem:[%s1948_s16 + $0x8] sm:$0xf]  ;;  %v1556_v0 = vld [vmem:[%s1948_s16 + $0x10] sm:$0xf0]  ;;  %v1359_v1 = vor.u32 %v1555_v58, %v1358_v57  ;;  %v1363_v3 = vor.u32 %v1554_v61, %v1360_v62  ;;  %v1370_v5 = vld [vmem:[%s1948_s16 + $0x18] sm:$0xf] }
  0x5b   : > { %934 = vmatpush.bf16.msra.mxu2 %v1972_v41  ;;  %v1367_v4 = vor.u32 %v1556_v0, %v1366_v63  ;;  %v1558_v6 = vld [vmem:[%s1948_s16 + $0x20] sm:$0xf0]  ;;  %v1442_v7 = vld [vmem:[%s1948_s16 + $0xa8] sm:$0xf]  ;;  %v1576_v8 = vld [vmem:[%s1948_s16 + $0xb0] sm:$0xf0] }
  0x5c   : > { %v1557_v9 = vld [vmem:[%s1948_s16 + $0x1c] sm:$0xf]  ;;  %v1372_v10 = vld [vmem:[%s1948_s16 + $0x24] sm:$0xf0]  ;;  %v1378_v11 = vld [vmem:[%s1948_s16 + $0x20] sm:$0xf]  ;;  %v1371_v13 = vor.u32 %v1558_v6, %v1370_v5  ;;  %v1443_v14 = vor.u32 %v1576_v8, %v1442_v7 }
  0x5d   : > { %837 = vmatpush.bf16.msra.mxu0 %v1582_v42  ;;  %1691 = vmatpush.bf16.msra.mxu3 %v1582_v42  ;;  %v1559_v12 = vld [vmem:[%s1948_s16 + $0x28] sm:$0xf0]  ;;  %v1375_v15 = vor.u32 %v1557_v9, %v1372_v10  ;;  %v1382_v17 = vld [vmem:[%s1948_s16 + $0x30] sm:$0xf]  ;;  %v1561_v18 = vld [vmem:[%s1948_s16 + $0x38] sm:$0xf0] }
  0x5e   : > { %886 = vmatpush.bf16.msra.mxu1 %v1590_v43  ;;  %v1379_v16 = vor.u32 %v1559_v12, %v1378_v11  ;;  %v1560_v19 = vld [vmem:[%s1948_s16 + $0x34] sm:$0xf]  ;;  %v1432_v21 = vld [vmem:[%s1948_s16 + $0x9c] sm:$0xf0]  ;;  %v1390_v23 = vld [vmem:[%s1948_s16 + $0x38] sm:$0xf]  ;;  %v1383_v25 = vor.u32 %v1561_v18, %v1382_v17 }
  0x5f   : > { %935 = vmatpush.bf16.msra.mxu2 %v1978_v44  ;;  %v1572_v20 = vld [vmem:[%s1948_s16 + $0x94] sm:$0xf]  ;;  %v1384_v22 = vld [vmem:[%s1948_s16 + $0x3c] sm:$0xf0]  ;;  %v1562_v24 = vld [vmem:[%s1948_s16 + $0x40] sm:$0xf0] }
  0x60   : > { %v1435_v26 = vor.u32 %v1572_v20, %v1432_v21  ;;  %v1387_v27 = vor.u32 %v1560_v19, %v1384_v22  ;;  %v1391_v28 = vor.u32 %v1562_v24, %v1390_v23  ;;  %v1394_v29 = vld [vmem:[%s1948_s16 + $0x48] sm:$0xf]  ;;  %v1564_v30 = vld [vmem:[%s1948_s16 + $0x50] sm:$0xf0]  ;;  %v1563_v31 = vld [vmem:[%s1948_s16 + $0x4c] sm:$0xf] }
  0x61   : > { %838 = vmatpush.bf16.msra.mxu0 %v1581_v45  ;;  %1692 = vmatpush.bf16.msra.mxu3 %v1581_v45  ;;  %v1575_v32 = vld [vmem:[%s1948_s16 + $0xac] sm:$0xf]  ;;  %v1444_v33 = vld [vmem:[%s1948_s16 + $0xb4] sm:$0xf0]  ;;  %v1565_v36 = vld [vmem:[%s1948_s16 + $0x58] sm:$0xf0] }
  0x62   : > { %887 = vmatpush.bf16.msra.mxu1 %v1589_v46  ;;  %v1447_v39 = vor.u32 %v1575_v32, %v1444_v33  ;;  %v1567_v42 = vld [vmem:[%s1948_s16 + $0x68] sm:$0xf0]  ;;  %v1574_v45 = vld [vmem:[%s1948_s16 + $0xa0] sm:$0xf0]  ;;  %v1450_v57 = vld [vmem:[%s1948_s16 + $0xb0] sm:$0xf] }
  0x63   : > { %936 = vmatpush.bf16.msra.mxu2 %v1984_v47  ;;  %v1420_v58 = vld [vmem:[%s1948_s16 + $0x84] sm:$0xf0]  ;;  %v1426_v59 = vld [vmem:[%s1948_s16 + $0x80] sm:$0xf]  ;;  %v1571_v60 = vld [vmem:[%s1948_s16 + $0x88] sm:$0xf0] }
  0x64   : > { %v1427_v0 = vor.u32 %v1571_v60, %v1426_v59  ;;  %v466_v5 = vld [vmem:[#allocation2 + $0x30] sm:$0xff]  ;;  %v468_v21 = vld [vmem:[#allocation2 + $0x58] sm:$0xff] }
  0x65   : > { %839 = vmatpush.bf16.msra.mxu0 %v1580_v48  ;;  %1693 = vmatpush.bf16.msra.mxu3 %v1580_v48  ;;  %v1568_v48 = vld [vmem:[%s1948_s16 + $0x70] sm:$0xf0] }
  0x66   : > { %888 = vmatpush.bf16.msra.mxu1 %v1588_v49 }
  0x67   : > { %937 = vmatpush.bf16.msra.mxu2 %v1990_v50 }
  0x69   : > { %840 = vmatpush.bf16.msra.mxu0 %v1579_v51  ;;  %1694 = vmatpush.bf16.msra.mxu3 %v1579_v51 }
  0x6a   : > { %889 = vmatpush.bf16.msra.mxu1 %v1587_v52 }
  0x6b   : > { %938 = vmatpush.bf16.msra.mxu2 %v1996_v53 }
  0x6d   : > { %841 = vmatpush.bf16.msra.mxu0 %v1578_v54  ;;  %1695 = vmatpush.bf16.msra.mxu3 %v1578_v54  ;;  %v1570_v54 = vld [vmem:[%s1948_s16 + $0x80] sm:$0xf0] }
  0x6e   : > { %890 = vmatpush.bf16.msra.mxu1 %v1586_v55 }
  0x6f   : > { %939 = vmatpush.bf16.msra.mxu2 %v2001_v56 }
  0x70   : > { %842 = vmatmul.bf16.vlgmr.msra.gmra.mxu0 %v1359_v1  ;;  %872 = vmatmul.bf16.vlgmr.msra.gmra.mxu3 %v1431_v2 }
  0x71   : > { %1696 = vmatpush.bf16.msrb.mxu3 %v1953_v34  ;;  %891 = vmatmul.bf16.vlgmr.msra.gmra.mxu1 %v1363_v3  ;;  %v1396_v34 = vld [vmem:[%s1948_s16 + $0x54] sm:$0xf0] }
  0x72   : > { %940 = vmatmul.bf16.vlgmr.msra.gmra.mxu2 %v1367_v4 }
  0x75   : > { %1697 = vmatpush.bf16.msrb.mxu3 %v1962_v37  ;;  %v1395_v37 = vor.u32 %v1564_v30, %v1394_v29  ;;  %v469_v29 = vld [vmem:[#allocation2 + $0x18] sm:$0xff] }
  0x79   : > { %1698 = vmatpush.bf16.msrb.mxu3 %v1591_v40 }
  0x7d   : > { %1699 = vmatpush.bf16.msrb.mxu3 %v1590_v43  ;;  %v1566_v43 = vld [vmem:[%s1948_s16 + $0x64] sm:$0xf] }
  0x80   : > { %847 = vmatmul.bf16.gmra.mxu0 %v1371_v13  ;;  %877 = vmatmul.bf16.gmra.mxu3 %v1443_v14  ;;  %v467_v13 = vld [vmem:[#allocation2] sm:$0xff] }
  0x81   : > { %1700 = vmatpush.bf16.msrb.mxu3 %v1589_v46  ;;  %896 = vmatmul.bf16.gmra.mxu1 %v1375_v15  ;;  %v1408_v46 = vld [vmem:[%s1948_s16 + $0x6c] sm:$0xf0] }
  0x82   : > { %945 = vmatmul.bf16.gmra.mxu2 %v1379_v16  ;;  %v1411_v51 = vor.u32 %v1566_v43, %v1408_v46 }
  0x85   : > { %1701 = vmatpush.bf16.msrb.mxu3 %v1588_v49 }
  0x89   : > { %1702 = vmatpush.bf16.msrb.mxu3 %v1587_v52 }
  0x8d   : > { %1703 = vmatpush.bf16.msrb.mxu3 %v1586_v55  ;;  %v1569_v55 = vld [vmem:[%s1948_s16 + $0x7c] sm:$0xf] }
  0x8e   : > { %v1423_v63 = vor.u32 %v1569_v55, %v1420_v58 }
  0x90   : > { %852 = vmatmul.bf16.gmra.mxu0 %v1383_v25  ;;  %921 = vmatmul.bf16.vlgmr.msrb.gmra.mxu3 %v1435_v26 }
  0x91   : > { %1704 = vmatpush.bf16.msra.mxu3 %v1956_v35  ;;  %901 = vmatmul.bf16.gmra.mxu1 %v1387_v27  ;;  %v1402_v35 = vld [vmem:[%s1948_s16 + $0x50] sm:$0xf] }
  0x92   : > { %950 = vmatmul.bf16.gmra.mxu2 %v1391_v28  ;;  %v1403_v40 = vor.u32 %v1565_v36, %v1402_v35 }
  0x95   : > { %1705 = vmatpush.bf16.msra.mxu3 %v1965_v38  ;;  %v1399_v38 = vor.u32 %v1563_v31, %v1396_v34 }
  0x99   : > { %1706 = vmatpush.bf16.msra.mxu3 %v1972_v41  ;;  %v1406_v41 = vld [vmem:[%s1948_s16 + $0x60] sm:$0xf] }
  0x9a   : > { %v1407_v49 = vor.u32 %v1567_v42, %v1406_v41 }
  0x9d   : > { %1707 = vmatpush.bf16.msra.mxu3 %v1978_v44  ;;  %v1438_v44 = vld [vmem:[%s1948_s16 + $0x98] sm:$0xf] }
  0xa0   : > { %857 = vmatmul.bf16.gmra.mxu0 %v1395_v37  ;;  %926 = vmatmul.bf16.gmra.mxu3 %v1447_v39  ;;  %v470_v37 = vld [vmem:[#allocation2 + $0x50] sm:$0xff] }
  0xa1   : > { %1708 = vmatpush.bf16.msra.mxu3 %v1984_v47  ;;  %906 = vmatmul.bf16.gmra.mxu1 %v1399_v38  ;;  %v1414_v47 = vld [vmem:[%s1948_s16 + $0x68] sm:$0xf] }
  0xa2   : > { %955 = vmatmul.bf16.gmra.mxu2 %v1403_v40  ;;  %v1415_v52 = vor.u32 %v1568_v48, %v1414_v47 }
  0xa5   : > { %1709 = vmatpush.bf16.msra.mxu3 %v1990_v50  ;;  %v1439_v50 = vor.u32 %v1574_v45, %v1438_v44  ;;  %v471_v45 = vld [vmem:[#allocation2 + $0x68] sm:$0xff] }
  0xa9   : > { %1710 = vmatpush.bf16.msra.mxu3 %v1996_v53  ;;  %v1418_v53 = vld [vmem:[%s1948_s16 + $0x78] sm:$0xf] }
  0xaa   : > { %v1419_v61 = vor.u32 %v1570_v54, %v1418_v53  ;;  %v472_v53 = vld [vmem:[#allocation2 + $0x8] sm:$0xff] }
  0xad   : > { %1711 = vmatpush.bf16.msra.mxu3 %v2001_v56  ;;  %v1577_v56 = vld [vmem:[%s1948_s16 + $0xb8] sm:$0xf0] }
  0xae   : > { %v1451_v62 = vor.u32 %v1577_v56, %v1450_v57 }
  0xb0   : > { %862 = vmatmul.bf16.gmra.mxu0 %v1407_v49  ;;  %970 = vmatmul.bf16.vlgmr.msra.gmra.mxu3 %v1439_v50 }
  0xb1   : > { %911 = vmatmul.bf16.gmra.mxu1 %v1411_v51 }
  0xb2   : > { %960 = vmatmul.bf16.gmra.mxu2 %v1415_v52 }
  0xc0   : > { %867 = vmatmul.bf16.gmra.mxu0 %v1419_v61  ;;  %975 = vmatmul.bf16.gmra.mxu3 %v1451_v62  ;;  %v473_v61 = vld [vmem:[#allocation2 + $0x48] sm:$0xff] }
  0xc1   : > { %916 = vmatmul.bf16.gmra.mxu1 %v1423_v63 }
  0xc2   : > { %965 = vmatmul.bf16.gmra.mxu2 %v1427_v0 }
  0xed   : > { %v843_v1 = vpop.f32.mrf.mxu0 }
  0xee   : > { %v892_v2 = vpop.f32.mrf.mxu1 }
  0xef   : > { %v893_v3 = vadd.f32 %v892_v2, %v843_v1 }
  0xf3   : > { %v2063_v4 = vpop.f32.mrf.mxu3 }
  0xf5   : > { %v941_v6 = vpop.f32.mrf.mxu2  ;;  %v845_v8 = vpop.f32.mrf.mxu0 }
  0xf6   : > { %v942_v7 = vadd.f32 %v941_v6, %v893_v3  ;;  %v894_v9 = vpop.f32.mrf.mxu1  ;;  %v478_v6 = vld [vmem:[#allocation2 + $0x60] sm:$0xff] }
  0xf7   : > { %v895_v11 = vadd.f32 %v894_v9, %v845_v8  ;;  %v474_v8 = vld [vmem:[#allocation2 + $0x40] sm:$0xff] }
  0xf8   : > { %v981_v10 = vadd.f32 %v942_v7, %v466_v5 }
  0xfa   : > { %997 = vst [vmem:[#allocation2 + $0x30] sm:$0xff] %v981_v10 }
  0xfb   : > { %v2065_v12 = vpop.f32.mrf.mxu3 }
  0xfd   : > { %v943_v14 = vpop.f32.mrf.mxu2  ;;  %v848_v16 = vpop.f32.mrf.mxu0 }
  0xfe   : > { %v944_v15 = vadd.f32 %v943_v14, %v895_v11  ;;  %v897_v17 = vpop.f32.mrf.mxu1 }
  0xff   : > { %v898_v19 = vadd.f32 %v897_v17, %v848_v16 }
 0x100   : > { %v982_v18 = vadd.f32 %v944_v15, %v467_v13 }
 0x102   : > { %998 = vst [vmem:[#allocation2] sm:$0xff] %v982_v18 }
 0x103   : > { %v2067_v20 = vpop.f32.mrf.mxu3 }
 0x105   : > { %v946_v22 = vpop.f32.mrf.mxu2  ;;  %v850_v24 = vpop.f32.mrf.mxu0 }
 0x106   : > { %v947_v23 = vadd.f32 %v946_v22, %v898_v19  ;;  %v899_v25 = vpop.f32.mrf.mxu1  ;;  %v479_v19 = vld [vmem:[#allocation2 + $0x70] sm:$0xff]  ;;  %v475_v22 = vld [vmem:[#allocation2 + $0x20] sm:$0xff] }
 0x107   : > { %v900_v27 = vadd.f32 %v899_v25, %v850_v24 }
 0x108   : > { %v983_v26 = vadd.f32 %v947_v23, %v468_v21 }
 0x10a   : > { %999 = vst [vmem:[#allocation2 + $0x58] sm:$0xff] %v983_v26 }
 0x10b   : > { %v2069_v28 = vpop.f32.mrf.mxu3 }
 0x10d   : > { %v948_v30 = vpop.f32.mrf.mxu2  ;;  %v853_v32 = vpop.f32.mrf.mxu0 }
 0x10e   : > { %v949_v31 = vadd.f32 %v948_v30, %v900_v27  ;;  %v902_v33 = vpop.f32.mrf.mxu1 }
 0x10f   : > { %v903_v35 = vadd.f32 %v902_v33, %v853_v32  ;;  %v480_v32 = vld [vmem:[#allocation2 + $0x78] sm:$0xff] }
 0x110   : > { %v984_v34 = vadd.f32 %v949_v31, %v469_v29 }
 0x112   : > { %1000 = vst [vmem:[#allocation2 + $0x18] sm:$0xff] %v984_v34  ;;  %v476_v34 = vld [vmem:[#allocation2 + $0x10] sm:$0xff] }
 0x113   : > { %v922_v36 = vpop.f32.mrf.mxu3 }
 0x114   : > { %v923_v5 = vadd.f32 %v922_v36, %v2063_v4 }
 0x115   : > { %v951_v39 = vpop.f32.mrf.mxu2  ;;  %v855_v40 = vpop.f32.mrf.mxu0 }
 0x116   : > { %v952_v38 = vadd.f32 %v951_v39, %v903_v35  ;;  %v904_v41 = vpop.f32.mrf.mxu1 }
 0x117   : > { %v905_v43 = vadd.f32 %v904_v41, %v855_v40 }
 0x118   : > { %v985_v42 = vadd.f32 %v952_v38, %v470_v37 }
 0x11a   : > { %1001 = vst [vmem:[#allocation2 + $0x50] sm:$0xff] %v985_v42 }
 0x11b   : > { %v924_v44 = vpop.f32.mrf.mxu3 }
 0x11c   : > { %v925_v17 = vadd.f32 %v924_v44, %v2065_v12 }
 0x11d   : > { %v953_v46 = vpop.f32.mrf.mxu2  ;;  %v858_v48 = vpop.f32.mrf.mxu0 }
 0x11e   : > { %v954_v47 = vadd.f32 %v953_v46, %v905_v43  ;;  %v907_v49 = vpop.f32.mrf.mxu1  ;;  %v481_v43 = vld [vmem:[#allocation2 + $0x28] sm:$0xff] }
 0x11f   : > { %v908_v51 = vadd.f32 %v907_v49, %v858_v48 }
 0x120   : > { %v986_v50 = vadd.f32 %v954_v47, %v471_v45  ;;  %v477_v45 = vld [vmem:[#allocation2 + $0x38] sm:$0xff] }
 0x122   : > { %1002 = vst [vmem:[#allocation2 + $0x68] sm:$0xff] %v986_v50 }
 0x123   : > { %v927_v52 = vpop.f32.mrf.mxu3 }
 0x124   : > { %v928_v31 = vadd.f32 %v927_v52, %v2067_v20 }
 0x125   : > { %v956_v54 = vpop.f32.mrf.mxu2  ;;  %v860_v57 = vpop.f32.mrf.mxu0 }
 0x126   : > { %v957_v55 = vadd.f32 %v956_v54, %v908_v51  ;;  %v909_v56 = vpop.f32.mrf.mxu1 }
 0x127   : > { %v910_v59 = vadd.f32 %v909_v56, %v860_v57 }
 0x128   : > { %v987_v58 = vadd.f32 %v957_v55, %v472_v53 }
 0x12a   : > { %1003 = vst [vmem:[#allocation2 + $0x8] sm:$0xff] %v987_v58 }
 0x12b   : > { %v929_v60 = vpop.f32.mrf.mxu3 }
 0x12c   : > { %v930_v41 = vadd.f32 %v929_v60, %v2069_v28 }
 0x12d   : > { %v958_v62 = vpop.f32.mrf.mxu2  ;;  %v863_v0 = vpop.f32.mrf.mxu0 }
 0x12e   : > { %v959_v63 = vadd.f32 %v958_v62, %v910_v59  ;;  %v912_v1 = vpop.f32.mrf.mxu1 }
 0x12f   : > { %v913_v3 = vadd.f32 %v912_v1, %v863_v0 }
 0x130   : > { %v988_v2 = vadd.f32 %v959_v63, %v473_v61 }
 0x132   : > { %1004 = vst [vmem:[#allocation2 + $0x48] sm:$0xff] %v988_v2 }
 0x133   : > { %v971_v7 = vpop.f32.mrf.mxu3 }
 0x134   : > { %v972_v10 = vadd.f32 %v971_v7, %v923_v5 }
 0x135   : > { %v961_v9 = vpop.f32.mrf.mxu2  ;;  %v865_v13 = vpop.f32.mrf.mxu0 }
 0x136   : > { %v962_v11 = vadd.f32 %v961_v9, %v913_v3  ;;  %v993_v14 = vadd.f32 %v972_v10, %v478_v6  ;;  %v914_v15 = vpop.f32.mrf.mxu1 }
 0x137   : > { %v915_v18 = vadd.f32 %v914_v15, %v865_v13 }
 0x138   : > { %v989_v16 = vadd.f32 %v962_v11, %v474_v8  ;;  %1009 = vst [vmem:[#allocation2 + $0x60] sm:$0xff] %v993_v14 }
 0x13a   : > { %1005 = vst [vmem:[#allocation2 + $0x40] sm:$0xff] %v989_v16 }
 0x13b   : > { %v973_v21 = vpop.f32.mrf.mxu3 }
 0x13c   : > { %v974_v4 = vadd.f32 %v973_v21, %v925_v17 }
 0x13d   : > { %v963_v23 = vpop.f32.mrf.mxu2  ;;  %v868_v26 = vpop.f32.mrf.mxu0 }
 0x13e   : > { %v964_v24 = vadd.f32 %v963_v23, %v915_v18  ;;  %v994_v25 = vadd.f32 %v974_v4, %v479_v19  ;;  %v917_v27 = vpop.f32.mrf.mxu1 }
 0x13f   : > { %v918_v30 = vadd.f32 %v917_v27, %v868_v26 }
 0x140   : > { %v990_v29 = vadd.f32 %v964_v24, %v475_v22  ;;  %1010 = vst [vmem:[#allocation2 + $0x70] sm:$0xff] %v994_v25 }
 0x142   : > { %1006 = vst [vmem:[#allocation2 + $0x20] sm:$0xff] %v990_v29 }
 0x143   : > { %v976_v33 = vpop.f32.mrf.mxu3 }
 0x144   : > { %v977_v35 = vadd.f32 %v976_v33, %v928_v31 }
 0x145   : > { %v966_v12 = vpop.f32.mrf.mxu2  ;;  %v870_v38 = vpop.f32.mrf.mxu0 }
 0x146   : > { %v967_v36 = vadd.f32 %v966_v12, %v918_v30  ;;  %v995_v37 = vadd.f32 %v977_v35, %v480_v32  ;;  %v919_v40 = vpop.f32.mrf.mxu1 }
 0x147   : > { %v920_v42 = vadd.f32 %v919_v40, %v870_v38 }
 0x148   : > { %v991_v39 = vadd.f32 %v967_v36, %v476_v34  ;;  %1011 = vst [vmem:[#allocation2 + $0x78] sm:$0xff] %v995_v37 }
 0x14a   : > { %1007 = vst [vmem:[#allocation2 + $0x10] sm:$0xff] %v991_v39 }
 0x14b   : > { %v978_v44 = vpop.f32.mrf.mxu3 }
 0x14c   : > { %v979_v20 = vadd.f32 %v978_v44, %v930_v41 }
 0x14d   : > { %v968_v46 = vpop.f32.mrf.mxu2 }
 0x14e   : > { %v969_v47 = vadd.f32 %v968_v46, %v920_v42  ;;  %v996_v48 = vadd.f32 %v979_v20, %v481_v43  ;;  %1016 = sbr.rel (%p1548_p11) target bundleno = 369 (0x171), region = 74 }
 0x150   : > { %v992_v49 = vadd.f32 %v969_v47, %v477_v45  ;;  %1012 = vst [vmem:[#allocation2 + $0x28] sm:$0xff] %v996_v48 }
 0x152   : > { %1008 = vst [vmem:[#allocation2 + $0x38] sm:$0xff] %v992_v49 }
 0x153   : > { %v1017_v50 = vld [vmem:[#allocation2 + $0x30] sm:$0xff]  ;;  %v1018_v51 = vld [vmem:[#allocation2] sm:$0xff]  ;;  %v1019_v54 = vld [vmem:[#allocation2 + $0x58] sm:$0xff] }
 0x154   : > { %v2079_v28 = vld [vmem:[%s2183_s2] ss:$0 sm:$0xff]  ;;  %v1020_v55 = vld [vmem:[#allocation2 + $0x18] sm:$0xff]  ;;  %v1674_v60 = vld [vmem:[%s2185_s4 + $0x8] sm:$0xff]  }
 0x155   : > { %v2084_v52 = vld [vmem:[%s2184_s3] ss:$0 sm:$0xff]  ;;  %v1037_v57 = vmul.f32 %v2079_v28, %v1017_v50  ;;  %v1038_v56 = vmul.f32 %v2079_v28, %v1018_v51  ;;  %v1021_v61 = vld [vmem:[#allocation2 + $0x50] sm:$0xff]  ;;  %v1022_v62 = vld [vmem:[#allocation2 + $0x68] sm:$0xff]  ;;  %v1039_v63 = vmul.f32 %v2079_v28, %v1019_v54  ;;  %v1040_v0 = vmul.f32 %v2079_v28, %v1020_v55 }
 0x156   : > { %v1603_v53 = vld [vmem:[%s2185_s4] sm:$0xff]   ;;  %v1608_v1 = vunpack.c.l.bf16 %v1674_v60  ;;  %v1609_v2 = vunpack.c.h.bf16 %v1674_v60  ;;  %v1675_v3 = vld [vmem:[%s2185_s4 + $0x10] sm:$0xff]   ;;  %v1041_v7 = vmul.f32 %v2079_v28, %v1021_v61  ;;  %v1042_v8 = vmul.f32 %v2079_v28, %v1022_v62  ;;  %v1023_v9 = vld [vmem:[#allocation2 + $0x8] sm:$0xff] }
 0x157   : > { %v1604_v58 = vunpack.c.l.bf16 %v1603_v53  ;;  %v1605_v59 = vunpack.c.h.bf16 %v1603_v53  ;;  %v1057_v5 = vadd.f32 %v2084_v52, %v1037_v57  ;;  %v1058_v6 = vadd.f32 %v2084_v52, %v1038_v56  ;;  %v1024_v10 = vld [vmem:[#allocation2 + $0x48] sm:$0xff]  ;;  %v1676_v24 = vld [vmem:[%s2185_s4 + $0x18] sm:$0xff]   ;;  %v1025_v30 = vld [vmem:[#allocation2 + $0x40] sm:$0xff] }
 0x158   : > { %v1059_v11 = vadd.f32 %v2084_v52, %v1039_v63  ;;  %v1060_v13 = vadd.f32 %v2084_v52, %v1040_v0  ;;  %v1612_v14 = vunpack.c.l.bf16 %v1675_v3  ;;  %v1613_v15 = vunpack.c.h.bf16 %v1675_v3  ;;  %v1026_v31 = vld [vmem:[#allocation2 + $0x20] sm:$0xff]  ;;  %v1027_v40 = vld [vmem:[#allocation2 + $0x10] sm:$0xff]  ;;  %v1678_v46 = vld [vmem:[%s2185_s4 + $0x28] sm:$0xff]  }
 0x159   : > { %v1105_v16 = vadd.f32 %v1604_v58, %v1057_v5  ;;  %v1106_v17 = vadd.f32 %v1605_v59, %v1058_v6  ;;  %v1061_v18 = vadd.f32 %v2084_v52, %v1041_v7  ;;  %v1062_v19 = vadd.f32 %v2084_v52, %v1042_v8  ;;  %v1677_v35 = vld [vmem:[%s2185_s4 + $0x20] sm:$0xff]   ;;  %v1028_v45 = vld [vmem:[#allocation2 + $0x38] sm:$0xff]  ;;  %v1030_v57 = vld [vmem:[#allocation2 + $0x70] sm:$0xff] }
 0x15a   : > { %v1107_v21 = vadd.f32 %v1608_v1, %v1059_v11  ;;  %v1108_v22 = vadd.f32 %v1609_v2, %v1060_v13  ;;  %v1043_v23 = vmul.f32 %v2079_v28, %v1023_v9  ;;  %v1044_v4 = vmul.f32 %v2079_v28, %v1024_v10  ;;  %v1029_v55 = vld [vmem:[#allocation2 + $0x60] sm:$0xff]  ;;  %v1679_v56 = vld [vmem:[%s2185_s4 + $0x30] sm:$0xff]   ;;  %v1031_v7 = vld [vmem:[#allocation2 + $0x78] sm:$0xff] }
 0x15b   : > { %v1121_v25 = vmax.f32 %v1105_v16, 0.0  ;;  %v1122_v26 = vmax.f32 %v1106_v17, 0.0  ;;  %v1109_v27 = vadd.f32 %v1612_v14, %v1061_v18  ;;  %v1110_v29 = vadd.f32 %v1613_v15, %v1062_v19  ;;  %v1032_v8 = vld [vmem:[#allocation2 + $0x28] sm:$0xff]  ;;  %v1680_v14 = vld [vmem:[%s2185_s4 + $0x38] sm:$0xff]  }
 0x15c   : > { %v1123_v32 = vmax.f32 %v1107_v21, 0.0  ;;  %v1124_v33 = vmax.f32 %v1108_v22, 0.0  ;;  %v1063_v34 = vadd.f32 %v2084_v52, %v1043_v23  ;;  %v1064_v12 = vadd.f32 %v2084_v52, %v1044_v4 }
 0x15d   : > { %v1637_v36 = vpack.c.bf16 %v1122_v26, %v1121_v25  ;;  %v1125_v37 = vmax.f32 %v1109_v27, 0.0  ;;  %v1126_v39 = vmax.f32 %v1110_v29, 0.0  ;;  %v1616_v38 = vunpack.c.l.bf16 %v1676_v24 }
 0x15e   : > { %v1642_v41 = vpack.c.bf16 %v1124_v33, %v1123_v32  ;;  %v1617_v42 = vunpack.c.h.bf16 %v1676_v24  ;;  %v1045_v43 = vmul.f32 %v2079_v28, %v1025_v30  ;;  %v1046_v44 = vmul.f32 %v2079_v28, %v1026_v31 }
 0x15f   : > { %1638 = vst [vmem:[%s2186_s5] sm:$0xff] %v1637_v36   ;;  %v1647_v20 = vpack.c.bf16 %v1126_v39, %v1125_v37  ;;  %v1111_v47 = vadd.f32 %v1616_v38, %v1063_v34  ;;  %v1620_v48 = vunpack.c.l.bf16 %v1677_v35  ;;  %v1621_v49 = vunpack.c.h.bf16 %v1677_v35 }
 0x160   : > { %1681 = vst [vmem:[%s2186_s5 + $0x8] sm:$0xff] %v1642_v41   ;;  %v1112_v50 = vadd.f32 %v1617_v42, %v1064_v12  ;;  %v1065_v51 = vadd.f32 %v2084_v52, %v1045_v43  ;;  %v1066_v53 = vadd.f32 %v2084_v52, %v1046_v44  ;;  %v1047_v54 = vmul.f32 %v2079_v28, %v1027_v40 }
 0x161   : > { %1682 = vst [vmem:[%s2186_s5 + $0x10] sm:$0xff] %v1647_v20   ;;  %v1127_v58 = vmax.f32 %v1111_v47, 0.0  ;;  %v1048_v59 = vmul.f32 %v2079_v28, %v1028_v45  ;;  %v1624_v60 = vunpack.c.l.bf16 %v1678_v46  ;;  %v1625_v61 = vunpack.c.h.bf16 %v1678_v46 }
 0x162   : > { %v1128_v62 = vmax.f32 %v1112_v50, 0.0  ;;  %v1113_v63 = vadd.f32 %v1620_v48, %v1065_v51  ;;  %v1114_v0 = vadd.f32 %v1621_v49, %v1066_v53  ;;  %v1067_v1 = vadd.f32 %v2084_v52, %v1047_v54 }
 0x163   : > { %v1068_v2 = vadd.f32 %v2084_v52, %v1048_v59  ;;  %v1049_v3 = vmul.f32 %v2079_v28, %v1029_v55  ;;  %v1050_v5 = vmul.f32 %v2079_v28, %v1030_v57  ;;  %v1628_v6 = vunpack.c.l.bf16 %v1679_v56 }
 0x164   : > { %v1652_v9 = vpack.c.bf16 %v1128_v62, %v1127_v58  ;;  %v1129_v10 = vmax.f32 %v1113_v63, 0.0  ;;  %v1130_v11 = vmax.f32 %v1114_v0, 0.0  ;;  %v1115_v13 = vadd.f32 %v1624_v60, %v1067_v1 }
 0x165   : > { %v1116_v15 = vadd.f32 %v1625_v61, %v1068_v2  ;;  %v1069_v16 = vadd.f32 %v2084_v52, %v1049_v3  ;;  %v1070_v17 = vadd.f32 %v2084_v52, %v1050_v5  ;;  %v1629_v18 = vunpack.c.h.bf16 %v1679_v56 }
 0x166   : > { %1683 = vst [vmem:[%s2186_s5 + $0x18] sm:$0xff] %v1652_v9   ;;  %v1657_v19 = vpack.c.bf16 %v1130_v11, %v1129_v10  ;;  %v1131_v21 = vmax.f32 %v1115_v13, 0.0  ;;  %v1051_v22 = vmul.f32 %v2079_v28, %v1031_v7  ;;  %v1052_v23 = vmul.f32 %v2079_v28, %v1032_v8 }
 0x167   : > { %v1132_v4 = vmax.f32 %v1116_v15, 0.0  ;;  %v1117_v24 = vadd.f32 %v1628_v6, %v1069_v16  ;;  %v1118_v25 = vadd.f32 %v1629_v18, %v1070_v17  ;;  %v1632_v26 = vunpack.c.l.bf16 %v1680_v14 }
 0x168   : > { %1684 = vst [vmem:[%s2186_s5 + $0x20] sm:$0xff] %v1657_v19   ;;  %v1071_v27 = vadd.f32 %v2084_v52, %v1051_v22  ;;  %v1072_v29 = vadd.f32 %v2084_v52, %v1052_v23  ;;  %v1633_v30 = vunpack.c.h.bf16 %v1680_v14 }
 0x169   : > { %v1662_v31 = vpack.c.bf16 %v1132_v4, %v1131_v21  ;;  %v1133_v32 = vmax.f32 %v1117_v24, 0.0  ;;  %v1134_v33 = vmax.f32 %v1118_v25, 0.0 }
 0x16a   : > { %v1119_v34 = vadd.f32 %v1632_v26, %v1071_v27  ;;  %v1120_v12 = vadd.f32 %v1633_v30, %v1072_v29 }
 0x16b   : > { %1685 = vst [vmem:[%s2186_s5 + $0x28] sm:$0xff] %v1662_v31   ;;  %v1667_v28 = vpack.c.bf16 %v1134_v33, %v1133_v32 }
 0x16c   : > { %v1135_v35 = vmax.f32 %v1119_v34, 0.0  ;;  %v1136_v36 = vmax.f32 %v1120_v12, 0.0 }
 0x16d   : > { %1686 = vst [vmem:[%s2186_s5 + $0x30] sm:$0xff] %v1667_v28  }
 0x16e   : > { %v1672_v37 = vpack.c.bf16 %v1136_v36, %v1135_v35 }
 0x170   : > { %1687 = vst [vmem:[%s2186_s5 + $0x38] sm:$0xff] %v1672_v37  }
 0x171 PF: > { %s15_s22 = sadd.s32 1, %s1795_s22   ;;  %s2187_s18 = smov %s1783_s19 }
 0x172   : > { %p12_p12 = scmp.ge.s32.totalorder %s15_s22, 5   ;;  %s2188_s19 = smov %s1863_s26 }
 0x173   : > { %s2189_s20 = smov %s1791_s21  ;;  %s2190_s21 = smov %s2192_s23 }
 0x174   :  { %14 = sbr.rel (!%p12_p12) target bundleno = 3 (0x3), region = 127 }

// kernel: forward.19
= control target key start
LH: loop header
LB: loop body
LE: loop exit
PB: predicated region body
PF: predicated region fallthrough
CT: control target
= control target key end

     0   :  { %s1454_s15 = smov 0   ;;  %s1456_s16 = smov 0   ;;  %s1659_s0 = inlined_call_operand.vmem [shape: bf16[32,1152], index: 0, kind: input, shape index: {}]   ;;  %s1660_s1 = inlined_call_operand.vmem [shape: bf16[1152,256], index: 1, kind: input, shape index: {}]   ;;  %s1661_s2 = inlined_call_operand.vmem [shape: f32[1,256], index: 2, kind: input, shape index: {}]   ;;  %s1662_s3 = inlined_call_operand.vmem [shape: f32[1,256], index: 3, kind: input, shape index: {}]   ;;  %s1663_s4 = inlined_call_operand.vmem [shape: bf16[32,256], index: 4, kind: output, shape index: {}]  }
   0x1   :  { %s1458_s17 = smov 0   ;;  %s1460_s18 = smov 0  }
   0x2   :  { %s1462_s19 = smov 0  }
   0x3 LB: > { %s26_s20 = sadd.s32 1, %s1422_s18  ;;  %p49_p1 = scmp.ne.s32.totalorder %s1414_s16, %s1410_s15  ;;  %s1426_s19 = sphi %s1462_s19, %s14_s19   ;;  %s1422_s18 = sphi %s1460_s18, %s1667_s18   ;;  %s1418_s17 = sphi %s1458_s17, %s1666_s17   ;;  %s1414_s16 = sphi %s1456_s16, %s1665_s16   ;;  %s1410_s15 = sphi %s1454_s15, %s1664_s15  }
   0x4   : > { %p27_p0 = scmp.ge.s32.totalorder %s26_s20, 3  ;;  %p50_p2 = scmp.eq.s32.totalorder %s1426_s19, 0 }
   0x5   : > { %s42_s22 = sadd.s32 1, %s1414_s16  ;;  %p1038_p5 = scmp.ge.s32.totalorder %s1426_s19, 3 }
   0x6   : > { %s1669_s20 = smov (%p27_p0, %s26_s20), 0  ;;  %p51_p3 = por %p50_p2, %p49_p1 }
   0x7   : > { %s38_s21 = ssub.s32 %s1422_s18, %s1669_s20  ;;  %199 = sbr.rel (%p1038_p5) target bundleno = 25 (0x19), region = 24 }
   0x8   : > { %p40_p4 = scmp.eq.s32.totalorder %s38_s21, 0 }
   0xa   : > { %s1489_s23 = scalar_select %p40_p4, %s1414_s16, %s42_s22  }
   0xc   : > { %202 = sbr.rel (!%p51_p3) target bundleno = 25 (0x19), region = 28  ;;  %s204_s24 = sand.u32 (%p51_p3), 1, %s1414_s16  }
   0xd   : > { %s1273_s25 = smul.u32 (%p51_p3), 12, %s1422_s18 }
   0xe   : > { %s1345_s26 = smul.u32 (%p51_p3), 48, %s204_s24 }
   0xf   : > { %s212_s29 = scalar_lea.vmem (%p51_p3), %s1659_s0, %s1273_s25 }
  0x10   : > { %v227_v0 = vld [vmem:[%s212_s29] sm:$0xff] (%p51_p3)  ;;  %v231_v2 = vld [vmem:[%s212_s29 + $0x48] sm:$0xff] (%p51_p3)  ;;  %s206_s30 = scalar_lea.vmem (%p51_p3), [#allocation3], %s1345_s26  ;;  %v1044_v6 = vld [vmem:[%s212_s29 + $0x50] sm:$0xf] (%p51_p3) }
  0x11   : > { %v229_v1 = vld [vmem:[%s212_s29 + $0x24] sm:$0xff]  ;;  %228 = vst [vmem:[%s206_s30] sm:$0xff] %v227_v0  ;;  %v233_v3 = vld [vmem:[%s212_s29 + $0x6c] sm:$0xff]  ;;  %v1046_v7 = vld [vmem:[%s212_s29 + $0x74] sm:$0xf] }
  0x12   : > { %230 = vst [vmem:[%s206_s30 + $0xc] sm:$0xff] %v229_v1  ;;  %v1040_v4 = vld [vmem:[%s212_s29 + $0x8] sm:$0xf]  ;;  %v1042_v5 = vld [vmem:[%s212_s29 + $0x2c] sm:$0xf] }
  0x13   : > { %232 = vst [vmem:[%s206_s30 + $0x18] sm:$0xff] %v231_v2 }
  0x14   : > { %234 = vst [vmem:[%s206_s30 + $0x24] sm:$0xff] %v233_v3 }
  0x15   : > { %1041 = vst [vmem:[%s206_s30 + $0x8] sm:$0xf] %v1040_v4 }
  0x16   : > { %1043 = vst [vmem:[%s206_s30 + $0x14] sm:$0xf] %v1042_v5 }
  0x17   : > { %1045 = vst [vmem:[%s206_s30 + $0x20] sm:$0xf] %v1044_v6 }
  0x18   : > { %1047 = vst [vmem:[%s206_s30 + $0x2c] sm:$0xf] %v1046_v7 }
  0x19 PF: > { %p1048_p6 = scmp.ge.s32.totalorder %s1426_s19, 1  ;;  %p270_p7 = scmp.lt.s32.totalorder %s1426_s19, 4 }
  0x1b   : > { %p271_p8 = pnand %p1048_p6, %p270_p7 }
  0x1c   : > { %s277_s5 = sand.u32 (!%p271_p8), 1, %s1410_s15   ;;  %s327_s6 = smul.u32 (!%p271_p8), 48, %s1418_s17 }
  0x1d   : > { %274 = sbr.rel (%p271_p8) target bundleno = 279 (0x117), region = 58  ;;  %p1051_p10 = scmp.ne.s32.totalorder (!%p271_p8), %s1418_s17, 0 }
  0x1e   : > { %s1346_s7 = smul.u32 (!%p271_p8), 48, %s277_s5  ;;  %p329_p9 = scmp.lt.s32.totalorder (!%p271_p8), %s327_s6, 143 }
  0x20   : > { %s1506_s12 = scalar_lea.vmem (!%p271_p8), [#allocation3], %s1346_s7 }
  0x22   : > { %s1671_s6 = smov (!%p329_p9, %s327_s6), 143  ;;  %364 = sbr.rel (%p1051_p10) target bundleno = 48 (0x30), region = 66 }
  0x23   : > { %s1274_s8 = sshll.u32 %s1671_s6, 3 }
  0x24   : > { %s1504_s11 = scalar_lea.vmem %s1660_s1, %s1274_s8 }
  0x27   : > { %v1428_v8 = vmov 0.0  }
  0x28   : > { %365 = vst [vmem:[#allocation2 + $0x30] sm:$0xff] %v1428_v8 }
  0x29   : > { %366 = vst [vmem:[#allocation2] sm:$0xff] %v1428_v8 }
  0x2a   : > { %367 = vst [vmem:[#allocation2 + $0x18] sm:$0xff] %v1428_v8 }
  0x2b   : > { %368 = vst [vmem:[#allocation2 + $0x10] sm:$0xff] %v1428_v8 }
  0x2c   : > { %369 = vst [vmem:[#allocation2 + $0x8] sm:$0xff] %v1428_v8 }
  0x2d   : > { %370 = vst [vmem:[#allocation2 + $0x20] sm:$0xff] %v1428_v8 }
  0x2e   : > { %371 = vst [vmem:[#allocation2 + $0x28] sm:$0xff] %v1428_v8 }
  0x2f   : > { %372 = vst [vmem:[#allocation2 + $0x38] sm:$0xff] %v1428_v8 }
  0x30 PF: > { %v1134_v9 = vld [vmem:[%s1504_s11 + $0x70] sm:$0xf]  ;;  %v1296_v10 = vld [vmem:[%s1504_s11 + $0x74] sm:$0xf0]  ;;  %v1295_v18 = vld [vmem:[%s1504_s11 + $0x74] sm:$0xf] }
  0x31   : > { %v1198_v11 = vld [vmem:[%s1504_s11 + $0xf0] sm:$0xf]  ;;  %v1135_v12 = vor.u32 %v1296_v10, %v1134_v9  ;;  %v1312_v13 = vld [vmem:[%s1504_s11 + $0xf4] sm:$0xf0]  ;;  %v1136_v19 = vld [vmem:[%s1504_s11 + $0x78] sm:$0xf0] }
  0x32   : > { %v1262_v14 = vld [vmem:[%s1504_s11 + $0x170] sm:$0xf]  ;;  %v1328_v15 = vld [vmem:[%s1504_s11 + $0x174] sm:$0xf0]  ;;  %v1199_v16 = vor.u32 %v1312_v13, %v1198_v11  ;;  %v1126_v20 = vld [vmem:[%s1504_s11 + $0x60] sm:$0xf]  ;;  %v1139_v21 = vor.u32 %v1295_v18, %v1136_v19 }
  0x33   : > { %v1263_v17 = vor.u32 %v1328_v15, %v1262_v14  ;;  %709 = vmatpush.bf16.msra.mxu0 %v1135_v12  ;;  %v1294_v22 = vld [vmem:[%s1504_s11 + $0x64] sm:$0xf0]  ;;  %v1190_v23 = vld [vmem:[%s1504_s11 + $0xe0] sm:$0xf]  ;;  %v1293_v29 = vld [vmem:[%s1504_s11 + $0x64] sm:$0xf] }
  0x34   : > { %v1310_v24 = vld [vmem:[%s1504_s11 + $0xe4] sm:$0xf0]  ;;  %728 = vmatpush.bf16.msra.mxu1 %v1199_v16  ;;  %v1127_v25 = vor.u32 %v1294_v22, %v1126_v20  ;;  %v1254_v27 = vld [vmem:[%s1504_s11 + $0x160] sm:$0xf]  ;;  %766 = vmatpush.bf16.msra.mxu3 %v1139_v21  ;;  %v1128_v31 = vld [vmem:[%s1504_s11 + $0x68] sm:$0xf0] }
  0x35   : > { %747 = vmatpush.bf16.msra.mxu2 %v1263_v17  ;;  %v1191_v26 = vor.u32 %v1310_v24, %v1190_v23  ;;  %v1326_v28 = vld [vmem:[%s1504_s11 + $0x164] sm:$0xf0]  ;;  %v1118_v32 = vld [vmem:[%s1504_s11 + $0x50] sm:$0xf]  ;;  %v1292_v33 = vld [vmem:[%s1504_s11 + $0x54] sm:$0xf0]  ;;  %v1131_v34 = vor.u32 %v1293_v29, %v1128_v31 }
  0x36   : > { %v1255_v30 = vor.u32 %v1326_v28, %v1254_v27  ;;  %v1182_v35 = vld [vmem:[%s1504_s11 + $0xd0] sm:$0xf]  ;;  %v1308_v36 = vld [vmem:[%s1504_s11 + $0xd4] sm:$0xf0]  ;;  %v1119_v38 = vor.u32 %v1292_v33, %v1118_v32  ;;  %v1291_v40 = vld [vmem:[%s1504_s11 + $0x54] sm:$0xf] }
  0x37   : > { %v1246_v37 = vld [vmem:[%s1504_s11 + $0x150] sm:$0xf]  ;;  %710 = vmatpush.bf16.msra.mxu0 %v1127_v25  ;;  %v1324_v39 = vld [vmem:[%s1504_s11 + $0x154] sm:$0xf0]  ;;  %v1120_v41 = vld [vmem:[%s1504_s11 + $0x58] sm:$0xf0]  ;;  %v1183_v42 = vor.u32 %v1308_v36, %v1182_v35 }
  0x38   : > { %729 = vmatpush.bf16.msra.mxu1 %v1191_v26  ;;  %v1247_v43 = vor.u32 %v1324_v39, %v1246_v37  ;;  %v1110_v44 = vld [vmem:[%s1504_s11 + $0x40] sm:$0xf]  ;;  %v1290_v45 = vld [vmem:[%s1504_s11 + $0x44] sm:$0xf0]  ;;  %767 = vmatpush.bf16.msra.mxu3 %v1131_v34  ;;  %v1123_v47 = vor.u32 %v1291_v40, %v1120_v41  ;;  %v1289_v51 = vld [vmem:[%s1504_s11 + $0x44] sm:$0xf] }
  0x39   : > { %748 = vmatpush.bf16.msra.mxu2 %v1255_v30  ;;  %v1174_v46 = vld [vmem:[%s1504_s11 + $0xc0] sm:$0xf]  ;;  %v1306_v48 = vld [vmem:[%s1504_s11 + $0xc4] sm:$0xf0]  ;;  %v1112_v52 = vld [vmem:[%s1504_s11 + $0x48] sm:$0xf0]  ;;  %v1111_v53 = vor.u32 %v1290_v45, %v1110_v44 }
  0x3a   : > { %v1238_v49 = vld [vmem:[%s1504_s11 + $0x140] sm:$0xf]  ;;  %v1322_v50 = vld [vmem:[%s1504_s11 + $0x144] sm:$0xf0]  ;;  %v1175_v54 = vor.u32 %v1306_v48, %v1174_v46  ;;  %v1102_v56 = vld [vmem:[%s1504_s11 + $0x30] sm:$0xf]  ;;  %v1115_v59 = vor.u32 %v1289_v51, %v1112_v52 }
  0x3b   : > { %711 = vmatpush.bf16.msra.mxu0 %v1119_v38  ;;  %v1239_v55 = vor.u32 %v1322_v50, %v1238_v49  ;;  %v1288_v57 = vld [vmem:[%s1504_s11 + $0x34] sm:$0xf0]  ;;  %v1166_v58 = vld [vmem:[%s1504_s11 + $0xb0] sm:$0xf]  ;;  %v1287_v63 = vld [vmem:[%s1504_s11 + $0x34] sm:$0xf] }
  0x3c   : > { %730 = vmatpush.bf16.msra.mxu1 %v1183_v42  ;;  %768 = vmatpush.bf16.msra.mxu3 %v1123_v47  ;;  %v1304_v60 = vld [vmem:[%s1504_s11 + $0xb4] sm:$0xf0]  ;;  %v1230_v61 = vld [vmem:[%s1504_s11 + $0x130] sm:$0xf]  ;;  %v1104_v0 = vld [vmem:[%s1504_s11 + $0x38] sm:$0xf0]  ;;  %v1103_v1 = vor.u32 %v1288_v57, %v1102_v56 }
  0x3d   : > { %749 = vmatpush.bf16.msra.mxu2 %v1247_v43  ;;  %v1320_v62 = vld [vmem:[%s1504_s11 + $0x134] sm:$0xf0]  ;;  %v1167_v2 = vor.u32 %v1304_v60, %v1166_v58  ;;  %v1094_v4 = vld [vmem:[%s1504_s11 + $0x20] sm:$0xf]  ;;  %v1286_v5 = vld [vmem:[%s1504_s11 + $0x24] sm:$0xf0]  ;;  %v1107_v7 = vor.u32 %v1287_v63, %v1104_v0 }
  0x3e   : > { %v1231_v3 = vor.u32 %v1320_v62, %v1230_v61  ;;  %v1158_v6 = vld [vmem:[%s1504_s11 + $0xa0] sm:$0xf]  ;;  %v1302_v8 = vld [vmem:[%s1504_s11 + $0xa4] sm:$0xf0]  ;;  %v1285_v11 = vld [vmem:[%s1504_s11 + $0x24] sm:$0xf]  ;;  %v1095_v13 = vor.u32 %v1286_v5, %v1094_v4 }
  0x3f   : > { %712 = vmatpush.bf16.msra.mxu0 %v1111_v53  ;;  %v1222_v9 = vld [vmem:[%s1504_s11 + $0x120] sm:$0xf]  ;;  %v1318_v10 = vld [vmem:[%s1504_s11 + $0x124] sm:$0xf0]  ;;  %v1096_v12 = vld [vmem:[%s1504_s11 + $0x28] sm:$0xf0]  ;;  %v1159_v14 = vor.u32 %v1302_v8, %v1158_v6 }
  0x40   : > { %731 = vmatpush.bf16.msra.mxu1 %v1175_v54  ;;  %769 = vmatpush.bf16.msra.mxu3 %v1115_v59  ;;  %v1223_v15 = vor.u32 %v1318_v10, %v1222_v9  ;;  %v1086_v16 = vld [vmem:[%s1504_s11 + $0x10] sm:$0xf]  ;;  %v1284_v17 = vld [vmem:[%s1504_s11 + $0x14] sm:$0xf0]  ;;  %v1099_v19 = vor.u32 %v1285_v11, %v1096_v12  ;;  %v1283_v23 = vld [vmem:[%s1504_s11 + $0x14] sm:$0xf] }
  0x41   : > { %750 = vmatpush.bf16.msra.mxu2 %v1239_v55  ;;  %v1150_v18 = vld [vmem:[%s1504_s11 + $0x90] sm:$0xf]  ;;  %v1300_v20 = vld [vmem:[%s1504_s11 + $0x94] sm:$0xf0]  ;;  %v1088_v24 = vld [vmem:[%s1504_s11 + $0x18] sm:$0xf0]  ;;  %v1087_v25 = vor.u32 %v1284_v17, %v1086_v16 }
  0x42   : > { %v1214_v21 = vld [vmem:[%s1504_s11 + $0x110] sm:$0xf]  ;;  %v1316_v22 = vld [vmem:[%s1504_s11 + $0x114] sm:$0xf0]  ;;  %v1078_v26 = vld [vmem:[%s1504_s11] sm:$0xf]  ;;  %v1151_v29 = vor.u32 %v1300_v20, %v1150_v18  ;;  %v1091_v34 = vor.u32 %v1283_v23, %v1088_v24 }
  0x43   : > { %713 = vmatpush.bf16.msra.mxu0 %v1103_v1  ;;  %v1282_v27 = vld [vmem:[%s1504_s11 + $0x4] sm:$0xf0]  ;;  %v1142_v28 = vld [vmem:[%s1504_s11 + $0x80] sm:$0xf]  ;;  %v1215_v30 = vor.u32 %v1316_v22, %v1214_v21  ;;  %v1281_v35 = vld [vmem:[%s1504_s11 + $0x4] sm:$0xf] }
  0x44   : > { %732 = vmatpush.bf16.msra.mxu1 %v1167_v2  ;;  %770 = vmatpush.bf16.msra.mxu3 %v1107_v7  ;;  %v1298_v31 = vld [vmem:[%s1504_s11 + $0x84] sm:$0xf0]  ;;  %v1206_v32 = vld [vmem:[%s1504_s11 + $0x100] sm:$0xf]  ;;  %v1080_v36 = vld [vmem:[%s1504_s11 + $0x8] sm:$0xf0]  ;;  %v1079_v41 = vor.u32 %v1282_v27, %v1078_v26 }
  0x45   : > { %751 = vmatpush.bf16.msra.mxu2 %v1231_v3  ;;  %v1314_v33 = vld [vmem:[%s1504_s11 + $0x104] sm:$0xf0]  ;;  %v1054_v37 = vld [vmem:[%s1506_s12] sm:$0xf]  ;;  %v1276_v38 = vld [vmem:[%s1506_s12 + $0x8] sm:$0xf0]  ;;  %v1143_v45 = vor.u32 %v1298_v31, %v1142_v28  ;;  %v1083_v50 = vor.u32 %v1281_v35, %v1080_v36 }
  0x46   : > { %v1311_v39 = vld [vmem:[%s1504_s11 + $0xf4] sm:$0xf]  ;;  %v1200_v40 = vld [vmem:[%s1504_s11 + $0xf8] sm:$0xf0]  ;;  %v1207_v46 = vor.u32 %v1314_v33, %v1206_v32  ;;  %v1056_v47 = vld [vmem:[%s1506_s12 + $0xc] sm:$0xf0]  ;;  %v1055_v52 = vor.u32 %v1276_v38, %v1054_v37 }
  0x47   : > { %714 = vmatpush.bf16.msra.mxu0 %v1095_v13  ;;  %v1275_v42 = vld [vmem:[%s1506_s12 + $0x4] sm:$0xf]  ;;  %v1264_v44 = vld [vmem:[%s1504_s11 + $0x178] sm:$0xf0]  ;;  %v1062_v48 = vld [vmem:[%s1506_s12 + $0x8] sm:$0xf]  ;;  %v1203_v51 = vor.u32 %v1311_v39, %v1200_v40 }
  0x48   : > { %733 = vmatpush.bf16.msra.mxu1 %v1159_v14  ;;  %771 = vmatpush.bf16.msra.mxu3 %v1099_v19  ;;  %v1327_v43 = vld [vmem:[%s1504_s11 + $0x174] sm:$0xf]  ;;  %v1309_v54 = vld [vmem:[%s1504_s11 + $0xe4] sm:$0xf]  ;;  %v1192_v55 = vld [vmem:[%s1504_s11 + $0xe8] sm:$0xf0]  ;;  %v1585_v56 = vor.u32 %v1275_v42, %v1056_v47 }
  0x49   : > { %752 = vmatpush.bf16.msra.mxu2 %v1223_v15  ;;  %v1277_v49 = vld [vmem:[%s1506_s12 + $0x10] sm:$0xf0]  ;;  %v1267_v53 = vor.u32 %v1327_v43, %v1264_v44  ;;  %v1256_v59 = vld [vmem:[%s1504_s11 + $0x168] sm:$0xf0]  ;;  %v1195_v60 = vor.u32 %v1309_v54, %v1192_v55  ;;  %v1184_v63 = vld [vmem:[%s1504_s11 + $0xd8] sm:$0xf0] }
  0x4a   : > { %v1587_v57 = vor.u32 %v1277_v49, %v1062_v48  ;;  %v1325_v58 = vld [vmem:[%s1504_s11 + $0x164] sm:$0xf]  ;;  %v1307_v62 = vld [vmem:[%s1504_s11 + $0xd4] sm:$0xf]  ;;  %v1248_v1 = vld [vmem:[%s1504_s11 + $0x158] sm:$0xf0] }
  0x4b   : > { %715 = vmatpush.bf16.msra.mxu0 %v1087_v25  ;;  %v1259_v61 = vor.u32 %v1325_v58, %v1256_v59  ;;  %v1323_v0 = vld [vmem:[%s1504_s11 + $0x154] sm:$0xf]  ;;  %v1187_v2 = vor.u32 %v1307_v62, %v1184_v63  ;;  %v1305_v4 = vld [vmem:[%s1504_s11 + $0xc4] sm:$0xf]  ;;  %v1176_v5 = vld [vmem:[%s1504_s11 + $0xc8] sm:$0xf0] }
  0x4c   : > { %734 = vmatpush.bf16.msra.mxu1 %v1151_v29  ;;  %772 = vmatpush.bf16.msra.mxu3 %v1091_v34  ;;  %v1251_v3 = vor.u32 %v1323_v0, %v1248_v1  ;;  %v1321_v6 = vld [vmem:[%s1504_s11 + $0x144] sm:$0xf]  ;;  %v1240_v7 = vld [vmem:[%s1504_s11 + $0x148] sm:$0xf0]  ;;  %v1179_v8 = vor.u32 %v1305_v4, %v1176_v5  ;;  %v1066_v9 = vld [vmem:[%s1506_s12 + $0x18] sm:$0xf] }
  0x4d   : > { %753 = vmatpush.bf16.msra.mxu2 %v1215_v30  ;;  %v1243_v10 = vor.u32 %v1321_v6, %v1240_v7  ;;  %v1279_v11 = vld [vmem:[%s1506_s12 + $0x20] sm:$0xf0]  ;;  %v1168_v13 = vld [vmem:[%s1504_s11 + $0xb8] sm:$0xf0]  ;;  %v1068_v17 = vld [vmem:[%s1506_s12 + $0x24] sm:$0xf0] }
  0x4e   : > { %v1303_v12 = vld [vmem:[%s1504_s11 + $0xb4] sm:$0xf]  ;;  %v1278_v14 = vld [vmem:[%s1506_s12 + $0x1c] sm:$0xf]  ;;  %v1074_v18 = vld [vmem:[%s1506_s12 + $0x20] sm:$0xf]  ;;  %v1067_v21 = vor.u32 %v1279_v11, %v1066_v9 }
  0x4f   : > { %716 = vmatpush.bf16.msra.mxu0 %v1079_v41  ;;  %v1319_v15 = vld [vmem:[%s1504_s11 + $0x134] sm:$0xf]  ;;  %v1232_v16 = vld [vmem:[%s1504_s11 + $0x138] sm:$0xf0]  ;;  %v1171_v20 = vor.u32 %v1303_v12, %v1168_v13  ;;  %v1301_v23 = vld [vmem:[%s1504_s11 + $0xa4] sm:$0xf]  ;;  %v1071_v25 = vor.u32 %v1278_v14, %v1068_v17 }
  0x50   : > { %735 = vmatpush.bf16.msra.mxu1 %v1143_v45  ;;  %773 = vmatpush.bf16.msra.mxu3 %v1083_v50  ;;  %v1280_v19 = vld [vmem:[%s1506_s12 + $0x28] sm:$0xf0]  ;;  %v1235_v22 = vor.u32 %v1319_v15, %v1232_v16  ;;  %v1317_v27 = vld [vmem:[%s1504_s11 + $0x124] sm:$0xf]  ;;  %v1299_v31 = vld [vmem:[%s1504_s11 + $0x94] sm:$0xf] }
  0x51   : > { %754 = vmatpush.bf16.msra.mxu2 %v1207_v46  ;;  %v1160_v24 = vld [vmem:[%s1504_s11 + $0xa8] sm:$0xf0]  ;;  %v1075_v26 = vor.u32 %v1280_v19, %v1074_v18  ;;  %v1152_v32 = vld [vmem:[%s1504_s11 + $0x98] sm:$0xf0]  ;;  %v1315_v33 = vld [vmem:[%s1504_s11 + $0x114] sm:$0xf] }
  0x52   : > { %717 = vmatmul.bf16.vlgmr.msra.gmra.mxu0 %v1055_v52  ;;  %v1224_v28 = vld [vmem:[%s1504_s11 + $0x128] sm:$0xf0]  ;;  %v1163_v29 = vor.u32 %v1301_v23, %v1160_v24  ;;  %v1216_v34 = vld [vmem:[%s1504_s11 + $0x118] sm:$0xf0]  ;;  %v1155_v35 = vor.u32 %v1299_v31, %v1152_v32  ;;  %v1297_v37 = vld [vmem:[%s1504_s11 + $0x84] sm:$0xf] }
  0x53   : > { %736 = vmatmul.bf16.vlgmr.msra.gmra.mxu1 %v1585_v56  ;;  %774 = vmatmul.bf16.vlgmr.msra.gmra.mxu3 %v1055_v52  ;;  %v1227_v30 = vor.u32 %v1317_v27, %v1224_v28  ;;  %v1219_v36 = vor.u32 %v1315_v33, %v1216_v34  ;;  %v1144_v38 = vld [vmem:[%s1504_s11 + $0x88] sm:$0xf0]  ;;  %v1313_v39 = vld [vmem:[%s1504_s11 + $0x104] sm:$0xf]  ;;  %v373_v46 = vld [vmem:[#allocation2 + $0x30] sm:$0xff]  ;;  %p1268_p11 = scmp.ne.s32.totalorder %s1418_s17, 2 }
  0x54   : > { %804 = vmatpush.bf16.msrb.mxu1 %v1267_v53  ;;  %755 = vmatmul.bf16.vlgmr.msra.gmra.mxu2 %v1587_v57  ;;  %v1208_v40 = vld [vmem:[%s1504_s11 + $0x108] sm:$0xf0]  ;;  %v1147_v41 = vor.u32 %v1297_v37, %v1144_v38  ;;  %v375_v54 = vld [vmem:[#allocation2 + $0x18] sm:$0xff]  ;;  %v374_v14 = vld [vmem:[#allocation2] sm:$0xff] }
  0x55   : > { %1329 = vmatpush.bf16.msrb.mxu2 %v1203_v51  ;;  %785 = vmatpush.bf16.msrb.mxu0 %v1203_v51  ;;  %v1211_v42 = vor.u32 %v1313_v39, %v1208_v40  ;;  %v377_v62 = vld [vmem:[#allocation2 + $0x8] sm:$0xff]  ;;  %v376_v24 = vld [vmem:[#allocation2 + $0x10] sm:$0xff]  ;;  %v380_v31 = vld [vmem:[#allocation2 + $0x38] sm:$0xff] }
  0x56   : > { %1337 = vmatpush.bf16.msrb.mxu3 %v1267_v53  ;;  %v379_v6 = vld [vmem:[#allocation2 + $0x28] sm:$0xff] }
  0x58   : > { %805 = vmatpush.bf16.msrb.mxu1 %v1259_v61 }
  0x59   : > { %1330 = vmatpush.bf16.msrb.mxu2 %v1195_v60  ;;  %786 = vmatpush.bf16.msrb.mxu0 %v1195_v60 }
  0x5a   : > { %1338 = vmatpush.bf16.msrb.mxu3 %v1259_v61 }
  0x5c   : > { %806 = vmatpush.bf16.msrb.mxu1 %v1251_v3 }
  0x5d   : > { %1331 = vmatpush.bf16.msrb.mxu2 %v1187_v2  ;;  %787 = vmatpush.bf16.msrb.mxu0 %v1187_v2 }
  0x5e   : > { %1339 = vmatpush.bf16.msrb.mxu3 %v1251_v3 }
  0x60   : > { %807 = vmatpush.bf16.msrb.mxu1 %v1243_v10 }
  0x61   : > { %1332 = vmatpush.bf16.msrb.mxu2 %v1179_v8  ;;  %788 = vmatpush.bf16.msrb.mxu0 %v1179_v8 }
  0x62   : > { %1340 = vmatpush.bf16.msrb.mxu3 %v1243_v10  ;;  %722 = vmatmul.bf16.gmra.mxu0 %v1067_v21 }
  0x63   : > { %741 = vmatmul.bf16.gmra.mxu1 %v1071_v25  ;;  %779 = vmatmul.bf16.gmra.mxu3 %v1067_v21 }
  0x64   : > { %808 = vmatpush.bf16.msrb.mxu1 %v1235_v22  ;;  %760 = vmatmul.bf16.gmra.mxu2 %v1075_v26 }
  0x65   : > { %1333 = vmatpush.bf16.msrb.mxu2 %v1171_v20  ;;  %789 = vmatpush.bf16.msrb.mxu0 %v1171_v20  ;;  %v378_v20 = vld [vmem:[#allocation2 + $0x20] sm:$0xff] }
  0x66   : > { %1341 = vmatpush.bf16.msrb.mxu3 %v1235_v22 }
  0x68   : > { %809 = vmatpush.bf16.msrb.mxu1 %v1227_v30 }
  0x69   : > { %1334 = vmatpush.bf16.msrb.mxu2 %v1163_v29  ;;  %790 = vmatpush.bf16.msrb.mxu0 %v1163_v29 }
  0x6a   : > { %1342 = vmatpush.bf16.msrb.mxu3 %v1227_v30 }
  0x6c   : > { %810 = vmatpush.bf16.msrb.mxu1 %v1219_v36 }
  0x6d   : > { %1335 = vmatpush.bf16.msrb.mxu2 %v1155_v35  ;;  %791 = vmatpush.bf16.msrb.mxu0 %v1155_v35 }
  0x6e   : > { %1343 = vmatpush.bf16.msrb.mxu3 %v1219_v36 }
  0x70   : > { %811 = vmatpush.bf16.msrb.mxu1 %v1211_v42 }
  0x71   : > { %1336 = vmatpush.bf16.msrb.mxu2 %v1147_v41  ;;  %792 = vmatpush.bf16.msrb.mxu0 %v1147_v41 }
  0x72   : > { %1344 = vmatpush.bf16.msrb.mxu3 %v1211_v42 }
  0x73   : > { %812 = vmatmul.bf16.vlgmr.msrb.gmra.mxu1 %v1587_v57 }
  0x74   : > { %793 = vmatmul.bf16.vlgmr.msrb.gmra.mxu0 %v1585_v56  ;;  %798 = vmatmul.bf16.vlgmr.msrb.gmra.mxu2 %v1071_v25 }
  0x75   : > { %817 = vmatmul.bf16.vlgmr.msrb.gmra.mxu3 %v1075_v26 }
  0xcf   : > { %v718_v43 = vpop.f32.mrf.mxu0 }
  0xd0   : > { %v737_v44 = vpop.f32.mrf.mxu1 }
  0xd1   : > { %v738_v45 = vadd.f32 %v737_v44, %v718_v43 }
  0xd6   : > { %v775_v49 = vpop.f32.mrf.mxu3 }
  0xd7   : > { %v756_v47 = vpop.f32.mrf.mxu2  ;;  %v720_v50 = vpop.f32.mrf.mxu0 }
  0xd8   : > { %v757_v48 = vadd.f32 %v756_v47, %v738_v45  ;;  %v739_v51 = vpop.f32.mrf.mxu1 }
  0xd9   : > { %v740_v53 = vadd.f32 %v739_v51, %v720_v50 }
  0xda   : > { %v823_v52 = vadd.f32 %v757_v48, %v373_v46 }
  0xdc   : > { %831 = vst [vmem:[#allocation2 + $0x30] sm:$0xff] %v823_v52 }
  0xde   : > { %v777_v56 = vpop.f32.mrf.mxu3 }
  0xdf   : > { %v758_v55 = vpop.f32.mrf.mxu2  ;;  %v723_v59 = vpop.f32.mrf.mxu0 }
  0xe0   : > { %v759_v58 = vadd.f32 %v758_v55, %v740_v53  ;;  %v742_v60 = vpop.f32.mrf.mxu1 }
  0xe1   : > { %v743_v61 = vadd.f32 %v742_v60, %v723_v59 }
  0xe2   : > { %v825_v57 = vadd.f32 %v759_v58, %v375_v54 }
  0xe4   : > { %833 = vst [vmem:[#allocation2 + $0x18] sm:$0xff] %v825_v57 }
  0xe6   : > { %v780_v1 = vpop.f32.mrf.mxu3 }
  0xe7   : > { %v761_v63 = vpop.f32.mrf.mxu2  ;;  %v725_v2 = vpop.f32.mrf.mxu0 }
  0xe8   : > { %v762_v0 = vadd.f32 %v761_v63, %v743_v61  ;;  %v744_v3 = vpop.f32.mrf.mxu1 }
  0xe9   : > { %v745_v5 = vadd.f32 %v744_v3, %v725_v2 }
  0xea   : > { %v827_v4 = vadd.f32 %v762_v0, %v377_v62 }
  0xec   : > { %835 = vst [vmem:[#allocation2 + $0x8] sm:$0xff] %v827_v4 }
  0xee   : > { %v782_v9 = vpop.f32.mrf.mxu3 }
  0xef   : > { %v763_v7 = vpop.f32.mrf.mxu2 }
  0xf0   : > { %v764_v8 = vadd.f32 %v763_v7, %v745_v5  ;;  %v813_v13 = vpop.f32.mrf.mxu1 }
  0xf1   : > { %v794_v10 = vpop.f32.mrf.mxu0 }
  0xf2   : > { %v829_v11 = vadd.f32 %v764_v8, %v379_v6  ;;  %v795_v12 = vadd.f32 %v794_v10, %v775_v49 }
  0xf4   : > { %837 = vst [vmem:[#allocation2 + $0x28] sm:$0xff] %v829_v11  ;;  %v814_v15 = vadd.f32 %v813_v13, %v795_v12 }
  0xf6   : > { %v824_v16 = vadd.f32 %v814_v15, %v374_v14 }
  0xf7   : > { %v799_v17 = vpop.f32.mrf.mxu2 }
  0xf8   : > { %832 = vst [vmem:[#allocation2] sm:$0xff] %v824_v16  ;;  %v800_v18 = vadd.f32 %v799_v17, %v780_v1  ;;  %v818_v19 = vpop.f32.mrf.mxu3  ;;  %v815_v25 = vpop.f32.mrf.mxu1 }
  0xf9   : > { %v796_v21 = vpop.f32.mrf.mxu0 }
  0xfa   : > { %v819_v22 = vadd.f32 %v818_v19, %v800_v18  ;;  %v797_v23 = vadd.f32 %v796_v21, %v777_v56 }
  0xfc   : > { %v828_v26 = vadd.f32 %v819_v22, %v378_v20  ;;  %v816_v27 = vadd.f32 %v815_v25, %v797_v23 }
  0xfe   : > { %836 = vst [vmem:[#allocation2 + $0x20] sm:$0xff] %v828_v26  ;;  %v826_v28 = vadd.f32 %v816_v27, %v376_v24 }
  0xff   : > { %v801_v29 = vpop.f32.mrf.mxu2 }
 0x100   : > { %834 = vst [vmem:[#allocation2 + $0x10] sm:$0xff] %v826_v28  ;;  %v802_v30 = vadd.f32 %v801_v29, %v782_v9  ;;  %v820_v32 = vpop.f32.mrf.mxu3 }
 0x102   : > { %v821_v33 = vadd.f32 %v820_v32, %v802_v30  ;;  %842 = sbr.rel (%p1268_p11) target bundleno = 279 (0x117), region = 70 }
 0x104   : > { %v830_v34 = vadd.f32 %v821_v33, %v380_v31 }
 0x106   : > { %838 = vst [vmem:[#allocation2 + $0x38] sm:$0xff] %v830_v34 }
 0x107   : > { %v843_v35 = vld [vmem:[#allocation2 + $0x30] sm:$0xff]  ;;  %v844_v36 = vld [vmem:[#allocation2] sm:$0xff]  ;;  %v845_v41 = vld [vmem:[#allocation2 + $0x18] sm:$0xff] }
 0x108   : > { %v851_v37 = vld [vmem:[%s1661_s2] sm:$0x3]  ;;  %v846_v42 = vld [vmem:[#allocation2 + $0x10] sm:$0xff]  ;;  %v847_v45 = vld [vmem:[#allocation2 + $0x8] sm:$0xff] }
 0x109   : > { %v853_v38 = vperm.slane %v851_v37, 0  ;;  %v854_v39 = vperm.slane %v851_v37, 1  ;;  %v865_v40 = vld [vmem:[%s1662_s3] sm:$0x3]  ;;  %v849_v47 = vld [vmem:[#allocation2 + $0x28] sm:$0xff] }
 0x10a   : > { %v867_v43 = vperm.slane %v865_v40, 0  ;;  %v868_v44 = vperm.slane %v865_v40, 1  ;;  %v848_v46 = vld [vmem:[#allocation2 + $0x20] sm:$0xff] }
 0x10b   : > { %v857_v48 = vmul.f32 %v853_v38, %v843_v35  ;;  %v858_v49 = vmul.f32 %v854_v39, %v844_v36  ;;  %v859_v50 = vmul.f32 %v853_v38, %v845_v41  ;;  %v860_v51 = vmul.f32 %v854_v39, %v846_v42 }
 0x10c   : > { %v861_v53 = vmul.f32 %v853_v38, %v847_v45  ;;  %v862_v54 = vmul.f32 %v854_v39, %v848_v46  ;;  %v863_v55 = vmul.f32 %v853_v38, %v849_v47 }
 0x10d   : > { %v850_v52 = vld [vmem:[#allocation2 + $0x38] sm:$0xff]  ;;  %v871_v56 = vadd.f32 %v867_v43, %v857_v48  ;;  %v872_v59 = vadd.f32 %v868_v44, %v858_v49  ;;  %v873_v60 = vadd.f32 %v867_v43, %v859_v50  ;;  %v874_v57 = vadd.f32 %v868_v44, %v860_v51 }
 0x10e   : > { %v864_v58 = vmul.f32 %v854_v39, %v850_v52  ;;  %v875_v61 = vadd.f32 %v867_v43, %v861_v53  ;;  %v876_v62 = vadd.f32 %v868_v44, %v862_v54  ;;  %v877_v63 = vadd.f32 %v867_v43, %v863_v55 }
 0x10f   : > { %v879_v1 = vmax.f32 %v871_v56, 0.0  ;;  %v880_v2 = vmax.f32 %v872_v59, 0.0  ;;  %v881_v3 = vmax.f32 %v873_v60, 0.0  ;;  %v882_v4 = vmax.f32 %v874_v57, 0.0 }
 0x110   : > { %v878_v0 = vadd.f32 %v868_v44, %v864_v58  ;;  %v883_v5 = vmax.f32 %v875_v61, 0.0  ;;  %v884_v6 = vmax.f32 %v876_v62, 0.0  ;;  %v885_v7 = vmax.f32 %v877_v63, 0.0 }
 0x111   : > { %v887_v9 = vpack.c.bf16 %v880_v2, %v879_v1  ;;  %v888_v10 = vpack.c.bf16 %v882_v4, %v881_v3 }
 0x112   : > { %v886_v8 = vmax.f32 %v878_v0, 0.0  ;;  %v889_v11 = vpack.c.bf16 %v884_v6, %v883_v5 }
 0x113   : > { %891 = vst [vmem:[%s1663_s4] sm:$0xff] %v887_v9 }
 0x114   : > { %v890_v12 = vpack.c.bf16 %v886_v8, %v885_v7  ;;  %892 = vst [vmem:[%s1663_s4 + $0x8] sm:$0xff] %v888_v10 }
 0x115   : > { %893 = vst [vmem:[%s1663_s4 + $0x10] sm:$0xff] %v889_v11 }
 0x116   : > { %894 = vst [vmem:[%s1663_s4 + $0x18] sm:$0xff] %v890_v12 }
 0x117 PF: > { %s14_s19 = sadd.s32 1, %s1426_s19   ;;  %s1664_s15 = smov %s1414_s16 }
 0x118   : > { %p11_p12 = scmp.ge.s32.totalorder %s14_s19, 5   ;;  %s1665_s16 = smov %s1489_s23 }
 0x119   : > { %s1666_s17 = smov %s1422_s18  ;;  %s1667_s18 = smov %s1669_s20 }
 0x11a   :  { %13 = sbr.rel (!%p11_p12) target bundleno = 3 (0x3), region = 120 }

// kernel: forward.20
= control target key start
LH: loop header
LB: loop body
LE: loop exit
PB: predicated region body
PF: predicated region fallthrough
CT: control target
= control target key end

     0   :  { %s505_s1 = inlined_call_operand.vmem [shape: bf16[128,256], index: 1, kind: input, shape index: {}]   ;;  %s506_s0 = inlined_call_operand.vmem [shape: bf16[32,128], index: 0, kind: input, shape index: {}]   ;;  %s507_s2 = inlined_call_operand.vmem [shape: f32[1,256], index: 2, kind: input, shape index: {}]   ;;  %s508_s3 = inlined_call_operand.vmem [shape: f32[1,256], index: 3, kind: input, shape index: {}]   ;;  %s509_s4 = inlined_call_operand.vmem [shape: bf16[32,256], index: 4, kind: output, shape index: {}]  }
   0x1   :  { %v320_v0 = vld [vmem:[%s505_s1 + $0x70] sm:$0xf]  ;;  %v343_v1 = vld [vmem:[%s505_s1 + $0x74] sm:$0xf0]  ;;  %v342_v2 = vld [vmem:[%s505_s1 + $0x74] sm:$0xf] }
   0x2   :  { %v321_v3 = vor.u32 %v343_v1, %v320_v0  ;;  %v322_v4 = vld [vmem:[%s505_s1 + $0x78] sm:$0xf0]  ;;  %v312_v5 = vld [vmem:[%s505_s1 + $0x60] sm:$0xf]  ;;  %v341_v6 = vld [vmem:[%s505_s1 + $0x64] sm:$0xf0] }
   0x3   :  { %v325_v7 = vor.u32 %v342_v2, %v322_v4  ;;  %v340_v8 = vld [vmem:[%s505_s1 + $0x64] sm:$0xf]  ;;  %v314_v9 = vld [vmem:[%s505_s1 + $0x68] sm:$0xf0]  ;;  %v313_v10 = vor.u32 %v341_v6, %v312_v5  ;;  %v304_v12 = vld [vmem:[%s505_s1 + $0x50] sm:$0xf] }
   0x4   :  { %149 = vmatpush.bf16.msra.mxu0 %v321_v3  ;;  %344 = vmatpush.bf16.msra.mxu2 %v321_v3  ;;  %v317_v11 = vor.u32 %v340_v8, %v314_v9  ;;  %v339_v13 = vld [vmem:[%s505_s1 + $0x54] sm:$0xf0]  ;;  %v338_v14 = vld [vmem:[%s505_s1 + $0x54] sm:$0xf]  ;;  %v306_v15 = vld [vmem:[%s505_s1 + $0x58] sm:$0xf0] }
   0x5   :  { %168 = vmatpush.bf16.msra.mxu1 %v325_v7  ;;  %352 = vmatpush.bf16.msra.mxu3 %v325_v7  ;;  %v305_v16 = vor.u32 %v339_v13, %v304_v12  ;;  %v309_v17 = vor.u32 %v338_v14, %v306_v15  ;;  %v296_v18 = vld [vmem:[%s505_s1 + $0x40] sm:$0xf]  ;;  %v337_v19 = vld [vmem:[%s505_s1 + $0x44] sm:$0xf0]  ;;  %v336_v20 = vld [vmem:[%s505_s1 + $0x44] sm:$0xf] }
   0x6   :  { %v298_v21 = vld [vmem:[%s505_s1 + $0x48] sm:$0xf0]  ;;  %v297_v22 = vor.u32 %v337_v19, %v296_v18  ;;  %v288_v24 = vld [vmem:[%s505_s1 + $0x30] sm:$0xf]  ;;  %v335_v25 = vld [vmem:[%s505_s1 + $0x34] sm:$0xf0] }
   0x7   :  { %v301_v23 = vor.u32 %v336_v20, %v298_v21  ;;  %v334_v26 = vld [vmem:[%s505_s1 + $0x34] sm:$0xf]  ;;  %v290_v27 = vld [vmem:[%s505_s1 + $0x38] sm:$0xf0]  ;;  %v289_v28 = vor.u32 %v335_v25, %v288_v24  ;;  %v280_v30 = vld [vmem:[%s505_s1 + $0x20] sm:$0xf] }
   0x8   :  { %150 = vmatpush.bf16.msra.mxu0 %v313_v10  ;;  %345 = vmatpush.bf16.msra.mxu2 %v313_v10  ;;  %v293_v29 = vor.u32 %v334_v26, %v290_v27  ;;  %v333_v31 = vld [vmem:[%s505_s1 + $0x24] sm:$0xf0]  ;;  %v332_v32 = vld [vmem:[%s505_s1 + $0x24] sm:$0xf]  ;;  %v282_v33 = vld [vmem:[%s505_s1 + $0x28] sm:$0xf0] }
   0x9   :  { %169 = vmatpush.bf16.msra.mxu1 %v317_v11  ;;  %353 = vmatpush.bf16.msra.mxu3 %v317_v11  ;;  %v281_v34 = vor.u32 %v333_v31, %v280_v30  ;;  %v285_v35 = vor.u32 %v332_v32, %v282_v33  ;;  %v272_v36 = vld [vmem:[%s505_s1 + $0x10] sm:$0xf]  ;;  %v331_v37 = vld [vmem:[%s505_s1 + $0x14] sm:$0xf0]  ;;  %v330_v38 = vld [vmem:[%s505_s1 + $0x14] sm:$0xf] }
   0xa   :  { %v274_v39 = vld [vmem:[%s505_s1 + $0x18] sm:$0xf0]  ;;  %v273_v40 = vor.u32 %v331_v37, %v272_v36  ;;  %v264_v42 = vld [vmem:[%s505_s1] sm:$0xf]  ;;  %v329_v43 = vld [vmem:[%s505_s1 + $0x4] sm:$0xf0] }
   0xb   :  { %v277_v41 = vor.u32 %v330_v38, %v274_v39  ;;  %v328_v44 = vld [vmem:[%s505_s1 + $0x4] sm:$0xf]  ;;  %v266_v45 = vld [vmem:[%s505_s1 + $0x8] sm:$0xf0]  ;;  %v265_v46 = vor.u32 %v329_v43, %v264_v42  ;;  %v214_v50 = vld [vmem:[%s507_s2] sm:$0x3] }
   0xc   :  { %151 = vmatpush.bf16.msra.mxu0 %v305_v16  ;;  %346 = vmatpush.bf16.msra.mxu2 %v305_v16  ;;  %v269_v47 = vor.u32 %v328_v44, %v266_v45  ;;  %v326_v48 = vld [vmem:[%s506_s0] sm:$0xff]  ;;  %v327_v49 = vld [vmem:[%s506_s0 + $0x8] sm:$0xff]  ;;  %v216_v52 = vperm.slane %v214_v50, 0  ;;  %v217_v53 = vperm.slane %v214_v50, 1 }
   0xd   :  { %170 = vmatpush.bf16.msra.mxu1 %v309_v17  ;;  %354 = vmatpush.bf16.msra.mxu3 %v309_v17  ;;  %v228_v51 = vld [vmem:[%s508_s3] sm:$0x3] }
   0xe   :  { %v230_v54 = vperm.slane %v228_v51, 0  ;;  %v231_v56 = vperm.slane %v228_v51, 1 }
  0x10   :  { %152 = vmatpush.bf16.msra.mxu0 %v297_v22  ;;  %347 = vmatpush.bf16.msra.mxu2 %v297_v22 }
  0x11   :  { %171 = vmatpush.bf16.msra.mxu1 %v301_v23  ;;  %355 = vmatpush.bf16.msra.mxu3 %v301_v23 }
  0x14   :  { %153 = vmatpush.bf16.msra.mxu0 %v289_v28  ;;  %348 = vmatpush.bf16.msra.mxu2 %v289_v28 }
  0x15   :  { %172 = vmatpush.bf16.msra.mxu1 %v293_v29  ;;  %356 = vmatpush.bf16.msra.mxu3 %v293_v29 }
  0x18   :  { %154 = vmatpush.bf16.msra.mxu0 %v281_v34  ;;  %349 = vmatpush.bf16.msra.mxu2 %v281_v34 }
  0x19   :  { %173 = vmatpush.bf16.msra.mxu1 %v285_v35  ;;  %357 = vmatpush.bf16.msra.mxu3 %v285_v35 }
  0x1c   :  { %155 = vmatpush.bf16.msra.mxu0 %v273_v40  ;;  %350 = vmatpush.bf16.msra.mxu2 %v273_v40 }
  0x1d   :  { %174 = vmatpush.bf16.msra.mxu1 %v277_v41  ;;  %358 = vmatpush.bf16.msra.mxu3 %v277_v41 }
  0x20   :  { %156 = vmatpush.bf16.msra.mxu0 %v265_v46  ;;  %351 = vmatpush.bf16.msra.mxu2 %v265_v46 }
  0x21   :  { %175 = vmatpush.bf16.msra.mxu1 %v269_v47  ;;  %359 = vmatpush.bf16.msra.mxu3 %v269_v47 }
  0x23   :  { %157 = vmatmul.bf16.vlgmr.msra.gmra.mxu0 %v326_v48  ;;  %162 = vmatmul.bf16.vlgmr.msra.gmra.mxu2 %v327_v49 }
  0x24   :  { %176 = vmatmul.bf16.vlgmr.msra.gmra.mxu1 %v326_v48  ;;  %181 = vmatmul.bf16.vlgmr.msra.gmra.mxu3 %v327_v49 }
  0xa0   :  { %v158_v55 = vpop.f32.mrf.mxu0 }
  0xa1   :  { %v220_v57 = vmul.f32 %v216_v52, %v158_v55  ;;  %v177_v58 = vpop.f32.mrf.mxu1 }
  0xa2   :  { %v221_v59 = vmul.f32 %v217_v53, %v177_v58 }
  0xa3   :  { %v234_v60 = vadd.f32 %v230_v54, %v220_v57 }
  0xa4   :  { %v235_v61 = vadd.f32 %v231_v56, %v221_v59 }
  0xa6   :  { %v242_v62 = vpack.c.bf16 %v235_v61, %v234_v60  ;;  %v163_v63 = vpop.f32.mrf.mxu2 }
  0xa7   :  { %v224_v0 = vmul.f32 %v216_v52, %v163_v63  ;;  %v182_v1 = vpop.f32.mrf.mxu3 }
  0xa8   :  { %246 = vst [vmem:[%s509_s4] sm:$0xff] %v242_v62  ;;  %v225_v2 = vmul.f32 %v217_v53, %v182_v1  ;;  %v160_v3 = vpop.f32.mrf.mxu0 }
  0xa9   :  { %v238_v4 = vadd.f32 %v230_v54, %v224_v0  ;;  %v222_v5 = vmul.f32 %v216_v52, %v160_v3  ;;  %v179_v6 = vpop.f32.mrf.mxu1 }
  0xaa   :  { %v239_v7 = vadd.f32 %v231_v56, %v225_v2  ;;  %v223_v8 = vmul.f32 %v217_v53, %v179_v6 }
  0xab   :  { %v236_v9 = vadd.f32 %v230_v54, %v222_v5 }
  0xac   :  { %v244_v10 = vpack.c.bf16 %v239_v7, %v238_v4  ;;  %v237_v11 = vadd.f32 %v231_v56, %v223_v8 }
  0xae   :  { %248 = vst [vmem:[%s509_s4 + $0x10] sm:$0xff] %v244_v10  ;;  %v243_v12 = vpack.c.bf16 %v237_v11, %v236_v9  ;;  %v165_v13 = vpop.f32.mrf.mxu2 }
  0xaf   :  { %v226_v14 = vmul.f32 %v216_v52, %v165_v13  ;;  %v184_v15 = vpop.f32.mrf.mxu3 }
  0xb0   :  { %247 = vst [vmem:[%s509_s4 + $0x8] sm:$0xff] %v243_v12  ;;  %v227_v16 = vmul.f32 %v217_v53, %v184_v15 }
  0xb1   :  { %v240_v17 = vadd.f32 %v230_v54, %v226_v14 }
  0xb2   :  { %v241_v18 = vadd.f32 %v231_v56, %v227_v16 }
  0xb4   :  { %v245_v19 = vpack.c.bf16 %v241_v18, %v240_v17 }
  0xb6   :  { %249 = vst [vmem:[%s509_s4 + $0x18] sm:$0xff] %v245_v19 }

// kernel: forward.21
= control target key start
LH: loop header
LB: loop body
LE: loop exit
PB: predicated region body
PF: predicated region fallthrough
CT: control target
= control target key end

     0   :  { %s1569_s18 = smov 0   ;;  %s1571_s19 = smov 0   ;;  %s1786_s0 = inlined_call_operand.vmem [shape: bf16[32,2304], index: 0, kind: input, shape index: {}]   ;;  %s1787_s1 = inlined_call_operand.vmem [shape: bf16[2304,256], index: 1, kind: input, shape index: {}]   ;;  %s1788_s2 = inlined_call_operand.vmem [shape: f32[1,256], index: 2, kind: input, shape index: {}]   ;;  %s1789_s3 = inlined_call_operand.vmem [shape: f32[1,256], index: 3, kind: input, shape index: {}]   ;;  %s1790_s4 = inlined_call_operand.vmem [shape: bf16[32,256], index: 4, kind: input, shape index: {}]   ;;  %s1791_s5 = inlined_call_operand.vmem [shape: bf16[32,256], index: 5, kind: output, shape index: {}]  }
   0x1   :  { %s1573_s20 = smov 0   ;;  %s1575_s21 = smov 0  }
   0x2   :  { %s1577_s22 = smov 0  }
   0x3 LB: > { %s27_s23 = sadd.s32 1, %s1532_s21  ;;  %p50_p1 = scmp.ne.s32.totalorder %s1524_s19, %s1520_s18  ;;  %s1536_s22 = sphi %s1577_s22, %s15_s22   ;;  %s1532_s21 = sphi %s1575_s21, %s1795_s21   ;;  %s1528_s20 = sphi %s1573_s20, %s1794_s20   ;;  %s1524_s19 = sphi %s1571_s19, %s1793_s19   ;;  %s1520_s18 = sphi %s1569_s18, %s1792_s18  }
   0x4   : > { %p28_p0 = scmp.ge.s32.totalorder %s27_s23, 6  ;;  %p51_p2 = scmp.eq.s32.totalorder %s1536_s22, 0 }
   0x5   : > { %s43_s25 = sadd.s32 1, %s1524_s19  ;;  %p1148_p5 = scmp.ge.s32.totalorder %s1536_s22, 6 }
   0x6   : > { %s1797_s23 = smov (%p28_p0, %s27_s23), 0  ;;  %p52_p3 = por %p51_p2, %p50_p1 }
   0x7   : > { %s39_s24 = ssub.s32 %s1532_s21, %s1797_s23  ;;  %243 = sbr.rel (%p1148_p5) target bundleno = 25 (0x19), region = 28 }
   0x8   : > { %p41_p4 = scmp.eq.s32.totalorder %s39_s24, 0 }
   0xa   : > { %s1604_s26 = scalar_select %p41_p4, %s1524_s19, %s43_s25  }
   0xc   : > { %246 = sbr.rel (!%p52_p3) target bundleno = 25 (0x19), region = 32  ;;  %s248_s27 = sand.u32 (%p52_p3), 1, %s1524_s19  }
   0xd   : > { %s1383_s28 = smul.u32 (%p52_p3), 12, %s1532_s21 }
   0xe   : > { %s1455_s29 = smul.u32 (%p52_p3), 48, %s248_s27 }
   0xf   : > { %s256_s7 = scalar_lea.vmem (%p52_p3), %s1786_s0, %s1383_s28 }
  0x10   : > { %v271_v0 = vld [vmem:[%s256_s7] sm:$0xff] (%p52_p3)  ;;  %v273_v1 = vld [vmem:[%s256_s7 + $0x48] sm:$0xff] (%p52_p3)  ;;  %v275_v2 = vld [vmem:[%s256_s7 + $0x90] sm:$0xff] (%p52_p3)  ;;  %s250_s8 = scalar_lea.vmem (%p52_p3), [#allocation3], %s1455_s29 }
  0x11   : > { %272 = vst [vmem:[%s250_s8] sm:$0xff] %v271_v0  ;;  %v277_v3 = vld [vmem:[%s256_s7 + $0xd8] sm:$0xff]  ;;  %v1150_v4 = vld [vmem:[%s256_s7 + $0x8] sm:$0xf]  ;;  %v1152_v5 = vld [vmem:[%s256_s7 + $0x50] sm:$0xf] }
  0x12   : > { %274 = vst [vmem:[%s250_s8 + $0xc] sm:$0xff] %v273_v1  ;;  %v1154_v6 = vld [vmem:[%s256_s7 + $0x98] sm:$0xf]  ;;  %v1156_v7 = vld [vmem:[%s256_s7 + $0xe0] sm:$0xf] }
  0x13   : > { %276 = vst [vmem:[%s250_s8 + $0x18] sm:$0xff] %v275_v2 }
  0x14   : > { %278 = vst [vmem:[%s250_s8 + $0x24] sm:$0xff] %v277_v3 }
  0x15   : > { %1151 = vst [vmem:[%s250_s8 + $0x8] sm:$0xf] %v1150_v4 }
  0x16   : > { %1153 = vst [vmem:[%s250_s8 + $0x14] sm:$0xf] %v1152_v5 }
  0x17   : > { %1155 = vst [vmem:[%s250_s8 + $0x20] sm:$0xf] %v1154_v6 }
  0x18   : > { %1157 = vst [vmem:[%s250_s8 + $0x2c] sm:$0xf] %v1156_v7 }
  0x19 PF: > { %p1158_p6 = scmp.ge.s32.totalorder %s1536_s22, 1  ;;  %p314_p7 = scmp.lt.s32.totalorder %s1536_s22, 7 }
  0x1b   : > { %p315_p8 = pnand %p1158_p6, %p314_p7 }
  0x1c   : > { %s321_s9 = sand.u32 (!%p315_p8), 1, %s1520_s18   ;;  %s383_s10 = smul.u32 (!%p315_p8), 48, %s1528_s20 }
  0x1d   : > { %318 = sbr.rel (%p315_p8) target bundleno = 282 (0x11a), region = 62  ;;  %p1161_p10 = scmp.ne.s32.totalorder (!%p315_p8), %s1528_s20, 0 }
  0x1e   : > { %s1456_s11 = smul.u32 (!%p315_p8), 48, %s321_s9  ;;  %p385_p9 = scmp.lt.s32.totalorder (!%p315_p8), %s383_s10, 287 }
  0x20   : > { %s1621_s16 = scalar_lea.vmem (!%p315_p8), [#allocation3], %s1456_s11 }
  0x22   : > { %s1799_s10 = smov (!%p385_p9, %s383_s10), 287  ;;  %432 = sbr.rel (%p1161_p10) target bundleno = 48 (0x30), region = 70 }
  0x23   : > { %s1384_s12 = sshll.u32 %s1799_s10, 3 }
  0x24   : > { %s1619_s15 = scalar_lea.vmem %s1787_s1, %s1384_s12 }
  0x27   : > { %v1538_v8 = vmov 0.0  }
  0x28   : > { %433 = vst [vmem:[#allocation2 + $0x30] sm:$0xff] %v1538_v8 }
  0x29   : > { %434 = vst [vmem:[#allocation2] sm:$0xff] %v1538_v8 }
  0x2a   : > { %435 = vst [vmem:[#allocation2 + $0x18] sm:$0xff] %v1538_v8 }
  0x2b   : > { %436 = vst [vmem:[#allocation2 + $0x10] sm:$0xff] %v1538_v8 }
  0x2c   : > { %437 = vst [vmem:[#allocation2 + $0x8] sm:$0xff] %v1538_v8 }
  0x2d   : > { %438 = vst [vmem:[#allocation2 + $0x20] sm:$0xff] %v1538_v8 }
  0x2e   : > { %439 = vst [vmem:[#allocation2 + $0x28] sm:$0xff] %v1538_v8 }
  0x2f   : > { %440 = vst [vmem:[#allocation2 + $0x38] sm:$0xff] %v1538_v8 }
  0x30 PF: > { %v1244_v9 = vld [vmem:[%s1619_s15 + $0x70] sm:$0xf]  ;;  %v1406_v10 = vld [vmem:[%s1619_s15 + $0x74] sm:$0xf0]  ;;  %v1405_v18 = vld [vmem:[%s1619_s15 + $0x74] sm:$0xf] }
  0x31   : > { %v1308_v11 = vld [vmem:[%s1619_s15 + $0xf0] sm:$0xf]  ;;  %v1245_v12 = vor.u32 %v1406_v10, %v1244_v9  ;;  %v1422_v13 = vld [vmem:[%s1619_s15 + $0xf4] sm:$0xf0]  ;;  %v1246_v19 = vld [vmem:[%s1619_s15 + $0x78] sm:$0xf0] }
  0x32   : > { %v1372_v14 = vld [vmem:[%s1619_s15 + $0x170] sm:$0xf]  ;;  %v1438_v15 = vld [vmem:[%s1619_s15 + $0x174] sm:$0xf0]  ;;  %v1309_v16 = vor.u32 %v1422_v13, %v1308_v11  ;;  %v1236_v20 = vld [vmem:[%s1619_s15 + $0x60] sm:$0xf]  ;;  %v1249_v21 = vor.u32 %v1405_v18, %v1246_v19 }
  0x33   : > { %v1373_v17 = vor.u32 %v1438_v15, %v1372_v14  ;;  %777 = vmatpush.bf16.msra.mxu0 %v1245_v12  ;;  %v1404_v22 = vld [vmem:[%s1619_s15 + $0x64] sm:$0xf0]  ;;  %v1300_v23 = vld [vmem:[%s1619_s15 + $0xe0] sm:$0xf]  ;;  %v1403_v29 = vld [vmem:[%s1619_s15 + $0x64] sm:$0xf] }
  0x34   : > { %v1420_v24 = vld [vmem:[%s1619_s15 + $0xe4] sm:$0xf0]  ;;  %796 = vmatpush.bf16.msra.mxu1 %v1309_v16  ;;  %v1237_v25 = vor.u32 %v1404_v22, %v1236_v20  ;;  %v1364_v27 = vld [vmem:[%s1619_s15 + $0x160] sm:$0xf]  ;;  %834 = vmatpush.bf16.msra.mxu3 %v1249_v21  ;;  %v1238_v31 = vld [vmem:[%s1619_s15 + $0x68] sm:$0xf0] }
  0x35   : > { %815 = vmatpush.bf16.msra.mxu2 %v1373_v17  ;;  %v1301_v26 = vor.u32 %v1420_v24, %v1300_v23  ;;  %v1436_v28 = vld [vmem:[%s1619_s15 + $0x164] sm:$0xf0]  ;;  %v1228_v32 = vld [vmem:[%s1619_s15 + $0x50] sm:$0xf]  ;;  %v1402_v33 = vld [vmem:[%s1619_s15 + $0x54] sm:$0xf0]  ;;  %v1241_v34 = vor.u32 %v1403_v29, %v1238_v31 }
  0x36   : > { %v1365_v30 = vor.u32 %v1436_v28, %v1364_v27  ;;  %v1292_v35 = vld [vmem:[%s1619_s15 + $0xd0] sm:$0xf]  ;;  %v1418_v36 = vld [vmem:[%s1619_s15 + $0xd4] sm:$0xf0]  ;;  %v1229_v38 = vor.u32 %v1402_v33, %v1228_v32  ;;  %v1401_v40 = vld [vmem:[%s1619_s15 + $0x54] sm:$0xf] }
  0x37   : > { %v1356_v37 = vld [vmem:[%s1619_s15 + $0x150] sm:$0xf]  ;;  %778 = vmatpush.bf16.msra.mxu0 %v1237_v25  ;;  %v1434_v39 = vld [vmem:[%s1619_s15 + $0x154] sm:$0xf0]  ;;  %v1230_v41 = vld [vmem:[%s1619_s15 + $0x58] sm:$0xf0]  ;;  %v1293_v42 = vor.u32 %v1418_v36, %v1292_v35 }
  0x38   : > { %797 = vmatpush.bf16.msra.mxu1 %v1301_v26  ;;  %v1357_v43 = vor.u32 %v1434_v39, %v1356_v37  ;;  %v1220_v44 = vld [vmem:[%s1619_s15 + $0x40] sm:$0xf]  ;;  %v1400_v45 = vld [vmem:[%s1619_s15 + $0x44] sm:$0xf0]  ;;  %835 = vmatpush.bf16.msra.mxu3 %v1241_v34  ;;  %v1233_v47 = vor.u32 %v1401_v40, %v1230_v41  ;;  %v1399_v51 = vld [vmem:[%s1619_s15 + $0x44] sm:$0xf] }
  0x39   : > { %816 = vmatpush.bf16.msra.mxu2 %v1365_v30  ;;  %v1284_v46 = vld [vmem:[%s1619_s15 + $0xc0] sm:$0xf]  ;;  %v1416_v48 = vld [vmem:[%s1619_s15 + $0xc4] sm:$0xf0]  ;;  %v1222_v52 = vld [vmem:[%s1619_s15 + $0x48] sm:$0xf0]  ;;  %v1221_v53 = vor.u32 %v1400_v45, %v1220_v44 }
  0x3a   : > { %v1348_v49 = vld [vmem:[%s1619_s15 + $0x140] sm:$0xf]  ;;  %v1432_v50 = vld [vmem:[%s1619_s15 + $0x144] sm:$0xf0]  ;;  %v1285_v54 = vor.u32 %v1416_v48, %v1284_v46  ;;  %v1212_v56 = vld [vmem:[%s1619_s15 + $0x30] sm:$0xf]  ;;  %v1225_v59 = vor.u32 %v1399_v51, %v1222_v52 }
  0x3b   : > { %779 = vmatpush.bf16.msra.mxu0 %v1229_v38  ;;  %v1349_v55 = vor.u32 %v1432_v50, %v1348_v49  ;;  %v1398_v57 = vld [vmem:[%s1619_s15 + $0x34] sm:$0xf0]  ;;  %v1276_v58 = vld [vmem:[%s1619_s15 + $0xb0] sm:$0xf]  ;;  %v1397_v63 = vld [vmem:[%s1619_s15 + $0x34] sm:$0xf] }
  0x3c   : > { %798 = vmatpush.bf16.msra.mxu1 %v1293_v42  ;;  %836 = vmatpush.bf16.msra.mxu3 %v1233_v47  ;;  %v1414_v60 = vld [vmem:[%s1619_s15 + $0xb4] sm:$0xf0]  ;;  %v1340_v61 = vld [vmem:[%s1619_s15 + $0x130] sm:$0xf]  ;;  %v1214_v0 = vld [vmem:[%s1619_s15 + $0x38] sm:$0xf0]  ;;  %v1213_v1 = vor.u32 %v1398_v57, %v1212_v56 }
  0x3d   : > { %817 = vmatpush.bf16.msra.mxu2 %v1357_v43  ;;  %v1430_v62 = vld [vmem:[%s1619_s15 + $0x134] sm:$0xf0]  ;;  %v1277_v2 = vor.u32 %v1414_v60, %v1276_v58  ;;  %v1204_v4 = vld [vmem:[%s1619_s15 + $0x20] sm:$0xf]  ;;  %v1396_v5 = vld [vmem:[%s1619_s15 + $0x24] sm:$0xf0]  ;;  %v1217_v7 = vor.u32 %v1397_v63, %v1214_v0 }
  0x3e   : > { %v1341_v3 = vor.u32 %v1430_v62, %v1340_v61  ;;  %v1268_v6 = vld [vmem:[%s1619_s15 + $0xa0] sm:$0xf]  ;;  %v1412_v8 = vld [vmem:[%s1619_s15 + $0xa4] sm:$0xf0]  ;;  %v1395_v11 = vld [vmem:[%s1619_s15 + $0x24] sm:$0xf]  ;;  %v1205_v13 = vor.u32 %v1396_v5, %v1204_v4 }
  0x3f   : > { %780 = vmatpush.bf16.msra.mxu0 %v1221_v53  ;;  %v1332_v9 = vld [vmem:[%s1619_s15 + $0x120] sm:$0xf]  ;;  %v1428_v10 = vld [vmem:[%s1619_s15 + $0x124] sm:$0xf0]  ;;  %v1206_v12 = vld [vmem:[%s1619_s15 + $0x28] sm:$0xf0]  ;;  %v1269_v14 = vor.u32 %v1412_v8, %v1268_v6 }
  0x40   : > { %799 = vmatpush.bf16.msra.mxu1 %v1285_v54  ;;  %837 = vmatpush.bf16.msra.mxu3 %v1225_v59  ;;  %v1333_v15 = vor.u32 %v1428_v10, %v1332_v9  ;;  %v1196_v16 = vld [vmem:[%s1619_s15 + $0x10] sm:$0xf]  ;;  %v1394_v17 = vld [vmem:[%s1619_s15 + $0x14] sm:$0xf0]  ;;  %v1209_v19 = vor.u32 %v1395_v11, %v1206_v12  ;;  %v1393_v23 = vld [vmem:[%s1619_s15 + $0x14] sm:$0xf] }
  0x41   : > { %818 = vmatpush.bf16.msra.mxu2 %v1349_v55  ;;  %v1260_v18 = vld [vmem:[%s1619_s15 + $0x90] sm:$0xf]  ;;  %v1410_v20 = vld [vmem:[%s1619_s15 + $0x94] sm:$0xf0]  ;;  %v1198_v24 = vld [vmem:[%s1619_s15 + $0x18] sm:$0xf0]  ;;  %v1197_v25 = vor.u32 %v1394_v17, %v1196_v16 }
  0x42   : > { %v1324_v21 = vld [vmem:[%s1619_s15 + $0x110] sm:$0xf]  ;;  %v1426_v22 = vld [vmem:[%s1619_s15 + $0x114] sm:$0xf0]  ;;  %v1188_v26 = vld [vmem:[%s1619_s15] sm:$0xf]  ;;  %v1261_v29 = vor.u32 %v1410_v20, %v1260_v18  ;;  %v1201_v34 = vor.u32 %v1393_v23, %v1198_v24 }
  0x43   : > { %781 = vmatpush.bf16.msra.mxu0 %v1213_v1  ;;  %v1392_v27 = vld [vmem:[%s1619_s15 + $0x4] sm:$0xf0]  ;;  %v1252_v28 = vld [vmem:[%s1619_s15 + $0x80] sm:$0xf]  ;;  %v1325_v30 = vor.u32 %v1426_v22, %v1324_v21  ;;  %v1391_v35 = vld [vmem:[%s1619_s15 + $0x4] sm:$0xf] }
  0x44   : > { %800 = vmatpush.bf16.msra.mxu1 %v1277_v2  ;;  %838 = vmatpush.bf16.msra.mxu3 %v1217_v7  ;;  %v1408_v31 = vld [vmem:[%s1619_s15 + $0x84] sm:$0xf0]  ;;  %v1316_v32 = vld [vmem:[%s1619_s15 + $0x100] sm:$0xf]  ;;  %v1190_v36 = vld [vmem:[%s1619_s15 + $0x8] sm:$0xf0]  ;;  %v1189_v41 = vor.u32 %v1392_v27, %v1188_v26 }
  0x45   : > { %819 = vmatpush.bf16.msra.mxu2 %v1341_v3  ;;  %v1424_v33 = vld [vmem:[%s1619_s15 + $0x104] sm:$0xf0]  ;;  %v1164_v37 = vld [vmem:[%s1621_s16] sm:$0xf]  ;;  %v1386_v38 = vld [vmem:[%s1621_s16 + $0x8] sm:$0xf0]  ;;  %v1253_v45 = vor.u32 %v1408_v31, %v1252_v28  ;;  %v1193_v50 = vor.u32 %v1391_v35, %v1190_v36 }
  0x46   : > { %v1421_v39 = vld [vmem:[%s1619_s15 + $0xf4] sm:$0xf]  ;;  %v1310_v40 = vld [vmem:[%s1619_s15 + $0xf8] sm:$0xf0]  ;;  %v1317_v46 = vor.u32 %v1424_v33, %v1316_v32  ;;  %v1166_v47 = vld [vmem:[%s1621_s16 + $0xc] sm:$0xf0]  ;;  %v1165_v52 = vor.u32 %v1386_v38, %v1164_v37 }
  0x47   : > { %782 = vmatpush.bf16.msra.mxu0 %v1205_v13  ;;  %v1385_v42 = vld [vmem:[%s1621_s16 + $0x4] sm:$0xf]  ;;  %v1374_v44 = vld [vmem:[%s1619_s15 + $0x178] sm:$0xf0]  ;;  %v1172_v48 = vld [vmem:[%s1621_s16 + $0x8] sm:$0xf]  ;;  %v1313_v51 = vor.u32 %v1421_v39, %v1310_v40 }
  0x48   : > { %801 = vmatpush.bf16.msra.mxu1 %v1269_v14  ;;  %839 = vmatpush.bf16.msra.mxu3 %v1209_v19  ;;  %v1437_v43 = vld [vmem:[%s1619_s15 + $0x174] sm:$0xf]  ;;  %v1419_v54 = vld [vmem:[%s1619_s15 + $0xe4] sm:$0xf]  ;;  %v1302_v55 = vld [vmem:[%s1619_s15 + $0xe8] sm:$0xf0]  ;;  %v1700_v56 = vor.u32 %v1385_v42, %v1166_v47 }
  0x49   : > { %820 = vmatpush.bf16.msra.mxu2 %v1333_v15  ;;  %v1387_v49 = vld [vmem:[%s1621_s16 + $0x10] sm:$0xf0]  ;;  %v1377_v53 = vor.u32 %v1437_v43, %v1374_v44  ;;  %v1366_v59 = vld [vmem:[%s1619_s15 + $0x168] sm:$0xf0]  ;;  %v1305_v60 = vor.u32 %v1419_v54, %v1302_v55  ;;  %v1294_v63 = vld [vmem:[%s1619_s15 + $0xd8] sm:$0xf0] }
  0x4a   : > { %v1702_v57 = vor.u32 %v1387_v49, %v1172_v48  ;;  %v1435_v58 = vld [vmem:[%s1619_s15 + $0x164] sm:$0xf]  ;;  %v1417_v62 = vld [vmem:[%s1619_s15 + $0xd4] sm:$0xf]  ;;  %v1358_v1 = vld [vmem:[%s1619_s15 + $0x158] sm:$0xf0] }
  0x4b   : > { %783 = vmatpush.bf16.msra.mxu0 %v1197_v25  ;;  %v1369_v61 = vor.u32 %v1435_v58, %v1366_v59  ;;  %v1433_v0 = vld [vmem:[%s1619_s15 + $0x154] sm:$0xf]  ;;  %v1297_v2 = vor.u32 %v1417_v62, %v1294_v63  ;;  %v1415_v4 = vld [vmem:[%s1619_s15 + $0xc4] sm:$0xf]  ;;  %v1286_v5 = vld [vmem:[%s1619_s15 + $0xc8] sm:$0xf0] }
  0x4c   : > { %802 = vmatpush.bf16.msra.mxu1 %v1261_v29  ;;  %840 = vmatpush.bf16.msra.mxu3 %v1201_v34  ;;  %v1361_v3 = vor.u32 %v1433_v0, %v1358_v1  ;;  %v1431_v6 = vld [vmem:[%s1619_s15 + $0x144] sm:$0xf]  ;;  %v1350_v7 = vld [vmem:[%s1619_s15 + $0x148] sm:$0xf0]  ;;  %v1289_v8 = vor.u32 %v1415_v4, %v1286_v5  ;;  %v1176_v9 = vld [vmem:[%s1621_s16 + $0x18] sm:$0xf] }
  0x4d   : > { %821 = vmatpush.bf16.msra.mxu2 %v1325_v30  ;;  %v1353_v10 = vor.u32 %v1431_v6, %v1350_v7  ;;  %v1389_v11 = vld [vmem:[%s1621_s16 + $0x20] sm:$0xf0]  ;;  %v1278_v13 = vld [vmem:[%s1619_s15 + $0xb8] sm:$0xf0]  ;;  %v1178_v17 = vld [vmem:[%s1621_s16 + $0x24] sm:$0xf0] }
  0x4e   : > { %v1413_v12 = vld [vmem:[%s1619_s15 + $0xb4] sm:$0xf]  ;;  %v1388_v14 = vld [vmem:[%s1621_s16 + $0x1c] sm:$0xf]  ;;  %v1184_v18 = vld [vmem:[%s1621_s16 + $0x20] sm:$0xf]  ;;  %v1177_v21 = vor.u32 %v1389_v11, %v1176_v9 }
  0x4f   : > { %784 = vmatpush.bf16.msra.mxu0 %v1189_v41  ;;  %v1429_v15 = vld [vmem:[%s1619_s15 + $0x134] sm:$0xf]  ;;  %v1342_v16 = vld [vmem:[%s1619_s15 + $0x138] sm:$0xf0]  ;;  %v1281_v20 = vor.u32 %v1413_v12, %v1278_v13  ;;  %v1411_v23 = vld [vmem:[%s1619_s15 + $0xa4] sm:$0xf]  ;;  %v1181_v25 = vor.u32 %v1388_v14, %v1178_v17 }
  0x50   : > { %803 = vmatpush.bf16.msra.mxu1 %v1253_v45  ;;  %841 = vmatpush.bf16.msra.mxu3 %v1193_v50  ;;  %v1390_v19 = vld [vmem:[%s1621_s16 + $0x28] sm:$0xf0]  ;;  %v1345_v22 = vor.u32 %v1429_v15, %v1342_v16  ;;  %v1427_v27 = vld [vmem:[%s1619_s15 + $0x124] sm:$0xf]  ;;  %v1409_v31 = vld [vmem:[%s1619_s15 + $0x94] sm:$0xf] }
  0x51   : > { %822 = vmatpush.bf16.msra.mxu2 %v1317_v46  ;;  %v1270_v24 = vld [vmem:[%s1619_s15 + $0xa8] sm:$0xf0]  ;;  %v1185_v26 = vor.u32 %v1390_v19, %v1184_v18  ;;  %v1262_v32 = vld [vmem:[%s1619_s15 + $0x98] sm:$0xf0]  ;;  %v1425_v33 = vld [vmem:[%s1619_s15 + $0x114] sm:$0xf] }
  0x52   : > { %785 = vmatmul.bf16.vlgmr.msra.gmra.mxu0 %v1165_v52  ;;  %v1334_v28 = vld [vmem:[%s1619_s15 + $0x128] sm:$0xf0]  ;;  %v1273_v29 = vor.u32 %v1411_v23, %v1270_v24  ;;  %v1326_v34 = vld [vmem:[%s1619_s15 + $0x118] sm:$0xf0]  ;;  %v1265_v35 = vor.u32 %v1409_v31, %v1262_v32  ;;  %v1407_v37 = vld [vmem:[%s1619_s15 + $0x84] sm:$0xf] }
  0x53   : > { %804 = vmatmul.bf16.vlgmr.msra.gmra.mxu1 %v1700_v56  ;;  %842 = vmatmul.bf16.vlgmr.msra.gmra.mxu3 %v1165_v52  ;;  %v1337_v30 = vor.u32 %v1427_v27, %v1334_v28  ;;  %v1329_v36 = vor.u32 %v1425_v33, %v1326_v34  ;;  %v1254_v38 = vld [vmem:[%s1619_s15 + $0x88] sm:$0xf0]  ;;  %v1423_v39 = vld [vmem:[%s1619_s15 + $0x104] sm:$0xf]  ;;  %v441_v46 = vld [vmem:[#allocation2 + $0x30] sm:$0xff]  ;;  %p1378_p11 = scmp.ne.s32.totalorder %s1528_s20, 5 }
  0x54   : > { %872 = vmatpush.bf16.msrb.mxu1 %v1377_v53  ;;  %823 = vmatmul.bf16.vlgmr.msra.gmra.mxu2 %v1702_v57  ;;  %v1318_v40 = vld [vmem:[%s1619_s15 + $0x108] sm:$0xf0]  ;;  %v1257_v41 = vor.u32 %v1407_v37, %v1254_v38  ;;  %v443_v54 = vld [vmem:[#allocation2 + $0x18] sm:$0xff]  ;;  %v442_v14 = vld [vmem:[#allocation2] sm:$0xff] }
  0x55   : > { %1439 = vmatpush.bf16.msrb.mxu2 %v1313_v51  ;;  %853 = vmatpush.bf16.msrb.mxu0 %v1313_v51  ;;  %v1321_v42 = vor.u32 %v1423_v39, %v1318_v40  ;;  %v445_v62 = vld [vmem:[#allocation2 + $0x8] sm:$0xff]  ;;  %v444_v24 = vld [vmem:[#allocation2 + $0x10] sm:$0xff]  ;;  %v448_v31 = vld [vmem:[#allocation2 + $0x38] sm:$0xff] }
  0x56   : > { %1447 = vmatpush.bf16.msrb.mxu3 %v1377_v53  ;;  %v447_v6 = vld [vmem:[#allocation2 + $0x28] sm:$0xff] }
  0x58   : > { %873 = vmatpush.bf16.msrb.mxu1 %v1369_v61 }
  0x59   : > { %1440 = vmatpush.bf16.msrb.mxu2 %v1305_v60  ;;  %854 = vmatpush.bf16.msrb.mxu0 %v1305_v60 }
  0x5a   : > { %1448 = vmatpush.bf16.msrb.mxu3 %v1369_v61 }
  0x5c   : > { %874 = vmatpush.bf16.msrb.mxu1 %v1361_v3 }
  0x5d   : > { %1441 = vmatpush.bf16.msrb.mxu2 %v1297_v2  ;;  %855 = vmatpush.bf16.msrb.mxu0 %v1297_v2 }
  0x5e   : > { %1449 = vmatpush.bf16.msrb.mxu3 %v1361_v3 }
  0x60   : > { %875 = vmatpush.bf16.msrb.mxu1 %v1353_v10 }
  0x61   : > { %1442 = vmatpush.bf16.msrb.mxu2 %v1289_v8  ;;  %856 = vmatpush.bf16.msrb.mxu0 %v1289_v8 }
  0x62   : > { %1450 = vmatpush.bf16.msrb.mxu3 %v1353_v10  ;;  %790 = vmatmul.bf16.gmra.mxu0 %v1177_v21 }
  0x63   : > { %809 = vmatmul.bf16.gmra.mxu1 %v1181_v25  ;;  %847 = vmatmul.bf16.gmra.mxu3 %v1177_v21 }
  0x64   : > { %876 = vmatpush.bf16.msrb.mxu1 %v1345_v22  ;;  %828 = vmatmul.bf16.gmra.mxu2 %v1185_v26 }
  0x65   : > { %1443 = vmatpush.bf16.msrb.mxu2 %v1281_v20  ;;  %857 = vmatpush.bf16.msrb.mxu0 %v1281_v20  ;;  %v446_v20 = vld [vmem:[#allocation2 + $0x20] sm:$0xff] }
  0x66   : > { %1451 = vmatpush.bf16.msrb.mxu3 %v1345_v22 }
  0x68   : > { %877 = vmatpush.bf16.msrb.mxu1 %v1337_v30 }
  0x69   : > { %1444 = vmatpush.bf16.msrb.mxu2 %v1273_v29  ;;  %858 = vmatpush.bf16.msrb.mxu0 %v1273_v29 }
  0x6a   : > { %1452 = vmatpush.bf16.msrb.mxu3 %v1337_v30 }
  0x6c   : > { %878 = vmatpush.bf16.msrb.mxu1 %v1329_v36 }
  0x6d   : > { %1445 = vmatpush.bf16.msrb.mxu2 %v1265_v35  ;;  %859 = vmatpush.bf16.msrb.mxu0 %v1265_v35 }
  0x6e   : > { %1453 = vmatpush.bf16.msrb.mxu3 %v1329_v36 }
  0x70   : > { %879 = vmatpush.bf16.msrb.mxu1 %v1321_v42 }
  0x71   : > { %1446 = vmatpush.bf16.msrb.mxu2 %v1257_v41  ;;  %860 = vmatpush.bf16.msrb.mxu0 %v1257_v41 }
  0x72   : > { %1454 = vmatpush.bf16.msrb.mxu3 %v1321_v42 }
  0x73   : > { %880 = vmatmul.bf16.vlgmr.msrb.gmra.mxu1 %v1702_v57 }
  0x74   : > { %861 = vmatmul.bf16.vlgmr.msrb.gmra.mxu0 %v1700_v56  ;;  %866 = vmatmul.bf16.vlgmr.msrb.gmra.mxu2 %v1181_v25 }
  0x75   : > { %885 = vmatmul.bf16.vlgmr.msrb.gmra.mxu3 %v1185_v26 }
  0xcf   : > { %v786_v43 = vpop.f32.mrf.mxu0 }
  0xd0   : > { %v805_v44 = vpop.f32.mrf.mxu1 }
  0xd1   : > { %v806_v45 = vadd.f32 %v805_v44, %v786_v43 }
  0xd6   : > { %v843_v49 = vpop.f32.mrf.mxu3 }
  0xd7   : > { %v824_v47 = vpop.f32.mrf.mxu2  ;;  %v788_v50 = vpop.f32.mrf.mxu0 }
  0xd8   : > { %v825_v48 = vadd.f32 %v824_v47, %v806_v45  ;;  %v807_v51 = vpop.f32.mrf.mxu1 }
  0xd9   : > { %v808_v53 = vadd.f32 %v807_v51, %v788_v50 }
  0xda   : > { %v891_v52 = vadd.f32 %v825_v48, %v441_v46 }
  0xdc   : > { %899 = vst [vmem:[#allocation2 + $0x30] sm:$0xff] %v891_v52 }
  0xde   : > { %v845_v56 = vpop.f32.mrf.mxu3 }
  0xdf   : > { %v826_v55 = vpop.f32.mrf.mxu2  ;;  %v791_v59 = vpop.f32.mrf.mxu0 }
  0xe0   : > { %v827_v58 = vadd.f32 %v826_v55, %v808_v53  ;;  %v810_v60 = vpop.f32.mrf.mxu1 }
  0xe1   : > { %v811_v61 = vadd.f32 %v810_v60, %v791_v59 }
  0xe2   : > { %v893_v57 = vadd.f32 %v827_v58, %v443_v54 }
  0xe4   : > { %901 = vst [vmem:[#allocation2 + $0x18] sm:$0xff] %v893_v57 }
  0xe6   : > { %v848_v1 = vpop.f32.mrf.mxu3 }
  0xe7   : > { %v829_v63 = vpop.f32.mrf.mxu2  ;;  %v793_v2 = vpop.f32.mrf.mxu0 }
  0xe8   : > { %v830_v0 = vadd.f32 %v829_v63, %v811_v61  ;;  %v812_v3 = vpop.f32.mrf.mxu1 }
  0xe9   : > { %v813_v5 = vadd.f32 %v812_v3, %v793_v2 }
  0xea   : > { %v895_v4 = vadd.f32 %v830_v0, %v445_v62 }
  0xec   : > { %903 = vst [vmem:[#allocation2 + $0x8] sm:$0xff] %v895_v4 }
  0xee   : > { %v850_v9 = vpop.f32.mrf.mxu3 }
  0xef   : > { %v831_v7 = vpop.f32.mrf.mxu2 }
  0xf0   : > { %v832_v8 = vadd.f32 %v831_v7, %v813_v5  ;;  %v881_v13 = vpop.f32.mrf.mxu1 }
  0xf1   : > { %v862_v10 = vpop.f32.mrf.mxu0 }
  0xf2   : > { %v897_v11 = vadd.f32 %v832_v8, %v447_v6  ;;  %v863_v12 = vadd.f32 %v862_v10, %v843_v49 }
  0xf4   : > { %905 = vst [vmem:[#allocation2 + $0x28] sm:$0xff] %v897_v11  ;;  %v882_v15 = vadd.f32 %v881_v13, %v863_v12 }
  0xf6   : > { %v892_v16 = vadd.f32 %v882_v15, %v442_v14 }
  0xf7   : > { %v867_v17 = vpop.f32.mrf.mxu2 }
  0xf8   : > { %900 = vst [vmem:[#allocation2] sm:$0xff] %v892_v16  ;;  %v868_v18 = vadd.f32 %v867_v17, %v848_v1  ;;  %v886_v19 = vpop.f32.mrf.mxu3  ;;  %v883_v25 = vpop.f32.mrf.mxu1 }
  0xf9   : > { %v864_v21 = vpop.f32.mrf.mxu0 }
  0xfa   : > { %v887_v22 = vadd.f32 %v886_v19, %v868_v18  ;;  %v865_v23 = vadd.f32 %v864_v21, %v845_v56 }
  0xfc   : > { %v896_v26 = vadd.f32 %v887_v22, %v446_v20  ;;  %v884_v27 = vadd.f32 %v883_v25, %v865_v23 }
  0xfe   : > { %904 = vst [vmem:[#allocation2 + $0x20] sm:$0xff] %v896_v26  ;;  %v894_v28 = vadd.f32 %v884_v27, %v444_v24 }
  0xff   : > { %v869_v29 = vpop.f32.mrf.mxu2 }
 0x100   : > { %902 = vst [vmem:[#allocation2 + $0x10] sm:$0xff] %v894_v28  ;;  %v870_v30 = vadd.f32 %v869_v29, %v850_v9  ;;  %v888_v32 = vpop.f32.mrf.mxu3 }
 0x102   : > { %v889_v33 = vadd.f32 %v888_v32, %v870_v30  ;;  %910 = sbr.rel (%p1378_p11) target bundleno = 282 (0x11a), region = 74 }
 0x104   : > { %v898_v34 = vadd.f32 %v889_v33, %v448_v31 }
 0x106   : > { %906 = vst [vmem:[#allocation2 + $0x38] sm:$0xff] %v898_v34 }
 0x107   : > { %v911_v35 = vld [vmem:[#allocation2 + $0x30] sm:$0xff]  ;;  %v912_v36 = vld [vmem:[#allocation2] sm:$0xff]  ;;  %v913_v42 = vld [vmem:[#allocation2 + $0x18] sm:$0xff] }
 0x108   : > { %v919_v37 = vld [vmem:[%s1788_s2] sm:$0x3]  ;;  %v914_v47 = vld [vmem:[#allocation2 + $0x10] sm:$0xff]  ;;  %v948_v48 = vld [vmem:[%s1790_s4 + $0x8] sm:$0xff] }
 0x109   : > { %v921_v38 = vperm.slane %v919_v37, 0  ;;  %v922_v39 = vperm.slane %v919_v37, 1  ;;  %v933_v40 = vld [vmem:[%s1789_s3] sm:$0x3]  ;;  %v915_v49 = vld [vmem:[#allocation2 + $0x8] sm:$0xff]  ;;  %v949_v55 = vld [vmem:[%s1790_s4 + $0x10] sm:$0xff]  ;;  %v953_v58 = vunpack.c.l.bf16 %v948_v48  ;;  %v954_v56 = vunpack.c.h.bf16 %v948_v48 }
 0x10a   : > { %v947_v41 = vld [vmem:[%s1790_s4] sm:$0xff]  ;;  %v935_v43 = vperm.slane %v933_v40, 0  ;;  %v936_v44 = vperm.slane %v933_v40, 1  ;;  %v917_v0 = vld [vmem:[#allocation2 + $0x28] sm:$0xff]  ;;  %v955_v4 = vunpack.c.l.bf16 %v949_v55  ;;  %v956_v5 = vunpack.c.h.bf16 %v949_v55  ;;  %v950_v14 = vld [vmem:[%s1790_s4 + $0x18] sm:$0xff] }
 0x10b   : > { %v951_v45 = vunpack.c.l.bf16 %v947_v41  ;;  %v952_v46 = vunpack.c.h.bf16 %v947_v41  ;;  %v925_v50 = vmul.f32 %v921_v38, %v911_v35  ;;  %v926_v51 = vmul.f32 %v922_v39, %v912_v36  ;;  %v916_v54 = vld [vmem:[#allocation2 + $0x20] sm:$0xff] }
 0x10c   : > { %v927_v52 = vmul.f32 %v921_v38, %v913_v42  ;;  %v928_v53 = vmul.f32 %v922_v39, %v914_v47  ;;  %v929_v59 = vmul.f32 %v921_v38, %v915_v49  ;;  %v930_v60 = vmul.f32 %v922_v39, %v916_v54 }
 0x10d   : > { %v939_v57 = vadd.f32 %v935_v43, %v925_v50  ;;  %v940_v61 = vadd.f32 %v936_v44, %v926_v51  ;;  %v918_v1 = vld [vmem:[#allocation2 + $0x38] sm:$0xff]  ;;  %v931_v12 = vmul.f32 %v921_v38, %v917_v0  ;;  %v957_v25 = vunpack.c.l.bf16 %v950_v14 }
 0x10e   : > { %v941_v62 = vadd.f32 %v935_v43, %v927_v52  ;;  %v942_v63 = vadd.f32 %v936_v44, %v928_v53  ;;  %v943_v2 = vadd.f32 %v935_v43, %v929_v59  ;;  %v944_v3 = vadd.f32 %v936_v44, %v930_v60 }
 0x10f   : > { %v959_v6 = vadd.f32 %v951_v45, %v939_v57  ;;  %v960_v7 = vadd.f32 %v952_v46, %v940_v61  ;;  %v932_v13 = vmul.f32 %v922_v39, %v918_v1  ;;  %v945_v21 = vadd.f32 %v935_v43, %v931_v12 }
 0x110   : > { %v961_v8 = vadd.f32 %v953_v58, %v941_v62  ;;  %v962_v9 = vadd.f32 %v954_v56, %v942_v63  ;;  %v963_v10 = vadd.f32 %v955_v4, %v943_v2  ;;  %v964_v11 = vadd.f32 %v956_v5, %v944_v3 }
 0x111   : > { %v967_v15 = vmax.f32 %v959_v6, 0.0  ;;  %v968_v16 = vmax.f32 %v960_v7, 0.0  ;;  %v946_v22 = vadd.f32 %v936_v44, %v932_v13  ;;  %v958_v26 = vunpack.c.h.bf16 %v950_v14 }
 0x112   : > { %v969_v17 = vmax.f32 %v961_v8, 0.0  ;;  %v970_v18 = vmax.f32 %v962_v9, 0.0  ;;  %v971_v19 = vmax.f32 %v963_v10, 0.0  ;;  %v972_v20 = vmax.f32 %v964_v11, 0.0 }
 0x113   : > { %v975_v23 = vpack.c.bf16 %v968_v16, %v967_v15  ;;  %v965_v28 = vadd.f32 %v957_v25, %v945_v21  ;;  %v966_v29 = vadd.f32 %v958_v26, %v946_v22 }
 0x114   : > { %v976_v24 = vpack.c.bf16 %v970_v18, %v969_v17  ;;  %v977_v27 = vpack.c.bf16 %v972_v20, %v971_v19 }
 0x115   : > { %979 = vst [vmem:[%s1791_s5] sm:$0xff] %v975_v23  ;;  %v973_v30 = vmax.f32 %v965_v28, 0.0  ;;  %v974_v31 = vmax.f32 %v966_v29, 0.0 }
 0x116   : > { %980 = vst [vmem:[%s1791_s5 + $0x8] sm:$0xff] %v976_v24 }
 0x117   : > { %981 = vst [vmem:[%s1791_s5 + $0x10] sm:$0xff] %v977_v27  ;;  %v978_v32 = vpack.c.bf16 %v974_v31, %v973_v30 }
 0x119   : > { %982 = vst [vmem:[%s1791_s5 + $0x18] sm:$0xff] %v978_v32 }
 0x11a PF: > { %s15_s22 = sadd.s32 1, %s1536_s22   ;;  %s1792_s18 = smov %s1524_s19 }
 0x11b   : > { %p12_p12 = scmp.ge.s32.totalorder %s15_s22, 8   ;;  %s1793_s19 = smov %s1604_s26 }
 0x11c   : > { %s1794_s20 = smov %s1532_s21  ;;  %s1795_s21 = smov %s1797_s23 }
 0x11d   :  { %14 = sbr.rel (!%p12_p12) target bundleno = 3 (0x3), region = 127 }

// kernel: forward.22
= control target key start
LH: loop header
LB: loop body
LE: loop exit
PB: predicated region body
PF: predicated region fallthrough
CT: control target
= control target key end

     0   :  { %s1481_s15 = smov 0   ;;  %s1483_s16 = smov 0   ;;  %s1805_s0 = inlined_call_operand.vmem [shape: bf16[8,2304], index: 0, kind: input, shape index: {}]   ;;  %s1806_s1 = inlined_call_operand.vmem [shape: bf16[2304,512], index: 1, kind: input, shape index: {}]   ;;  %s1807_s2 = inlined_call_operand.vmem [shape: f32[1,512], index: 2, kind: input, shape index: {}]   ;;  %s1808_s3 = inlined_call_operand.vmem [shape: f32[1,512], index: 3, kind: input, shape index: {}]   ;;  %s1809_s4 = inlined_call_operand.vmem [shape: bf16[8,512], index: 4, kind: output, shape index: {}]  }
   0x1   :  { %s1485_s17 = smov 0   ;;  %s1487_s18 = smov 0  }
   0x2   :  { %s1489_s19 = smov 0   ;;  %s1491_s20 = smov 0  }
   0x3   :  { %s1493_s21 = smov 0  }
   0x4 LB: > { %s26_s22 = sadd.s32 1, %s1445_s19  ;;  %s29_s23 = sadd.s32 1, %s1449_s20  ;;  %s1453_s21 = sphi %s1493_s21, %s14_s21   ;;  %s1449_s20 = sphi %s1491_s20, %s1815_s20   ;;  %s1445_s19 = sphi %s1489_s19, %s1814_s19   ;;  %s1441_s18 = sphi %s1487_s18, %s1813_s18   ;;  %s1437_s17 = sphi %s1485_s17, %s1812_s17   ;;  %s1433_s16 = sphi %s1483_s16, %s1811_s16   ;;  %s1429_s15 = sphi %s1481_s15, %s1810_s15  }
   0x5   : > { %p27_p0 = scmp.ge.s32.totalorder %s26_s22, 6  ;;  %p77_p1 = scmp.ne.s32.totalorder %s1433_s16, %s1429_s15 }
   0x6   : > { %p78_p2 = scmp.eq.s32.totalorder %s1453_s21, 0  ;;  %s70_s27 = sadd.s32 1, %s1433_s16 }
   0x7   : > { %s1817_s22 = smov (%p27_p0, %s26_s22), 0  ;;  %s1819_s23 = smov (!%p27_p0, %s29_s23), %s1449_s20 }
   0x8   : > { %p79_p3 = por %p78_p2, %p77_p1  ;;  %p31_p4 = scmp.ge.s32.totalorder %s1819_s23, 2 }
   0x9   : > { %s65_s24 = ssub.s32 %s1445_s19, %s1817_s22  ;;  %p1085_p6 = scmp.ge.s32.totalorder %s1453_s21, 12 }
   0xa   : > { %s1821_s23 = smov (%p31_p4, %s1819_s23), 0 }
   0xb   : > { %s66_s25 = ssub.s32 %s1449_s20, %s1821_s23  ;;  %183 = sbr.rel (%p1085_p6) target bundleno = 72 (0x48), region = 16 }
   0xc   : > { %s67_s26 = sor.u32 %s66_s25, %s65_s24 }
   0xd   : > { %p68_p5 = scmp.eq.s32.totalorder %s67_s26, 0 }
   0xf   : > { %s1532_s28 = scalar_select %p68_p5, %s1433_s16, %s70_s27  }
  0x10   : > { %199 = sbr.rel (!%p79_p3) target bundleno = 72 (0x48), region = 24  ;;  %s201_s29 = sand.u32 (%p79_p3), 1, %s1433_s16  }
  0x11   : > { %s1340_s30 = smul.u32 (%p79_p3), 384, %s201_s29  ;;  %s1086_s5 = sshll.u32 (%p79_p3), %s1449_s20, 1 }
  0x12   : > { %s1291_s6 = smul.u32 (%p79_p3), 192, %s1445_s19 }
  0x13   : > { %s1546_s12 = scalar_lea.vmem (%p79_p3), [#allocation3], %s1340_s30 }
  0x14   : > { %s207_s7 = sadd.s32 (%p79_p3), %s1291_s6, %s1086_s5 }
  0x15   : > { %s1088_s8 = sshll.u32 %s207_s7, 2 }
  0x16   : > { %s1541_s11 = scalar_lea.vmem %s1806_s1, %s1088_s8 }
  0x17   : > { %v332_v0 = vld [vmem:[%s1541_s11] sm:$0xff]  ;;  %v334_v1 = vld [vmem:[%s1541_s11 + $0x10] sm:$0xff] }
  0x18   : > { %v336_v2 = vld [vmem:[%s1541_s11 + $0x20] sm:$0xff]  ;;  %333 = vst [vmem:[%s1546_s12] sm:$0xff] %v332_v0  ;;  %v338_v3 = vld [vmem:[%s1541_s11 + $0x30] sm:$0xff] }
  0x19   : > { %335 = vst [vmem:[%s1546_s12 + $0x8] sm:$0xff] %v334_v1  ;;  %v340_v4 = vld [vmem:[%s1541_s11 + $0x40] sm:$0xff]  ;;  %v342_v5 = vld [vmem:[%s1541_s11 + $0x50] sm:$0xff] }
  0x1a   : > { %337 = vst [vmem:[%s1546_s12 + $0x10] sm:$0xff] %v336_v2  ;;  %v344_v6 = vld [vmem:[%s1541_s11 + $0x60] sm:$0xff]  ;;  %v346_v7 = vld [vmem:[%s1541_s11 + $0x70] sm:$0xff] }
  0x1b   : > { %339 = vst [vmem:[%s1546_s12 + $0x18] sm:$0xff] %v338_v3  ;;  %v348_v8 = vld [vmem:[%s1541_s11 + $0x80] sm:$0xff]  ;;  %v350_v9 = vld [vmem:[%s1541_s11 + $0x90] sm:$0xff] }
  0x1c   : > { %341 = vst [vmem:[%s1546_s12 + $0x20] sm:$0xff] %v340_v4  ;;  %v352_v10 = vld [vmem:[%s1541_s11 + $0xa0] sm:$0xff]  ;;  %v354_v11 = vld [vmem:[%s1541_s11 + $0xb0] sm:$0xff] }
  0x1d   : > { %343 = vst [vmem:[%s1546_s12 + $0x28] sm:$0xff] %v342_v5  ;;  %v356_v12 = vld [vmem:[%s1541_s11 + $0xc0] sm:$0xff]  ;;  %v358_v13 = vld [vmem:[%s1541_s11 + $0xd0] sm:$0xff] }
  0x1e   : > { %345 = vst [vmem:[%s1546_s12 + $0x30] sm:$0xff] %v344_v6  ;;  %v360_v14 = vld [vmem:[%s1541_s11 + $0xe0] sm:$0xff]  ;;  %v362_v15 = vld [vmem:[%s1541_s11 + $0xf0] sm:$0xff] }
  0x1f   : > { %347 = vst [vmem:[%s1546_s12 + $0x38] sm:$0xff] %v346_v7  ;;  %v364_v16 = vld [vmem:[%s1541_s11 + $0x100] sm:$0xff]  ;;  %v366_v17 = vld [vmem:[%s1541_s11 + $0x110] sm:$0xff] }
  0x20   : > { %349 = vst [vmem:[%s1546_s12 + $0x40] sm:$0xff] %v348_v8  ;;  %v368_v18 = vld [vmem:[%s1541_s11 + $0x120] sm:$0xff]  ;;  %v370_v19 = vld [vmem:[%s1541_s11 + $0x130] sm:$0xff] }
  0x21   : > { %351 = vst [vmem:[%s1546_s12 + $0x48] sm:$0xff] %v350_v9  ;;  %v372_v20 = vld [vmem:[%s1541_s11 + $0x140] sm:$0xff]  ;;  %v374_v21 = vld [vmem:[%s1541_s11 + $0x150] sm:$0xff] }
  0x22   : > { %353 = vst [vmem:[%s1546_s12 + $0x50] sm:$0xff] %v352_v10  ;;  %v376_v22 = vld [vmem:[%s1541_s11 + $0x160] sm:$0xff]  ;;  %v378_v23 = vld [vmem:[%s1541_s11 + $0x170] sm:$0xff] }
  0x23   : > { %355 = vst [vmem:[%s1546_s12 + $0x58] sm:$0xff] %v354_v11  ;;  %v380_v24 = vld [vmem:[%s1541_s11 + $0x180] sm:$0xff]  ;;  %v382_v25 = vld [vmem:[%s1541_s11 + $0x190] sm:$0xff] }
  0x24   : > { %357 = vst [vmem:[%s1546_s12 + $0x60] sm:$0xff] %v356_v12  ;;  %v384_v26 = vld [vmem:[%s1541_s11 + $0x1a0] sm:$0xff]  ;;  %v386_v27 = vld [vmem:[%s1541_s11 + $0x1b0] sm:$0xff] }
  0x25   : > { %359 = vst [vmem:[%s1546_s12 + $0x68] sm:$0xff] %v358_v13  ;;  %v388_v28 = vld [vmem:[%s1541_s11 + $0x1c0] sm:$0xff]  ;;  %v390_v29 = vld [vmem:[%s1541_s11 + $0x1d0] sm:$0xff] }
  0x26   : > { %361 = vst [vmem:[%s1546_s12 + $0x70] sm:$0xff] %v360_v14  ;;  %v392_v30 = vld [vmem:[%s1541_s11 + $0x1e0] sm:$0xff]  ;;  %v394_v31 = vld [vmem:[%s1541_s11 + $0x1f0] sm:$0xff] }
  0x27   : > { %363 = vst [vmem:[%s1546_s12 + $0x78] sm:$0xff] %v362_v15  ;;  %v396_v32 = vld [vmem:[%s1541_s11 + $0x200] sm:$0xff]  ;;  %v398_v33 = vld [vmem:[%s1541_s11 + $0x210] sm:$0xff] }
  0x28   : > { %365 = vst [vmem:[%s1546_s12 + $0x80] sm:$0xff] %v364_v16  ;;  %v400_v34 = vld [vmem:[%s1541_s11 + $0x220] sm:$0xff]  ;;  %v402_v35 = vld [vmem:[%s1541_s11 + $0x230] sm:$0xff] }
  0x29   : > { %367 = vst [vmem:[%s1546_s12 + $0x88] sm:$0xff] %v366_v17  ;;  %v404_v36 = vld [vmem:[%s1541_s11 + $0x240] sm:$0xff]  ;;  %v406_v37 = vld [vmem:[%s1541_s11 + $0x250] sm:$0xff] }
  0x2a   : > { %369 = vst [vmem:[%s1546_s12 + $0x90] sm:$0xff] %v368_v18  ;;  %v408_v38 = vld [vmem:[%s1541_s11 + $0x260] sm:$0xff]  ;;  %v410_v39 = vld [vmem:[%s1541_s11 + $0x270] sm:$0xff] }
  0x2b   : > { %371 = vst [vmem:[%s1546_s12 + $0x98] sm:$0xff] %v370_v19  ;;  %v412_v40 = vld [vmem:[%s1541_s11 + $0x280] sm:$0xff]  ;;  %v414_v41 = vld [vmem:[%s1541_s11 + $0x290] sm:$0xff] }
  0x2c   : > { %373 = vst [vmem:[%s1546_s12 + $0xa0] sm:$0xff] %v372_v20  ;;  %v416_v42 = vld [vmem:[%s1541_s11 + $0x2a0] sm:$0xff]  ;;  %v418_v43 = vld [vmem:[%s1541_s11 + $0x2b0] sm:$0xff] }
  0x2d   : > { %375 = vst [vmem:[%s1546_s12 + $0xa8] sm:$0xff] %v374_v21  ;;  %v420_v44 = vld [vmem:[%s1541_s11 + $0x2c0] sm:$0xff]  ;;  %v422_v45 = vld [vmem:[%s1541_s11 + $0x2d0] sm:$0xff] }
  0x2e   : > { %377 = vst [vmem:[%s1546_s12 + $0xb0] sm:$0xff] %v376_v22  ;;  %v424_v46 = vld [vmem:[%s1541_s11 + $0x2e0] sm:$0xff]  ;;  %v426_v47 = vld [vmem:[%s1541_s11 + $0x2f0] sm:$0xff] }
  0x2f   : > { %379 = vst [vmem:[%s1546_s12 + $0xb8] sm:$0xff] %v378_v23 }
  0x30   : > { %381 = vst [vmem:[%s1546_s12 + $0xc0] sm:$0xff] %v380_v24 }
  0x31   : > { %383 = vst [vmem:[%s1546_s12 + $0xc8] sm:$0xff] %v382_v25 }
  0x32   : > { %385 = vst [vmem:[%s1546_s12 + $0xd0] sm:$0xff] %v384_v26 }
  0x33   : > { %387 = vst [vmem:[%s1546_s12 + $0xd8] sm:$0xff] %v386_v27 }
  0x34   : > { %389 = vst [vmem:[%s1546_s12 + $0xe0] sm:$0xff] %v388_v28 }
  0x35   : > { %391 = vst [vmem:[%s1546_s12 + $0xe8] sm:$0xff] %v390_v29 }
  0x36   : > { %393 = vst [vmem:[%s1546_s12 + $0xf0] sm:$0xff] %v392_v30 }
  0x37   : > { %395 = vst [vmem:[%s1546_s12 + $0xf8] sm:$0xff] %v394_v31 }
  0x38   : > { %397 = vst [vmem:[%s1546_s12 + $0x100] sm:$0xff] %v396_v32 }
  0x39   : > { %399 = vst [vmem:[%s1546_s12 + $0x108] sm:$0xff] %v398_v33 }
  0x3a   : > { %401 = vst [vmem:[%s1546_s12 + $0x110] sm:$0xff] %v400_v34 }
  0x3b   : > { %403 = vst [vmem:[%s1546_s12 + $0x118] sm:$0xff] %v402_v35 }
  0x3c   : > { %405 = vst [vmem:[%s1546_s12 + $0x120] sm:$0xff] %v404_v36 }
  0x3d   : > { %407 = vst [vmem:[%s1546_s12 + $0x128] sm:$0xff] %v406_v37 }
  0x3e   : > { %409 = vst [vmem:[%s1546_s12 + $0x130] sm:$0xff] %v408_v38 }
  0x3f   : > { %411 = vst [vmem:[%s1546_s12 + $0x138] sm:$0xff] %v410_v39 }
  0x40   : > { %413 = vst [vmem:[%s1546_s12 + $0x140] sm:$0xff] %v412_v40 }
  0x41   : > { %415 = vst [vmem:[%s1546_s12 + $0x148] sm:$0xff] %v414_v41 }
  0x42   : > { %417 = vst [vmem:[%s1546_s12 + $0x150] sm:$0xff] %v416_v42 }
  0x43   : > { %419 = vst [vmem:[%s1546_s12 + $0x158] sm:$0xff] %v418_v43 }
  0x44   : > { %421 = vst [vmem:[%s1546_s12 + $0x160] sm:$0xff] %v420_v44 }
  0x45   : > { %423 = vst [vmem:[%s1546_s12 + $0x168] sm:$0xff] %v422_v45 }
  0x46   : > { %425 = vst [vmem:[%s1546_s12 + $0x170] sm:$0xff] %v424_v46 }
  0x47   : > { %427 = vst [vmem:[%s1546_s12 + $0x178] sm:$0xff] %v426_v47 }
  0x48 PF: > { %p1089_p7 = scmp.ge.s32.totalorder %s1453_s21, 1  ;;  %p448_p8 = scmp.lt.s32.totalorder %s1453_s21, 13 }
  0x4a   : > { %p449_p9 = pnand %p1089_p7, %p448_p8 }
  0x4b   : > { %s455_s13 = sand.u32 (!%p449_p9), 1, %s1429_s15   ;;  %s501_s14 = smul.u32 (!%p449_p9), 3, %s1437_s17 }
  0x4c   : > { %452 = sbr.rel (%p449_p9) target bundleno = 307 (0x133), region = 70  ;;  %s1091_s25 = sshll.u32 (!%p449_p9), %s1441_s18, 1 }
  0x4d   : > { %s1341_s24 = smul.u32 (!%p449_p9), 384, %s455_s13  ;;  %p504_p10 = scmp.lt.s32.totalorder (!%p449_p9), %s501_s14, 17 }
  0x4e   : > { %p514_p11 = scmp.lt.s32.totalorder (!%p449_p9), %s1091_s25, 3  ;;  %p1095_p12 = scmp.ne.s32.totalorder (!%p449_p9), %s1437_s17, 0 }
  0x4f   : > { %s1667_s13 = scalar_lea.vmem (!%p449_p9), [#allocation3], %s1341_s24 }
  0x51   : > { %s1823_s14 = smov (!%p504_p10, %s501_s14), 17  ;;  %s1825_s25 = smov (!%p514_p11, %s1091_s25), 3 }
  0x52   : > { %s1090_s26 = sshll.u32 %s1823_s14, 2  ;;  %s516_s15 = scalar_lea.vmem %s1807_s2, %s1825_s25 }
  0x53   : > { %s1651_s30 = scalar_lea.vmem %s1805_s0, %s1090_s26  ;;  %s521_s8 = scalar_lea.vmem %s1808_s3, %s1825_s25 }
  0x54   : > { %s1094_s9 = sshll.u32 %s1825_s25, 2  ;;  %536 = sbr.rel (%p1095_p12) target bundleno = 92 (0x5c), region = 78 }
  0x55   : > { %s1665_s12 = scalar_lea.vmem %s1809_s4, %s1094_s9 }
  0x59   : > { %v1455_v48 = vmov 0.0  }
  0x5a   : > { %537 = vst [vmem:[#allocation2] sm:$0xff] %v1455_v48 }
  0x5b   : > { %538 = vst [vmem:[#allocation2 + $0x8] sm:$0xff] %v1455_v48 }
  0x5c PF: > { %v1154_v49 = vld [vmem:[%s1667_s13 + $0x70] sm:$0xf]  ;;  %v1307_v50 = vld [vmem:[%s1667_s13 + $0x74] sm:$0xf0]  ;;  %v1146_v54 = vld [vmem:[%s1667_s13 + $0x60] sm:$0xf] }
  0x5d   : > { %v1218_v51 = vld [vmem:[%s1667_s13 + $0xf0] sm:$0xf]  ;;  %v1155_v52 = vor.u32 %v1307_v50, %v1154_v49  ;;  %v1323_v53 = vld [vmem:[%s1667_s13 + $0xf4] sm:$0xf0]  ;;  %v1305_v55 = vld [vmem:[%s1667_s13 + $0x64] sm:$0xf0] }
  0x5e   : > { %v1219_v56 = vor.u32 %v1323_v53, %v1218_v51  ;;  %v1210_v57 = vld [vmem:[%s1667_s13 + $0xe0] sm:$0xf]  ;;  %v1321_v58 = vld [vmem:[%s1667_s13 + $0xe4] sm:$0xf0]  ;;  %v1147_v59 = vor.u32 %v1305_v55, %v1146_v54  ;;  %v1138_v60 = vld [vmem:[%s1667_s13 + $0x50] sm:$0xf] }
  0x5f   : > { %842 = vmatpush.bf16.msra.mxu0 %v1155_v52  ;;  %v1211_v61 = vor.u32 %v1321_v58, %v1210_v57  ;;  %v1303_v62 = vld [vmem:[%s1667_s13 + $0x54] sm:$0xf0]  ;;  %v1282_v63 = vld [vmem:[%s1667_s13 + $0x170] sm:$0xf]  ;;  %v1274_v4 = vld [vmem:[%s1667_s13 + $0x160] sm:$0xf] }
  0x60   : > { %855 = vmatpush.bf16.msra.mxu1 %v1219_v56  ;;  %v1339_v0 = vld [vmem:[%s1667_s13 + $0x174] sm:$0xf0]  ;;  %v1202_v1 = vld [vmem:[%s1667_s13 + $0xd0] sm:$0xf]  ;;  %v1337_v5 = vld [vmem:[%s1667_s13 + $0x164] sm:$0xf0]  ;;  %v1139_v7 = vor.u32 %v1303_v62, %v1138_v60 }
  0x61   : > { %v1319_v2 = vld [vmem:[%s1667_s13 + $0xd4] sm:$0xf0]  ;;  %v1283_v3 = vor.u32 %v1339_v0, %v1282_v63  ;;  %v1306_v6 = vld [vmem:[%s1667_s13 + $0x74] sm:$0xf]  ;;  %v1130_v8 = vld [vmem:[%s1667_s13 + $0x40] sm:$0xf]  ;;  %v1275_v10 = vor.u32 %v1337_v5, %v1274_v4 }
  0x62   : > { %v1301_v9 = vld [vmem:[%s1667_s13 + $0x44] sm:$0xf0]  ;;  %v1156_v11 = vld [vmem:[%s1667_s13 + $0x78] sm:$0xf0]  ;;  %v1203_v12 = vor.u32 %v1319_v2, %v1202_v1  ;;  %v1194_v13 = vld [vmem:[%s1667_s13 + $0xc0] sm:$0xf] }
  0x63   : > { %843 = vmatpush.bf16.msra.mxu0 %v1147_v59  ;;  %868 = vmatpush.bf16.msra.mxu2 %v1283_v3  ;;  %v1317_v14 = vld [vmem:[%s1667_s13 + $0xc4] sm:$0xf0]  ;;  %v1159_v15 = vor.u32 %v1306_v6, %v1156_v11  ;;  %v1266_v16 = vld [vmem:[%s1667_s13 + $0x150] sm:$0xf]  ;;  %v1335_v17 = vld [vmem:[%s1667_s13 + $0x154] sm:$0xf0]  ;;  %v1131_v21 = vor.u32 %v1301_v9, %v1130_v8 }
  0x64   : > { %856 = vmatpush.bf16.msra.mxu1 %v1211_v61  ;;  %v1304_v18 = vld [vmem:[%s1667_s13 + $0x64] sm:$0xf]  ;;  %v1148_v19 = vld [vmem:[%s1667_s13 + $0x68] sm:$0xf0]  ;;  %v1122_v22 = vld [vmem:[%s1667_s13 + $0x30] sm:$0xf]  ;;  %v1267_v24 = vor.u32 %v1335_v17, %v1266_v16  ;;  %v1195_v26 = vor.u32 %v1317_v14, %v1194_v13 }
  0x65   : > { %881 = vmatpush.bf16.msra.mxu3 %v1159_v15  ;;  %v1151_v20 = vor.u32 %v1304_v18, %v1148_v19  ;;  %v1299_v23 = vld [vmem:[%s1667_s13 + $0x34] sm:$0xf0]  ;;  %v1258_v25 = vld [vmem:[%s1667_s13 + $0x140] sm:$0xf]  ;;  %v1333_v27 = vld [vmem:[%s1667_s13 + $0x144] sm:$0xf0] }
  0x66   : > { %v1302_v28 = vld [vmem:[%s1667_s13 + $0x54] sm:$0xf]  ;;  %v1140_v29 = vld [vmem:[%s1667_s13 + $0x58] sm:$0xf0]  ;;  %v1186_v30 = vld [vmem:[%s1667_s13 + $0xb0] sm:$0xf]  ;;  %v1123_v33 = vor.u32 %v1299_v23, %v1122_v22  ;;  %v1259_v35 = vor.u32 %v1333_v27, %v1258_v25 }
  0x67   : > { %844 = vmatpush.bf16.msra.mxu0 %v1139_v7  ;;  %869 = vmatpush.bf16.msra.mxu2 %v1275_v10  ;;  %v1315_v31 = vld [vmem:[%s1667_s13 + $0xb4] sm:$0xf0]  ;;  %v1143_v32 = vor.u32 %v1302_v28, %v1140_v29  ;;  %v1114_v34 = vld [vmem:[%s1667_s13 + $0x20] sm:$0xf]  ;;  %v1300_v36 = vld [vmem:[%s1667_s13 + $0x44] sm:$0xf] }
  0x68   : > { %857 = vmatpush.bf16.msra.mxu1 %v1203_v12  ;;  %v1132_v37 = vld [vmem:[%s1667_s13 + $0x48] sm:$0xf0]  ;;  %v1187_v38 = vor.u32 %v1315_v31, %v1186_v30  ;;  %v1297_v39 = vld [vmem:[%s1667_s13 + $0x24] sm:$0xf0]  ;;  %v1250_v40 = vld [vmem:[%s1667_s13 + $0x130] sm:$0xf] }
  0x69   : > { %882 = vmatpush.bf16.msra.mxu3 %v1151_v20  ;;  %v1331_v41 = vld [vmem:[%s1667_s13 + $0x134] sm:$0xf0]  ;;  %v1178_v42 = vld [vmem:[%s1667_s13 + $0xa0] sm:$0xf]  ;;  %v1313_v43 = vld [vmem:[%s1667_s13 + $0xa4] sm:$0xf0]  ;;  %v1135_v44 = vor.u32 %v1300_v36, %v1132_v37  ;;  %v1115_v45 = vor.u32 %v1297_v39, %v1114_v34 }
  0x6a   : > { %v1106_v46 = vld [vmem:[%s1667_s13 + $0x10] sm:$0xf]  ;;  %v1251_v47 = vor.u32 %v1331_v41, %v1250_v40  ;;  %v1298_v48 = vld [vmem:[%s1667_s13 + $0x34] sm:$0xf]  ;;  %v1124_v49 = vld [vmem:[%s1667_s13 + $0x38] sm:$0xf0]  ;;  %v1179_v50 = vor.u32 %v1313_v43, %v1178_v42 }
  0x6b   : > { %845 = vmatpush.bf16.msra.mxu0 %v1131_v21  ;;  %870 = vmatpush.bf16.msra.mxu2 %v1267_v24  ;;  %v1295_v51 = vld [vmem:[%s1667_s13 + $0x14] sm:$0xf0]  ;;  %v1242_v52 = vld [vmem:[%s1667_s13 + $0x120] sm:$0xf]  ;;  %v1329_v53 = vld [vmem:[%s1667_s13 + $0x124] sm:$0xf0]  ;;  %v1127_v58 = vor.u32 %v1298_v48, %v1124_v49 }
  0x6c   : > { %858 = vmatpush.bf16.msra.mxu1 %v1195_v26  ;;  %v1170_v54 = vld [vmem:[%s1667_s13 + $0x90] sm:$0xf]  ;;  %v1311_v55 = vld [vmem:[%s1667_s13 + $0x94] sm:$0xf0]  ;;  %v1098_v56 = vld [vmem:[%s1667_s13] sm:$0xf]  ;;  %v1107_v59 = vor.u32 %v1295_v51, %v1106_v46  ;;  %v1243_v60 = vor.u32 %v1329_v53, %v1242_v52 }
  0x6d   : > { %883 = vmatpush.bf16.msra.mxu3 %v1143_v32  ;;  %v1293_v57 = vld [vmem:[%s1667_s13 + $0x4] sm:$0xf0]  ;;  %v1296_v61 = vld [vmem:[%s1667_s13 + $0x24] sm:$0xf]  ;;  %v1116_v62 = vld [vmem:[%s1667_s13 + $0x28] sm:$0xf0]  ;;  %v1171_v0 = vor.u32 %v1311_v55, %v1170_v54 }
  0x6e   : > { %v541_v63 = vld [vmem:[%s1651_s30] sm:$0xff]  ;;  %v1162_v1 = vld [vmem:[%s1667_s13 + $0x80] sm:$0xf]  ;;  %v1327_v3 = vld [vmem:[%s1667_s13 + $0x114] sm:$0xf0]  ;;  %v1119_v9 = vor.u32 %v1296_v61, %v1116_v62  ;;  %v1099_v11 = vor.u32 %v1293_v57, %v1098_v56  ;;  %p1288_p13 = scmp.ne.s32.totalorder %s1437_s17, 5 }
  0x6f   : > { %846 = vmatpush.bf16.msra.mxu0 %v1123_v33  ;;  %871 = vmatpush.bf16.msra.mxu2 %v1259_v35  ;;  %v1234_v2 = vld [vmem:[%s1667_s13 + $0x110] sm:$0xf]  ;;  %v1309_v4 = vld [vmem:[%s1667_s13 + $0x84] sm:$0xf0]  ;;  %v1322_v5 = vld [vmem:[%s1667_s13 + $0xf4] sm:$0xf]  ;;  %v593_v10 = vunpack.c.l.b16 %v541_v63  ;;  %v594_v13 = vunpack.c.h.b16 %v541_v63 }
  0x70   : > { %859 = vmatpush.bf16.msra.mxu1 %v1187_v38  ;;  %v1220_v6 = vld [vmem:[%s1667_s13 + $0xf8] sm:$0xf0]  ;;  %v1338_v7 = vld [vmem:[%s1667_s13 + $0x174] sm:$0xf]  ;;  %v1235_v12 = vor.u32 %v1327_v3, %v1234_v2  ;;  %v542_v16 = vld [vmem:[%s1651_s30 + $0x8] sm:$0xf]  ;;  %v1163_v17 = vor.u32 %v1309_v4, %v1162_v1 }
  0x71   : > { %884 = vmatpush.bf16.msra.mxu3 %v1135_v44  ;;  %v1284_v8 = vld [vmem:[%s1667_s13 + $0x178] sm:$0xf0]  ;;  %v1294_v14 = vld [vmem:[%s1667_s13 + $0x14] sm:$0xf]  ;;  %v1223_v18 = vor.u32 %v1322_v5, %v1220_v6  ;;  %v1226_v19 = vld [vmem:[%s1667_s13 + $0x100] sm:$0xf]  ;;  %v596_v26 = vpack.c.b16 %v593_v10, %v593_v10  ;;  %v595_v28 = vunpack.c.l.b16 %v542_v16  ;;  %v1742_v29 = vpack.c.b16 %v594_v13, %v594_v13 }
  0x72   : > { %v1108_v15 = vld [vmem:[%s1667_s13 + $0x18] sm:$0xf0]  ;;  %v1325_v20 = vld [vmem:[%s1667_s13 + $0x104] sm:$0xf0]  ;;  %v1287_v21 = vor.u32 %v1338_v7, %v1284_v8  ;;  %v1320_v22 = vld [vmem:[%s1667_s13 + $0xe4] sm:$0xf] }
  0x73   : > { %847 = vmatpush.bf16.msra.mxu0 %v1115_v45  ;;  %872 = vmatpush.bf16.msra.mxu2 %v1251_v47  ;;  %v1212_v23 = vld [vmem:[%s1667_s13 + $0xe8] sm:$0xf0]  ;;  %v1336_v24 = vld [vmem:[%s1667_s13 + $0x164] sm:$0xf]  ;;  %v1111_v27 = vor.u32 %v1294_v14, %v1108_v15  ;;  %v1227_v30 = vor.u32 %v1325_v20, %v1226_v19  ;;  %v1318_v35 = vld [vmem:[%s1667_s13 + $0xd4] sm:$0xf]  ;;  %v598_v39 = vpack.c.b16 %v595_v28, %v595_v28 }
  0x74   : > { %860 = vmatpush.bf16.msra.mxu1 %v1179_v50  ;;  %v1276_v25 = vld [vmem:[%s1667_s13 + $0x168] sm:$0xf0]  ;;  %v1292_v31 = vld [vmem:[%s1667_s13 + $0x4] sm:$0xf]  ;;  %v1215_v33 = vor.u32 %v1320_v22, %v1212_v23  ;;  %v1204_v36 = vld [vmem:[%s1667_s13 + $0xd8] sm:$0xf0] }
  0x75   : > { %885 = vmatpush.bf16.msra.mxu3 %v1127_v58  ;;  %v1100_v32 = vld [vmem:[%s1667_s13 + $0x8] sm:$0xf0]  ;;  %v1279_v34 = vor.u32 %v1336_v24, %v1276_v25  ;;  %v1334_v37 = vld [vmem:[%s1667_s13 + $0x154] sm:$0xf]  ;;  %v1268_v38 = vld [vmem:[%s1667_s13 + $0x158] sm:$0xf0]  ;;  %v1207_v41 = vor.u32 %v1318_v35, %v1204_v36 }
  0x76   : > { %v1103_v40 = vor.u32 %v1292_v31, %v1100_v32  ;;  %v1271_v42 = vor.u32 %v1334_v37, %v1268_v38  ;;  %v1316_v43 = vld [vmem:[%s1667_s13 + $0xc4] sm:$0xf]  ;;  %v1196_v44 = vld [vmem:[%s1667_s13 + $0xc8] sm:$0xf0]  ;;  %v1314_v49 = vld [vmem:[%s1667_s13 + $0xb4] sm:$0xf] }
  0x77   : > { %848 = vmatpush.bf16.msra.mxu0 %v1107_v59  ;;  %873 = vmatpush.bf16.msra.mxu2 %v1243_v60  ;;  %v1332_v45 = vld [vmem:[%s1667_s13 + $0x144] sm:$0xf]  ;;  %v1260_v46 = vld [vmem:[%s1667_s13 + $0x148] sm:$0xf0]  ;;  %v1199_v47 = vor.u32 %v1316_v43, %v1196_v44  ;;  %v1188_v50 = vld [vmem:[%s1667_s13 + $0xb8] sm:$0xf0] }
  0x78   : > { %861 = vmatpush.bf16.msra.mxu1 %v1171_v0  ;;  %v1263_v48 = vor.u32 %v1332_v45, %v1260_v46  ;;  %v1330_v51 = vld [vmem:[%s1667_s13 + $0x134] sm:$0xf]  ;;  %v1252_v52 = vld [vmem:[%s1667_s13 + $0x138] sm:$0xf0]  ;;  %v1191_v53 = vor.u32 %v1314_v49, %v1188_v50  ;;  %v1312_v55 = vld [vmem:[%s1667_s13 + $0xa4] sm:$0xf] }
  0x79   : > { %886 = vmatpush.bf16.msra.mxu3 %v1119_v9  ;;  %v1255_v54 = vor.u32 %v1330_v51, %v1252_v52  ;;  %v1180_v56 = vld [vmem:[%s1667_s13 + $0xa8] sm:$0xf0]  ;;  %v1328_v57 = vld [vmem:[%s1667_s13 + $0x124] sm:$0xf]  ;;  %v1310_v61 = vld [vmem:[%s1667_s13 + $0x94] sm:$0xf] }
  0x7a   : > { %v1244_v58 = vld [vmem:[%s1667_s13 + $0x128] sm:$0xf0]  ;;  %v1183_v59 = vor.u32 %v1312_v55, %v1180_v56  ;;  %v1172_v62 = vld [vmem:[%s1667_s13 + $0x98] sm:$0xf0]  ;;  %v1326_v63 = vld [vmem:[%s1667_s13 + $0x114] sm:$0xf] }
  0x7b   : > { %849 = vmatpush.bf16.msra.mxu0 %v1099_v11  ;;  %874 = vmatpush.bf16.msra.mxu2 %v1235_v12  ;;  %v1247_v60 = vor.u32 %v1328_v57, %v1244_v58  ;;  %v1236_v0 = vld [vmem:[%s1667_s13 + $0x118] sm:$0xf0]  ;;  %v1175_v1 = vor.u32 %v1310_v61, %v1172_v62  ;;  %v1308_v3 = vld [vmem:[%s1667_s13 + $0x84] sm:$0xf]  ;;  %v1164_v4 = vld [vmem:[%s1667_s13 + $0x88] sm:$0xf0] }
  0x7c   : > { %862 = vmatpush.bf16.msra.mxu1 %v1163_v17  ;;  %v1239_v2 = vor.u32 %v1326_v63, %v1236_v0  ;;  %v1324_v5 = vld [vmem:[%s1667_s13 + $0x104] sm:$0xf]  ;;  %v1228_v6 = vld [vmem:[%s1667_s13 + $0x108] sm:$0xf0]  ;;  %v1167_v7 = vor.u32 %v1308_v3, %v1164_v4  ;;  %v539_v14 = vld [vmem:[#allocation2] sm:$0xff] }
  0x7d   : > { %887 = vmatpush.bf16.msra.mxu3 %v1111_v27  ;;  %v1231_v8 = vor.u32 %v1324_v5, %v1228_v6  ;;  %v540_v24 = vld [vmem:[#allocation2 + $0x8] sm:$0xff] }
  0x7e   : > { %850 = vmatmul.bf16.vlgmr.msra.gmra.mxu0 %v596_v26 }
  0x7f   : > { %894 = vmatpush.bf16.msrb.mxu0 %v1223_v18  ;;  %863 = vmatmul.bf16.vlgmr.msra.gmra.mxu1 %v1742_v29 }
  0x80   : > { %907 = vmatpush.bf16.msrb.mxu1 %v1287_v21  ;;  %875 = vmatpush.bf16.msra.mxu2 %v1227_v30 }
  0x81   : > { %888 = vmatpush.bf16.msra.mxu3 %v1103_v40 }
  0x83   : > { %895 = vmatpush.bf16.msrb.mxu0 %v1215_v33  ;;  %876 = vmatmul.bf16.vlgmr.msra.gmra.mxu2 %v598_v39 }
  0x84   : > { %908 = vmatpush.bf16.msrb.mxu1 %v1279_v34  ;;  %889 = vmatmul.bf16.vlgmr.msra.gmra.mxu3 %v596_v26 }
  0x87   : > { %896 = vmatpush.bf16.msrb.mxu0 %v1207_v41 }
  0x88   : > { %909 = vmatpush.bf16.msrb.mxu1 %v1271_v42 }
  0x8b   : > { %897 = vmatpush.bf16.msrb.mxu0 %v1199_v47 }
  0x8c   : > { %910 = vmatpush.bf16.msrb.mxu1 %v1263_v48 }
  0x8f   : > { %898 = vmatpush.bf16.msrb.mxu0 %v1191_v53 }
  0x90   : > { %911 = vmatpush.bf16.msrb.mxu1 %v1255_v54 }
  0x93   : > { %899 = vmatpush.bf16.msrb.mxu0 %v1183_v59 }
  0x94   : > { %912 = vmatpush.bf16.msrb.mxu1 %v1247_v60 }
  0x97   : > { %900 = vmatpush.bf16.msrb.mxu0 %v1175_v1 }
  0x98   : > { %913 = vmatpush.bf16.msrb.mxu1 %v1239_v2 }
  0x9b   : > { %901 = vmatpush.bf16.msrb.mxu0 %v1167_v7 }
  0x9c   : > { %914 = vmatpush.bf16.msrb.mxu1 %v1231_v8 }
  0x9e   : > { %902 = vmatmul.bf16.vlgmr.msrb.gmra.mxu0 %v1742_v29 }
  0x9f   : > { %915 = vmatmul.bf16.vlgmr.msrb.gmra.mxu1 %v598_v39 }
  0xfb   : > { %v851_v9 = vpop.f32.mrf.mxu0 }
  0xfc   : > { %v864_v10 = vpop.f32.mrf.mxu1 }
  0xfd   : > { %v865_v11 = vadd.f32 %v864_v10, %v851_v9 }
 0x103   : > { %v853_v12 = vpop.f32.mrf.mxu0 }
 0x104   : > { %v866_v13 = vpop.f32.mrf.mxu1 }
 0x106   : > { %v877_v15 = vpop.f32.mrf.mxu2 }
 0x107   : > { %v878_v16 = vadd.f32 %v877_v15, %v865_v11  ;;  %v890_v18 = vpop.f32.mrf.mxu3 }
 0x109   : > { %v920_v17 = vadd.f32 %v878_v16, %v539_v14 }
 0x10b   : > { %922 = vst [vmem:[#allocation2] sm:$0xff] %v920_v17 }
 0x10e   : > { %v879_v19 = vpop.f32.mrf.mxu2 }
 0x10f   : > { %v892_v20 = vpop.f32.mrf.mxu3 }
 0x11b   : > { %v903_v21 = vpop.f32.mrf.mxu0 }
 0x11c   : > { %v904_v22 = vadd.f32 %v903_v21, %v890_v18  ;;  %v916_v23 = vpop.f32.mrf.mxu1 }
 0x11e   : > { %v917_v25 = vadd.f32 %v916_v23, %v904_v22 }
 0x120   : > { %v921_v26 = vadd.f32 %v917_v25, %v540_v24  ;;  %927 = sbr.rel (%p1288_p13) target bundleno = 307 (0x133), region = 82 }
 0x122   : > { %923 = vst [vmem:[#allocation2 + $0x8] sm:$0xff] %v921_v26 }
 0x123   : > { %v905_v27 = vpop.f32.mrf.mxu0 }
 0x124   : > { %v918_v28 = vpop.f32.mrf.mxu1 }
 0x125   : > { %v928_v29 = vld [vmem:[#allocation2] sm:$0xff] }
 0x126   : > { %v930_v31 = vld [vmem:[%s516_s15] sm:$0x3] }
 0x127   : > { %v932_v32 = vperm.slane %v930_v31, 0  ;;  %v933_v33 = vperm.slane %v930_v31, 1  ;;  %v938_v34 = vld [vmem:[%s521_s8] sm:$0x3] }
 0x128   : > { %v940_v35 = vperm.slane %v938_v34, 0  ;;  %v941_v36 = vperm.slane %v938_v34, 1 }
 0x129   : > { %v929_v30 = vld [vmem:[#allocation2 + $0x8] sm:$0xff]  ;;  %v936_v37 = vmul.f32 %v932_v32, %v928_v29 }
 0x12a   : > { %v937_v38 = vmul.f32 %v933_v33, %v929_v30 }
 0x12b   : > { %v944_v39 = vadd.f32 %v940_v35, %v936_v37 }
 0x12c   : > { %v945_v40 = vadd.f32 %v941_v36, %v937_v38 }
 0x12d   : > { %v946_v41 = vmax.f32 %v944_v39, 0.0 }
 0x12e   : > { %v947_v42 = vmax.f32 %v945_v40, 0.0 }
 0x130   : > { %v948_v43 = vpack.c.bf16 %v947_v42, %v946_v41 }
 0x132   : > { %949 = vst [vmem:[%s1665_s12] sm:$0xff] %v948_v43 }
 0x133 PF: > { %s14_s21 = sadd.s32 1, %s1453_s21   ;;  %s1810_s15 = smov %s1433_s16 }
 0x134   : > { %p11_p0 = scmp.ge.s32.totalorder %s14_s21, 14   ;;  %s1811_s16 = smov %s1532_s28 }
 0x135   : > { %s1812_s17 = smov %s1445_s19  ;;  %s1813_s18 = smov %s1449_s20 }
 0x136   : > { %s1814_s19 = smov %s1817_s22  ;;  %s1815_s20 = smov %s1821_s23 }
 0x137   :  { %13 = sbr.rel (!%p11_p0) target bundleno = 4 (0x4), region = 126 }

// kernel: forward.24
= control target key start
LH: loop header
LB: loop body
LE: loop exit
PB: predicated region body
PF: predicated region fallthrough
CT: control target
= control target key end

     0   :  { %s1845_s18 = smov 0   ;;  %s1847_s19 = smov 0   ;;  %s2251_s0 = inlined_call_operand.vmem [shape: bf16[8,4608], index: 0, kind: input, shape index: {}]   ;;  %s2252_s1 = inlined_call_operand.vmem [shape: bf16[4608,512], index: 1, kind: input, shape index: {}]   ;;  %s2253_s2 = inlined_call_operand.vmem [shape: f32[1,512], index: 2, kind: input, shape index: {}]   ;;  %s2254_s3 = inlined_call_operand.vmem [shape: f32[1,512], index: 3, kind: input, shape index: {}]   ;;  %s2255_s4 = inlined_call_operand.vmem [shape: bf16[8,512], index: 4, kind: input, shape index: {}]   ;;  %s2256_s5 = inlined_call_operand.vmem [shape: bf16[8,512], index: 5, kind: output, shape index: {}]  }
   0x1   :  { %s1849_s20 = smov 0   ;;  %s1851_s21 = smov 0  }
   0x2   :  { %s1853_s22 = smov 0   ;;  %s1855_s23 = smov 0  }
   0x3   :  { %s1857_s24 = smov 0  }
   0x4 LB: > { %s27_s25 = sadd.s32 1, %s1804_s22  ;;  %s30_s26 = sadd.s32 1, %s1808_s23  ;;  %s1812_s24 = sphi %s1857_s24, %s15_s24   ;;  %s1808_s23 = sphi %s1855_s23, %s2262_s23   ;;  %s1804_s22 = sphi %s1853_s22, %s2261_s22   ;;  %s1800_s21 = sphi %s1851_s21, %s2260_s21   ;;  %s1796_s20 = sphi %s1849_s20, %s2259_s20   ;;  %s1792_s19 = sphi %s1847_s19, %s2258_s19   ;;  %s1788_s18 = sphi %s1845_s18, %s2257_s18  }
   0x5   : > { %p28_p0 = scmp.ge.s32.totalorder %s27_s25, 9  ;;  %p78_p1 = scmp.ne.s32.totalorder %s1792_s19, %s1788_s18 }
   0x6   : > { %p79_p2 = scmp.eq.s32.totalorder %s1812_s24, 0  ;;  %s71_s30 = sadd.s32 1, %s1792_s19 }
   0x7   : > { %s2264_s25 = smov (%p28_p0, %s27_s25), 0  ;;  %s2266_s26 = smov (!%p28_p0, %s30_s26), %s1808_s23 }
   0x8   : > { %p80_p3 = por %p79_p2, %p78_p1  ;;  %p32_p4 = scmp.ge.s32.totalorder %s2266_s26, 2 }
   0x9   : > { %s66_s27 = ssub.s32 %s1804_s22, %s2264_s25  ;;  %p1360_p6 = scmp.ge.s32.totalorder %s1812_s24, 18 }
   0xa   : > { %s2268_s26 = smov (%p32_p4, %s2266_s26), 0 }
   0xb   : > { %s67_s28 = ssub.s32 %s1808_s23, %s2268_s26  ;;  %212 = sbr.rel (%p1360_p6) target bundleno = 87 (0x57), region = 16 }
   0xc   : > { %s68_s29 = sor.u32 %s67_s28, %s66_s27 }
   0xd   : > { %p69_p5 = scmp.eq.s32.totalorder %s68_s29, 0 }
   0xf   : > { %s1896_s6 = scalar_select %p69_p5, %s1792_s19, %s71_s30  }
  0x10   : > { %228 = sbr.rel (!%p80_p3) target bundleno = 87 (0x57), region = 24  ;;  %s230_s7 = sand.u32 (%p80_p3), 1, %s1792_s19  }
  0x11   : > { %s1363_s8 = sshll.u32 (%p80_p3), %s1808_s23, 1  ;;  %s1361_s9 = sshll.u32 (%p80_p3), %s230_s7, 9 }
  0x12   : > { %s1636_s10 = sshll.u32 (%p80_p3), %s1804_s22, 8  ;;  %s1910_s16 = scalar_lea.vmem (%p80_p3), [#allocation3], %s1361_s9 }
  0x13   : > { %s236_s11 = sadd.s32 (%p80_p3), %s1636_s10, %s1363_s8 }
  0x14   : > { %s1365_s12 = sshll.u32 (%p80_p3), %s236_s11, 2 }
  0x15   : > { %s1905_s15 = scalar_lea.vmem %s2252_s1, %s1365_s12 }
  0x16   : > { %v393_v0 = vld [vmem:[%s1905_s15] sm:$0xff]  ;;  %v395_v1 = vld [vmem:[%s1905_s15 + $0x10] sm:$0xff] }
  0x17   : > { %v397_v2 = vld [vmem:[%s1905_s15 + $0x20] sm:$0xff]  ;;  %394 = vst [vmem:[%s1910_s16] sm:$0xff] %v393_v0  ;;  %v399_v3 = vld [vmem:[%s1905_s15 + $0x30] sm:$0xff] }
  0x18   : > { %396 = vst [vmem:[%s1910_s16 + $0x8] sm:$0xff] %v395_v1  ;;  %v401_v4 = vld [vmem:[%s1905_s15 + $0x40] sm:$0xff]  ;;  %v403_v5 = vld [vmem:[%s1905_s15 + $0x50] sm:$0xff] }
  0x19   : > { %398 = vst [vmem:[%s1910_s16 + $0x10] sm:$0xff] %v397_v2  ;;  %v405_v6 = vld [vmem:[%s1905_s15 + $0x60] sm:$0xff]  ;;  %v407_v7 = vld [vmem:[%s1905_s15 + $0x70] sm:$0xff] }
  0x1a   : > { %400 = vst [vmem:[%s1910_s16 + $0x18] sm:$0xff] %v399_v3  ;;  %v409_v8 = vld [vmem:[%s1905_s15 + $0x80] sm:$0xff]  ;;  %v411_v9 = vld [vmem:[%s1905_s15 + $0x90] sm:$0xff] }
  0x1b   : > { %402 = vst [vmem:[%s1910_s16 + $0x20] sm:$0xff] %v401_v4  ;;  %v413_v10 = vld [vmem:[%s1905_s15 + $0xa0] sm:$0xff]  ;;  %v415_v11 = vld [vmem:[%s1905_s15 + $0xb0] sm:$0xff] }
  0x1c   : > { %404 = vst [vmem:[%s1910_s16 + $0x28] sm:$0xff] %v403_v5  ;;  %v417_v12 = vld [vmem:[%s1905_s15 + $0xc0] sm:$0xff]  ;;  %v419_v13 = vld [vmem:[%s1905_s15 + $0xd0] sm:$0xff] }
  0x1d   : > { %406 = vst [vmem:[%s1910_s16 + $0x30] sm:$0xff] %v405_v6  ;;  %v421_v14 = vld [vmem:[%s1905_s15 + $0xe0] sm:$0xff]  ;;  %v423_v15 = vld [vmem:[%s1905_s15 + $0xf0] sm:$0xff] }
  0x1e   : > { %408 = vst [vmem:[%s1910_s16 + $0x38] sm:$0xff] %v407_v7  ;;  %v425_v16 = vld [vmem:[%s1905_s15 + $0x100] sm:$0xff]  ;;  %v427_v17 = vld [vmem:[%s1905_s15 + $0x110] sm:$0xff] }
  0x1f   : > { %410 = vst [vmem:[%s1910_s16 + $0x40] sm:$0xff] %v409_v8  ;;  %v429_v18 = vld [vmem:[%s1905_s15 + $0x120] sm:$0xff]  ;;  %v431_v19 = vld [vmem:[%s1905_s15 + $0x130] sm:$0xff] }
  0x20   : > { %412 = vst [vmem:[%s1910_s16 + $0x48] sm:$0xff] %v411_v9  ;;  %v433_v20 = vld [vmem:[%s1905_s15 + $0x140] sm:$0xff]  ;;  %v435_v21 = vld [vmem:[%s1905_s15 + $0x150] sm:$0xff] }
  0x21   : > { %414 = vst [vmem:[%s1910_s16 + $0x50] sm:$0xff] %v413_v10  ;;  %v437_v22 = vld [vmem:[%s1905_s15 + $0x160] sm:$0xff]  ;;  %v439_v23 = vld [vmem:[%s1905_s15 + $0x170] sm:$0xff] }
  0x22   : > { %416 = vst [vmem:[%s1910_s16 + $0x58] sm:$0xff] %v415_v11  ;;  %v441_v24 = vld [vmem:[%s1905_s15 + $0x180] sm:$0xff]  ;;  %v443_v25 = vld [vmem:[%s1905_s15 + $0x190] sm:$0xff] }
  0x23   : > { %418 = vst [vmem:[%s1910_s16 + $0x60] sm:$0xff] %v417_v12  ;;  %v445_v26 = vld [vmem:[%s1905_s15 + $0x1a0] sm:$0xff]  ;;  %v447_v27 = vld [vmem:[%s1905_s15 + $0x1b0] sm:$0xff] }
  0x24   : > { %420 = vst [vmem:[%s1910_s16 + $0x68] sm:$0xff] %v419_v13  ;;  %v449_v28 = vld [vmem:[%s1905_s15 + $0x1c0] sm:$0xff]  ;;  %v451_v29 = vld [vmem:[%s1905_s15 + $0x1d0] sm:$0xff] }
  0x25   : > { %422 = vst [vmem:[%s1910_s16 + $0x70] sm:$0xff] %v421_v14  ;;  %v453_v30 = vld [vmem:[%s1905_s15 + $0x1e0] sm:$0xff]  ;;  %v455_v31 = vld [vmem:[%s1905_s15 + $0x1f0] sm:$0xff] }
  0x26   : > { %424 = vst [vmem:[%s1910_s16 + $0x78] sm:$0xff] %v423_v15  ;;  %v457_v32 = vld [vmem:[%s1905_s15 + $0x200] sm:$0xff]  ;;  %v459_v33 = vld [vmem:[%s1905_s15 + $0x210] sm:$0xff] }
  0x27   : > { %426 = vst [vmem:[%s1910_s16 + $0x80] sm:$0xff] %v425_v16  ;;  %v461_v34 = vld [vmem:[%s1905_s15 + $0x220] sm:$0xff]  ;;  %v463_v35 = vld [vmem:[%s1905_s15 + $0x230] sm:$0xff] }
  0x28   : > { %428 = vst [vmem:[%s1910_s16 + $0x88] sm:$0xff] %v427_v17  ;;  %v465_v36 = vld [vmem:[%s1905_s15 + $0x240] sm:$0xff]  ;;  %v467_v37 = vld [vmem:[%s1905_s15 + $0x250] sm:$0xff] }
  0x29   : > { %430 = vst [vmem:[%s1910_s16 + $0x90] sm:$0xff] %v429_v18  ;;  %v469_v38 = vld [vmem:[%s1905_s15 + $0x260] sm:$0xff]  ;;  %v471_v39 = vld [vmem:[%s1905_s15 + $0x270] sm:$0xff] }
  0x2a   : > { %432 = vst [vmem:[%s1910_s16 + $0x98] sm:$0xff] %v431_v19  ;;  %v473_v40 = vld [vmem:[%s1905_s15 + $0x280] sm:$0xff]  ;;  %v475_v41 = vld [vmem:[%s1905_s15 + $0x290] sm:$0xff] }
  0x2b   : > { %434 = vst [vmem:[%s1910_s16 + $0xa0] sm:$0xff] %v433_v20  ;;  %v477_v42 = vld [vmem:[%s1905_s15 + $0x2a0] sm:$0xff]  ;;  %v479_v43 = vld [vmem:[%s1905_s15 + $0x2b0] sm:$0xff] }
  0x2c   : > { %436 = vst [vmem:[%s1910_s16 + $0xa8] sm:$0xff] %v435_v21  ;;  %v481_v44 = vld [vmem:[%s1905_s15 + $0x2c0] sm:$0xff]  ;;  %v483_v45 = vld [vmem:[%s1905_s15 + $0x2d0] sm:$0xff] }
  0x2d   : > { %438 = vst [vmem:[%s1910_s16 + $0xb0] sm:$0xff] %v437_v22  ;;  %v485_v46 = vld [vmem:[%s1905_s15 + $0x2e0] sm:$0xff]  ;;  %v487_v47 = vld [vmem:[%s1905_s15 + $0x2f0] sm:$0xff] }
  0x2e   : > { %440 = vst [vmem:[%s1910_s16 + $0xb8] sm:$0xff] %v439_v23  ;;  %v489_v48 = vld [vmem:[%s1905_s15 + $0x300] sm:$0xff]  ;;  %v491_v49 = vld [vmem:[%s1905_s15 + $0x310] sm:$0xff] }
  0x2f   : > { %442 = vst [vmem:[%s1910_s16 + $0xc0] sm:$0xff] %v441_v24  ;;  %v493_v50 = vld [vmem:[%s1905_s15 + $0x320] sm:$0xff]  ;;  %v495_v51 = vld [vmem:[%s1905_s15 + $0x330] sm:$0xff] }
  0x30   : > { %444 = vst [vmem:[%s1910_s16 + $0xc8] sm:$0xff] %v443_v25  ;;  %v497_v52 = vld [vmem:[%s1905_s15 + $0x340] sm:$0xff]  ;;  %v499_v53 = vld [vmem:[%s1905_s15 + $0x350] sm:$0xff] }
  0x31   : > { %446 = vst [vmem:[%s1910_s16 + $0xd0] sm:$0xff] %v445_v26  ;;  %v501_v54 = vld [vmem:[%s1905_s15 + $0x360] sm:$0xff]  ;;  %v503_v55 = vld [vmem:[%s1905_s15 + $0x370] sm:$0xff] }
  0x32   : > { %448 = vst [vmem:[%s1910_s16 + $0xd8] sm:$0xff] %v447_v27  ;;  %v505_v56 = vld [vmem:[%s1905_s15 + $0x380] sm:$0xff]  ;;  %v507_v57 = vld [vmem:[%s1905_s15 + $0x390] sm:$0xff] }
  0x33   : > { %450 = vst [vmem:[%s1910_s16 + $0xe0] sm:$0xff] %v449_v28  ;;  %v509_v58 = vld [vmem:[%s1905_s15 + $0x3a0] sm:$0xff]  ;;  %v511_v59 = vld [vmem:[%s1905_s15 + $0x3b0] sm:$0xff] }
  0x34   : > { %452 = vst [vmem:[%s1910_s16 + $0xe8] sm:$0xff] %v451_v29  ;;  %v513_v60 = vld [vmem:[%s1905_s15 + $0x3c0] sm:$0xff]  ;;  %v515_v61 = vld [vmem:[%s1905_s15 + $0x3d0] sm:$0xff] }
  0x35   : > { %454 = vst [vmem:[%s1910_s16 + $0xf0] sm:$0xff] %v453_v30  ;;  %v517_v62 = vld [vmem:[%s1905_s15 + $0x3e0] sm:$0xff]  ;;  %v519_v63 = vld [vmem:[%s1905_s15 + $0x3f0] sm:$0xff] }
  0x36   : > { %456 = vst [vmem:[%s1910_s16 + $0xf8] sm:$0xff] %v455_v31 }
  0x37   : > { %458 = vst [vmem:[%s1910_s16 + $0x100] sm:$0xff] %v457_v32 }
  0x38   : > { %460 = vst [vmem:[%s1910_s16 + $0x108] sm:$0xff] %v459_v33 }
  0x39   : > { %462 = vst [vmem:[%s1910_s16 + $0x110] sm:$0xff] %v461_v34 }
  0x3a   : > { %464 = vst [vmem:[%s1910_s16 + $0x118] sm:$0xff] %v463_v35 }
  0x3b   : > { %466 = vst [vmem:[%s1910_s16 + $0x120] sm:$0xff] %v465_v36 }
  0x3c   : > { %468 = vst [vmem:[%s1910_s16 + $0x128] sm:$0xff] %v467_v37 }
  0x3d   : > { %470 = vst [vmem:[%s1910_s16 + $0x130] sm:$0xff] %v469_v38 }
  0x3e   : > { %472 = vst [vmem:[%s1910_s16 + $0x138] sm:$0xff] %v471_v39 }
  0x3f   : > { %474 = vst [vmem:[%s1910_s16 + $0x140] sm:$0xff] %v473_v40 }
  0x40   : > { %476 = vst [vmem:[%s1910_s16 + $0x148] sm:$0xff] %v475_v41 }
  0x41   : > { %478 = vst [vmem:[%s1910_s16 + $0x150] sm:$0xff] %v477_v42 }
  0x42   : > { %480 = vst [vmem:[%s1910_s16 + $0x158] sm:$0xff] %v479_v43 }
  0x43   : > { %482 = vst [vmem:[%s1910_s16 + $0x160] sm:$0xff] %v481_v44 }
  0x44   : > { %484 = vst [vmem:[%s1910_s16 + $0x168] sm:$0xff] %v483_v45 }
  0x45   : > { %486 = vst [vmem:[%s1910_s16 + $0x170] sm:$0xff] %v485_v46 }
  0x46   : > { %488 = vst [vmem:[%s1910_s16 + $0x178] sm:$0xff] %v487_v47 }
  0x47   : > { %490 = vst [vmem:[%s1910_s16 + $0x180] sm:$0xff] %v489_v48 }
  0x48   : > { %492 = vst [vmem:[%s1910_s16 + $0x188] sm:$0xff] %v491_v49 }
  0x49   : > { %494 = vst [vmem:[%s1910_s16 + $0x190] sm:$0xff] %v493_v50 }
  0x4a   : > { %496 = vst [vmem:[%s1910_s16 + $0x198] sm:$0xff] %v495_v51 }
  0x4b   : > { %498 = vst [vmem:[%s1910_s16 + $0x1a0] sm:$0xff] %v497_v52 }
  0x4c   : > { %500 = vst [vmem:[%s1910_s16 + $0x1a8] sm:$0xff] %v499_v53 }
  0x4d   : > { %502 = vst [vmem:[%s1910_s16 + $0x1b0] sm:$0xff] %v501_v54 }
  0x4e   : > { %504 = vst [vmem:[%s1910_s16 + $0x1b8] sm:$0xff] %v503_v55 }
  0x4f   : > { %506 = vst [vmem:[%s1910_s16 + $0x1c0] sm:$0xff] %v505_v56 }
  0x50   : > { %508 = vst [vmem:[%s1910_s16 + $0x1c8] sm:$0xff] %v507_v57 }
  0x51   : > { %510 = vst [vmem:[%s1910_s16 + $0x1d0] sm:$0xff] %v509_v58 }
  0x52   : > { %512 = vst [vmem:[%s1910_s16 + $0x1d8] sm:$0xff] %v511_v59 }
  0x53   : > { %514 = vst [vmem:[%s1910_s16 + $0x1e0] sm:$0xff] %v513_v60 }
  0x54   : > { %516 = vst [vmem:[%s1910_s16 + $0x1e8] sm:$0xff] %v515_v61 }
  0x55   : > { %518 = vst [vmem:[%s1910_s16 + $0x1f0] sm:$0xff] %v517_v62 }
  0x56   : > { %520 = vst [vmem:[%s1910_s16 + $0x1f8] sm:$0xff] %v519_v63 }
  0x57 PF: > { %p1366_p7 = scmp.ge.s32.totalorder %s1812_s24, 1  ;;  %p554_p8 = scmp.lt.s32.totalorder %s1812_s24, 19 }
  0x59   : > { %p555_p9 = pnand %p1366_p7, %p554_p8 }
  0x5a   : > { %s561_s17 = sand.u32 (!%p555_p9), 1, %s1788_s18   ;;  %s1368_s27 = sshll.u32 (!%p555_p9), %s1796_s20, 2 }
  0x5b   : > { %558 = sbr.rel (%p555_p9) target bundleno = 332 (0x14c), region = 74  ;;  %s1367_s28 = sshll.u32 (!%p555_p9), %s561_s17, 9 }
  0x5c   : > { %p621_p10 = scmp.lt.s32.totalorder (!%p555_p9), %s1368_s27, 35  ;;  %s1370_s29 = sshll.u32 (!%p555_p9), %s1800_s21, 1 }
  0x5d   : > { %p631_p11 = scmp.lt.s32.totalorder (!%p555_p9), %s1370_s29, 3  ;;  %s2068_s8 = scalar_lea.vmem (!%p555_p9), [#allocation3], %s1367_s28 }
  0x5e   : > { %p1376_p12 = scmp.ne.s32.totalorder (!%p555_p9), %s1796_s20, 0 }
  0x60   : > { %s2270_s27 = smov (!%p621_p10, %s1368_s27), 35  ;;  %s2272_s29 = smov (!%p631_p11, %s1370_s29), 3 }
  0x61   : > { %s1369_s30 = sshll.u32 %s2270_s27, 2  ;;  %s633_s18 = scalar_lea.vmem %s2253_s2, %s2272_s29 }
  0x62   : > { %s2045_s9 = scalar_lea.vmem %s2251_s0, %s1369_s30  ;;  %s638_s21 = scalar_lea.vmem %s2254_s3, %s2272_s29 }
  0x63   : > { %s1373_s14 = sshll.u32 %s2272_s29, 2  ;;  %663 = sbr.rel (%p1376_p12) target bundleno = 107 (0x6b), region = 82 }
  0x64   : > { %s2061_s17 = scalar_lea.vmem %s2255_s4, %s1373_s14  ;;  %s2066_s7 = scalar_lea.vmem %s2256_s5, %s1373_s14 }
  0x68   : > { %v1814_v0 = vmov 0.0  }
  0x69   : > { %664 = vst [vmem:[#allocation2] sm:$0xff] %v1814_v0 }
  0x6a   : > { %665 = vst [vmem:[#allocation2 + $0x8] sm:$0xff] %v1814_v0 }
  0x6b PF: > { %v1435_v1 = vld [vmem:[%s2068_s8 + $0x70] sm:$0xf]  ;;  %v1652_v2 = vld [vmem:[%s2068_s8 + $0x74] sm:$0xf0]  ;;  %v1427_v12 = vld [vmem:[%s2068_s8 + $0x60] sm:$0xf] }
  0x6c   : > { %v1499_v3 = vld [vmem:[%s2068_s8 + $0xf0] sm:$0xf]  ;;  %v1436_v4 = vor.u32 %v1652_v2, %v1435_v1  ;;  %v1668_v5 = vld [vmem:[%s2068_s8 + $0xf4] sm:$0xf0]  ;;  %v1650_v14 = vld [vmem:[%s2068_s8 + $0x64] sm:$0xf0] }
  0x6d   : > { %v1563_v6 = vld [vmem:[%s2068_s8 + $0x170] sm:$0xf]  ;;  %v1684_v7 = vld [vmem:[%s2068_s8 + $0x174] sm:$0xf0]  ;;  %v1500_v8 = vor.u32 %v1668_v5, %v1499_v3  ;;  %v1491_v15 = vld [vmem:[%s2068_s8 + $0xe0] sm:$0xf]  ;;  %v1428_v17 = vor.u32 %v1650_v14, %v1427_v12 }
  0x6e   : > { %v1564_v9 = vor.u32 %v1684_v7, %v1563_v6  ;;  %v1627_v10 = vld [vmem:[%s2068_s8 + $0x1f0] sm:$0xf]  ;;  %v1700_v11 = vld [vmem:[%s2068_s8 + $0x1f4] sm:$0xf0]  ;;  %1068 = vmatpush.bf16.msra.mxu0 %v1436_v4  ;;  %v1666_v16 = vld [vmem:[%s2068_s8 + $0xe4] sm:$0xf0] }
  0x6f   : > { %v1628_v13 = vor.u32 %v1700_v11, %v1627_v10  ;;  %1081 = vmatpush.bf16.msra.mxu1 %v1500_v8  ;;  %v1492_v18 = vor.u32 %v1666_v16, %v1491_v15  ;;  %v1555_v19 = vld [vmem:[%s2068_s8 + $0x160] sm:$0xf]  ;;  %v1682_v20 = vld [vmem:[%s2068_s8 + $0x164] sm:$0xf0]  ;;  %v1419_v24 = vld [vmem:[%s2068_s8 + $0x50] sm:$0xf] }
  0x70   : > { %1094 = vmatpush.bf16.msra.mxu2 %v1564_v9  ;;  %v1619_v21 = vld [vmem:[%s2068_s8 + $0x1e0] sm:$0xf]  ;;  %v1556_v22 = vor.u32 %v1682_v20, %v1555_v19  ;;  %v1698_v23 = vld [vmem:[%s2068_s8 + $0x1e4] sm:$0xf0]  ;;  %v1648_v25 = vld [vmem:[%s2068_s8 + $0x54] sm:$0xf0] }
  0x71   : > { %1107 = vmatpush.bf16.msra.mxu3 %v1628_v13  ;;  %v1620_v26 = vor.u32 %v1698_v23, %v1619_v21  ;;  %v1483_v27 = vld [vmem:[%s2068_s8 + $0xd0] sm:$0xf]  ;;  %v1664_v28 = vld [vmem:[%s2068_s8 + $0xd4] sm:$0xf0]  ;;  %v1420_v30 = vor.u32 %v1648_v25, %v1419_v24  ;;  %v1411_v36 = vld [vmem:[%s2068_s8 + $0x40] sm:$0xf] }
  0x72   : > { %v1547_v29 = vld [vmem:[%s2068_s8 + $0x150] sm:$0xf]  ;;  %1069 = vmatpush.bf16.msra.mxu0 %v1428_v17  ;;  %v1680_v31 = vld [vmem:[%s2068_s8 + $0x154] sm:$0xf0]  ;;  %v1484_v34 = vor.u32 %v1664_v28, %v1483_v27  ;;  %v1646_v37 = vld [vmem:[%s2068_s8 + $0x44] sm:$0xf0] }
  0x73   : > { %v1611_v32 = vld [vmem:[%s2068_s8 + $0x1d0] sm:$0xf]  ;;  %v1696_v33 = vld [vmem:[%s2068_s8 + $0x1d4] sm:$0xf0]  ;;  %1082 = vmatpush.bf16.msra.mxu1 %v1492_v18  ;;  %v1548_v35 = vor.u32 %v1680_v31, %v1547_v29  ;;  %v1475_v38 = vld [vmem:[%s2068_s8 + $0xc0] sm:$0xf]  ;;  %v1412_v45 = vor.u32 %v1646_v37, %v1411_v36 }
  0x74   : > { %1095 = vmatpush.bf16.msra.mxu2 %v1556_v22  ;;  %v1612_v39 = vor.u32 %v1696_v33, %v1611_v32  ;;  %v1662_v40 = vld [vmem:[%s2068_s8 + $0xc4] sm:$0xf0]  ;;  %v1539_v41 = vld [vmem:[%s2068_s8 + $0x140] sm:$0xf]  ;;  %v1403_v48 = vld [vmem:[%s2068_s8 + $0x30] sm:$0xf] }
  0x75   : > { %1108 = vmatpush.bf16.msra.mxu3 %v1620_v26  ;;  %v1678_v42 = vld [vmem:[%s2068_s8 + $0x144] sm:$0xf0]  ;;  %v1603_v43 = vld [vmem:[%s2068_s8 + $0x1c0] sm:$0xf]  ;;  %v1476_v46 = vor.u32 %v1662_v40, %v1475_v38  ;;  %v1644_v49 = vld [vmem:[%s2068_s8 + $0x34] sm:$0xf0] }
  0x76   : > { %v1694_v44 = vld [vmem:[%s2068_s8 + $0x1c4] sm:$0xf0]  ;;  %1070 = vmatpush.bf16.msra.mxu0 %v1420_v30  ;;  %v1540_v47 = vor.u32 %v1678_v42, %v1539_v41  ;;  %v1467_v50 = vld [vmem:[%s2068_s8 + $0xb0] sm:$0xf]  ;;  %v1660_v52 = vld [vmem:[%s2068_s8 + $0xb4] sm:$0xf0]  ;;  %v1404_v57 = vor.u32 %v1644_v49, %v1403_v48 }
  0x77   : > { %1083 = vmatpush.bf16.msra.mxu1 %v1484_v34  ;;  %v1604_v51 = vor.u32 %v1694_v44, %v1603_v43  ;;  %v1531_v53 = vld [vmem:[%s2068_s8 + $0x130] sm:$0xf]  ;;  %v1676_v54 = vld [vmem:[%s2068_s8 + $0x134] sm:$0xf0]  ;;  %v1468_v58 = vor.u32 %v1660_v52, %v1467_v50  ;;  %v1395_v60 = vld [vmem:[%s2068_s8 + $0x20] sm:$0xf] }
  0x78   : > { %1096 = vmatpush.bf16.msra.mxu2 %v1548_v35  ;;  %v1595_v55 = vld [vmem:[%s2068_s8 + $0x1b0] sm:$0xf]  ;;  %v1692_v56 = vld [vmem:[%s2068_s8 + $0x1b4] sm:$0xf0]  ;;  %v1532_v59 = vor.u32 %v1676_v54, %v1531_v53  ;;  %v1642_v61 = vld [vmem:[%s2068_s8 + $0x24] sm:$0xf0] }
  0x79   : > { %1109 = vmatpush.bf16.msra.mxu3 %v1612_v39  ;;  %v1459_v62 = vld [vmem:[%s2068_s8 + $0xa0] sm:$0xf]  ;;  %v1596_v63 = vor.u32 %v1692_v56, %v1595_v55  ;;  %v1658_v0 = vld [vmem:[%s2068_s8 + $0xa4] sm:$0xf0]  ;;  %v1396_v5 = vor.u32 %v1642_v61, %v1395_v60  ;;  %v1387_v8 = vld [vmem:[%s2068_s8 + $0x10] sm:$0xf] }
  0x7a   : > { %1071 = vmatpush.bf16.msra.mxu0 %v1412_v45  ;;  %v1523_v1 = vld [vmem:[%s2068_s8 + $0x120] sm:$0xf]  ;;  %v1674_v2 = vld [vmem:[%s2068_s8 + $0x124] sm:$0xf0]  ;;  %v1460_v6 = vor.u32 %v1658_v0, %v1459_v62  ;;  %v1640_v9 = vld [vmem:[%s2068_s8 + $0x14] sm:$0xf0] }
  0x7b   : > { %1084 = vmatpush.bf16.msra.mxu1 %v1476_v46  ;;  %v1587_v3 = vld [vmem:[%s2068_s8 + $0x1a0] sm:$0xf]  ;;  %v1690_v4 = vld [vmem:[%s2068_s8 + $0x1a4] sm:$0xf0]  ;;  %v1524_v7 = vor.u32 %v1674_v2, %v1523_v1  ;;  %v1451_v10 = vld [vmem:[%s2068_s8 + $0x90] sm:$0xf]  ;;  %v1388_v17 = vor.u32 %v1640_v9, %v1387_v8 }
  0x7c   : > { %1097 = vmatpush.bf16.msra.mxu2 %v1540_v47  ;;  %v1588_v11 = vor.u32 %v1690_v4, %v1587_v3  ;;  %v1656_v12 = vld [vmem:[%s2068_s8 + $0x94] sm:$0xf0]  ;;  %v1515_v13 = vld [vmem:[%s2068_s8 + $0x110] sm:$0xf]  ;;  %v1379_v18 = vld [vmem:[%s2068_s8] sm:$0xf] }
  0x7d   : > { %1110 = vmatpush.bf16.msra.mxu3 %v1604_v51  ;;  %v1672_v14 = vld [vmem:[%s2068_s8 + $0x114] sm:$0xf0]  ;;  %v1579_v15 = vld [vmem:[%s2068_s8 + $0x190] sm:$0xf]  ;;  %v1638_v19 = vld [vmem:[%s2068_s8 + $0x4] sm:$0xf0]  ;;  %v1452_v21 = vor.u32 %v1656_v12, %v1451_v10 }
  0x7e   : > { %1072 = vmatpush.bf16.msra.mxu0 %v1404_v57  ;;  %v1688_v16 = vld [vmem:[%s2068_s8 + $0x194] sm:$0xf0]  ;;  %v1443_v20 = vld [vmem:[%s2068_s8 + $0x80] sm:$0xf]  ;;  %v1516_v22 = vor.u32 %v1672_v14, %v1515_v13  ;;  %v1654_v23 = vld [vmem:[%s2068_s8 + $0x84] sm:$0xf0]  ;;  %v1380_v33 = vor.u32 %v1638_v19, %v1379_v18 }
  0x7f   : > { %1085 = vmatpush.bf16.msra.mxu1 %v1468_v58  ;;  %v1507_v24 = vld [vmem:[%s2068_s8 + $0x100] sm:$0xf]  ;;  %v1670_v25 = vld [vmem:[%s2068_s8 + $0x104] sm:$0xf0]  ;;  %v1580_v26 = vor.u32 %v1688_v16, %v1579_v15  ;;  %v1651_v29 = vld [vmem:[%s2068_s8 + $0x74] sm:$0xf]  ;;  %v1444_v38 = vor.u32 %v1654_v23, %v1443_v20 }
  0x80   : > { %1098 = vmatpush.bf16.msra.mxu2 %v1532_v59  ;;  %v1571_v27 = vld [vmem:[%s2068_s8 + $0x180] sm:$0xf]  ;;  %v1686_v28 = vld [vmem:[%s2068_s8 + $0x184] sm:$0xf0]  ;;  %v1437_v30 = vld [vmem:[%s2068_s8 + $0x78] sm:$0xf0]  ;;  %v1508_v39 = vor.u32 %v1670_v25, %v1507_v24 }
  0x81   : > { %1111 = vmatpush.bf16.msra.mxu3 %v1596_v63  ;;  %v1667_v31 = vld [vmem:[%s2068_s8 + $0xf4] sm:$0xf]  ;;  %v669_v32 = vld [vmem:[%s2045_s9 + $0x8] sm:$0xff]  ;;  %v1572_v43 = vor.u32 %v1686_v28, %v1571_v27  ;;  %v1440_v44 = vor.u32 %v1651_v29, %v1437_v30  ;;  %v1649_v48 = vld [vmem:[%s2068_s8 + $0x64] sm:$0xf]  ;;  %p1633_p13 = scmp.ne.s32.totalorder %s1796_s20, 8 }
  0x82   : > { %1073 = vmatpush.bf16.msra.mxu0 %v1396_v5  ;;  %v1501_v34 = vld [vmem:[%s2068_s8 + $0xf8] sm:$0xf0]  ;;  %v1683_v35 = vld [vmem:[%s2068_s8 + $0x174] sm:$0xf]  ;;  %v738_v37 = vunpack.c.l.b16 %v669_v32  ;;  %v739_v42 = vunpack.c.h.b16 %v669_v32  ;;  %v1429_v49 = vld [vmem:[%s2068_s8 + $0x68] sm:$0xf0] }
  0x83   : > { %1086 = vmatpush.bf16.msra.mxu1 %v1460_v6  ;;  %v1565_v36 = vld [vmem:[%s2068_s8 + $0x178] sm:$0xf0]  ;;  %v1699_v40 = vld [vmem:[%s2068_s8 + $0x1f4] sm:$0xf]  ;;  %v1504_v46 = vor.u32 %v1667_v31, %v1501_v34  ;;  %v1665_v50 = vld [vmem:[%s2068_s8 + $0xe4] sm:$0xf]  ;;  %v1432_v62 = vor.u32 %v1649_v48, %v1429_v49 }
  0x84   : > { %1099 = vmatpush.bf16.msra.mxu2 %v1524_v7  ;;  %v1629_v41 = vld [vmem:[%s2068_s8 + $0x1f8] sm:$0xf0]  ;;  %v668_v45 = vld [vmem:[%s2045_s9] sm:$0xff]  ;;  %v1568_v47 = vor.u32 %v1683_v35, %v1565_v36  ;;  %v1493_v54 = vld [vmem:[%s2068_s8 + $0xe8] sm:$0xf0]  ;;  %v2151_v57 = vpack.c.b16 %v738_v37, %v738_v37  ;;  %v2155_v60 = vpack.c.b16 %v739_v42, %v739_v42 }
  0x85   : > { %1112 = vmatpush.bf16.msra.mxu3 %v1588_v11  ;;  %v736_v51 = vunpack.c.l.b16 %v668_v45  ;;  %v737_v52 = vunpack.c.h.b16 %v668_v45  ;;  %v1632_v53 = vor.u32 %v1699_v40, %v1629_v41  ;;  %v1681_v55 = vld [vmem:[%s2068_s8 + $0x164] sm:$0xf]  ;;  %v1557_v56 = vld [vmem:[%s2068_s8 + $0x168] sm:$0xf0]  ;;  %v1496_v0 = vor.u32 %v1665_v50, %v1493_v54  ;;  %v1647_v2 = vld [vmem:[%s2068_s8 + $0x54] sm:$0xf] }
  0x86   : > { %1074 = vmatpush.bf16.msra.mxu0 %v1388_v17  ;;  %v1697_v58 = vld [vmem:[%s2068_s8 + $0x1e4] sm:$0xf]  ;;  %v1621_v59 = vld [vmem:[%s2068_s8 + $0x1e8] sm:$0xf0]  ;;  %v1560_v1 = vor.u32 %v1681_v55, %v1557_v56  ;;  %v1421_v3 = vld [vmem:[%s2068_s8 + $0x58] sm:$0xf0] }
  0x87   : > { %1087 = vmatpush.bf16.msra.mxu1 %v1452_v21  ;;  %v2157_v61 = vpack.c.b16 %v736_v51, %v736_v51  ;;  %v2159_v63 = vpack.c.b16 %v737_v52, %v737_v52  ;;  %v1663_v4 = vld [vmem:[%s2068_s8 + $0xd4] sm:$0xf]  ;;  %v1624_v5 = vor.u32 %v1697_v58, %v1621_v59  ;;  %v1485_v6 = vld [vmem:[%s2068_s8 + $0xd8] sm:$0xf0]  ;;  %v1424_v11 = vor.u32 %v1647_v2, %v1421_v3  ;;  %v1645_v14 = vld [vmem:[%s2068_s8 + $0x44] sm:$0xf] }
  0x88   : > { %1100 = vmatpush.bf16.msra.mxu2 %v1516_v22  ;;  %v1679_v7 = vld [vmem:[%s2068_s8 + $0x154] sm:$0xf]  ;;  %v1549_v8 = vld [vmem:[%s2068_s8 + $0x158] sm:$0xf0]  ;;  %v1488_v12 = vor.u32 %v1663_v4, %v1485_v6  ;;  %v1413_v15 = vld [vmem:[%s2068_s8 + $0x48] sm:$0xf0] }
  0x89   : > { %1113 = vmatpush.bf16.msra.mxu3 %v1580_v26  ;;  %v1695_v9 = vld [vmem:[%s2068_s8 + $0x1d4] sm:$0xf]  ;;  %v1613_v10 = vld [vmem:[%s2068_s8 + $0x1d8] sm:$0xf0]  ;;  %v1552_v13 = vor.u32 %v1679_v7, %v1549_v8  ;;  %v1661_v16 = vld [vmem:[%s2068_s8 + $0xc4] sm:$0xf]  ;;  %v1416_v23 = vor.u32 %v1645_v14, %v1413_v15 }
  0x8a   : > { %1075 = vmatpush.bf16.msra.mxu0 %v1380_v33  ;;  %v1616_v17 = vor.u32 %v1695_v9, %v1613_v10  ;;  %v1477_v18 = vld [vmem:[%s2068_s8 + $0xc8] sm:$0xf0]  ;;  %v1677_v19 = vld [vmem:[%s2068_s8 + $0x144] sm:$0xf]  ;;  %v1643_v26 = vld [vmem:[%s2068_s8 + $0x34] sm:$0xf] }
  0x8b   : > { %1088 = vmatpush.bf16.msra.mxu1 %v1444_v38  ;;  %v1541_v20 = vld [vmem:[%s2068_s8 + $0x148] sm:$0xf0]  ;;  %v1693_v21 = vld [vmem:[%s2068_s8 + $0x1c4] sm:$0xf]  ;;  %v1480_v24 = vor.u32 %v1661_v16, %v1477_v18  ;;  %v1405_v27 = vld [vmem:[%s2068_s8 + $0x38] sm:$0xf0] }
  0x8c   : > { %1101 = vmatpush.bf16.msra.mxu2 %v1508_v39  ;;  %v1605_v22 = vld [vmem:[%s2068_s8 + $0x1c8] sm:$0xf0]  ;;  %v1544_v25 = vor.u32 %v1677_v19, %v1541_v20  ;;  %v1659_v28 = vld [vmem:[%s2068_s8 + $0xb4] sm:$0xf]  ;;  %v1469_v30 = vld [vmem:[%s2068_s8 + $0xb8] sm:$0xf0]  ;;  %v1408_v35 = vor.u32 %v1643_v26, %v1405_v27 }
  0x8d   : > { %1114 = vmatpush.bf16.msra.mxu3 %v1572_v43  ;;  %1076 = vmatmul.bf16.vlgmr.msra.gmra.mxu0 %v2157_v61  ;;  %v1608_v29 = vor.u32 %v1693_v21, %v1605_v22  ;;  %v1675_v31 = vld [vmem:[%s2068_s8 + $0x134] sm:$0xf]  ;;  %v1533_v32 = vld [vmem:[%s2068_s8 + $0x138] sm:$0xf0]  ;;  %v1472_v36 = vor.u32 %v1659_v28, %v1469_v30  ;;  %v1641_v38 = vld [vmem:[%s2068_s8 + $0x24] sm:$0xf] }
  0x8e   : > { %1120 = vmatpush.bf16.msrb.mxu0 %v1440_v44  ;;  %1089 = vmatmul.bf16.vlgmr.msra.gmra.mxu1 %v2159_v63  ;;  %v1691_v33 = vld [vmem:[%s2068_s8 + $0x1b4] sm:$0xf]  ;;  %v1597_v34 = vld [vmem:[%s2068_s8 + $0x1b8] sm:$0xf0]  ;;  %v1536_v37 = vor.u32 %v1675_v31, %v1533_v32  ;;  %v1397_v39 = vld [vmem:[%s2068_s8 + $0x28] sm:$0xf0] }
  0x8f   : > { %1133 = vmatpush.bf16.msrb.mxu1 %v1504_v46  ;;  %1102 = vmatmul.bf16.vlgmr.msra.gmra.mxu2 %v2151_v57  ;;  %v1657_v40 = vld [vmem:[%s2068_s8 + $0xa4] sm:$0xf]  ;;  %v1600_v41 = vor.u32 %v1691_v33, %v1597_v34  ;;  %v1461_v42 = vld [vmem:[%s2068_s8 + $0xa8] sm:$0xf0]  ;;  %v1639_v50 = vld [vmem:[%s2068_s8 + $0x14] sm:$0xf] }
  0x90   : > { %1146 = vmatpush.bf16.msrb.mxu2 %v1568_v47  ;;  %1115 = vmatmul.bf16.vlgmr.msra.gmra.mxu3 %v2155_v60  ;;  %v1673_v43 = vld [vmem:[%s2068_s8 + $0x124] sm:$0xf]  ;;  %v1525_v44 = vld [vmem:[%s2068_s8 + $0x128] sm:$0xf0]  ;;  %v1400_v47 = vor.u32 %v1641_v38, %v1397_v39  ;;  %v1464_v48 = vor.u32 %v1657_v40, %v1461_v42  ;;  %v1389_v51 = vld [vmem:[%s2068_s8 + $0x18] sm:$0xf0] }
  0x91   : > { %1159 = vmatpush.bf16.msrb.mxu3 %v1632_v53  ;;  %v1689_v45 = vld [vmem:[%s2068_s8 + $0x1a4] sm:$0xf]  ;;  %v1589_v46 = vld [vmem:[%s2068_s8 + $0x1a8] sm:$0xf0]  ;;  %v1528_v49 = vor.u32 %v1673_v43, %v1525_v44  ;;  %v1655_v52 = vld [vmem:[%s2068_s8 + $0x94] sm:$0xf] }
  0x92   : > { %1121 = vmatpush.bf16.msrb.mxu0 %v1432_v62  ;;  %v1592_v53 = vor.u32 %v1689_v45, %v1589_v46  ;;  %v1453_v54 = vld [vmem:[%s2068_s8 + $0x98] sm:$0xf0]  ;;  %v1671_v55 = vld [vmem:[%s2068_s8 + $0x114] sm:$0xf]  ;;  %v1392_v62 = vor.u32 %v1639_v50, %v1389_v51  ;;  %v1637_v2 = vld [vmem:[%s2068_s8 + $0x4] sm:$0xf] }
  0x93   : > { %1134 = vmatpush.bf16.msrb.mxu1 %v1496_v0  ;;  %v1517_v56 = vld [vmem:[%s2068_s8 + $0x118] sm:$0xf0]  ;;  %v1687_v58 = vld [vmem:[%s2068_s8 + $0x194] sm:$0xf]  ;;  %v1456_v0 = vor.u32 %v1655_v52, %v1453_v54  ;;  %v1381_v3 = vld [vmem:[%s2068_s8 + $0x8] sm:$0xf0] }
  0x94   : > { %1147 = vmatpush.bf16.msrb.mxu2 %v1560_v1  ;;  %v1581_v59 = vld [vmem:[%s2068_s8 + $0x198] sm:$0xf0]  ;;  %v1520_v1 = vor.u32 %v1671_v55, %v1517_v56  ;;  %v1653_v4 = vld [vmem:[%s2068_s8 + $0x84] sm:$0xf]  ;;  %v1445_v6 = vld [vmem:[%s2068_s8 + $0x88] sm:$0xf0] }
  0x95   : > { %1160 = vmatpush.bf16.msrb.mxu3 %v1624_v5  ;;  %v1584_v5 = vor.u32 %v1687_v58, %v1581_v59  ;;  %v1669_v7 = vld [vmem:[%s2068_s8 + $0x104] sm:$0xf]  ;;  %v1509_v8 = vld [vmem:[%s2068_s8 + $0x108] sm:$0xf0]  ;;  %v666_v21 = vld [vmem:[#allocation2] sm:$0xff] }
  0x96   : > { %1122 = vmatpush.bf16.msrb.mxu0 %v1424_v11  ;;  %v1685_v9 = vld [vmem:[%s2068_s8 + $0x184] sm:$0xf]  ;;  %v1573_v10 = vld [vmem:[%s2068_s8 + $0x188] sm:$0xf0]  ;;  %v1384_v11 = vor.u32 %v1637_v2, %v1381_v3  ;;  %v667_v31 = vld [vmem:[#allocation2 + $0x8] sm:$0xff] }
  0x97   : > { %1135 = vmatpush.bf16.msrb.mxu1 %v1488_v12  ;;  %v1448_v12 = vor.u32 %v1653_v4, %v1445_v6  ;;  %v1576_v14 = vor.u32 %v1685_v9, %v1573_v10 }
  0x98   : > { %1148 = vmatpush.bf16.msrb.mxu2 %v1552_v13  ;;  %v1512_v13 = vor.u32 %v1669_v7, %v1509_v8 }
  0x99   : > { %1161 = vmatpush.bf16.msrb.mxu3 %v1616_v17 }
  0x9a   : > { %1123 = vmatpush.bf16.msrb.mxu0 %v1416_v23 }
  0x9b   : > { %1136 = vmatpush.bf16.msrb.mxu1 %v1480_v24 }
  0x9c   : > { %1149 = vmatpush.bf16.msrb.mxu2 %v1544_v25 }
  0x9d   : > { %1162 = vmatpush.bf16.msrb.mxu3 %v1608_v29 }
  0x9e   : > { %1124 = vmatpush.bf16.msrb.mxu0 %v1408_v35 }
  0x9f   : > { %1137 = vmatpush.bf16.msrb.mxu1 %v1472_v36 }
  0xa0   : > { %1150 = vmatpush.bf16.msrb.mxu2 %v1536_v37 }
  0xa1   : > { %1163 = vmatpush.bf16.msrb.mxu3 %v1600_v41 }
  0xa2   : > { %1125 = vmatpush.bf16.msrb.mxu0 %v1400_v47 }
  0xa3   : > { %1138 = vmatpush.bf16.msrb.mxu1 %v1464_v48 }
  0xa4   : > { %1151 = vmatpush.bf16.msrb.mxu2 %v1528_v49 }
  0xa5   : > { %1164 = vmatpush.bf16.msrb.mxu3 %v1592_v53 }
  0xa6   : > { %1126 = vmatpush.bf16.msrb.mxu0 %v1392_v62 }
  0xa7   : > { %1139 = vmatpush.bf16.msrb.mxu1 %v1456_v0 }
  0xa8   : > { %1152 = vmatpush.bf16.msrb.mxu2 %v1520_v1 }
  0xa9   : > { %1165 = vmatpush.bf16.msrb.mxu3 %v1584_v5 }
  0xaa   : > { %1127 = vmatpush.bf16.msrb.mxu0 %v1384_v11 }
  0xab   : > { %1140 = vmatpush.bf16.msrb.mxu1 %v1448_v12 }
  0xac   : > { %1153 = vmatpush.bf16.msrb.mxu2 %v1512_v13 }
  0xad   : > { %1166 = vmatpush.bf16.msrb.mxu3 %v1576_v14  ;;  %1128 = vmatmul.bf16.vlgmr.msrb.gmra.mxu0 %v2157_v61 }
  0xae   : > { %1141 = vmatmul.bf16.vlgmr.msrb.gmra.mxu1 %v2159_v63 }
  0xaf   : > { %1154 = vmatmul.bf16.vlgmr.msrb.gmra.mxu2 %v2151_v57 }
  0xb0   : > { %1167 = vmatmul.bf16.vlgmr.msrb.gmra.mxu3 %v2155_v60 }
 0x10a   : > { %v1077_v15 = vpop.f32.mrf.mxu0 }
 0x10b   : > { %v1090_v16 = vpop.f32.mrf.mxu1 }
 0x10c   : > { %v1091_v17 = vadd.f32 %v1090_v16, %v1077_v15 }
 0x112   : > { %v1103_v18 = vpop.f32.mrf.mxu2  ;;  %v1079_v23 = vpop.f32.mrf.mxu0 }
 0x113   : > { %v1104_v19 = vadd.f32 %v1103_v18, %v1091_v17  ;;  %v1116_v20 = vpop.f32.mrf.mxu3  ;;  %v1092_v24 = vpop.f32.mrf.mxu1 }
 0x115   : > { %v1117_v22 = vadd.f32 %v1116_v20, %v1104_v19 }
 0x117   : > { %v1172_v25 = vadd.f32 %v1117_v22, %v666_v21 }
 0x119   : > { %1174 = vst [vmem:[#allocation2] sm:$0xff] %v1172_v25 }
 0x11a   : > { %v1105_v26 = vpop.f32.mrf.mxu2 }
 0x11b   : > { %v1118_v61 = vpop.f32.mrf.mxu3 }
 0x12a   : > { %v1129_v27 = vpop.f32.mrf.mxu0 }
 0x12b   : > { %v1142_v63 = vpop.f32.mrf.mxu1 }
 0x12c   : > { %v1143_v28 = vadd.f32 %v1142_v63, %v1129_v27 }
 0x132   : > { %v1155_v57 = vpop.f32.mrf.mxu2  ;;  %v1131_v30 = vpop.f32.mrf.mxu0 }
 0x133   : > { %v1156_v29 = vadd.f32 %v1155_v57, %v1143_v28  ;;  %v1168_v60 = vpop.f32.mrf.mxu3  ;;  %v1144_v32 = vpop.f32.mrf.mxu1 }
 0x135   : > { %v1169_v33 = vadd.f32 %v1168_v60, %v1156_v29 }
 0x137   : > { %v1173_v34 = vadd.f32 %v1169_v33, %v667_v31  ;;  %1179 = sbr.rel (%p1633_p13) target bundleno = 332 (0x14c), region = 86 }
 0x139   : > { %1175 = vst [vmem:[#allocation2 + $0x8] sm:$0xff] %v1173_v34 }
 0x13a   : > { %v1157_v35 = vpop.f32.mrf.mxu2 }
 0x13b   : > { %v1170_v36 = vpop.f32.mrf.mxu3 }
 0x13c   : > { %v1180_v37 = vld [vmem:[#allocation2] sm:$0xff] }
 0x13d   : > { %v1182_v39 = vld [vmem:[%s633_s18] sm:$0x3] }
 0x13e   : > { %v1184_v40 = vperm.slane %v1182_v39, 0  ;;  %v1185_v41 = vperm.slane %v1182_v39, 1  ;;  %v1190_v42 = vld [vmem:[%s638_s21] sm:$0x3] }
 0x13f   : > { %v1198_v43 = vld [vmem:[%s2061_s17] sm:$0xff]  ;;  %v1192_v44 = vperm.slane %v1190_v42, 0  ;;  %v1193_v45 = vperm.slane %v1190_v42, 1 }
 0x140   : > { %v1181_v38 = vld [vmem:[#allocation2 + $0x8] sm:$0xff]  ;;  %v1188_v46 = vmul.f32 %v1184_v40, %v1180_v37  ;;  %v1199_v48 = vunpack.c.l.bf16 %v1198_v43  ;;  %v1200_v49 = vunpack.c.h.bf16 %v1198_v43 }
 0x141   : > { %v1189_v47 = vmul.f32 %v1185_v41, %v1181_v38 }
 0x142   : > { %v1196_v50 = vadd.f32 %v1192_v44, %v1188_v46 }
 0x143   : > { %v1197_v51 = vadd.f32 %v1193_v45, %v1189_v47 }
 0x144   : > { %v1201_v52 = vadd.f32 %v1199_v48, %v1196_v50 }
 0x145   : > { %v1202_v53 = vadd.f32 %v1200_v49, %v1197_v51 }
 0x146   : > { %v1203_v54 = vmax.f32 %v1201_v52, 0.0 }
 0x147   : > { %v1204_v55 = vmax.f32 %v1202_v53, 0.0 }
 0x149   : > { %v1205_v56 = vpack.c.bf16 %v1204_v55, %v1203_v54 }
 0x14b   : > { %1206 = vst [vmem:[%s2066_s7] sm:$0xff] %v1205_v56 }
 0x14c PF: > { %s15_s24 = sadd.s32 1, %s1812_s24   ;;  %s2257_s18 = smov %s1792_s19 }
 0x14d   : > { %p12_p0 = scmp.ge.s32.totalorder %s15_s24, 20   ;;  %s2258_s19 = smov %s1896_s6 }
 0x14e   : > { %s2259_s20 = smov %s1804_s22  ;;  %s2260_s21 = smov %s1808_s23 }
 0x14f   : > { %s2261_s22 = smov %s2264_s25  ;;  %s2262_s23 = smov %s2268_s26 }
 0x150   :  { %14 = sbr.rel (!%p12_p0) target bundleno = 4 (0x4), region = 133 }

// kernel: forward.23
= control target key start
LH: loop header
LB: loop body
LE: loop exit
PB: predicated region body
PF: predicated region fallthrough
CT: control target
= control target key end

     0   :  { %s1170_s15 = smov 0   ;;  %s1172_s16 = smov 0   ;;  %s1378_s0 = inlined_call_operand.vmem [shape: bf16[8,256], index: 0, kind: input, shape index: {}]   ;;  %s1379_s1 = inlined_call_operand.vmem [shape: bf16[256,512], index: 1, kind: input, shape index: {}]   ;;  %s1380_s2 = inlined_call_operand.vmem [shape: f32[1,512], index: 2, kind: input, shape index: {}]   ;;  %s1381_s3 = inlined_call_operand.vmem [shape: f32[1,512], index: 3, kind: input, shape index: {}]   ;;  %s1382_s4 = inlined_call_operand.vmem [shape: bf16[8,512], index: 4, kind: output, shape index: {}]  }
   0x1   :  { %s1174_s17 = smov 0   ;;  %s1176_s18 = smov 0  }
   0x2   :  { %s1178_s19 = smov 0  }
   0x3 LB: > { %s29_s20 = sadd.s32 1, %s1139_s18  ;;  %p77_p1 = scmp.ne.s32.totalorder %s1131_s16, %s1127_s15  ;;  %s1143_s19 = sphi %s1178_s19, %s14_s19   ;;  %s1139_s18 = sphi %s1176_s18, %s1386_s18   ;;  %s1135_s17 = sphi %s1174_s17, %s1385_s17   ;;  %s1131_s16 = sphi %s1172_s16, %s1384_s16   ;;  %s1127_s15 = sphi %s1170_s15, %s1383_s15  }
   0x4   : > { %p31_p0 = scmp.ge.s32.totalorder %s29_s20, 2  ;;  %p78_p2 = scmp.eq.s32.totalorder %s1143_s19, 0 }
   0x5   : > { %s70_s22 = sadd.s32 1, %s1131_s16  ;;  %p892_p5 = scmp.ge.s32.totalorder %s1143_s19, 2 }
   0x6   : > { %s1388_s20 = smov (%p31_p0, %s29_s20), 0  ;;  %p79_p3 = por %p78_p2, %p77_p1 }
   0x7   : > { %s66_s21 = ssub.s32 %s1139_s18, %s1388_s20  ;;  %196 = sbr.rel (%p892_p5) target bundleno = 48 (0x30), region = 20 }
   0x8   : > { %p68_p4 = scmp.eq.s32.totalorder %s66_s21, 0 }
   0xa   : > { %s1205_s23 = scalar_select %p68_p4, %s1131_s16, %s70_s22  }
   0xc   : > { %199 = sbr.rel (!%p79_p3) target bundleno = 48 (0x30), region = 24  ;;  %s201_s24 = sand.u32 (%p79_p3), 1, %s1131_s16  }
   0xd   : > { %s1032_s25 = sshll.u32 (%p79_p3), %s1139_s18, 3  ;;  %s893_s26 = sshll.u32 (%p79_p3), %s201_s24, 8 }
   0xe   : > { %s1213_s29 = scalar_lea.vmem (%p79_p3), %s1379_s1, %s1032_s25  ;;  %s1218_s30 = scalar_lea.vmem (%p79_p3), [#allocation3], %s893_s26 }
   0xf   : > { %v300_v0 = vld [vmem:[%s1213_s29] sm:$0xff] (%p79_p3)  ;;  %v302_v1 = vld [vmem:[%s1213_s29 + $0x10] sm:$0xff] (%p79_p3) }
  0x10   : > { %v304_v2 = vld [vmem:[%s1213_s29 + $0x20] sm:$0xff] (%p79_p3)  ;;  %301 = vst [vmem:[%s1218_s30] sm:$0xff] (%p79_p3), %v300_v0  ;;  %v306_v3 = vld [vmem:[%s1213_s29 + $0x30] sm:$0xff] (%p79_p3) }
  0x11   : > { %303 = vst [vmem:[%s1218_s30 + $0x8] sm:$0xff] %v302_v1  ;;  %v308_v4 = vld [vmem:[%s1213_s29 + $0x40] sm:$0xff]  ;;  %v310_v5 = vld [vmem:[%s1213_s29 + $0x50] sm:$0xff] }
  0x12   : > { %305 = vst [vmem:[%s1218_s30 + $0x10] sm:$0xff] %v304_v2  ;;  %v312_v6 = vld [vmem:[%s1213_s29 + $0x60] sm:$0xff]  ;;  %v314_v7 = vld [vmem:[%s1213_s29 + $0x70] sm:$0xff] }
  0x13   : > { %307 = vst [vmem:[%s1218_s30 + $0x18] sm:$0xff] %v306_v3  ;;  %v316_v8 = vld [vmem:[%s1213_s29 + $0x80] sm:$0xff]  ;;  %v318_v9 = vld [vmem:[%s1213_s29 + $0x90] sm:$0xff] }
  0x14   : > { %309 = vst [vmem:[%s1218_s30 + $0x20] sm:$0xff] %v308_v4  ;;  %v320_v10 = vld [vmem:[%s1213_s29 + $0xa0] sm:$0xff]  ;;  %v322_v11 = vld [vmem:[%s1213_s29 + $0xb0] sm:$0xff] }
  0x15   : > { %311 = vst [vmem:[%s1218_s30 + $0x28] sm:$0xff] %v310_v5  ;;  %v324_v12 = vld [vmem:[%s1213_s29 + $0xc0] sm:$0xff]  ;;  %v326_v13 = vld [vmem:[%s1213_s29 + $0xd0] sm:$0xff] }
  0x16   : > { %313 = vst [vmem:[%s1218_s30 + $0x30] sm:$0xff] %v312_v6  ;;  %v328_v14 = vld [vmem:[%s1213_s29 + $0xe0] sm:$0xff]  ;;  %v330_v15 = vld [vmem:[%s1213_s29 + $0xf0] sm:$0xff] }
  0x17   : > { %315 = vst [vmem:[%s1218_s30 + $0x38] sm:$0xff] %v314_v7  ;;  %v332_v16 = vld [vmem:[%s1213_s29 + $0x100] sm:$0xff]  ;;  %v334_v17 = vld [vmem:[%s1213_s29 + $0x110] sm:$0xff] }
  0x18   : > { %317 = vst [vmem:[%s1218_s30 + $0x40] sm:$0xff] %v316_v8  ;;  %v336_v18 = vld [vmem:[%s1213_s29 + $0x120] sm:$0xff]  ;;  %v338_v19 = vld [vmem:[%s1213_s29 + $0x130] sm:$0xff] }
  0x19   : > { %319 = vst [vmem:[%s1218_s30 + $0x48] sm:$0xff] %v318_v9  ;;  %v340_v20 = vld [vmem:[%s1213_s29 + $0x140] sm:$0xff]  ;;  %v342_v21 = vld [vmem:[%s1213_s29 + $0x150] sm:$0xff] }
  0x1a   : > { %321 = vst [vmem:[%s1218_s30 + $0x50] sm:$0xff] %v320_v10  ;;  %v344_v22 = vld [vmem:[%s1213_s29 + $0x160] sm:$0xff]  ;;  %v346_v23 = vld [vmem:[%s1213_s29 + $0x170] sm:$0xff] }
  0x1b   : > { %323 = vst [vmem:[%s1218_s30 + $0x58] sm:$0xff] %v322_v11  ;;  %v348_v24 = vld [vmem:[%s1213_s29 + $0x180] sm:$0xff]  ;;  %v350_v25 = vld [vmem:[%s1213_s29 + $0x190] sm:$0xff] }
  0x1c   : > { %325 = vst [vmem:[%s1218_s30 + $0x60] sm:$0xff] %v324_v12  ;;  %v352_v26 = vld [vmem:[%s1213_s29 + $0x1a0] sm:$0xff]  ;;  %v354_v27 = vld [vmem:[%s1213_s29 + $0x1b0] sm:$0xff] }
  0x1d   : > { %327 = vst [vmem:[%s1218_s30 + $0x68] sm:$0xff] %v326_v13  ;;  %v356_v28 = vld [vmem:[%s1213_s29 + $0x1c0] sm:$0xff]  ;;  %v358_v29 = vld [vmem:[%s1213_s29 + $0x1d0] sm:$0xff] }
  0x1e   : > { %329 = vst [vmem:[%s1218_s30 + $0x70] sm:$0xff] %v328_v14  ;;  %v360_v30 = vld [vmem:[%s1213_s29 + $0x1e0] sm:$0xff]  ;;  %v362_v31 = vld [vmem:[%s1213_s29 + $0x1f0] sm:$0xff] }
  0x1f   : > { %331 = vst [vmem:[%s1218_s30 + $0x78] sm:$0xff] %v330_v15 }
  0x20   : > { %333 = vst [vmem:[%s1218_s30 + $0x80] sm:$0xff] %v332_v16 }
  0x21   : > { %335 = vst [vmem:[%s1218_s30 + $0x88] sm:$0xff] %v334_v17 }
  0x22   : > { %337 = vst [vmem:[%s1218_s30 + $0x90] sm:$0xff] %v336_v18 }
  0x23   : > { %339 = vst [vmem:[%s1218_s30 + $0x98] sm:$0xff] %v338_v19 }
  0x24   : > { %341 = vst [vmem:[%s1218_s30 + $0xa0] sm:$0xff] %v340_v20 }
  0x25   : > { %343 = vst [vmem:[%s1218_s30 + $0xa8] sm:$0xff] %v342_v21 }
  0x26   : > { %345 = vst [vmem:[%s1218_s30 + $0xb0] sm:$0xff] %v344_v22 }
  0x27   : > { %347 = vst [vmem:[%s1218_s30 + $0xb8] sm:$0xff] %v346_v23 }
  0x28   : > { %349 = vst [vmem:[%s1218_s30 + $0xc0] sm:$0xff] %v348_v24 }
  0x29   : > { %351 = vst [vmem:[%s1218_s30 + $0xc8] sm:$0xff] %v350_v25 }
  0x2a   : > { %353 = vst [vmem:[%s1218_s30 + $0xd0] sm:$0xff] %v352_v26 }
  0x2b   : > { %355 = vst [vmem:[%s1218_s30 + $0xd8] sm:$0xff] %v354_v27 }
  0x2c   : > { %357 = vst [vmem:[%s1218_s30 + $0xe0] sm:$0xff] %v356_v28 }
  0x2d   : > { %359 = vst [vmem:[%s1218_s30 + $0xe8] sm:$0xff] %v358_v29 }
  0x2e   : > { %361 = vst [vmem:[%s1218_s30 + $0xf0] sm:$0xff] %v360_v30 }
  0x2f   : > { %363 = vst [vmem:[%s1218_s30 + $0xf8] sm:$0xff] %v362_v31 }
  0x30 PF: > { %p896_p6 = scmp.ge.s32.totalorder %s1143_s19, 1  ;;  %p384_p7 = scmp.lt.s32.totalorder %s1143_s19, 3 }
  0x32   : > { %p385_p8 = pnand %p896_p6, %p384_p7 }
  0x33   : > { %s391_s5 = sand.u32 (!%p385_p8), 1, %s1127_s15   ;;  %s898_s10 = sshll.u32 (!%p385_p8), %s1135_s17, 1 }
  0x34   : > { %388 = sbr.rel (%p385_p8) target bundleno = 234 (0xea), region = 70  ;;  %s897_s6 = sshll.u32 (!%p385_p8), %s391_s5, 8 }
  0x35   : > { %s1284_s7 = scalar_lea.vmem (!%p385_p8), [#allocation3], %s897_s6  ;;  %p450_p9 = scmp.lt.s32.totalorder (!%p385_p8), %s898_s10, 3 }
  0x39   : > { %v960_v32 = vld [vmem:[%s1284_s7 + $0x70] sm:$0xf]  ;;  %v1048_v33 = vld [vmem:[%s1284_s7 + $0x74] sm:$0xf0]  ;;  %v1047_v37 = vld [vmem:[%s1284_s7 + $0x74] sm:$0xf] }
  0x3a   : > { %v1024_v34 = vld [vmem:[%s1284_s7 + $0xf0] sm:$0xf]  ;;  %v961_v35 = vor.u32 %v1048_v33, %v960_v32  ;;  %v1064_v36 = vld [vmem:[%s1284_s7 + $0xf4] sm:$0xf0]  ;;  %v962_v38 = vld [vmem:[%s1284_s7 + $0x78] sm:$0xf0] }
  0x3b   : > { %v1025_v39 = vor.u32 %v1064_v36, %v1024_v34  ;;  %v965_v40 = vor.u32 %v1047_v37, %v962_v38  ;;  %v1063_v41 = vld [vmem:[%s1284_s7 + $0xf4] sm:$0xf]  ;;  %v1026_v42 = vld [vmem:[%s1284_s7 + $0xf8] sm:$0xf0]  ;;  %v952_v43 = vld [vmem:[%s1284_s7 + $0x60] sm:$0xf] }
  0x3c   : > { %677 = vmatpush.bf16.msra.mxu0 %v961_v35  ;;  %v1029_v44 = vor.u32 %v1063_v41, %v1026_v42  ;;  %v1046_v45 = vld [vmem:[%s1284_s7 + $0x64] sm:$0xf0]  ;;  %v1016_v46 = vld [vmem:[%s1284_s7 + $0xe0] sm:$0xf]  ;;  %v1045_v50 = vld [vmem:[%s1284_s7 + $0x64] sm:$0xf] }
  0x3d   : > { %v1062_v47 = vld [vmem:[%s1284_s7 + $0xe4] sm:$0xf0]  ;;  %690 = vmatpush.bf16.msra.mxu1 %v1025_v39  ;;  %703 = vmatpush.bf16.msra.mxu2 %v965_v40  ;;  %v953_v48 = vor.u32 %v1046_v45, %v952_v43  ;;  %v954_v51 = vld [vmem:[%s1284_s7 + $0x68] sm:$0xf0]  ;;  %v1061_v52 = vld [vmem:[%s1284_s7 + $0xe4] sm:$0xf] }
  0x3e   : > { %v1017_v49 = vor.u32 %v1062_v47, %v1016_v46  ;;  %716 = vmatpush.bf16.msra.mxu3 %v1029_v44  ;;  %v957_v53 = vor.u32 %v1045_v50, %v954_v51  ;;  %v1018_v54 = vld [vmem:[%s1284_s7 + $0xe8] sm:$0xf0]  ;;  %v944_v55 = vld [vmem:[%s1284_s7 + $0x50] sm:$0xf]  ;;  %v1044_v56 = vld [vmem:[%s1284_s7 + $0x54] sm:$0xf0] }
  0x3f   : > { %v1021_v57 = vor.u32 %v1061_v52, %v1018_v54  ;;  %v1008_v58 = vld [vmem:[%s1284_s7 + $0xd0] sm:$0xf]  ;;  %v1060_v59 = vld [vmem:[%s1284_s7 + $0xd4] sm:$0xf0]  ;;  %v1043_v60 = vld [vmem:[%s1284_s7 + $0x54] sm:$0xf]  ;;  %v945_v61 = vor.u32 %v1044_v56, %v944_v55 }
  0x40   : > { %678 = vmatpush.bf16.msra.mxu0 %v953_v48  ;;  %v946_v62 = vld [vmem:[%s1284_s7 + $0x58] sm:$0xf0]  ;;  %v1059_v63 = vld [vmem:[%s1284_s7 + $0xd4] sm:$0xf]  ;;  %v1009_v1 = vor.u32 %v1060_v59, %v1008_v58  ;;  %v936_v3 = vld [vmem:[%s1284_s7 + $0x40] sm:$0xf] }
  0x41   : > { %v1010_v0 = vld [vmem:[%s1284_s7 + $0xd8] sm:$0xf0]  ;;  %691 = vmatpush.bf16.msra.mxu1 %v1017_v49  ;;  %704 = vmatpush.bf16.msra.mxu2 %v957_v53  ;;  %v949_v2 = vor.u32 %v1043_v60, %v946_v62  ;;  %v1042_v4 = vld [vmem:[%s1284_s7 + $0x44] sm:$0xf0]  ;;  %v1000_v5 = vld [vmem:[%s1284_s7 + $0xc0] sm:$0xf] }
  0x42   : > { %717 = vmatpush.bf16.msra.mxu3 %v1021_v57  ;;  %v1013_v6 = vor.u32 %v1059_v63, %v1010_v0  ;;  %v1058_v7 = vld [vmem:[%s1284_s7 + $0xc4] sm:$0xf0]  ;;  %v1041_v8 = vld [vmem:[%s1284_s7 + $0x44] sm:$0xf]  ;;  %v938_v9 = vld [vmem:[%s1284_s7 + $0x48] sm:$0xf0]  ;;  %v937_v12 = vor.u32 %v1042_v4, %v936_v3 }
  0x43   : > { %v1057_v10 = vld [vmem:[%s1284_s7 + $0xc4] sm:$0xf]  ;;  %v1002_v11 = vld [vmem:[%s1284_s7 + $0xc8] sm:$0xf0]  ;;  %v1001_v13 = vor.u32 %v1058_v7, %v1000_v5  ;;  %v941_v14 = vor.u32 %v1041_v8, %v938_v9  ;;  %v928_v15 = vld [vmem:[%s1284_s7 + $0x30] sm:$0xf] }
  0x44   : > { %679 = vmatpush.bf16.msra.mxu0 %v945_v61  ;;  %v1040_v16 = vld [vmem:[%s1284_s7 + $0x34] sm:$0xf0]  ;;  %v992_v17 = vld [vmem:[%s1284_s7 + $0xb0] sm:$0xf]  ;;  %v1005_v18 = vor.u32 %v1057_v10, %v1002_v11  ;;  %v1039_v20 = vld [vmem:[%s1284_s7 + $0x34] sm:$0xf] }
  0x45   : > { %692 = vmatpush.bf16.msra.mxu1 %v1009_v1  ;;  %705 = vmatpush.bf16.msra.mxu2 %v949_v2  ;;  %v1056_v19 = vld [vmem:[%s1284_s7 + $0xb4] sm:$0xf0]  ;;  %v930_v21 = vld [vmem:[%s1284_s7 + $0x38] sm:$0xf0]  ;;  %v1055_v22 = vld [vmem:[%s1284_s7 + $0xb4] sm:$0xf]  ;;  %v929_v24 = vor.u32 %v1040_v16, %v928_v15 }
  0x46   : > { %718 = vmatpush.bf16.msra.mxu3 %v1013_v6  ;;  %v994_v23 = vld [vmem:[%s1284_s7 + $0xb8] sm:$0xf0]  ;;  %v993_v25 = vor.u32 %v1056_v19, %v992_v17  ;;  %v933_v26 = vor.u32 %v1039_v20, %v930_v21  ;;  %v920_v27 = vld [vmem:[%s1284_s7 + $0x20] sm:$0xf]  ;;  %v1038_v28 = vld [vmem:[%s1284_s7 + $0x24] sm:$0xf0] }
  0x47   : > { %v984_v29 = vld [vmem:[%s1284_s7 + $0xa0] sm:$0xf]  ;;  %v997_v30 = vor.u32 %v1055_v22, %v994_v23  ;;  %v1054_v31 = vld [vmem:[%s1284_s7 + $0xa4] sm:$0xf0]  ;;  %v1037_v32 = vld [vmem:[%s1284_s7 + $0x24] sm:$0xf]  ;;  %v921_v36 = vor.u32 %v1038_v28, %v920_v27 }
  0x48   : > { %680 = vmatpush.bf16.msra.mxu0 %v937_v12  ;;  %v922_v33 = vld [vmem:[%s1284_s7 + $0x28] sm:$0xf0]  ;;  %v1053_v34 = vld [vmem:[%s1284_s7 + $0xa4] sm:$0xf]  ;;  %v985_v37 = vor.u32 %v1054_v31, %v984_v29  ;;  %v912_v39 = vld [vmem:[%s1284_s7 + $0x10] sm:$0xf] }
  0x49   : > { %693 = vmatpush.bf16.msra.mxu1 %v1001_v13  ;;  %706 = vmatpush.bf16.msra.mxu2 %v941_v14  ;;  %v986_v35 = vld [vmem:[%s1284_s7 + $0xa8] sm:$0xf0]  ;;  %v925_v38 = vor.u32 %v1037_v32, %v922_v33  ;;  %v1036_v40 = vld [vmem:[%s1284_s7 + $0x14] sm:$0xf0]  ;;  %v976_v41 = vld [vmem:[%s1284_s7 + $0x90] sm:$0xf] }
  0x4a   : > { %719 = vmatpush.bf16.msra.mxu3 %v1005_v18  ;;  %v989_v42 = vor.u32 %v1053_v34, %v986_v35  ;;  %v1052_v43 = vld [vmem:[%s1284_s7 + $0x94] sm:$0xf0]  ;;  %v1035_v44 = vld [vmem:[%s1284_s7 + $0x14] sm:$0xf]  ;;  %v914_v45 = vld [vmem:[%s1284_s7 + $0x18] sm:$0xf0]  ;;  %v913_v48 = vor.u32 %v1036_v40, %v912_v39 }
  0x4b   : > { %v1051_v46 = vld [vmem:[%s1284_s7 + $0x94] sm:$0xf]  ;;  %v978_v47 = vld [vmem:[%s1284_s7 + $0x98] sm:$0xf0]  ;;  %v477_v49 = vld [vmem:[%s1378_s0] sm:$0xff]  ;;  %v977_v50 = vor.u32 %v1052_v43, %v976_v41  ;;  %v917_v51 = vor.u32 %v1035_v44, %v914_v45  ;;  %s1390_s10 = smov (!%p450_p9, %s898_s10), 3 }
  0x4c   : > { %681 = vmatpush.bf16.msra.mxu0 %v929_v24  ;;  %v904_v52 = vld [vmem:[%s1284_s7] sm:$0xf]  ;;  %v1034_v53 = vld [vmem:[%s1284_s7 + $0x4] sm:$0xf0]  ;;  %v981_v55 = vor.u32 %v1051_v46, %v978_v47  ;;  %v1033_v57 = vld [vmem:[%s1284_s7 + $0x4] sm:$0xf]  ;;  %v511_v61 = vunpack.c.l.b16 %v477_v49  ;;  %v512_v63 = vunpack.c.h.b16 %v477_v49  ;;  %s452_s13 = scalar_lea.vmem %s1380_s2, %s1390_s10  ;;  %s457_s21 = scalar_lea.vmem %s1381_s3, %s1390_s10 }
  0x4d   : > { %694 = vmatpush.bf16.msra.mxu1 %v993_v25  ;;  %707 = vmatpush.bf16.msra.mxu2 %v933_v26  ;;  %v968_v54 = vld [vmem:[%s1284_s7 + $0x80] sm:$0xf]  ;;  %v1050_v56 = vld [vmem:[%s1284_s7 + $0x84] sm:$0xf0]  ;;  %v906_v58 = vld [vmem:[%s1284_s7 + $0x8] sm:$0xf0]  ;;  %v905_v62 = vor.u32 %v1034_v53, %v904_v52 }
  0x4e   : > { %720 = vmatpush.bf16.msra.mxu3 %v997_v30  ;;  %v1049_v59 = vld [vmem:[%s1284_s7 + $0x84] sm:$0xf]  ;;  %v970_v60 = vld [vmem:[%s1284_s7 + $0x88] sm:$0xf0]  ;;  %v969_v0 = vor.u32 %v1050_v56, %v968_v54  ;;  %v909_v1 = vor.u32 %v1033_v57, %v906_v58  ;;  %v513_v3 = vpack.c.b16 %v511_v61, %v511_v61  ;;  %v514_v4 = vpack.c.b16 %v512_v63, %v512_v63  ;;  %v738_v6 = vld [vmem:[%s452_s13] sm:$0x3] }
  0x4f   : > { %v973_v2 = vor.u32 %v1049_v59, %v970_v60  ;;  %v740_v9 = vperm.slane %v738_v6, 0  ;;  %v746_v10 = vld [vmem:[%s457_s21] sm:$0x3]  ;;  %v741_v14 = vperm.slane %v738_v6, 1  ;;  %s901_s17 = sshll.u32 %s1390_s10, 2 }
  0x50   : > { %682 = vmatpush.bf16.msra.mxu0 %v921_v36  ;;  %v748_v12 = vperm.slane %v746_v10, 0  ;;  %v749_v18 = vperm.slane %v746_v10, 1  ;;  %s467_s25 = scalar_lea.vmem %s1382_s4, %s901_s17 }
  0x51   : > { %695 = vmatpush.bf16.msra.mxu1 %v985_v37  ;;  %708 = vmatpush.bf16.msra.mxu2 %v925_v38 }
  0x52   : > { %721 = vmatpush.bf16.msra.mxu3 %v989_v42 }
  0x54   : > { %683 = vmatpush.bf16.msra.mxu0 %v913_v48 }
  0x55   : > { %696 = vmatpush.bf16.msra.mxu1 %v977_v50  ;;  %709 = vmatpush.bf16.msra.mxu2 %v917_v51 }
  0x56   : > { %722 = vmatpush.bf16.msra.mxu3 %v981_v55 }
  0x58   : > { %684 = vmatpush.bf16.msra.mxu0 %v905_v62 }
  0x59   : > { %697 = vmatpush.bf16.msra.mxu1 %v969_v0  ;;  %710 = vmatpush.bf16.msra.mxu2 %v909_v1 }
  0x5a   : > { %723 = vmatpush.bf16.msra.mxu3 %v973_v2 }
  0x5b   : > { %685 = vmatmul.bf16.vlgmr.msra.gmra.mxu0 %v513_v3 }
  0x5c   : > { %698 = vmatmul.bf16.vlgmr.msra.gmra.mxu1 %v514_v4  ;;  %711 = vmatmul.bf16.vlgmr.msra.gmra.mxu2 %v513_v3 }
  0x5d   : > { %724 = vmatmul.bf16.vlgmr.msra.gmra.mxu3 %v514_v4 }
  0xd8   : > { %v686_v5 = vpop.f32.mrf.mxu0 }
  0xd9   : > { %v699_v7 = vpop.f32.mrf.mxu1 }
  0xda   : > { %v700_v8 = vadd.f32 %v699_v7, %v686_v5 }
  0xdc   : > { %v744_v11 = vmul.f32 %v740_v9, %v700_v8 }
  0xde   : > { %v752_v20 = vadd.f32 %v748_v12, %v744_v11 }
  0xdf   : > { %v712_v13 = vpop.f32.mrf.mxu2 }
  0xe0   : > { %v725_v15 = vpop.f32.mrf.mxu3  ;;  %v688_v16 = vpop.f32.mrf.mxu0 }
  0xe1   : > { %v726_v17 = vadd.f32 %v725_v15, %v712_v13  ;;  %v701_v19 = vpop.f32.mrf.mxu1 }
  0xe3   : > { %v745_v21 = vmul.f32 %v741_v14, %v726_v17 }
  0xe5   : > { %v753_v22 = vadd.f32 %v749_v18, %v745_v21 }
  0xe7   : > { %v754_v23 = vpack.c.bf16 %v753_v22, %v752_v20  ;;  %v714_v24 = vpop.f32.mrf.mxu2 }
  0xe8   : > { %v727_v25 = vpop.f32.mrf.mxu3 }
  0xe9   : > { %755 = vst [vmem:[%s467_s25] sm:$0xff] %v754_v23 }
  0xea PF: > { %s14_s19 = sadd.s32 1, %s1143_s19   ;;  %s1383_s15 = smov %s1131_s16 }
  0xeb   : > { %p11_p10 = scmp.ge.s32.totalorder %s14_s19, 4   ;;  %s1384_s16 = smov %s1205_s23 }
  0xec   : > { %s1385_s17 = smov %s1139_s18  ;;  %s1386_s18 = smov %s1388_s20 }
  0xed   :  { %13 = sbr.rel (!%p11_p10) target bundleno = 3 (0x3), region = 126 }

// kernel: forward.25
= control target key start
LH: loop header
LB: loop body
LE: loop exit
PB: predicated region body
PF: predicated region fallthrough
CT: control target
= control target key end

     0   :  { %v334_v26 = vmov 4.0   ;;  %s579_s0 = inlined_call_operand.vmem [shape: bf16[2,4,512], index: 0, kind: input, shape index: {}]   ;;  %s580_s1 = inlined_call_operand.vmem [shape: f32[512,100], index: 1, kind: input, shape index: {}]   ;;  %s581_s2 = inlined_call_operand.vmem [shape: f32[1,100], index: 2, kind: input, shape index: {}]   ;;  %s582_s3 = inlined_call_operand.hbm [shape: f32[2,100], index: 3, kind: output, shape index: {}]  }
   0x1   :  { %v167_v0 = vld [vmem:[%s580_s1 + $0x178] sm:$0xff]  ;;  %v166_v2 = vld [vmem:[%s580_s1 + $0x170] sm:$0xff]  ;;  %v165_v6 = vld [vmem:[%s580_s1 + $0x168] sm:$0xff]  ;;  %306 = vrcp.f32 %v334_v26 }
   0x2   :  { %v135_v1 = vld [vmem:[%s580_s1 + $0x78] sm:$0xff]  ;;  %245 = vmatpush.msra.mxu2 %v167_v0  ;;  %v134_v4 = vld [vmem:[%s580_s1 + $0x70] sm:$0xff]  ;;  %v133_v8 = vld [vmem:[%s580_s1 + $0x68] sm:$0xff] }
   0x3   :  { %205 = vmatpush.msra.mxu0 %v135_v1  ;;  %v183_v3 = vld [vmem:[%s580_s1 + $0x1f8] sm:$0xff]  ;;  %v182_v7 = vld [vmem:[%s580_s1 + $0x1f0] sm:$0xff]  ;;  %v181_v10 = vld [vmem:[%s580_s1 + $0x1e8] sm:$0xff] }
   0x4   :  { %v151_v5 = vld [vmem:[%s580_s1 + $0xf8] sm:$0xff]  ;;  %265 = vmatpush.msra.mxu3 %v183_v3  ;;  %246 = vmatpush.msra.mxu2 %v166_v2  ;;  %v150_v9 = vld [vmem:[%s580_s1 + $0xf0] sm:$0xff]  ;;  %v164_v11 = vld [vmem:[%s580_s1 + $0x160] sm:$0xff] }
   0x5   :  { %225 = vmatpush.msra.mxu1 %v151_v5  ;;  %206 = vmatpush.msra.mxu0 %v134_v4  ;;  %v132_v12 = vld [vmem:[%s580_s1 + $0x60] sm:$0xff]  ;;  %v149_v13 = vld [vmem:[%s580_s1 + $0xe8] sm:$0xff]  ;;  %v163_v16 = vld [vmem:[%s580_s1 + $0x158] sm:$0xff] }
   0x6   :  { %266 = vmatpush.msra.mxu3 %v182_v7  ;;  %247 = vmatpush.msra.mxu2 %v165_v6  ;;  %v180_v14 = vld [vmem:[%s580_s1 + $0x1e0] sm:$0xff]  ;;  %v131_v17 = vld [vmem:[%s580_s1 + $0x58] sm:$0xff]  ;;  %v162_v20 = vld [vmem:[%s580_s1 + $0x150] sm:$0xff] }
   0x7   :  { %226 = vmatpush.msra.mxu1 %v150_v9  ;;  %207 = vmatpush.msra.mxu0 %v133_v8  ;;  %v148_v15 = vld [vmem:[%s580_s1 + $0xe0] sm:$0xff]  ;;  %v179_v18 = vld [vmem:[%s580_s1 + $0x1d8] sm:$0xff]  ;;  %v130_v21 = vld [vmem:[%s580_s1 + $0x50] sm:$0xff]  ;;  %v464_v37 = vpop.eup %306 }
   0x8   :  { %267 = vmatpush.msra.mxu3 %v181_v10  ;;  %248 = vmatpush.msra.mxu2 %v164_v11  ;;  %v147_v19 = vld [vmem:[%s580_s1 + $0xd8] sm:$0xff]  ;;  %v178_v22 = vld [vmem:[%s580_s1 + $0x1d0] sm:$0xff]  ;;  %v161_v24 = vld [vmem:[%s580_s1 + $0x148] sm:$0xff]  ;;  %v106_v47 = vmul.f32 4.0, %v464_v37 }
   0x9   :  { %227 = vmatpush.msra.mxu1 %v149_v13  ;;  %208 = vmatpush.msra.mxu0 %v132_v12  ;;  %v146_v23 = vld [vmem:[%s580_s1 + $0xd0] sm:$0xff]  ;;  %v129_v25 = vld [vmem:[%s580_s1 + $0x48] sm:$0xff]  ;;  %v160_v29 = vld [vmem:[%s580_s1 + $0x140] sm:$0xff] }
   0xa   :  { %268 = vmatpush.msra.mxu3 %v180_v14  ;;  %249 = vmatpush.msra.mxu2 %v163_v16  ;;  %v177_v27 = vld [vmem:[%s580_s1 + $0x1c8] sm:$0xff]  ;;  %v128_v30 = vld [vmem:[%s580_s1 + $0x40] sm:$0xff]  ;;  %v159_v33 = vld [vmem:[%s580_s1 + $0x138] sm:$0xff] }
   0xb   :  { %228 = vmatpush.msra.mxu1 %v148_v15  ;;  %209 = vmatpush.msra.mxu0 %v131_v17  ;;  %v145_v28 = vld [vmem:[%s580_s1 + $0xc8] sm:$0xff]  ;;  %v176_v31 = vld [vmem:[%s580_s1 + $0x1c0] sm:$0xff]  ;;  %v127_v34 = vld [vmem:[%s580_s1 + $0x38] sm:$0xff] }
   0xc   :  { %269 = vmatpush.msra.mxu3 %v179_v18  ;;  %250 = vmatpush.msra.mxu2 %v162_v20  ;;  %v144_v32 = vld [vmem:[%s580_s1 + $0xc0] sm:$0xff]  ;;  %v175_v35 = vld [vmem:[%s580_s1 + $0x1b8] sm:$0xff]  ;;  %v158_v38 = vld [vmem:[%s580_s1 + $0x130] sm:$0xff] }
   0xd   :  { %229 = vmatpush.msra.mxu1 %v147_v19  ;;  %210 = vmatpush.msra.mxu0 %v130_v21  ;;  %v143_v36 = vld [vmem:[%s580_s1 + $0xb8] sm:$0xff]  ;;  %v126_v39 = vld [vmem:[%s580_s1 + $0x30] sm:$0xff]  ;;  %v157_v42 = vld [vmem:[%s580_s1 + $0x128] sm:$0xff] }
   0xe   :  { %270 = vmatpush.msra.mxu3 %v178_v22  ;;  %251 = vmatpush.msra.mxu2 %v161_v24  ;;  %v174_v40 = vld [vmem:[%s580_s1 + $0x1b0] sm:$0xff]  ;;  %v125_v43 = vld [vmem:[%s580_s1 + $0x28] sm:$0xff]  ;;  %v156_v44 = vld [vmem:[%s580_s1 + $0x120] sm:$0xff] }
   0xf   :  { %230 = vmatpush.msra.mxu1 %v146_v23  ;;  %211 = vmatpush.msra.mxu0 %v129_v25  ;;  %v142_v41 = vld [vmem:[%s580_s1 + $0xb0] sm:$0xff]  ;;  %v173_v45 = vld [vmem:[%s580_s1 + $0x1a8] sm:$0xff]  ;;  %v124_v48 = vld [vmem:[%s580_s1 + $0x20] sm:$0xff] }
  0x10   :  { %271 = vmatpush.msra.mxu3 %v177_v27  ;;  %252 = vmatpush.msra.mxu2 %v160_v29  ;;  %v141_v46 = vld [vmem:[%s580_s1 + $0xa8] sm:$0xff]  ;;  %v15_v49 = vld [vmem:[%s579_s0] sm:$0xff]  ;;  %v155_v51 = vld [vmem:[%s580_s1 + $0x118] sm:$0xff] }
  0x11   :  { %231 = vmatpush.msra.mxu1 %v145_v28  ;;  %212 = vmatpush.msra.mxu0 %v128_v30  ;;  %v16_v50 = vld [vmem:[%s579_s0 + $0x8] sm:$0xff]  ;;  %v172_v52 = vld [vmem:[%s580_s1 + $0x1a0] sm:$0xff]  ;;  %v18_v54 = vunpack.c.h.bf16 %v15_v49  ;;  %v17_v56 = vunpack.c.l.bf16 %v15_v49  ;;  %v123_v57 = vld [vmem:[%s580_s1 + $0x18] sm:$0xff] }
  0x12   :  { %272 = vmatpush.msra.mxu3 %v176_v31  ;;  %253 = vmatpush.msra.mxu2 %v159_v33  ;;  %v140_v53 = vld [vmem:[%s580_s1 + $0xa0] sm:$0xff]  ;;  %v20_v55 = vunpack.c.h.bf16 %v16_v50  ;;  %v19_v58 = vunpack.c.l.bf16 %v16_v50 }
  0x13   :  { %232 = vmatpush.msra.mxu1 %v144_v32  ;;  %213 = vmatpush.msra.mxu0 %v127_v34 }
  0x14   :  { %273 = vmatpush.msra.mxu3 %v175_v35  ;;  %254 = vmatpush.msra.mxu2 %v158_v38 }
  0x15   :  { %233 = vmatpush.msra.mxu1 %v143_v36  ;;  %214 = vmatpush.msra.mxu0 %v126_v39 }
  0x16   :  { %274 = vmatpush.msra.mxu3 %v174_v40  ;;  %255 = vmatpush.msra.mxu2 %v157_v42 }
  0x17   :  { %234 = vmatpush.msra.mxu1 %v142_v41  ;;  %215 = vmatpush.msra.mxu0 %v125_v43 }
  0x18   :  { %275 = vmatpush.msra.mxu3 %v173_v45 }
  0x19   :  { %235 = vmatpush.msra.mxu1 %v141_v46 }
  0x1a   :  { %8 = vsyncpa [#allocation3], 0  ;;  %256 = vmatpush.msra.mxu2 %v156_v44  ;;  %216 = vmatpush.msra.mxu0 %v124_v48  ;;  %v171_v59 = vld [vmem:[%s580_s1 + $0x198] sm:$0xff]  ;;  %27 = vst [vmem:[#allocation1 + $0x10] ss:$2 sm:$0xff] %v18_v54  ;;  %v107_v61 = vsub.f32 1.0, %v106_v47  ;;  %vm110_vm1 = vweird.f32 %v464_v37 }
  0x1b   :  { %v139_v60 = vld [vmem:[%s580_s1 + $0x98] sm:$0xff]  ;;  %276 = vmatpush.msra.mxu3 %v172_v52  ;;  %236 = vmatpush.msra.mxu1 %v140_v53  ;;  %v154_v62 = vld [vmem:[%s580_s1 + $0x110] sm:$0xff]  ;;  %35 = vst [vmem:[#allocation1 + $0x30] ss:$2 sm:$0xff] %v20_v55  ;;  %v153_v2 = vld [vmem:[%s580_s1 + $0x108] sm:$0xff]  ;;  %vm48_vm0 = vcmask 1043456  }
  0x1c   :  { %v122_v63 = vld [vmem:[%s580_s1 + $0x10] sm:$0xff]  ;;  %257 = vmatpush.msra.mxu2 %v155_v51  ;;  %217 = vmatpush.msra.mxu0 %v123_v57  ;;  %25 = vst [vmem:[#allocation1] ss:$2 sm:$0xff] %v17_v56  ;;  %v121_v3 = vld [vmem:[%s580_s1 + $0x8] sm:$0xff]  ;;  %v108_v5 = vmul.f32 %v464_v37, %v107_v61  ;;  %v152_v7 = vld [vmem:[%s580_s1 + $0x100] sm:$0xff]  ;;  %vm196_vm2 = vcmask 1041409  }
  0x1d   :  { %v170_v0 = vld [vmem:[%s580_s1 + $0x190] sm:$0xff]  ;;  %277 = vmatpush.msra.mxu3 %v171_v59  ;;  %237 = vmatpush.msra.mxu1 %v139_v60  ;;  %33 = vst [vmem:[#allocation1 + $0x20] ss:$2 sm:$0xff] %v19_v58  ;;  %v169_v4 = vld [vmem:[%s580_s1 + $0x188] sm:$0xff]  ;;  %v120_v8 = vld [vmem:[%s580_s1] sm:$0xff]  ;;  %s335_s8 = smov [#allocation2]  }
  0x1e   :  { %v138_v1 = vld [vmem:[%s580_s1 + $0x90] sm:$0xff]  ;;  %258 = vmatpush.msra.mxu2 %v154_v62  ;;  %218 = vmatpush.msra.mxu0 %v122_v63  ;;  %v137_v6 = vld [vmem:[%s580_s1 + $0x88] sm:$0xff]  ;;  %v168_v9 = vld [vmem:[%s580_s1 + $0x180] sm:$0xff]  ;;  %v109_v15 = vadd.f32 %v464_v37, %v108_v5  ;;  %s292_s9 = sshll.u32 %s335_s8, 4  ;;  %s294_s12 = sshll.u32 %s582_s3, 4  ;;  %vm285_vm3 = vcmask 812032   ;;  %s293_s9 = int_to_ptr.vmem [resolvable:$true] %s292_s9  ;;  %s295_s12 = int_to_ptr.hbm [resolvable:$true] %s294_s12 }
  0x1f   :  { %278 = vmatpush.msra.mxu3 %v170_v0  ;;  %238 = vmatpush.msra.mxu1 %v138_v1  ;;  %v136_v10 = vld [vmem:[%s580_s1 + $0x80] sm:$0xff] }
  0x20   :  { %259 = vmatpush.msra.mxu2 %v153_v2  ;;  %219 = vmatpush.msra.mxu0 %v121_v3  ;;  %v111_v30 = vsel %vm110_vm1, %v464_v37, %v109_v15 }
  0x21   :  { %279 = vmatpush.msra.mxu3 %v169_v4  ;;  %v30_v11 = vld.sshfl [vmem:[#allocation1 + $0x10] sm:$0xff pattern:$0x75316420]  ;;  %239 = vmatpush.msra.mxu1 %v137_v6  ;;  %v31_v12 = vld.sshfl [vmem:[#allocation1 + $0x18] sm:$0xff pattern:$0x75316420] }
  0x22   :  { %260 = vmatpush.msra.mxu2 %v152_v7  ;;  %v38_v13 = vld.sshfl [vmem:[#allocation1 + $0x30] sm:$0xff pattern:$0x75316420]  ;;  %v63_v14 = vsel %vm48_vm0, %v30_v11, 0.0  ;;  %220 = vmatpush.msra.mxu0 %v120_v8  ;;  %v70_v16 = vsel %vm48_vm0, %v31_v12, 0.0 }
  0x23   :  { %v64_v17 = vrot.slane %v63_v14, 4  ;;  %v91_v18 = vsel %vm48_vm0, %v38_v13, 0.0  ;;  %280 = vmatpush.msra.mxu3 %v168_v9  ;;  %v28_v19 = vld.sshfl [vmem:[#allocation1] sm:$0xff pattern:$0x75316420]  ;;  %v71_v20 = vrot.slane %v70_v16, 4  ;;  %240 = vmatpush.msra.mxu1 %v136_v10 }
  0x24   :  { %v92_v21 = vrot.slane %v91_v18, 4  ;;  %v36_v22 = vld.sshfl [vmem:[#allocation1 + $0x20] sm:$0xff pattern:$0x75316420]  ;;  %v49_v23 = vsel %vm48_vm0, %v28_v19, 0.0 }
  0x25   :  { %v65_v24 = vadd.f32 %v64_v17, %v63_v14  ;;  %v50_v25 = vrot.slane %v49_v23, 4  ;;  %v77_v26 = vsel %vm48_vm0, %v36_v22, 0.0  ;;  %v39_v27 = vld.sshfl [vmem:[#allocation1 + $0x38] sm:$0xff pattern:$0x75316420]  ;;  %v72_v28 = vadd.f32 %v71_v20, %v70_v16 }
  0x26   :  { %v93_v29 = vadd.f32 %v92_v21, %v91_v18  ;;  %v78_v31 = vrot.slane %v77_v26, 4  ;;  %v98_v32 = vsel %vm48_vm0, %v39_v27, 0.0  ;;  %v29_v33 = vld.sshfl [vmem:[#allocation1 + $0x8] sm:$0xff pattern:$0x75316420] }
  0x27   :  { %v66_v34 = vrot.slane %v65_v24, 2  ;;  %v51_v35 = vadd.f32 %v50_v25, %v49_v23  ;;  %v73_v36 = vrot.slane %v72_v28, 2  ;;  %v99_v38 = vrot.slane %v98_v32, 4  ;;  %v37_v39 = vld.sshfl [vmem:[#allocation1 + $0x28] sm:$0xff pattern:$0x75316420] }
  0x28   :  { %v94_v40 = vrot.slane %v93_v29, 2  ;;  %v79_v41 = vadd.f32 %v78_v31, %v77_v26  ;;  %v56_v42 = vsel %vm48_vm0, %v29_v33, 0.0  ;;  %v84_v43 = vsel %vm48_vm0, %v37_v39, 0.0  ;;  %v305_v25 = vld [vmem:[%s581_s2] ss:$0 sm:$0xff] }
  0x29   :  { %v67_v44 = vadd.f32 %v66_v34, %v65_v24  ;;  %v52_v45 = vrot.slane %v51_v35, 2  ;;  %v74_v46 = vadd.f32 %v73_v36, %v72_v28  ;;  %v100_v47 = vadd.f32 %v99_v38, %v98_v32 }
  0x2a   :  { %v95_v37 = vadd.f32 %v94_v40, %v93_v29  ;;  %v80_v48 = vrot.slane %v79_v41, 2  ;;  %v57_v49 = vrot.slane %v56_v42, 4  ;;  %v85_v50 = vrot.slane %v84_v43, 4 }
  0x2b   :  { %v68_v51 = vrot.slane %v67_v44, 1  ;;  %v53_v52 = vadd.f32 %v52_v45, %v51_v35  ;;  %v75_v53 = vrot.slane %v74_v46, 1  ;;  %v101_v54 = vrot.slane %v100_v47, 2 }
  0x2c   :  { %v96_v55 = vrot.slane %v95_v37, 1  ;;  %v81_v56 = vadd.f32 %v80_v48, %v79_v41  ;;  %v58_v57 = vadd.f32 %v57_v49, %v56_v42  ;;  %v86_v58 = vadd.f32 %v85_v50, %v84_v43 }
  0x2d   :  { %v69_v59 = vadd.f32 %v68_v51, %v67_v44  ;;  %v54_v60 = vrot.slane %v53_v52, 1  ;;  %v76_v61 = vadd.f32 %v75_v53, %v74_v46  ;;  %v102_v62 = vadd.f32 %v101_v54, %v100_v47 }
  0x2e   :  { %v97_v63 = vadd.f32 %v96_v55, %v95_v37  ;;  %v82_v0 = vrot.slane %v81_v56, 1  ;;  %v59_v1 = vrot.slane %v58_v57, 2  ;;  %v87_v2 = vrot.slane %v86_v58, 2 }
  0x2f   :  { %v114_v3 = vmul.f32 %v111_v30, %v69_v59  ;;  %v55_v4 = vadd.f32 %v54_v60, %v53_v52  ;;  %v103_v5 = vrot.slane %v102_v62, 1  ;;  %v115_v12 = vmul.f32 %v111_v30, %v76_v61 }
  0x30   :  { %v118_v6 = vmul.f32 %v111_v30, %v97_v63  ;;  %v83_v7 = vadd.f32 %v82_v0, %v81_v56  ;;  %v60_v8 = vadd.f32 %v59_v1, %v58_v57  ;;  %v88_v9 = vadd.f32 %v87_v2, %v86_v58 }
  0x31   :  { %v112_v10 = vmul.f32 %v111_v30, %v55_v4  ;;  %v104_v11 = vadd.f32 %v103_v5, %v102_v62 }
  0x32   :  { %v199_v13 = vsel %vm196_vm2, %v118_v6, %v114_v3  ;;  %v116_v14 = vmul.f32 %v111_v30, %v83_v7  ;;  %v61_v15 = vrot.slane %v60_v8, 1  ;;  %v89_v16 = vrot.slane %v88_v9, 1 }
  0x33   :  { %261 = vmatmul.f32.vlgmr.msra.gmra.mxu2 %v199_v13  ;;  %v119_v17 = vmul.f32 %v111_v30, %v104_v11 }
  0x34   :  { %v197_v18 = vsel %vm196_vm2, %v116_v14, %v112_v10  ;;  %v62_v19 = vadd.f32 %v61_v15, %v60_v8  ;;  %v90_v20 = vadd.f32 %v89_v16, %v88_v9 }
  0x35   :  { %221 = vmatmul.f32.vlgmr.msra.gmra.mxu0 %v197_v18  ;;  %v200_v21 = vsel %vm196_vm2, %v119_v17, %v115_v12 }
  0x36   :  { %281 = vmatmul.f32.vlgmr.msra.gmra.mxu3 %v200_v21  ;;  %v113_v22 = vmul.f32 %v111_v30, %v62_v19  ;;  %v117_v23 = vmul.f32 %v111_v30, %v90_v20 }
  0x38   :  { %v198_v24 = vsel %vm196_vm2, %v117_v23, %v113_v22 }
  0x39   :  { %241 = vmatmul.f32.vlgmr.msra.gmra.mxu1 %v198_v24 }
  0xb2   :  { %v222_v26 = vpop.f32.mrf.mxu0 }
  0xb3   :  { %v223_v27 = vadd.f32 %v305_v25, %v222_v26 }
  0xb6   :  { %v242_v28 = vpop.f32.mrf.mxu1  ;;  %v262_v29 = vpop.f32.mrf.mxu2 }
  0xb7   :  { %v243_v31 = vadd.f32 %v242_v28, %v223_v27 }
  0xb9   :  { %v263_v32 = vadd.f32 %v262_v29, %v243_v31  ;;  %v282_v30 = vpop.f32.mrf.mxu3 }
  0xbb   :  { %v283_v33 = vadd.f32 %v282_v30, %v263_v32 }
  0xbd   :  { %286 = vst.msk [vmem:[#allocation2] sm:$0x3] %vm285_vm3, %v283_v33 }
  0xbe   :  { %297 = dma.vmem_to_hbm [thread:$0]  %s293_s9, 32, %s295_s12, [#allocation3]  }
  0xbf   :  { %332 = dma.done.wait [#allocation3], 32  }
  0xc0   :  { %333 = vsyncadd [#allocation3], 4294967264 }
  0xc1   :  { %302 = vsyncpa [#allocation3], 1 }

</bundles_post_ra>
